<compile_context>
chip_gen: v7x
topology: tpu7x:2x2x1
jax: 0.10.0
libtpu: 0.0.40
codegen_flags: <defaults>
</compile_context>

<pallas_src>
import functools
import math

import jax
import jax.numpy as jnp
from jax import lax
from jax.experimental import pallas as pl
from jax.experimental.pallas import tpu as pltpu

_VQ_CHUNK = 512  # codebook codes processed per fori_loop step (vreg-sized tile)


# ----------------------------------------------------------------------------
# In-kernel helpers (operate on values, not refs)
# ----------------------------------------------------------------------------
def _layer_norm(v, g, b):
    m = jnp.mean(v, axis=-1, keepdims=True)
    var = jnp.mean(jnp.square(v - m), axis=-1, keepdims=True)
    return (v - m) * lax.rsqrt(var + 1e-5) * g + b


def _attn_ffn_block(x, heads, wqkv, wo, g1, b1, w1, bb1, w2, bb2, g2, b2,
                    kv_valid=None):
    """Pre-LN self-attention + dense FF on a [S, D] f32 value (batched heads).

    wqkv is stored [3D, D] so the projection contracts the lane dim of both
    operands (no in-kernel relayout of the weight).
    """
    S, D = x.shape
    dh = D // heads

    xl = _layer_norm(x, g1, b1).astype(jnp.bfloat16)
    # qkv projection, produced already transposed: [3D, S]
    qkvT = lax.dot_general(wqkv, xl, (((1,), (1,)), ((), ())),
                           preferred_element_type=jnp.float32)
    # no-op reshapes (split second-minor dim, lane dim untouched)
    qh = qkvT[0:D].reshape(heads, dh, S).astype(jnp.bfloat16)
    kh = qkvT[D:2 * D].reshape(heads, dh, S).astype(jnp.bfloat16)
    vh = qkvT[2 * D:3 * D].reshape(heads, dh, S).astype(jnp.bfloat16)

    s = jnp.einsum('hdq,hdk->hqk', qh, kh,
                   preferred_element_type=jnp.float32) * (1.0 / math.sqrt(dh))
    if kv_valid is not None:                       # mask padded key rows
        col = lax.broadcasted_iota(jnp.int32, s.shape, 2)
        s = jnp.where(col < kv_valid, s, -1e30)
    s = s - jnp.max(s, axis=-1, keepdims=True)
    p = jnp.exp(s)
    p = p * pl.reciprocal(jnp.sum(p, axis=-1, keepdims=True), approx=True)

    ctxT = jnp.einsum('hdk,hqk->hdq', vh, p.astype(jnp.bfloat16),
                      preferred_element_type=jnp.float32)       # [H, dh, S]
    ctx = ctxT.reshape(D, S).astype(jnp.bfloat16)               # no-op merge
    attn = lax.dot_general(ctx, wo, (((0,), (0,)), ((), ())),
                           preferred_element_type=jnp.float32)  # [S, D]
    x = x + attn

    h2 = _layer_norm(x, g2, b2).astype(jnp.bfloat16)
    # TODO(synk): MoE feed-forward of TransformerSeq2SeqBasic replaced by dense FF.
    ff = jnp.maximum(
        jnp.dot(h2, w1, preferred_element_type=jnp.float32) + bb1, 0.0)
    ff = jnp.dot(ff.astype(jnp.bfloat16), w2,
                 preferred_element_type=jnp.float32) + bb2
    return x + ff


def _vq_lookup(z, cb_ref, cbsq_ref):
    """Replace each row of z [T, D] by its nearest codebook vector.

    Chunked scan over the codebook via lax.fori_loop carrying (best_d, best_v);
    within a chunk the winner is the FIRST index attaining the minimum
    distance (torch.argmin semantics), across chunks a strict `<` keeps the
    earlier chunk on ties.
    """
    T, D = z.shape
    N = cb_ref.shape[0]
    n_chunks = N // _VQ_CHUNK
    zb = z.astype(jnp.bfloat16)

    def body(c, carry):
        best_d, best_v = carry
        c0 = pl.multiple_of(c * _VQ_CHUNK, _VQ_CHUNK)
        cb_c = cb_ref[pl.ds(c0, _VQ_CHUNK), :]                 # [C, D] bf16
        sq_c = cbsq_ref[:, pl.ds(c0, _VQ_CHUNK)]               # [1, C] f32
        xc = lax.dot_general(zb, cb_c, (((1,), (1,)), ((), ())),
                             preferred_element_type=jnp.float32)   # [T, C]
        d = sq_c - 2.0 * xc           # ||z||^2 dropped (constant per row)
        dmin = jnp.min(d, axis=-1, keepdims=True)              # [T, 1]
        # first index attaining the minimum (argmin-first semantics)
        col = lax.broadcasted_iota(jnp.int32, d.shape, 1)
        idx = jnp.min(jnp.where(d <= dmin, col, _VQ_CHUNK),
                      axis=-1, keepdims=True)                   # [T, 1]
        oh = (col == idx).astype(jnp.bfloat16)                  # [T, C]
        v = jnp.dot(oh, cb_c, preferred_element_type=jnp.float32)   # [T, D]
        take = dmin < best_d           # strict: earlier chunk wins on ties
        best_v = jnp.where(take, v, best_v)
        best_d = jnp.where(take, dmin, best_d)
        return best_d, best_v

    best_d0 = jnp.full((T, 1), 1e30, jnp.float32)
    best_v0 = jnp.zeros((T, D), jnp.float32)
    _, best_v = lax.fori_loop(0, n_chunks, body, (best_d0, best_v0))
    return best_v


# ----------------------------------------------------------------------------
# Fused forward kernel (one grid step per batch element)
# ----------------------------------------------------------------------------
def _fused_kernel(heads, n_tok_real,
                  patches_ref, origT_ref,
                  pw_ref, pb_ref, ltok_ref,
                  e_wqkv_ref, e_wo_ref, e_g1_ref, e_b1_ref, e_w1_ref,
                  e_bb1_ref, e_w2_ref, e_bb2_ref, e_g2_ref, e_b2_ref,
                  cb_ref, cbsq_ref,
                  mem_ref,
                  d_wqkv_ref, d_wo_ref, d_g1_ref, d_b1_ref, d_w1_ref,
                  d_bb1_ref, d_w2_ref, d_bb2_ref, d_g2_ref, d_b2_ref,
                  trw_ref, trb_ref,
                  detokT_ref,
                  wf1T_ref, wf2T_ref, bfT_ref, afT_ref, bfoldT_ref,
                  cfT_ref, wo2T_ref,
                  o_ref):
    # ---- titok.tokenize (stand-in): patch embed -> latent encoder -> VQ ----
    pe = jnp.dot(patches_ref[...], pw_ref[...],
                 preferred_element_type=jnp.float32) + pb_ref[...]   # [8, D]
    lat0 = ltok_ref[...]                                             # [T, D]
    n_lat = lat0.shape[0]
    seq = jnp.concatenate([lat0, pe], axis=0)                        # [T+8, D]
    seq = _attn_ffn_block(seq, heads,
                          e_wqkv_ref[...], e_wo_ref[...],
                          e_g1_ref[...], e_b1_ref[...],
                          e_w1_ref[...], e_bb1_ref[...],
                          e_w2_ref[...], e_bb2_ref[...],
                          e_g2_ref[...], e_b2_ref[...],
                          kv_valid=n_tok_real)
    lat = _vq_lookup(seq[0:n_lat], cb_ref, cbsq_ref)                 # [T, D]

    # ---- TransformerSeq2SeqBasic (stand-in): memory tokens + attn stack ----
    mem = mem_ref[...]                                               # [M, D]
    t = jnp.concatenate([mem, lat], axis=0)                          # [M+T, D]
    depth = d_wqkv_ref.shape[0]
    for i in range(depth):                       # unrolled in-kernel depth loop
        t = _attn_ffn_block(t, heads,
                            d_wqkv_ref[i], d_wo_ref[i],
                            d_g1_ref[i], d_b1_ref[i],
                            d_w1_ref[i], d_bb1_ref[i],
                            d_w2_ref[i], d_bb2_ref[i],
                            d_g2_ref[i], d_b2_ref[i])
    t = t[mem.shape[0]:]                                             # [T, D]
    t = jnp.dot(t.astype(jnp.bfloat16), trw_ref[...],
                preferred_element_type=jnp.float32) + trb_ref[...]

    # ---- titok.codebook_ids_to_images (stand-in): re-quantize + detokenize -
    q = _vq_lookup(t, cb_ref, cbsq_ref)                              # [T, D]
    # lane-dense detokenization: decT = q^T @ detok^T -> [D, HW] (HW on lanes)
    decT = lax.dot_general(q.astype(jnp.bfloat16), detokT_ref[...],
                           (((0,), (0,)), ((), ())),
                           preferred_element_type=jnp.float32)       # [D, HW]
    decT_r = jnp.maximum(decT, 0.0)

    # ---- exact module tail (all lane-dense over HW): embed_angles /
    #      final_ff / gated activation / output projection -----------------
    origT = origT_ref[...]                                           # [C, HW]
    px = origT[0:1, :]
    py = origT[1:2, :]
    sa = jnp.sin(px) * jnp.cos(px + 0.1)
    ca = jnp.sin(py) * jnp.cos(px - 0.1)
    row = lax.broadcasted_iota(jnp.int32, origT.shape, 0)
    feT = jnp.where(row == 0, sa, jnp.where(row == 1, ca, origT))    # [C, HW]

    # hT is only needed for the relu() branch of the gated activation; the
    # linear branch is pre-folded (afT/bfoldT/cfT) in the wrapper.
    hT = (jnp.dot(wf1T_ref[...], decT_r, preferred_element_type=jnp.float32)
          + jnp.dot(wf2T_ref[...], feT, preferred_element_type=jnp.float32)
          + bfT_ref[...])                                            # [12, HW]
    outT = (jnp.dot(afT_ref[...], decT_r, preferred_element_type=jnp.float32)
            + jnp.dot(bfoldT_ref[...], feT, preferred_element_type=jnp.float32)
            + jnp.dot(wo2T_ref[...], jnp.maximum(hT, 0.0),
                      preferred_element_type=jnp.float32)
            + cfT_ref[...])                                          # [od, HW]
    o_ref[...] = outT                               # 2 full vregs, unmasked vst


# ----------------------------------------------------------------------------
# Wrapper: XLA does only layout plumbing (patchify / transpose / reshape back).
# ----------------------------------------------------------------------------
def forward(params, x, *, heads, patch_size):
    B, H, W, C = x.shape
    P = patch_size
    od = params['tail_cfT'].shape[0]

    gh, gw = H // P, W // P
    patches = x.reshape(B, gh, P, gw, P, C).transpose(0, 1, 3, 2, 4, 5)
    patches = patches.reshape(B, gh * gw, P * P * C)
    n_patches = gh * gw
    pad = (-n_patches) % 8                     # pad patch rows to sublane tile
    if pad:
        patches = jnp.concatenate(
            [patches, jnp.zeros((B, pad, P * P * C), patches.dtype)], axis=1)
    patches = patches.astype(jnp.bfloat16)
    origT = x.reshape(B, H * W, C).transpose(0, 2, 1)    # [B, C, HW] lane-dense

    n_tok_real = params['latent_tokens'].shape[0] + n_patches

    weights = [
        params['patch_w'], params['patch_b'], params['latent_tokens'],
        params['enc_wqkv'], params['enc_wo'],
        params['enc_g1'], params['enc_b1'],
        params['enc_w1'], params['enc_bb1'],
        params['enc_w2'], params['enc_bb2'],
        params['enc_g2'], params['enc_b2'],
        params['codebook'], params['cbsq'],
        params['memory_tokens'],
        params['dec_wqkv'], params['dec_wo'],
        params['dec_g1'], params['dec_b1'],
        params['dec_w1'], params['dec_bb1'],
        params['dec_w2'], params['dec_bb2'],
        params['dec_g2'], params['dec_b2'],
        params['tr_out_w'], params['tr_out_b'],
        params['detok_mT'],
        params['tail_wf1T'], params['tail_wf2T'], params['tail_bfT'],
        params['tail_afT'], params['tail_bfoldT'], params['tail_cfT'],
        params['tail_wo2T'],
    ]

    in_specs = [
        pl.BlockSpec((None, patches.shape[1], P * P * C), lambda b: (b, 0, 0)),
        pl.BlockSpec((None, C, H * W), lambda b: (b, 0, 0)),
    ] + [pl.BlockSpec(w.shape, lambda b, n=w.ndim: (0,) * n) for w in weights]

    kern = functools.partial(_fused_kernel, heads, n_tok_real)
    out_t = pl.pallas_call(
        kern,
        out_shape=jax.ShapeDtypeStruct((B, od, H * W), jnp.float32),
        grid=(B,),
        in_specs=in_specs,
        out_specs=pl.BlockSpec((None, od, H * W), lambda b: (b, 0, 0)),
        compiler_params=pltpu.CompilerParams(
            dimension_semantics=("parallel",),        # batch -> both v7x TCs
            vmem_limit_bytes=16 * 1024 * 1024),
    )(patches, origT, *weights)
    # [B, od, HW] -> [B, H, W, od]
    return out_t.transpose(0, 2, 1).reshape(B, H, W, od)


# ----------------------------------------------------------------------------
# Parameter initialization (deterministic, synthetic)
# ----------------------------------------------------------------------------
def _init_block(key, D, F):
    ks = jax.random.split(key, 4)
    sd = 1.0 / math.sqrt(D)
    return dict(
        wqkv=jax.random.normal(ks[0], (D, 3 * D)) * sd,
        wo=jax.random.normal(ks[1], (D, D)) * sd,
        g1=jnp.ones((1, D)), b1=jnp.zeros((1, D)),
        w1=jax.random.normal(ks[2], (D, F)) * sd, bb1=jnp.zeros((1, F)),
        w2=jax.random.normal(ks[3], (F, D)) / math.sqrt(F), bb2=jnp.zeros((1, D)),
        g2=jnp.ones((1, D)), b2=jnp.zeros((1, D)),
    )


def init_params(key, *, input_dim, output_dim, inner_dim, model_depth,
                memory_tokens, num_latent_tokens, codebook_size,
                patch_size, H, W):
    D = inner_dim
    F = 4 * D
    pdim = patch_size * patch_size * input_dim
    keys = iter(jax.random.split(key, 16 + model_depth))
    bf16 = jnp.bfloat16

    enc = _init_block(next(keys), D, F)
    layers = [_init_block(next(keys), D, F) for _ in range(model_depth)]
    stack = lambda name: jnp.stack([l[name] for l in layers], axis=0)

    codebook = (jax.random.normal(next(keys), (codebook_size, D))
                / math.sqrt(D)).astype(bf16)
    cbsq = jnp.sum(codebook.astype(jnp.float32) ** 2, axis=1)[None, :]

    wf1 = jax.random.normal(next(keys), (D, 12)) / math.sqrt(D + input_dim)
    wf2 = jax.random.normal(next(keys), (input_dim, 12)) / math.sqrt(D + input_dim)
    bf_ = jnp.zeros((1, 12))
    wo1 = jax.random.normal(next(keys), (12, output_dim)) / math.sqrt(24)
    wo2 = jax.random.normal(next(keys), (12, output_dim)) / math.sqrt(24)
    bo = jnp.zeros((1, output_dim))

    return dict(
        patch_w=(jax.random.normal(next(keys), (pdim, D))
                 / math.sqrt(pdim)).astype(bf16),
        patch_b=jnp.zeros((1, D)),
        latent_tokens=jax.random.normal(next(keys), (num_latent_tokens, D)) * 0.02,
        # qkv stored [3D, D]: in-kernel contraction is on the lane dim of both
        enc_wqkv=enc['wqkv'].T.astype(bf16), enc_wo=enc['wo'].astype(bf16),
        enc_g1=enc['g1'], enc_b1=enc['b1'],
        enc_w1=enc['w1'].astype(bf16), enc_bb1=enc['bb1'],
        enc_w2=enc['w2'].astype(bf16), enc_bb2=enc['bb2'],
        enc_g2=enc['g2'], enc_b2=enc['b2'],
        codebook=codebook, cbsq=cbsq,
        memory_tokens=jax.random.normal(next(keys), (memory_tokens, D)) * 0.02,
        dec_wqkv=jnp.swapaxes(stack('wqkv'), 1, 2).astype(bf16),   # [depth,3D,D]
        dec_wo=stack('wo').astype(bf16),
        dec_g1=stack('g1'), dec_b1=stack('b1'),
        dec_w1=stack('w1').astype(bf16), dec_bb1=stack('bb1'),
        dec_w2=stack('w2').astype(bf16), dec_bb2=stack('bb2'),
        dec_g2=stack('g2'), dec_b2=stack('b2'),
        tr_out_w=(jax.random.normal(next(keys), (D, D))
                  / math.sqrt(D)).astype(bf16),
        tr_out_b=jnp.zeros((1, D)),
        # detokenizer stored [T, HW] -> lane-dense decT in-kernel
        detok_mT=(jax.random.normal(next(keys), (num_latent_tokens, H * W))
                  / math.sqrt(num_latent_tokens)).astype(bf16),
        # tail weights pre-transposed to [out, in]; non-ReLU gated path
        # pre-folded through wo1
        tail_wf1T=wf1.T, tail_wf2T=wf2.T, tail_bfT=bf_.T,
        tail_afT=(wf1 @ wo1).T, tail_bfoldT=(wf2 @ wo1).T,
        tail_cfT=(bf_ @ wo1 + bo).T,
        tail_wo2T=wo2.T,
    )


# ----------------------------------------------------------------------------
if __name__ == "__main__":
    B, H, W = 2, 16, 16
    input_dim, output_dim = 4, 8
    inner_dim = 64
    heads = 4
    model_depth = 2
    memory_tokens = 16
    num_latent_tokens = 32
    codebook_size = 8192
    patch_size = 8

    key = jax.random.PRNGKey(0)
    pkey, xkey = jax.random.split(key)
    params = init_params(
        pkey, input_dim=input_dim, output_dim=output_dim, inner_dim=inner_dim,
        model_depth=model_depth, memory_tokens=memory_tokens,
        num_latent_tokens=num_latent_tokens, codebook_size=codebook_size,
        patch_size=patch_size, H=H, W=W)

    x = jax.random.normal(xkey, (B, H, W, input_dim), jnp.float32)

    fwd = jax.jit(functools.partial(forward, heads=heads, patch_size=patch_size))
    out = jax.block_until_ready(fwd(params, x))
    assert out.shape == (B, H, W, output_dim), out.shape
    assert bool(jnp.all(jnp.isfinite(out)))
    print("KERNEL_OK")
</pallas_src>

<mosaic_0001>
module attributes {stable_mosaic.version = 11 : i64} {
  func.func @_fused_kernel(%arg0: i32, %arg1: memref<1x8x256xbf16, #tpu.memory_space<vmem>>, %arg2: memref<1x4x256xf32, #tpu.memory_space<vmem>>, %arg3: memref<256x64xbf16, #tpu.memory_space<vmem>>, %arg4: memref<1x64xf32, #tpu.memory_space<vmem>>, %arg5: memref<32x64xf32, #tpu.memory_space<vmem>>, %arg6: memref<192x64xbf16, #tpu.memory_space<vmem>>, %arg7: memref<64x64xbf16, #tpu.memory_space<vmem>>, %arg8: memref<1x64xf32, #tpu.memory_space<vmem>>, %arg9: memref<1x64xf32, #tpu.memory_space<vmem>>, %arg10: memref<64x256xbf16, #tpu.memory_space<vmem>>, %arg11: memref<1x256xf32, #tpu.memory_space<vmem>>, %arg12: memref<256x64xbf16, #tpu.memory_space<vmem>>, %arg13: memref<1x64xf32, #tpu.memory_space<vmem>>, %arg14: memref<1x64xf32, #tpu.memory_space<vmem>>, %arg15: memref<1x64xf32, #tpu.memory_space<vmem>>, %arg16: memref<8192x64xbf16, #tpu.memory_space<vmem>>, %arg17: memref<1x8192xf32, #tpu.memory_space<vmem>>, %arg18: memref<16x64xf32, #tpu.memory_space<vmem>>, %arg19: memref<2x192x64xbf16, #tpu.memory_space<vmem>>, %arg20: memref<2x64x64xbf16, #tpu.memory_space<vmem>>, %arg21: memref<2x1x64xf32, #tpu.memory_space<vmem>>, %arg22: memref<2x1x64xf32, #tpu.memory_space<vmem>>, %arg23: memref<2x64x256xbf16, #tpu.memory_space<vmem>>, %arg24: memref<2x1x256xf32, #tpu.memory_space<vmem>>, %arg25: memref<2x256x64xbf16, #tpu.memory_space<vmem>>, %arg26: memref<2x1x64xf32, #tpu.memory_space<vmem>>, %arg27: memref<2x1x64xf32, #tpu.memory_space<vmem>>, %arg28: memref<2x1x64xf32, #tpu.memory_space<vmem>>, %arg29: memref<64x64xbf16, #tpu.memory_space<vmem>>, %arg30: memref<1x64xf32, #tpu.memory_space<vmem>>, %arg31: memref<32x256xbf16, #tpu.memory_space<vmem>>, %arg32: memref<12x64xf32, #tpu.memory_space<vmem>>, %arg33: memref<12x4xf32, #tpu.memory_space<vmem>>, %arg34: memref<12x1xf32, #tpu.memory_space<vmem>>, %arg35: memref<8x64xf32, #tpu.memory_space<vmem>>, %arg36: memref<8x4xf32, #tpu.memory_space<vmem>>, %arg37: memref<8x1xf32, #tpu.memory_space<vmem>>, %arg38: memref<8x12xf32, #tpu.memory_space<vmem>>, %arg39: memref<1x8x256xf32, #tpu.memory_space<vmem>>) attributes {dimension_semantics = [#tpu.dimension_semantics<parallel>], iteration_bounds = array<i64: 2>, scalar_prefetch = 0 : i64, scratch_operands = 0 : i64, tpu.core_type = #tpu.core_type<tc>, window_params = [{transform_indices = @transform_0, window_bounds = array<i64: 1, 8, 256>}, {transform_indices = @transform_1, window_bounds = array<i64: 1, 4, 256>}, {pipeline_mode = #tpu.pipeline_mode<synchronous>, transform_indices = @transform_2, window_bounds = array<i64: 256, 64>}, {pipeline_mode = #tpu.pipeline_mode<synchronous>, transform_indices = @transform_3, window_bounds = array<i64: 1, 64>}, {pipeline_mode = #tpu.pipeline_mode<synchronous>, transform_indices = @transform_4, window_bounds = array<i64: 32, 64>}, {pipeline_mode = #tpu.pipeline_mode<synchronous>, transform_indices = @transform_5, window_bounds = array<i64: 192, 64>}, {pipeline_mode = #tpu.pipeline_mode<synchronous>, transform_indices = @transform_6, window_bounds = array<i64: 64, 64>}, {pipeline_mode = #tpu.pipeline_mode<synchronous>, transform_indices = @transform_7, window_bounds = array<i64: 1, 64>}, {pipeline_mode = #tpu.pipeline_mode<synchronous>, transform_indices = @transform_8, window_bounds = array<i64: 1, 64>}, {pipeline_mode = #tpu.pipeline_mode<synchronous>, transform_indices = @transform_9, window_bounds = array<i64: 64, 256>}, {pipeline_mode = #tpu.pipeline_mode<synchronous>, transform_indices = @transform_10, window_bounds = array<i64: 1, 256>}, {pipeline_mode = #tpu.pipeline_mode<synchronous>, transform_indices = @transform_11, window_bounds = array<i64: 256, 64>}, {pipeline_mode = #tpu.pipeline_mode<synchronous>, transform_indices = @transform_12, window_bounds = array<i64: 1, 64>}, {pipeline_mode = #tpu.pipeline_mode<synchronous>, transform_indices = @transform_13, window_bounds = array<i64: 1, 64>}, {pipeline_mode = #tpu.pipeline_mode<synchronous>, transform_indices = @transform_14, window_bounds = array<i64: 1, 64>}, {pipeline_mode = #tpu.pipeline_mode<synchronous>, transform_indices = @transform_15, window_bounds = array<i64: 8192, 64>}, {pipeline_mode = #tpu.pipeline_mode<synchronous>, transform_indices = @transform_16, window_bounds = array<i64: 1, 8192>}, {pipeline_mode = #tpu.pipeline_mode<synchronous>, transform_indices = @transform_17, window_bounds = array<i64: 16, 64>}, {pipeline_mode = #tpu.pipeline_mode<synchronous>, transform_indices = @transform_18, window_bounds = array<i64: 2, 192, 64>}, {pipeline_mode = #tpu.pipeline_mode<synchronous>, transform_indices = @transform_19, window_bounds = array<i64: 2, 64, 64>}, {pipeline_mode = #tpu.pipeline_mode<synchronous>, transform_indices = @transform_20, window_bounds = array<i64: 2, 1, 64>}, {pipeline_mode = #tpu.pipeline_mode<synchronous>, transform_indices = @transform_21, window_bounds = array<i64: 2, 1, 64>}, {pipeline_mode = #tpu.pipeline_mode<synchronous>, transform_indices = @transform_22, window_bounds = array<i64: 2, 64, 256>}, {pipeline_mode = #tpu.pipeline_mode<synchronous>, transform_indices = @transform_23, window_bounds = array<i64: 2, 1, 256>}, {pipeline_mode = #tpu.pipeline_mode<synchronous>, transform_indices = @transform_24, window_bounds = array<i64: 2, 256, 64>}, {pipeline_mode = #tpu.pipeline_mode<synchronous>, transform_indices = @transform_25, window_bounds = array<i64: 2, 1, 64>}, {pipeline_mode = #tpu.pipeline_mode<synchronous>, transform_indices = @transform_26, window_bounds = array<i64: 2, 1, 64>}, {pipeline_mode = #tpu.pipeline_mode<synchronous>, transform_indices = @transform_27, window_bounds = array<i64: 2, 1, 64>}, {pipeline_mode = #tpu.pipeline_mode<synchronous>, transform_indices = @transform_28, window_bounds = array<i64: 64, 64>}, {pipeline_mode = #tpu.pipeline_mode<synchronous>, transform_indices = @transform_29, window_bounds = array<i64: 1, 64>}, {pipeline_mode = #tpu.pipeline_mode<synchronous>, transform_indices = @transform_30, window_bounds = array<i64: 32, 256>}, {pipeline_mode = #tpu.pipeline_mode<synchronous>, transform_indices = @transform_31, window_bounds = array<i64: 12, 64>}, {pipeline_mode = #tpu.pipeline_mode<synchronous>, transform_indices = @transform_32, window_bounds = array<i64: 12, 4>}, {pipeline_mode = #tpu.pipeline_mode<synchronous>, transform_indices = @transform_33, window_bounds = array<i64: 12, 1>}, {pipeline_mode = #tpu.pipeline_mode<synchronous>, transform_indices = @transform_34, window_bounds = array<i64: 8, 64>}, {pipeline_mode = #tpu.pipeline_mode<synchronous>, transform_indices = @transform_35, window_bounds = array<i64: 8, 4>}, {pipeline_mode = #tpu.pipeline_mode<synchronous>, transform_indices = @transform_36, window_bounds = array<i64: 8, 1>}, {pipeline_mode = #tpu.pipeline_mode<synchronous>, transform_indices = @transform_37, window_bounds = array<i64: 8, 12>}, {transform_indices = @transform_38, window_bounds = array<i64: 1, 8, 256>}]} {
    %c0 = arith.constant 0 : index
    %c0_0 = arith.constant 0 : index
    %c0_1 = arith.constant 0 : index
    %0 = vector.load %arg1[%c0, %c0_0, %c0_1] : memref<1x8x256xbf16, #tpu.memory_space<vmem>>, vector<1x8x256xbf16>
    %1 = vector.shape_cast %0 : vector<1x8x256xbf16> to vector<8x256xbf16>
    %c0_2 = arith.constant 0 : index
    %c0_3 = arith.constant 0 : index
    %2 = vector.load %arg3[%c0_2, %c0_3] : memref<256x64xbf16, #tpu.memory_space<vmem>>, vector<256x64xbf16>
    %cst = arith.constant dense<0.000000e+00> : vector<8x64xf32>
    %3 = tpu.matmul %1, %2, %cst {dimension_numbers = #tpu.dot_dimension_numbers<[1], [0], [0], [1], [0, 0, 1, 1], [], []>} : vector<8x256xbf16>, vector<256x64xbf16>, vector<8x64xf32> -> vector<8x64xf32>
    %c0_4 = arith.constant 0 : index
    %c0_5 = arith.constant 0 : index
    %4 = vector.load %arg4[%c0_4, %c0_5] : memref<1x64xf32, #tpu.memory_space<vmem>>, vector<1x64xf32>
    %5 = vector.broadcast %4 : vector<1x64xf32> to vector<8x64xf32>
    %6 = arith.addf %3, %5 : vector<8x64xf32>
    %c0_6 = arith.constant 0 : index
    %c0_7 = arith.constant 0 : index
    %7 = vector.load %arg5[%c0_6, %c0_7] : memref<32x64xf32, #tpu.memory_space<vmem>>, vector<32x64xf32>
    %8 = tpu.concatenate %7, %6 in 0 : vector<32x64xf32>, vector<8x64xf32> -> vector<40x64xf32>
    %c0_8 = arith.constant 0 : index
    %c0_9 = arith.constant 0 : index
    %9 = vector.load %arg6[%c0_8, %c0_9] : memref<192x64xbf16, #tpu.memory_space<vmem>>, vector<192x64xbf16>
    %c0_10 = arith.constant 0 : index
    %c0_11 = arith.constant 0 : index
    %10 = vector.load %arg7[%c0_10, %c0_11] : memref<64x64xbf16, #tpu.memory_space<vmem>>, vector<64x64xbf16>
    %c0_12 = arith.constant 0 : index
    %c0_13 = arith.constant 0 : index
    %11 = vector.load %arg8[%c0_12, %c0_13] : memref<1x64xf32, #tpu.memory_space<vmem>>, vector<1x64xf32>
    %c0_14 = arith.constant 0 : index
    %c0_15 = arith.constant 0 : index
    %12 = vector.load %arg9[%c0_14, %c0_15] : memref<1x64xf32, #tpu.memory_space<vmem>>, vector<1x64xf32>
    %c0_16 = arith.constant 0 : index
    %c0_17 = arith.constant 0 : index
    %13 = vector.load %arg10[%c0_16, %c0_17] : memref<64x256xbf16, #tpu.memory_space<vmem>>, vector<64x256xbf16>
    %c0_18 = arith.constant 0 : index
    %c0_19 = arith.constant 0 : index
    %14 = vector.load %arg11[%c0_18, %c0_19] : memref<1x256xf32, #tpu.memory_space<vmem>>, vector<1x256xf32>
    %c0_20 = arith.constant 0 : index
    %c0_21 = arith.constant 0 : index
    %15 = vector.load %arg12[%c0_20, %c0_21] : memref<256x64xbf16, #tpu.memory_space<vmem>>, vector<256x64xbf16>
    %c0_22 = arith.constant 0 : index
    %c0_23 = arith.constant 0 : index
    %16 = vector.load %arg13[%c0_22, %c0_23] : memref<1x64xf32, #tpu.memory_space<vmem>>, vector<1x64xf32>
    %c0_24 = arith.constant 0 : index
    %c0_25 = arith.constant 0 : index
    %17 = vector.load %arg14[%c0_24, %c0_25] : memref<1x64xf32, #tpu.memory_space<vmem>>, vector<1x64xf32>
    %c0_26 = arith.constant 0 : index
    %c0_27 = arith.constant 0 : index
    %18 = vector.load %arg15[%c0_26, %c0_27] : memref<1x64xf32, #tpu.memory_space<vmem>>, vector<1x64xf32>
    %cst_28 = arith.constant dense<0.000000e+00> : vector<40xf32>
    %19 = vector.multi_reduction <add>, %8, %cst_28 [1] : vector<40x64xf32> to vector<40xf32>
    %20 = vector.shape_cast %19 : vector<40xf32> to vector<40x1xf32>
    %cst_29 = arith.constant 6.400000e+01 : f32
    %21 = vector.broadcast %cst_29 : f32 to vector<40x1xf32>
    %22 = arith.divf %20, %21 : vector<40x1xf32>
    %23 = vector.broadcast %22 : vector<40x1xf32> to vector<40x64xf32>
    %24 = arith.subf %8, %23 : vector<40x64xf32>
    %25 = arith.mulf %24, %24 : vector<40x64xf32>
    %cst_30 = arith.constant dense<0.000000e+00> : vector<40xf32>
    %26 = vector.multi_reduction <add>, %25, %cst_30 [1] : vector<40x64xf32> to vector<40xf32>
    %27 = vector.shape_cast %26 : vector<40xf32> to vector<40x1xf32>
    %cst_31 = arith.constant 6.400000e+01 : f32
    %28 = vector.broadcast %cst_31 : f32 to vector<40x1xf32>
    %29 = arith.divf %27, %28 : vector<40x1xf32>
    %30 = vector.broadcast %22 : vector<40x1xf32> to vector<40x64xf32>
    %31 = arith.subf %8, %30 : vector<40x64xf32>
    %cst_32 = arith.constant 9.99999974E-6 : f32
    %32 = vector.broadcast %cst_32 : f32 to vector<40x1xf32>
    %33 = arith.addf %29, %32 : vector<40x1xf32>
    %34 = math.rsqrt %33 : vector<40x1xf32>
    %35 = vector.broadcast %34 : vector<40x1xf32> to vector<40x64xf32>
    %36 = arith.mulf %31, %35 : vector<40x64xf32>
    %37 = vector.broadcast %11 : vector<1x64xf32> to vector<40x64xf32>
    %38 = arith.mulf %36, %37 : vector<40x64xf32>
    %39 = vector.broadcast %12 : vector<1x64xf32> to vector<40x64xf32>
    %40 = arith.addf %38, %39 : vector<40x64xf32>
    %41 = arith.truncf %40 : vector<40x64xf32> to vector<40x64xbf16>
    %cst_33 = arith.constant dense<0.000000e+00> : vector<192x40xf32>
    %42 = tpu.matmul %9, %41, %cst_33 {dimension_numbers = #tpu.dot_dimension_numbers<[1], [1], [0], [0], [0, 0, 1, 0], [], []>} : vector<192x64xbf16>, vector<40x64xbf16>, vector<192x40xf32> -> vector<192x40xf32>
    %43 = vector.extract_strided_slice %42 {offsets = [0, 0], sizes = [64, 40], strides = [1, 1]} : vector<192x40xf32> to vector<64x40xf32>
    %44 = vector.shape_cast %43 : vector<64x40xf32> to vector<4x16x40xf32>
    %45 = arith.truncf %44 : vector<4x16x40xf32> to vector<4x16x40xbf16>
    %46 = vector.extract_strided_slice %42 {offsets = [64, 0], sizes = [64, 40], strides = [1, 1]} : vector<192x40xf32> to vector<64x40xf32>
    %47 = vector.shape_cast %46 : vector<64x40xf32> to vector<4x16x40xf32>
    %48 = arith.truncf %47 : vector<4x16x40xf32> to vector<4x16x40xbf16>
    %49 = vector.extract_strided_slice %42 {offsets = [128, 0], sizes = [64, 40], strides = [1, 1]} : vector<192x40xf32> to vector<64x40xf32>
    %50 = vector.shape_cast %49 : vector<64x40xf32> to vector<4x16x40xf32>
    %51 = arith.truncf %50 : vector<4x16x40xf32> to vector<4x16x40xbf16>
    "tpu.trace_start"() <{level = 10 : i32, message = "hdq,hdk->hqk"}> : () -> ()
    %cst_34 = arith.constant dense<0.000000e+00> : vector<4x40x40xf32>
    %52 = tpu.matmul %45, %48, %cst_34 {dimension_numbers = #tpu.dot_dimension_numbers<[1], [1], [2], [2], [0, 0, 0, 2, 1, 2], [0], [0]>} : vector<4x16x40xbf16>, vector<4x16x40xbf16>, vector<4x40x40xf32> -> vector<4x40x40xf32>
    "tpu.trace_stop"() : () -> ()
    %cst_35 = arith.constant 2.500000e-01 : f32
    %53 = vector.broadcast %cst_35 : f32 to vector<4x40x40xf32>
    %54 = arith.mulf %52, %53 : vector<4x40x40xf32>
    %55 = tpu.iota {dimensions = array<i32: 2>} : vector<4x40x40xi32>
    %c36_i32 = arith.constant 36 : i32
    %56 = vector.broadcast %c36_i32 : i32 to vector<4x40x40xi32>
    %57 = arith.cmpi slt, %55, %56 : vector<4x40x40xi32>
    %cst_36 = arith.constant -1.000000e+30 : f32
    %58 = vector.broadcast %cst_36 : f32 to vector<4x40x40xf32>
    %59 = arith.select %57, %54, %58 : vector<4x40x40xi1>, vector<4x40x40xf32>
    %cst_37 = arith.constant dense<0xFF800000> : vector<4x40xf32>
    %60 = vector.multi_reduction <maximumf>, %59, %cst_37 [2] : vector<4x40x40xf32> to vector<4x40xf32>
    %61 = vector.shape_cast %60 : vector<4x40xf32> to vector<4x40x1xf32>
    %62 = vector.broadcast %61 : vector<4x40x1xf32> to vector<4x40x40xf32>
    %63 = arith.subf %59, %62 : vector<4x40x40xf32>
    %64 = math.exp %63 : vector<4x40x40xf32>
    %cst_38 = arith.constant dense<0.000000e+00> : vector<4x40xf32>
    %65 = vector.multi_reduction <add>, %64, %cst_38 [2] : vector<4x40x40xf32> to vector<4x40xf32>
    %66 = vector.shape_cast %65 : vector<4x40xf32> to vector<4x40x1xf32>
    %67 = tpu.reciprocal %66 {approx = true} : vector<4x40x1xf32> -> vector<4x40x1xf32>
    %68 = vector.broadcast %67 : vector<4x40x1xf32> to vector<4x40x40xf32>
    %69 = arith.mulf %64, %68 : vector<4x40x40xf32>
    %70 = arith.truncf %69 : vector<4x40x40xf32> to vector<4x40x40xbf16>
    "tpu.trace_start"() <{level = 10 : i32, message = "hdk,hqk->hdq"}> : () -> ()
    %cst_39 = arith.constant dense<0.000000e+00> : vector<4x16x40xf32>
    %71 = tpu.matmul %51, %70, %cst_39 {dimension_numbers = #tpu.dot_dimension_numbers<[2], [2], [1], [1], [0, 0, 0, 1, 1, 1], [0], [0]>} : vector<4x16x40xbf16>, vector<4x40x40xbf16>, vector<4x16x40xf32> -> vector<4x16x40xf32>
    "tpu.trace_stop"() : () -> ()
    %72 = vector.shape_cast %71 : vector<4x16x40xf32> to vector<64x40xf32>
    %73 = arith.truncf %72 : vector<64x40xf32> to vector<64x40xbf16>
    %cst_40 = arith.constant dense<0.000000e+00> : vector<40x64xf32>
    %74 = tpu.matmul %73, %10, %cst_40 {dimension_numbers = #tpu.dot_dimension_numbers<[0], [0], [1], [1], [0, 1, 1, 1], [], []>} : vector<64x40xbf16>, vector<64x64xbf16>, vector<40x64xf32> -> vector<40x64xf32>
    %75 = arith.addf %8, %74 : vector<40x64xf32>
    %cst_41 = arith.constant dense<0.000000e+00> : vector<40xf32>
    %76 = vector.multi_reduction <add>, %75, %cst_41 [1] : vector<40x64xf32> to vector<40xf32>
    %77 = vector.shape_cast %76 : vector<40xf32> to vector<40x1xf32>
    %cst_42 = arith.constant 6.400000e+01 : f32
    %78 = vector.broadcast %cst_42 : f32 to vector<40x1xf32>
    %79 = arith.divf %77, %78 : vector<40x1xf32>
    %80 = vector.broadcast %79 : vector<40x1xf32> to vector<40x64xf32>
    %81 = arith.subf %75, %80 : vector<40x64xf32>
    %82 = arith.mulf %81, %81 : vector<40x64xf32>
    %cst_43 = arith.constant dense<0.000000e+00> : vector<40xf32>
    %83 = vector.multi_reduction <add>, %82, %cst_43 [1] : vector<40x64xf32> to vector<40xf32>
    %84 = vector.shape_cast %83 : vector<40xf32> to vector<40x1xf32>
    %cst_44 = arith.constant 6.400000e+01 : f32
    %85 = vector.broadcast %cst_44 : f32 to vector<40x1xf32>
    %86 = arith.divf %84, %85 : vector<40x1xf32>
    %87 = vector.broadcast %79 : vector<40x1xf32> to vector<40x64xf32>
    %88 = arith.subf %75, %87 : vector<40x64xf32>
    %cst_45 = arith.constant 9.99999974E-6 : f32
    %89 = vector.broadcast %cst_45 : f32 to vector<40x1xf32>
    %90 = arith.addf %86, %89 : vector<40x1xf32>
    %91 = math.rsqrt %90 : vector<40x1xf32>
    %92 = vector.broadcast %91 : vector<40x1xf32> to vector<40x64xf32>
    %93 = arith.mulf %88, %92 : vector<40x64xf32>
    %94 = vector.broadcast %17 : vector<1x64xf32> to vector<40x64xf32>
    %95 = arith.mulf %93, %94 : vector<40x64xf32>
    %96 = vector.broadcast %18 : vector<1x64xf32> to vector<40x64xf32>
    %97 = arith.addf %95, %96 : vector<40x64xf32>
    %98 = arith.truncf %97 : vector<40x64xf32> to vector<40x64xbf16>
    %cst_46 = arith.constant dense<0.000000e+00> : vector<40x256xf32>
    %99 = tpu.matmul %98, %13, %cst_46 {dimension_numbers = #tpu.dot_dimension_numbers<[1], [0], [0], [1], [0, 0, 1, 1], [], []>} : vector<40x64xbf16>, vector<64x256xbf16>, vector<40x256xf32> -> vector<40x256xf32>
    %100 = vector.broadcast %14 : vector<1x256xf32> to vector<40x256xf32>
    %101 = arith.addf %99, %100 : vector<40x256xf32>
    %cst_47 = arith.constant 0.000000e+00 : f32
    %102 = vector.broadcast %cst_47 : f32 to vector<40x256xf32>
    %103 = arith.maximumf %101, %102 : vector<40x256xf32>
    %104 = arith.truncf %103 : vector<40x256xf32> to vector<40x256xbf16>
    %cst_48 = arith.constant dense<0.000000e+00> : vector<40x64xf32>
    %105 = tpu.matmul %104, %15, %cst_48 {dimension_numbers = #tpu.dot_dimension_numbers<[1], [0], [0], [1], [0, 0, 1, 1], [], []>} : vector<40x256xbf16>, vector<256x64xbf16>, vector<40x64xf32> -> vector<40x64xf32>
    %106 = vector.broadcast %16 : vector<1x64xf32> to vector<40x64xf32>
    %107 = arith.addf %105, %106 : vector<40x64xf32>
    %108 = arith.addf %75, %107 : vector<40x64xf32>
    %109 = vector.extract_strided_slice %108 {offsets = [0, 0], sizes = [32, 64], strides = [1, 1]} : vector<40x64xf32> to vector<32x64xf32>
    %110 = arith.truncf %109 : vector<32x64xf32> to vector<32x64xbf16>
    %cst_49 = arith.constant 1.000000e+30 : f32
    %111 = vector.broadcast %cst_49 : f32 to vector<32x1xf32>
    %cst_50 = arith.constant 0.000000e+00 : f32
    %112 = vector.broadcast %cst_50 : f32 to vector<32x64xf32>
    %c0_i32 = arith.constant 0 : i32
    %c16_i32 = arith.constant 16 : i32
    %113 = arith.addi %c0_i32, %c16_i32 : i32
    %c1_i32 = arith.constant 1 : i32
    %114:2 = scf.for %arg40 = %c0_i32 to %113 step %c1_i32 iter_args(%arg41 = %111, %arg42 = %112) -> (vector<32x1xf32>, vector<32x64xf32>)  : i32 {
      %c512_i32 = arith.constant 512 : i32
      %393 = arith.muli %arg40, %c512_i32 : i32
      %394 = tpu.assume_multiple %393, 512 : i32
      %395 = arith.index_cast %394 : i32 to index
      %c0_198 = arith.constant 0 : index
      %396 = vector.load %arg16[%395, %c0_198] : memref<8192x64xbf16, #tpu.memory_space<vmem>>, vector<512x64xbf16>
      %c0_199 = arith.constant 0 : index
      %397 = arith.index_cast %394 : i32 to index
      %398 = vector.load %arg17[%c0_199, %397] : memref<1x8192xf32, #tpu.memory_space<vmem>>, vector<1x512xf32>
      %cst_200 = arith.constant dense<0.000000e+00> : vector<32x512xf32>
      %399 = tpu.matmul %110, %396, %cst_200 {dimension_numbers = #tpu.dot_dimension_numbers<[1], [1], [0], [0], [0, 0, 1, 0], [], []>} : vector<32x64xbf16>, vector<512x64xbf16>, vector<32x512xf32> -> vector<32x512xf32>
      %cst_201 = arith.constant 2.000000e+00 : f32
      %400 = vector.broadcast %cst_201 : f32 to vector<32x512xf32>
      %401 = arith.mulf %400, %399 : vector<32x512xf32>
      %402 = vector.broadcast %398 : vector<1x512xf32> to vector<32x512xf32>
      %403 = arith.subf %402, %401 : vector<32x512xf32>
      %cst_202 = arith.constant dense<0x7F800000> : vector<32xf32>
      %404 = vector.multi_reduction <minimumf>, %403, %cst_202 [1] : vector<32x512xf32> to vector<32xf32>
      %405 = vector.shape_cast %404 : vector<32xf32> to vector<32x1xf32>
      %406 = tpu.iota {dimensions = array<i32: 1>} : vector<32x512xi32>
      %407 = vector.broadcast %405 : vector<32x1xf32> to vector<32x512xf32>
      %408 = arith.cmpf ole, %403, %407 : vector<32x512xf32>
      %c512_i32_203 = arith.constant 512 : i32
      %409 = vector.broadcast %c512_i32_203 : i32 to vector<32x512xi32>
      %410 = arith.select %408, %406, %409 : vector<32x512xi1>, vector<32x512xi32>
      %cst_204 = arith.constant dense<2147483647> : vector<32xi32>
      %411 = vector.multi_reduction <minsi>, %410, %cst_204 [1] : vector<32x512xi32> to vector<32xi32>
      %412 = vector.shape_cast %411 : vector<32xi32> to vector<32x1xi32>
      %413 = vector.broadcast %412 : vector<32x1xi32> to vector<32x512xi32>
      %414 = arith.cmpi eq, %406, %413 : vector<32x512xi32>
      %415 = arith.extui %414 : vector<32x512xi1> to vector<32x512xi32>
      %416 = arith.sitofp %415 : vector<32x512xi32> to vector<32x512xf32>
      %417 = arith.truncf %416 : vector<32x512xf32> to vector<32x512xbf16>
      %cst_205 = arith.constant dense<0.000000e+00> : vector<32x64xf32>
      %418 = tpu.matmul %417, %396, %cst_205 {dimension_numbers = #tpu.dot_dimension_numbers<[1], [0], [0], [1], [0, 0, 1, 1], [], []>} : vector<32x512xbf16>, vector<512x64xbf16>, vector<32x64xf32> -> vector<32x64xf32>
      %419 = arith.cmpf olt, %405, %arg41 : vector<32x1xf32>
      %420 = vector.shape_cast %419 : vector<32x1xi1> to vector<32x1xi1>
      %421 = vector.broadcast %420 : vector<32x1xi1> to vector<32x64xi1>
      %422 = arith.select %421, %418, %arg42 : vector<32x64xi1>, vector<32x64xf32>
      %423 = arith.select %419, %405, %arg41 : vector<32x1xi1>, vector<32x1xf32>
      scf.yield %423, %422 : vector<32x1xf32>, vector<32x64xf32>
    }
    %c16_i32_51 = arith.constant 16 : i32
    %c0_52 = arith.constant 0 : index
    %c0_53 = arith.constant 0 : index
    %115 = vector.load %arg18[%c0_52, %c0_53] : memref<16x64xf32, #tpu.memory_space<vmem>>, vector<16x64xf32>
    %116 = tpu.concatenate %115, %114#1 in 0 : vector<16x64xf32>, vector<32x64xf32> -> vector<48x64xf32>
    %c0_54 = arith.constant 0 : index
    %c0_55 = arith.constant 0 : index
    %c0_56 = arith.constant 0 : index
    %117 = vector.load %arg19[%c0_54, %c0_55, %c0_56] : memref<2x192x64xbf16, #tpu.memory_space<vmem>>, vector<1x192x64xbf16>
    %118 = vector.shape_cast %117 : vector<1x192x64xbf16> to vector<192x64xbf16>
    %c0_57 = arith.constant 0 : index
    %c0_58 = arith.constant 0 : index
    %c0_59 = arith.constant 0 : index
    %119 = vector.load %arg20[%c0_57, %c0_58, %c0_59] : memref<2x64x64xbf16, #tpu.memory_space<vmem>>, vector<1x64x64xbf16>
    %120 = vector.shape_cast %119 : vector<1x64x64xbf16> to vector<64x64xbf16>
    %c0_60 = arith.constant 0 : index
    %c0_61 = arith.constant 0 : index
    %c0_62 = arith.constant 0 : index
    %121 = vector.load %arg21[%c0_60, %c0_61, %c0_62] : memref<2x1x64xf32, #tpu.memory_space<vmem>>, vector<1x1x64xf32>
    %122 = vector.shape_cast %121 : vector<1x1x64xf32> to vector<1x64xf32>
    %c0_63 = arith.constant 0 : index
    %c0_64 = arith.constant 0 : index
    %c0_65 = arith.constant 0 : index
    %123 = vector.load %arg22[%c0_63, %c0_64, %c0_65] : memref<2x1x64xf32, #tpu.memory_space<vmem>>, vector<1x1x64xf32>
    %124 = vector.shape_cast %123 : vector<1x1x64xf32> to vector<1x64xf32>
    %c0_66 = arith.constant 0 : index
    %c0_67 = arith.constant 0 : index
    %c0_68 = arith.constant 0 : index
    %125 = vector.load %arg23[%c0_66, %c0_67, %c0_68] : memref<2x64x256xbf16, #tpu.memory_space<vmem>>, vector<1x64x256xbf16>
    %126 = vector.shape_cast %125 : vector<1x64x256xbf16> to vector<64x256xbf16>
    %c0_69 = arith.constant 0 : index
    %c0_70 = arith.constant 0 : index
    %c0_71 = arith.constant 0 : index
    %127 = vector.load %arg24[%c0_69, %c0_70, %c0_71] : memref<2x1x256xf32, #tpu.memory_space<vmem>>, vector<1x1x256xf32>
    %128 = vector.shape_cast %127 : vector<1x1x256xf32> to vector<1x256xf32>
    %c0_72 = arith.constant 0 : index
    %c0_73 = arith.constant 0 : index
    %c0_74 = arith.constant 0 : index
    %129 = vector.load %arg25[%c0_72, %c0_73, %c0_74] : memref<2x256x64xbf16, #tpu.memory_space<vmem>>, vector<1x256x64xbf16>
    %130 = vector.shape_cast %129 : vector<1x256x64xbf16> to vector<256x64xbf16>
    %c0_75 = arith.constant 0 : index
    %c0_76 = arith.constant 0 : index
    %c0_77 = arith.constant 0 : index
    %131 = vector.load %arg26[%c0_75, %c0_76, %c0_77] : memref<2x1x64xf32, #tpu.memory_space<vmem>>, vector<1x1x64xf32>
    %132 = vector.shape_cast %131 : vector<1x1x64xf32> to vector<1x64xf32>
    %c0_78 = arith.constant 0 : index
    %c0_79 = arith.constant 0 : index
    %c0_80 = arith.constant 0 : index
    %133 = vector.load %arg27[%c0_78, %c0_79, %c0_80] : memref<2x1x64xf32, #tpu.memory_space<vmem>>, vector<1x1x64xf32>
    %134 = vector.shape_cast %133 : vector<1x1x64xf32> to vector<1x64xf32>
    %c0_81 = arith.constant 0 : index
    %c0_82 = arith.constant 0 : index
    %c0_83 = arith.constant 0 : index
    %135 = vector.load %arg28[%c0_81, %c0_82, %c0_83] : memref<2x1x64xf32, #tpu.memory_space<vmem>>, vector<1x1x64xf32>
    %136 = vector.shape_cast %135 : vector<1x1x64xf32> to vector<1x64xf32>
    %cst_84 = arith.constant dense<0.000000e+00> : vector<48xf32>
    %137 = vector.multi_reduction <add>, %116, %cst_84 [1] : vector<48x64xf32> to vector<48xf32>
    %138 = vector.shape_cast %137 : vector<48xf32> to vector<48x1xf32>
    %cst_85 = arith.constant 6.400000e+01 : f32
    %139 = vector.broadcast %cst_85 : f32 to vector<48x1xf32>
    %140 = arith.divf %138, %139 : vector<48x1xf32>
    %141 = vector.broadcast %140 : vector<48x1xf32> to vector<48x64xf32>
    %142 = arith.subf %116, %141 : vector<48x64xf32>
    %143 = arith.mulf %142, %142 : vector<48x64xf32>
    %cst_86 = arith.constant dense<0.000000e+00> : vector<48xf32>
    %144 = vector.multi_reduction <add>, %143, %cst_86 [1] : vector<48x64xf32> to vector<48xf32>
    %145 = vector.shape_cast %144 : vector<48xf32> to vector<48x1xf32>
    %cst_87 = arith.constant 6.400000e+01 : f32
    %146 = vector.broadcast %cst_87 : f32 to vector<48x1xf32>
    %147 = arith.divf %145, %146 : vector<48x1xf32>
    %148 = vector.broadcast %140 : vector<48x1xf32> to vector<48x64xf32>
    %149 = arith.subf %116, %148 : vector<48x64xf32>
    %cst_88 = arith.constant 9.99999974E-6 : f32
    %150 = vector.broadcast %cst_88 : f32 to vector<48x1xf32>
    %151 = arith.addf %147, %150 : vector<48x1xf32>
    %152 = math.rsqrt %151 : vector<48x1xf32>
    %153 = vector.broadcast %152 : vector<48x1xf32> to vector<48x64xf32>
    %154 = arith.mulf %149, %153 : vector<48x64xf32>
    %155 = vector.broadcast %122 : vector<1x64xf32> to vector<48x64xf32>
    %156 = arith.mulf %154, %155 : vector<48x64xf32>
    %157 = vector.broadcast %124 : vector<1x64xf32> to vector<48x64xf32>
    %158 = arith.addf %156, %157 : vector<48x64xf32>
    %159 = arith.truncf %158 : vector<48x64xf32> to vector<48x64xbf16>
    %cst_89 = arith.constant dense<0.000000e+00> : vector<192x48xf32>
    %160 = tpu.matmul %118, %159, %cst_89 {dimension_numbers = #tpu.dot_dimension_numbers<[1], [1], [0], [0], [0, 0, 1, 0], [], []>} : vector<192x64xbf16>, vector<48x64xbf16>, vector<192x48xf32> -> vector<192x48xf32>
    %161 = vector.extract_strided_slice %160 {offsets = [0, 0], sizes = [64, 48], strides = [1, 1]} : vector<192x48xf32> to vector<64x48xf32>
    %162 = vector.shape_cast %161 : vector<64x48xf32> to vector<4x16x48xf32>
    %163 = arith.truncf %162 : vector<4x16x48xf32> to vector<4x16x48xbf16>
    %164 = vector.extract_strided_slice %160 {offsets = [64, 0], sizes = [64, 48], strides = [1, 1]} : vector<192x48xf32> to vector<64x48xf32>
    %165 = vector.shape_cast %164 : vector<64x48xf32> to vector<4x16x48xf32>
    %166 = arith.truncf %165 : vector<4x16x48xf32> to vector<4x16x48xbf16>
    %167 = vector.extract_strided_slice %160 {offsets = [128, 0], sizes = [64, 48], strides = [1, 1]} : vector<192x48xf32> to vector<64x48xf32>
    %168 = vector.shape_cast %167 : vector<64x48xf32> to vector<4x16x48xf32>
    %169 = arith.truncf %168 : vector<4x16x48xf32> to vector<4x16x48xbf16>
    "tpu.trace_start"() <{level = 10 : i32, message = "hdq,hdk->hqk"}> : () -> ()
    %cst_90 = arith.constant dense<0.000000e+00> : vector<4x48x48xf32>
    %170 = tpu.matmul %163, %166, %cst_90 {dimension_numbers = #tpu.dot_dimension_numbers<[1], [1], [2], [2], [0, 0, 0, 2, 1, 2], [0], [0]>} : vector<4x16x48xbf16>, vector<4x16x48xbf16>, vector<4x48x48xf32> -> vector<4x48x48xf32>
    "tpu.trace_stop"() : () -> ()
    %cst_91 = arith.constant 2.500000e-01 : f32
    %171 = vector.broadcast %cst_91 : f32 to vector<4x48x48xf32>
    %172 = arith.mulf %170, %171 : vector<4x48x48xf32>
    %cst_92 = arith.constant dense<0xFF800000> : vector<4x48xf32>
    %173 = vector.multi_reduction <maximumf>, %172, %cst_92 [2] : vector<4x48x48xf32> to vector<4x48xf32>
    %174 = vector.shape_cast %173 : vector<4x48xf32> to vector<4x48x1xf32>
    %175 = vector.broadcast %174 : vector<4x48x1xf32> to vector<4x48x48xf32>
    %176 = arith.subf %172, %175 : vector<4x48x48xf32>
    %177 = math.exp %176 : vector<4x48x48xf32>
    %cst_93 = arith.constant dense<0.000000e+00> : vector<4x48xf32>
    %178 = vector.multi_reduction <add>, %177, %cst_93 [2] : vector<4x48x48xf32> to vector<4x48xf32>
    %179 = vector.shape_cast %178 : vector<4x48xf32> to vector<4x48x1xf32>
    %180 = tpu.reciprocal %179 {approx = true} : vector<4x48x1xf32> -> vector<4x48x1xf32>
    %181 = vector.broadcast %180 : vector<4x48x1xf32> to vector<4x48x48xf32>
    %182 = arith.mulf %177, %181 : vector<4x48x48xf32>
    %183 = arith.truncf %182 : vector<4x48x48xf32> to vector<4x48x48xbf16>
    "tpu.trace_start"() <{level = 10 : i32, message = "hdk,hqk->hdq"}> : () -> ()
    %cst_94 = arith.constant dense<0.000000e+00> : vector<4x16x48xf32>
    %184 = tpu.matmul %169, %183, %cst_94 {dimension_numbers = #tpu.dot_dimension_numbers<[2], [2], [1], [1], [0, 0, 0, 1, 1, 1], [0], [0]>} : vector<4x16x48xbf16>, vector<4x48x48xbf16>, vector<4x16x48xf32> -> vector<4x16x48xf32>
    "tpu.trace_stop"() : () -> ()
    %185 = vector.shape_cast %184 : vector<4x16x48xf32> to vector<64x48xf32>
    %186 = arith.truncf %185 : vector<64x48xf32> to vector<64x48xbf16>
    %cst_95 = arith.constant dense<0.000000e+00> : vector<48x64xf32>
    %187 = tpu.matmul %186, %120, %cst_95 {dimension_numbers = #tpu.dot_dimension_numbers<[0], [0], [1], [1], [0, 1, 1, 1], [], []>} : vector<64x48xbf16>, vector<64x64xbf16>, vector<48x64xf32> -> vector<48x64xf32>
    %188 = arith.addf %116, %187 : vector<48x64xf32>
    %cst_96 = arith.constant dense<0.000000e+00> : vector<48xf32>
    %189 = vector.multi_reduction <add>, %188, %cst_96 [1] : vector<48x64xf32> to vector<48xf32>
    %190 = vector.shape_cast %189 : vector<48xf32> to vector<48x1xf32>
    %cst_97 = arith.constant 6.400000e+01 : f32
    %191 = vector.broadcast %cst_97 : f32 to vector<48x1xf32>
    %192 = arith.divf %190, %191 : vector<48x1xf32>
    %193 = vector.broadcast %192 : vector<48x1xf32> to vector<48x64xf32>
    %194 = arith.subf %188, %193 : vector<48x64xf32>
    %195 = arith.mulf %194, %194 : vector<48x64xf32>
    %cst_98 = arith.constant dense<0.000000e+00> : vector<48xf32>
    %196 = vector.multi_reduction <add>, %195, %cst_98 [1] : vector<48x64xf32> to vector<48xf32>
    %197 = vector.shape_cast %196 : vector<48xf32> to vector<48x1xf32>
    %cst_99 = arith.constant 6.400000e+01 : f32
    %198 = vector.broadcast %cst_99 : f32 to vector<48x1xf32>
    %199 = arith.divf %197, %198 : vector<48x1xf32>
    %200 = vector.broadcast %192 : vector<48x1xf32> to vector<48x64xf32>
    %201 = arith.subf %188, %200 : vector<48x64xf32>
    %cst_100 = arith.constant 9.99999974E-6 : f32
    %202 = vector.broadcast %cst_100 : f32 to vector<48x1xf32>
    %203 = arith.addf %199, %202 : vector<48x1xf32>
    %204 = math.rsqrt %203 : vector<48x1xf32>
    %205 = vector.broadcast %204 : vector<48x1xf32> to vector<48x64xf32>
    %206 = arith.mulf %201, %205 : vector<48x64xf32>
    %207 = vector.broadcast %134 : vector<1x64xf32> to vector<48x64xf32>
    %208 = arith.mulf %206, %207 : vector<48x64xf32>
    %209 = vector.broadcast %136 : vector<1x64xf32> to vector<48x64xf32>
    %210 = arith.addf %208, %209 : vector<48x64xf32>
    %211 = arith.truncf %210 : vector<48x64xf32> to vector<48x64xbf16>
    %cst_101 = arith.constant dense<0.000000e+00> : vector<48x256xf32>
    %212 = tpu.matmul %211, %126, %cst_101 {dimension_numbers = #tpu.dot_dimension_numbers<[1], [0], [0], [1], [0, 0, 1, 1], [], []>} : vector<48x64xbf16>, vector<64x256xbf16>, vector<48x256xf32> -> vector<48x256xf32>
    %213 = vector.broadcast %128 : vector<1x256xf32> to vector<48x256xf32>
    %214 = arith.addf %212, %213 : vector<48x256xf32>
    %cst_102 = arith.constant 0.000000e+00 : f32
    %215 = vector.broadcast %cst_102 : f32 to vector<48x256xf32>
    %216 = arith.maximumf %214, %215 : vector<48x256xf32>
    %217 = arith.truncf %216 : vector<48x256xf32> to vector<48x256xbf16>
    %cst_103 = arith.constant dense<0.000000e+00> : vector<48x64xf32>
    %218 = tpu.matmul %217, %130, %cst_103 {dimension_numbers = #tpu.dot_dimension_numbers<[1], [0], [0], [1], [0, 0, 1, 1], [], []>} : vector<48x256xbf16>, vector<256x64xbf16>, vector<48x64xf32> -> vector<48x64xf32>
    %219 = vector.broadcast %132 : vector<1x64xf32> to vector<48x64xf32>
    %220 = arith.addf %218, %219 : vector<48x64xf32>
    %221 = arith.addf %188, %220 : vector<48x64xf32>
    %c1 = arith.constant 1 : index
    %c0_104 = arith.constant 0 : index
    %c0_105 = arith.constant 0 : index
    %222 = vector.load %arg19[%c1, %c0_104, %c0_105] : memref<2x192x64xbf16, #tpu.memory_space<vmem>>, vector<1x192x64xbf16>
    %223 = vector.shape_cast %222 : vector<1x192x64xbf16> to vector<192x64xbf16>
    %c1_106 = arith.constant 1 : index
    %c0_107 = arith.constant 0 : index
    %c0_108 = arith.constant 0 : index
    %224 = vector.load %arg20[%c1_106, %c0_107, %c0_108] : memref<2x64x64xbf16, #tpu.memory_space<vmem>>, vector<1x64x64xbf16>
    %225 = vector.shape_cast %224 : vector<1x64x64xbf16> to vector<64x64xbf16>
    %c1_109 = arith.constant 1 : index
    %c0_110 = arith.constant 0 : index
    %c0_111 = arith.constant 0 : index
    %226 = vector.load %arg21[%c1_109, %c0_110, %c0_111] : memref<2x1x64xf32, #tpu.memory_space<vmem>>, vector<1x1x64xf32>
    %227 = vector.shape_cast %226 : vector<1x1x64xf32> to vector<1x64xf32>
    %c1_112 = arith.constant 1 : index
    %c0_113 = arith.constant 0 : index
    %c0_114 = arith.constant 0 : index
    %228 = vector.load %arg22[%c1_112, %c0_113, %c0_114] : memref<2x1x64xf32, #tpu.memory_space<vmem>>, vector<1x1x64xf32>
    %229 = vector.shape_cast %228 : vector<1x1x64xf32> to vector<1x64xf32>
    %c1_115 = arith.constant 1 : index
    %c0_116 = arith.constant 0 : index
    %c0_117 = arith.constant 0 : index
    %230 = vector.load %arg23[%c1_115, %c0_116, %c0_117] : memref<2x64x256xbf16, #tpu.memory_space<vmem>>, vector<1x64x256xbf16>
    %231 = vector.shape_cast %230 : vector<1x64x256xbf16> to vector<64x256xbf16>
    %c1_118 = arith.constant 1 : index
    %c0_119 = arith.constant 0 : index
    %c0_120 = arith.constant 0 : index
    %232 = vector.load %arg24[%c1_118, %c0_119, %c0_120] : memref<2x1x256xf32, #tpu.memory_space<vmem>>, vector<1x1x256xf32>
    %233 = vector.shape_cast %232 : vector<1x1x256xf32> to vector<1x256xf32>
    %c1_121 = arith.constant 1 : index
    %c0_122 = arith.constant 0 : index
    %c0_123 = arith.constant 0 : index
    %234 = vector.load %arg25[%c1_121, %c0_122, %c0_123] : memref<2x256x64xbf16, #tpu.memory_space<vmem>>, vector<1x256x64xbf16>
    %235 = vector.shape_cast %234 : vector<1x256x64xbf16> to vector<256x64xbf16>
    %c1_124 = arith.constant 1 : index
    %c0_125 = arith.constant 0 : index
    %c0_126 = arith.constant 0 : index
    %236 = vector.load %arg26[%c1_124, %c0_125, %c0_126] : memref<2x1x64xf32, #tpu.memory_space<vmem>>, vector<1x1x64xf32>
    %237 = vector.shape_cast %236 : vector<1x1x64xf32> to vector<1x64xf32>
    %c1_127 = arith.constant 1 : index
    %c0_128 = arith.constant 0 : index
    %c0_129 = arith.constant 0 : index
    %238 = vector.load %arg27[%c1_127, %c0_128, %c0_129] : memref<2x1x64xf32, #tpu.memory_space<vmem>>, vector<1x1x64xf32>
    %239 = vector.shape_cast %238 : vector<1x1x64xf32> to vector<1x64xf32>
    %c1_130 = arith.constant 1 : index
    %c0_131 = arith.constant 0 : index
    %c0_132 = arith.constant 0 : index
    %240 = vector.load %arg28[%c1_130, %c0_131, %c0_132] : memref<2x1x64xf32, #tpu.memory_space<vmem>>, vector<1x1x64xf32>
    %241 = vector.shape_cast %240 : vector<1x1x64xf32> to vector<1x64xf32>
    %cst_133 = arith.constant dense<0.000000e+00> : vector<48xf32>
    %242 = vector.multi_reduction <add>, %221, %cst_133 [1] : vector<48x64xf32> to vector<48xf32>
    %243 = vector.shape_cast %242 : vector<48xf32> to vector<48x1xf32>
    %cst_134 = arith.constant 6.400000e+01 : f32
    %244 = vector.broadcast %cst_134 : f32 to vector<48x1xf32>
    %245 = arith.divf %243, %244 : vector<48x1xf32>
    %246 = vector.broadcast %245 : vector<48x1xf32> to vector<48x64xf32>
    %247 = arith.subf %221, %246 : vector<48x64xf32>
    %248 = arith.mulf %247, %247 : vector<48x64xf32>
    %cst_135 = arith.constant dense<0.000000e+00> : vector<48xf32>
    %249 = vector.multi_reduction <add>, %248, %cst_135 [1] : vector<48x64xf32> to vector<48xf32>
    %250 = vector.shape_cast %249 : vector<48xf32> to vector<48x1xf32>
    %cst_136 = arith.constant 6.400000e+01 : f32
    %251 = vector.broadcast %cst_136 : f32 to vector<48x1xf32>
    %252 = arith.divf %250, %251 : vector<48x1xf32>
    %253 = vector.broadcast %245 : vector<48x1xf32> to vector<48x64xf32>
    %254 = arith.subf %221, %253 : vector<48x64xf32>
    %cst_137 = arith.constant 9.99999974E-6 : f32
    %255 = vector.broadcast %cst_137 : f32 to vector<48x1xf32>
    %256 = arith.addf %252, %255 : vector<48x1xf32>
    %257 = math.rsqrt %256 : vector<48x1xf32>
    %258 = vector.broadcast %257 : vector<48x1xf32> to vector<48x64xf32>
    %259 = arith.mulf %254, %258 : vector<48x64xf32>
    %260 = vector.broadcast %227 : vector<1x64xf32> to vector<48x64xf32>
    %261 = arith.mulf %259, %260 : vector<48x64xf32>
    %262 = vector.broadcast %229 : vector<1x64xf32> to vector<48x64xf32>
    %263 = arith.addf %261, %262 : vector<48x64xf32>
    %264 = arith.truncf %263 : vector<48x64xf32> to vector<48x64xbf16>
    %cst_138 = arith.constant dense<0.000000e+00> : vector<192x48xf32>
    %265 = tpu.matmul %223, %264, %cst_138 {dimension_numbers = #tpu.dot_dimension_numbers<[1], [1], [0], [0], [0, 0, 1, 0], [], []>} : vector<192x64xbf16>, vector<48x64xbf16>, vector<192x48xf32> -> vector<192x48xf32>
    %266 = vector.extract_strided_slice %265 {offsets = [0, 0], sizes = [64, 48], strides = [1, 1]} : vector<192x48xf32> to vector<64x48xf32>
    %267 = vector.shape_cast %266 : vector<64x48xf32> to vector<4x16x48xf32>
    %268 = arith.truncf %267 : vector<4x16x48xf32> to vector<4x16x48xbf16>
    %269 = vector.extract_strided_slice %265 {offsets = [64, 0], sizes = [64, 48], strides = [1, 1]} : vector<192x48xf32> to vector<64x48xf32>
    %270 = vector.shape_cast %269 : vector<64x48xf32> to vector<4x16x48xf32>
    %271 = arith.truncf %270 : vector<4x16x48xf32> to vector<4x16x48xbf16>
    %272 = vector.extract_strided_slice %265 {offsets = [128, 0], sizes = [64, 48], strides = [1, 1]} : vector<192x48xf32> to vector<64x48xf32>
    %273 = vector.shape_cast %272 : vector<64x48xf32> to vector<4x16x48xf32>
    %274 = arith.truncf %273 : vector<4x16x48xf32> to vector<4x16x48xbf16>
    "tpu.trace_start"() <{level = 10 : i32, message = "hdq,hdk->hqk"}> : () -> ()
    %cst_139 = arith.constant dense<0.000000e+00> : vector<4x48x48xf32>
    %275 = tpu.matmul %268, %271, %cst_139 {dimension_numbers = #tpu.dot_dimension_numbers<[1], [1], [2], [2], [0, 0, 0, 2, 1, 2], [0], [0]>} : vector<4x16x48xbf16>, vector<4x16x48xbf16>, vector<4x48x48xf32> -> vector<4x48x48xf32>
    "tpu.trace_stop"() : () -> ()
    %cst_140 = arith.constant 2.500000e-01 : f32
    %276 = vector.broadcast %cst_140 : f32 to vector<4x48x48xf32>
    %277 = arith.mulf %275, %276 : vector<4x48x48xf32>
    %cst_141 = arith.constant dense<0xFF800000> : vector<4x48xf32>
    %278 = vector.multi_reduction <maximumf>, %277, %cst_141 [2] : vector<4x48x48xf32> to vector<4x48xf32>
    %279 = vector.shape_cast %278 : vector<4x48xf32> to vector<4x48x1xf32>
    %280 = vector.broadcast %279 : vector<4x48x1xf32> to vector<4x48x48xf32>
    %281 = arith.subf %277, %280 : vector<4x48x48xf32>
    %282 = math.exp %281 : vector<4x48x48xf32>
    %cst_142 = arith.constant dense<0.000000e+00> : vector<4x48xf32>
    %283 = vector.multi_reduction <add>, %282, %cst_142 [2] : vector<4x48x48xf32> to vector<4x48xf32>
    %284 = vector.shape_cast %283 : vector<4x48xf32> to vector<4x48x1xf32>
    %285 = tpu.reciprocal %284 {approx = true} : vector<4x48x1xf32> -> vector<4x48x1xf32>
    %286 = vector.broadcast %285 : vector<4x48x1xf32> to vector<4x48x48xf32>
    %287 = arith.mulf %282, %286 : vector<4x48x48xf32>
    %288 = arith.truncf %287 : vector<4x48x48xf32> to vector<4x48x48xbf16>
    "tpu.trace_start"() <{level = 10 : i32, message = "hdk,hqk->hdq"}> : () -> ()
    %cst_143 = arith.constant dense<0.000000e+00> : vector<4x16x48xf32>
    %289 = tpu.matmul %274, %288, %cst_143 {dimension_numbers = #tpu.dot_dimension_numbers<[2], [2], [1], [1], [0, 0, 0, 1, 1, 1], [0], [0]>} : vector<4x16x48xbf16>, vector<4x48x48xbf16>, vector<4x16x48xf32> -> vector<4x16x48xf32>
    "tpu.trace_stop"() : () -> ()
    %290 = vector.shape_cast %289 : vector<4x16x48xf32> to vector<64x48xf32>
    %291 = arith.truncf %290 : vector<64x48xf32> to vector<64x48xbf16>
    %cst_144 = arith.constant dense<0.000000e+00> : vector<48x64xf32>
    %292 = tpu.matmul %291, %225, %cst_144 {dimension_numbers = #tpu.dot_dimension_numbers<[0], [0], [1], [1], [0, 1, 1, 1], [], []>} : vector<64x48xbf16>, vector<64x64xbf16>, vector<48x64xf32> -> vector<48x64xf32>
    %293 = arith.addf %221, %292 : vector<48x64xf32>
    %cst_145 = arith.constant dense<0.000000e+00> : vector<48xf32>
    %294 = vector.multi_reduction <add>, %293, %cst_145 [1] : vector<48x64xf32> to vector<48xf32>
    %295 = vector.shape_cast %294 : vector<48xf32> to vector<48x1xf32>
    %cst_146 = arith.constant 6.400000e+01 : f32
    %296 = vector.broadcast %cst_146 : f32 to vector<48x1xf32>
    %297 = arith.divf %295, %296 : vector<48x1xf32>
    %298 = vector.broadcast %297 : vector<48x1xf32> to vector<48x64xf32>
    %299 = arith.subf %293, %298 : vector<48x64xf32>
    %300 = arith.mulf %299, %299 : vector<48x64xf32>
    %cst_147 = arith.constant dense<0.000000e+00> : vector<48xf32>
    %301 = vector.multi_reduction <add>, %300, %cst_147 [1] : vector<48x64xf32> to vector<48xf32>
    %302 = vector.shape_cast %301 : vector<48xf32> to vector<48x1xf32>
    %cst_148 = arith.constant 6.400000e+01 : f32
    %303 = vector.broadcast %cst_148 : f32 to vector<48x1xf32>
    %304 = arith.divf %302, %303 : vector<48x1xf32>
    %305 = vector.broadcast %297 : vector<48x1xf32> to vector<48x64xf32>
    %306 = arith.subf %293, %305 : vector<48x64xf32>
    %cst_149 = arith.constant 9.99999974E-6 : f32
    %307 = vector.broadcast %cst_149 : f32 to vector<48x1xf32>
    %308 = arith.addf %304, %307 : vector<48x1xf32>
    %309 = math.rsqrt %308 : vector<48x1xf32>
    %310 = vector.broadcast %309 : vector<48x1xf32> to vector<48x64xf32>
    %311 = arith.mulf %306, %310 : vector<48x64xf32>
    %312 = vector.broadcast %239 : vector<1x64xf32> to vector<48x64xf32>
    %313 = arith.mulf %311, %312 : vector<48x64xf32>
    %314 = vector.broadcast %241 : vector<1x64xf32> to vector<48x64xf32>
    %315 = arith.addf %313, %314 : vector<48x64xf32>
    %316 = arith.truncf %315 : vector<48x64xf32> to vector<48x64xbf16>
    %cst_150 = arith.constant dense<0.000000e+00> : vector<48x256xf32>
    %317 = tpu.matmul %316, %231, %cst_150 {dimension_numbers = #tpu.dot_dimension_numbers<[1], [0], [0], [1], [0, 0, 1, 1], [], []>} : vector<48x64xbf16>, vector<64x256xbf16>, vector<48x256xf32> -> vector<48x256xf32>
    %318 = vector.broadcast %233 : vector<1x256xf32> to vector<48x256xf32>
    %319 = arith.addf %317, %318 : vector<48x256xf32>
    %cst_151 = arith.constant 0.000000e+00 : f32
    %320 = vector.broadcast %cst_151 : f32 to vector<48x256xf32>
    %321 = arith.maximumf %319, %320 : vector<48x256xf32>
    %322 = arith.truncf %321 : vector<48x256xf32> to vector<48x256xbf16>
    %cst_152 = arith.constant dense<0.000000e+00> : vector<48x64xf32>
    %323 = tpu.matmul %322, %235, %cst_152 {dimension_numbers = #tpu.dot_dimension_numbers<[1], [0], [0], [1], [0, 0, 1, 1], [], []>} : vector<48x256xbf16>, vector<256x64xbf16>, vector<48x64xf32> -> vector<48x64xf32>
    %324 = vector.broadcast %237 : vector<1x64xf32> to vector<48x64xf32>
    %325 = arith.addf %323, %324 : vector<48x64xf32>
    %326 = arith.addf %293, %325 : vector<48x64xf32>
    %327 = vector.extract_strided_slice %326 {offsets = [16, 0], sizes = [32, 64], strides = [1, 1]} : vector<48x64xf32> to vector<32x64xf32>
    %328 = arith.truncf %327 : vector<32x64xf32> to vector<32x64xbf16>
    %c0_153 = arith.constant 0 : index
    %c0_154 = arith.constant 0 : index
    %329 = vector.load %arg29[%c0_153, %c0_154] : memref<64x64xbf16, #tpu.memory_space<vmem>>, vector<64x64xbf16>
    %cst_155 = arith.constant dense<0.000000e+00> : vector<32x64xf32>
    %330 = tpu.matmul %328, %329, %cst_155 {dimension_numbers = #tpu.dot_dimension_numbers<[1], [0], [0], [1], [0, 0, 1, 1], [], []>} : vector<32x64xbf16>, vector<64x64xbf16>, vector<32x64xf32> -> vector<32x64xf32>
    %c0_156 = arith.constant 0 : index
    %c0_157 = arith.constant 0 : index
    %331 = vector.load %arg30[%c0_156, %c0_157] : memref<1x64xf32, #tpu.memory_space<vmem>>, vector<1x64xf32>
    %332 = vector.broadcast %331 : vector<1x64xf32> to vector<32x64xf32>
    %333 = arith.addf %330, %332 : vector<32x64xf32>
    %334 = arith.truncf %333 : vector<32x64xf32> to vector<32x64xbf16>
    %cst_158 = arith.constant 1.000000e+30 : f32
    %335 = vector.broadcast %cst_158 : f32 to vector<32x1xf32>
    %cst_159 = arith.constant 0.000000e+00 : f32
    %336 = vector.broadcast %cst_159 : f32 to vector<32x64xf32>
    %c0_i32_160 = arith.constant 0 : i32
    %c16_i32_161 = arith.constant 16 : i32
    %337 = arith.addi %c0_i32_160, %c16_i32_161 : i32
    %c1_i32_162 = arith.constant 1 : i32
    %338:2 = scf.for %arg40 = %c0_i32_160 to %337 step %c1_i32_162 iter_args(%arg41 = %335, %arg42 = %336) -> (vector<32x1xf32>, vector<32x64xf32>)  : i32 {
      %c512_i32 = arith.constant 512 : i32
      %393 = arith.muli %arg40, %c512_i32 : i32
      %394 = tpu.assume_multiple %393, 512 : i32
      %395 = arith.index_cast %394 : i32 to index
      %c0_198 = arith.constant 0 : index
      %396 = vector.load %arg16[%395, %c0_198] : memref<8192x64xbf16, #tpu.memory_space<vmem>>, vector<512x64xbf16>
      %c0_199 = arith.constant 0 : index
      %397 = arith.index_cast %394 : i32 to index
      %398 = vector.load %arg17[%c0_199, %397] : memref<1x8192xf32, #tpu.memory_space<vmem>>, vector<1x512xf32>
      %cst_200 = arith.constant dense<0.000000e+00> : vector<32x512xf32>
      %399 = tpu.matmul %334, %396, %cst_200 {dimension_numbers = #tpu.dot_dimension_numbers<[1], [1], [0], [0], [0, 0, 1, 0], [], []>} : vector<32x64xbf16>, vector<512x64xbf16>, vector<32x512xf32> -> vector<32x512xf32>
      %cst_201 = arith.constant 2.000000e+00 : f32
      %400 = vector.broadcast %cst_201 : f32 to vector<32x512xf32>
      %401 = arith.mulf %400, %399 : vector<32x512xf32>
      %402 = vector.broadcast %398 : vector<1x512xf32> to vector<32x512xf32>
      %403 = arith.subf %402, %401 : vector<32x512xf32>
      %cst_202 = arith.constant dense<0x7F800000> : vector<32xf32>
      %404 = vector.multi_reduction <minimumf>, %403, %cst_202 [1] : vector<32x512xf32> to vector<32xf32>
      %405 = vector.shape_cast %404 : vector<32xf32> to vector<32x1xf32>
      %406 = tpu.iota {dimensions = array<i32: 1>} : vector<32x512xi32>
      %407 = vector.broadcast %405 : vector<32x1xf32> to vector<32x512xf32>
      %408 = arith.cmpf ole, %403, %407 : vector<32x512xf32>
      %c512_i32_203 = arith.constant 512 : i32
      %409 = vector.broadcast %c512_i32_203 : i32 to vector<32x512xi32>
      %410 = arith.select %408, %406, %409 : vector<32x512xi1>, vector<32x512xi32>
      %cst_204 = arith.constant dense<2147483647> : vector<32xi32>
      %411 = vector.multi_reduction <minsi>, %410, %cst_204 [1] : vector<32x512xi32> to vector<32xi32>
      %412 = vector.shape_cast %411 : vector<32xi32> to vector<32x1xi32>
      %413 = vector.broadcast %412 : vector<32x1xi32> to vector<32x512xi32>
      %414 = arith.cmpi eq, %406, %413 : vector<32x512xi32>
      %415 = arith.extui %414 : vector<32x512xi1> to vector<32x512xi32>
      %416 = arith.sitofp %415 : vector<32x512xi32> to vector<32x512xf32>
      %417 = arith.truncf %416 : vector<32x512xf32> to vector<32x512xbf16>
      %cst_205 = arith.constant dense<0.000000e+00> : vector<32x64xf32>
      %418 = tpu.matmul %417, %396, %cst_205 {dimension_numbers = #tpu.dot_dimension_numbers<[1], [0], [0], [1], [0, 0, 1, 1], [], []>} : vector<32x512xbf16>, vector<512x64xbf16>, vector<32x64xf32> -> vector<32x64xf32>
      %419 = arith.cmpf olt, %405, %arg41 : vector<32x1xf32>
      %420 = vector.shape_cast %419 : vector<32x1xi1> to vector<32x1xi1>
      %421 = vector.broadcast %420 : vector<32x1xi1> to vector<32x64xi1>
      %422 = arith.select %421, %418, %arg42 : vector<32x64xi1>, vector<32x64xf32>
      %423 = arith.select %419, %405, %arg41 : vector<32x1xi1>, vector<32x1xf32>
      scf.yield %423, %422 : vector<32x1xf32>, vector<32x64xf32>
    }
    %c16_i32_163 = arith.constant 16 : i32
    %339 = arith.truncf %338#1 : vector<32x64xf32> to vector<32x64xbf16>
    %c0_164 = arith.constant 0 : index
    %c0_165 = arith.constant 0 : index
    %340 = vector.load %arg31[%c0_164, %c0_165] : memref<32x256xbf16, #tpu.memory_space<vmem>>, vector<32x256xbf16>
    %cst_166 = arith.constant dense<0.000000e+00> : vector<64x256xf32>
    %341 = tpu.matmul %339, %340, %cst_166 {dimension_numbers = #tpu.dot_dimension_numbers<[0], [0], [1], [1], [0, 1, 1, 1], [], []>} : vector<32x64xbf16>, vector<32x256xbf16>, vector<64x256xf32> -> vector<64x256xf32>
    %cst_167 = arith.constant 0.000000e+00 : f32
    %342 = vector.broadcast %cst_167 : f32 to vector<64x256xf32>
    %343 = arith.maximumf %341, %342 : vector<64x256xf32>
    %c0_168 = arith.constant 0 : index
    %c0_169 = arith.constant 0 : index
    %c0_170 = arith.constant 0 : index
    %344 = vector.load %arg2[%c0_168, %c0_169, %c0_170] : memref<1x4x256xf32, #tpu.memory_space<vmem>>, vector<1x4x256xf32>
    %345 = vector.shape_cast %344 : vector<1x4x256xf32> to vector<4x256xf32>
    %346 = vector.extract_strided_slice %345 {offsets = [0, 0], sizes = [1, 256], strides = [1, 1]} : vector<4x256xf32> to vector<1x256xf32>
    %347 = vector.extract_strided_slice %345 {offsets = [1, 0], sizes = [1, 256], strides = [1, 1]} : vector<4x256xf32> to vector<1x256xf32>
    %348 = math.sin %346 : vector<1x256xf32>
    %cst_171 = arith.constant 1.000000e-01 : f32
    %349 = vector.broadcast %cst_171 : f32 to vector<1x256xf32>
    %350 = arith.addf %346, %349 : vector<1x256xf32>
    %351 = math.cos %350 : vector<1x256xf32>
    %352 = arith.mulf %348, %351 : vector<1x256xf32>
    %353 = math.sin %347 : vector<1x256xf32>
    %cst_172 = arith.constant 1.000000e-01 : f32
    %354 = vector.broadcast %cst_172 : f32 to vector<1x256xf32>
    %355 = arith.subf %346, %354 : vector<1x256xf32>
    %356 = math.cos %355 : vector<1x256xf32>
    %357 = arith.mulf %353, %356 : vector<1x256xf32>
    %358 = tpu.iota {dimensions = array<i32: 0>} : vector<4x256xi32>
    %c0_i32_173 = arith.constant 0 : i32
    %359 = vector.broadcast %c0_i32_173 : i32 to vector<4x256xi32>
    %360 = arith.cmpi eq, %358, %359 : vector<4x256xi32>
    %c1_i32_174 = arith.constant 1 : i32
    %361 = vector.broadcast %c1_i32_174 : i32 to vector<4x256xi32>
    %362 = arith.cmpi eq, %358, %361 : vector<4x256xi32>
    %363 = vector.shape_cast %357 : vector<1x256xf32> to vector<1x256xf32>
    %364 = vector.broadcast %363 : vector<1x256xf32> to vector<4x256xf32>
    %365 = arith.select %362, %364, %345 : vector<4x256xi1>, vector<4x256xf32>
    %366 = vector.shape_cast %352 : vector<1x256xf32> to vector<1x256xf32>
    %367 = vector.broadcast %366 : vector<1x256xf32> to vector<4x256xf32>
    %368 = arith.select %360, %367, %365 : vector<4x256xi1>, vector<4x256xf32>
    %c0_175 = arith.constant 0 : index
    %c0_176 = arith.constant 0 : index
    %369 = vector.load %arg32[%c0_175, %c0_176] : memref<12x64xf32, #tpu.memory_space<vmem>>, vector<12x64xf32>
    %cst_177 = arith.constant dense<0.000000e+00> : vector<12x256xf32>
    %370 = tpu.matmul %369, %343, %cst_177 {dimension_numbers = #tpu.dot_dimension_numbers<[1], [0], [0], [1], [0, 0, 1, 1], [], []>} : vector<12x64xf32>, vector<64x256xf32>, vector<12x256xf32> -> vector<12x256xf32>
    %c0_178 = arith.constant 0 : index
    %c0_179 = arith.constant 0 : index
    %371 = vector.load %arg33[%c0_178, %c0_179] : memref<12x4xf32, #tpu.memory_space<vmem>>, vector<12x4xf32>
    %cst_180 = arith.constant dense<0.000000e+00> : vector<12x256xf32>
    %372 = tpu.matmul %371, %368, %cst_180 {dimension_numbers = #tpu.dot_dimension_numbers<[1], [0], [0], [1], [0, 0, 1, 1], [], []>} : vector<12x4xf32>, vector<4x256xf32>, vector<12x256xf32> -> vector<12x256xf32>
    %373 = arith.addf %370, %372 : vector<12x256xf32>
    %c0_181 = arith.constant 0 : index
    %c0_182 = arith.constant 0 : index
    %374 = vector.load %arg34[%c0_181, %c0_182] : memref<12x1xf32, #tpu.memory_space<vmem>>, vector<12x1xf32>
    %375 = vector.broadcast %374 : vector<12x1xf32> to vector<12x256xf32>
    %376 = arith.addf %373, %375 : vector<12x256xf32>
    %c0_183 = arith.constant 0 : index
    %c0_184 = arith.constant 0 : index
    %377 = vector.load %arg35[%c0_183, %c0_184] : memref<8x64xf32, #tpu.memory_space<vmem>>, vector<8x64xf32>
    %cst_185 = arith.constant dense<0.000000e+00> : vector<8x256xf32>
    %378 = tpu.matmul %377, %343, %cst_185 {dimension_numbers = #tpu.dot_dimension_numbers<[1], [0], [0], [1], [0, 0, 1, 1], [], []>} : vector<8x64xf32>, vector<64x256xf32>, vector<8x256xf32> -> vector<8x256xf32>
    %c0_186 = arith.constant 0 : index
    %c0_187 = arith.constant 0 : index
    %379 = vector.load %arg36[%c0_186, %c0_187] : memref<8x4xf32, #tpu.memory_space<vmem>>, vector<8x4xf32>
    %cst_188 = arith.constant dense<0.000000e+00> : vector<8x256xf32>
    %380 = tpu.matmul %379, %368, %cst_188 {dimension_numbers = #tpu.dot_dimension_numbers<[1], [0], [0], [1], [0, 0, 1, 1], [], []>} : vector<8x4xf32>, vector<4x256xf32>, vector<8x256xf32> -> vector<8x256xf32>
    %381 = arith.addf %378, %380 : vector<8x256xf32>
    %c0_189 = arith.constant 0 : index
    %c0_190 = arith.constant 0 : index
    %382 = vector.load %arg38[%c0_189, %c0_190] : memref<8x12xf32, #tpu.memory_space<vmem>>, vector<8x12xf32>
    %cst_191 = arith.constant 0.000000e+00 : f32
    %383 = vector.broadcast %cst_191 : f32 to vector<12x256xf32>
    %384 = arith.maximumf %376, %383 : vector<12x256xf32>
    %cst_192 = arith.constant dense<0.000000e+00> : vector<8x256xf32>
    %385 = tpu.matmul %382, %384, %cst_192 {dimension_numbers = #tpu.dot_dimension_numbers<[1], [0], [0], [1], [0, 0, 1, 1], [], []>} : vector<8x12xf32>, vector<12x256xf32>, vector<8x256xf32> -> vector<8x256xf32>
    %386 = arith.addf %381, %385 : vector<8x256xf32>
    %c0_193 = arith.constant 0 : index
    %c0_194 = arith.constant 0 : index
    %387 = vector.load %arg37[%c0_193, %c0_194] : memref<8x1xf32, #tpu.memory_space<vmem>>, vector<8x1xf32>
    %388 = vector.broadcast %387 : vector<8x1xf32> to vector<8x256xf32>
    %389 = arith.addf %386, %388 : vector<8x256xf32>
    %c0_195 = arith.constant 0 : index
    %c0_196 = arith.constant 0 : index
    %c0_197 = arith.constant 0 : index
    %390 = vector.load %arg39[%c0_195, %c0_196, %c0_197] : memref<1x8x256xf32, #tpu.memory_space<vmem>>, vector<1x8x256xf32>
    %391 = vector.shape_cast %390 : vector<1x8x256xf32> to vector<8x256xf32>
    %392 = vector.shape_cast %389 : vector<8x256xf32> to vector<1x8x256xf32>
    tpu.vector_store %arg39[%c0_195, %c0_196, %c0_197], %392 {strides = array<i32>} : memref<1x8x256xf32, #tpu.memory_space<vmem>>, vector<1x8x256xf32>,
    return
  }
  func.func @transform_0(%arg0: i32) -> (i32, i32, i32) {
    %c0_i32 = arith.constant 0 : i32
    %c0_i32_0 = arith.constant 0 : i32
    %c0_i32_1 = arith.constant 0 : i32
    return %arg0, %c0_i32, %c0_i32_0 : i32, i32, i32
  }
  func.func @transform_1(%arg0: i32) -> (i32, i32, i32) {
    %c0_i32 = arith.constant 0 : i32
    %c0_i32_0 = arith.constant 0 : i32
    %c0_i32_1 = arith.constant 0 : i32
    return %arg0, %c0_i32, %c0_i32_0 : i32, i32, i32
  }
  func.func @transform_2(%arg0: i32) -> (i32, i32) {
    %c0_i32 = arith.constant 0 : i32
    %c0_i32_0 = arith.constant 0 : i32
    %c0_i32_1 = arith.constant 0 : i32
    return %c0_i32, %c0_i32_0 : i32, i32
  }
  func.func @transform_3(%arg0: i32) -> (i32, i32) {
    %c0_i32 = arith.constant 0 : i32
    %c0_i32_0 = arith.constant 0 : i32
    %c0_i32_1 = arith.constant 0 : i32
    return %c0_i32, %c0_i32_0 : i32, i32
  }
  func.func @transform_4(%arg0: i32) -> (i32, i32) {
    %c0_i32 = arith.constant 0 : i32
    %c0_i32_0 = arith.constant 0 : i32
    %c0_i32_1 = arith.constant 0 : i32
    return %c0_i32, %c0_i32_0 : i32, i32
  }
  func.func @transform_5(%arg0: i32) -> (i32, i32) {
    %c0_i32 = arith.constant 0 : i32
    %c0_i32_0 = arith.constant 0 : i32
    %c0_i32_1 = arith.constant 0 : i32
    return %c0_i32, %c0_i32_0 : i32, i32
  }
  func.func @transform_6(%arg0: i32) -> (i32, i32) {
    %c0_i32 = arith.constant 0 : i32
    %c0_i32_0 = arith.constant 0 : i32
    %c0_i32_1 = arith.constant 0 : i32
    return %c0_i32, %c0_i32_0 : i32, i32
  }
  func.func @transform_7(%arg0: i32) -> (i32, i32) {
    %c0_i32 = arith.constant 0 : i32
    %c0_i32_0 = arith.constant 0 : i32
    %c0_i32_1 = arith.constant 0 : i32
    return %c0_i32, %c0_i32_0 : i32, i32
  }
  func.func @transform_8(%arg0: i32) -> (i32, i32) {
    %c0_i32 = arith.constant 0 : i32
    %c0_i32_0 = arith.constant 0 : i32
    %c0_i32_1 = arith.constant 0 : i32
    return %c0_i32, %c0_i32_0 : i32, i32
  }
  func.func @transform_9(%arg0: i32) -> (i32, i32) {
    %c0_i32 = arith.constant 0 : i32
    %c0_i32_0 = arith.constant 0 : i32
    %c0_i32_1 = arith.constant 0 : i32
    return %c0_i32, %c0_i32_0 : i32, i32
  }
  func.func @transform_10(%arg0: i32) -> (i32, i32) {
    %c0_i32 = arith.constant 0 : i32
    %c0_i32_0 = arith.constant 0 : i32
    %c0_i32_1 = arith.constant 0 : i32
    return %c0_i32, %c0_i32_0 : i32, i32
  }
  func.func @transform_11(%arg0: i32) -> (i32, i32) {
    %c0_i32 = arith.constant 0 : i32
    %c0_i32_0 = arith.constant 0 : i32
    %c0_i32_1 = arith.constant 0 : i32
    return %c0_i32, %c0_i32_0 : i32, i32
  }
  func.func @transform_12(%arg0: i32) -> (i32, i32) {
    %c0_i32 = arith.constant 0 : i32
    %c0_i32_0 = arith.constant 0 : i32
    %c0_i32_1 = arith.constant 0 : i32
    return %c0_i32, %c0_i32_0 : i32, i32
  }
  func.func @transform_13(%arg0: i32) -> (i32, i32) {
    %c0_i32 = arith.constant 0 : i32
    %c0_i32_0 = arith.constant 0 : i32
    %c0_i32_1 = arith.constant 0 : i32
    return %c0_i32, %c0_i32_0 : i32, i32
  }
  func.func @transform_14(%arg0: i32) -> (i32, i32) {
    %c0_i32 = arith.constant 0 : i32
    %c0_i32_0 = arith.constant 0 : i32
    %c0_i32_1 = arith.constant 0 : i32
    return %c0_i32, %c0_i32_0 : i32, i32
  }
  func.func @transform_15(%arg0: i32) -> (i32, i32) {
    %c0_i32 = arith.constant 0 : i32
    %c0_i32_0 = arith.constant 0 : i32
    %c0_i32_1 = arith.constant 0 : i32
    return %c0_i32, %c0_i32_0 : i32, i32
  }
  func.func @transform_16(%arg0: i32) -> (i32, i32) {
    %c0_i32 = arith.constant 0 : i32
    %c0_i32_0 = arith.constant 0 : i32
    %c0_i32_1 = arith.constant 0 : i32
    return %c0_i32, %c0_i32_0 : i32, i32
  }
  func.func @transform_17(%arg0: i32) -> (i32, i32) {
    %c0_i32 = arith.constant 0 : i32
    %c0_i32_0 = arith.constant 0 : i32
    %c0_i32_1 = arith.constant 0 : i32
    return %c0_i32, %c0_i32_0 : i32, i32
  }
  func.func @transform_18(%arg0: i32) -> (i32, i32, i32) {
    %c0_i32 = arith.constant 0 : i32
    %c0_i32_0 = arith.constant 0 : i32
    %c0_i32_1 = arith.constant 0 : i32
    %c0_i32_2 = arith.constant 0 : i32
    return %c0_i32, %c0_i32_0, %c0_i32_1 : i32, i32, i32
  }
  func.func @transform_19(%arg0: i32) -> (i32, i32, i32) {
    %c0_i32 = arith.constant 0 : i32
    %c0_i32_0 = arith.constant 0 : i32
    %c0_i32_1 = arith.constant 0 : i32
    %c0_i32_2 = arith.constant 0 : i32
    return %c0_i32, %c0_i32_0, %c0_i32_1 : i32, i32, i32
  }
  func.func @transform_20(%arg0: i32) -> (i32, i32, i32) {
    %c0_i32 = arith.constant 0 : i32
    %c0_i32_0 = arith.constant 0 : i32
    %c0_i32_1 = arith.constant 0 : i32
    %c0_i32_2 = arith.constant 0 : i32
    return %c0_i32, %c0_i32_0, %c0_i32_1 : i32, i32, i32
  }
  func.func @transform_21(%arg0: i32) -> (i32, i32, i32) {
    %c0_i32 = arith.constant 0 : i32
    %c0_i32_0 = arith.constant 0 : i32
    %c0_i32_1 = arith.constant 0 : i32
    %c0_i32_2 = arith.constant 0 : i32
    return %c0_i32, %c0_i32_0, %c0_i32_1 : i32, i32, i32
  }
  func.func @transform_22(%arg0: i32) -> (i32, i32, i32) {
    %c0_i32 = arith.constant 0 : i32
    %c0_i32_0 = arith.constant 0 : i32
    %c0_i32_1 = arith.constant 0 : i32
    %c0_i32_2 = arith.constant 0 : i32
    return %c0_i32, %c0_i32_0, %c0_i32_1 : i32, i32, i32
  }
  func.func @transform_23(%arg0: i32) -> (i32, i32, i32) {
    %c0_i32 = arith.constant 0 : i32
    %c0_i32_0 = arith.constant 0 : i32
    %c0_i32_1 = arith.constant 0 : i32
    %c0_i32_2 = arith.constant 0 : i32
    return %c0_i32, %c0_i32_0, %c0_i32_1 : i32, i32, i32
  }
  func.func @transform_24(%arg0: i32) -> (i32, i32, i32) {
    %c0_i32 = arith.constant 0 : i32
    %c0_i32_0 = arith.constant 0 : i32
    %c0_i32_1 = arith.constant 0 : i32
    %c0_i32_2 = arith.constant 0 : i32
    return %c0_i32, %c0_i32_0, %c0_i32_1 : i32, i32, i32
  }
  func.func @transform_25(%arg0: i32) -> (i32, i32, i32) {
    %c0_i32 = arith.constant 0 : i32
    %c0_i32_0 = arith.constant 0 : i32
    %c0_i32_1 = arith.constant 0 : i32
    %c0_i32_2 = arith.constant 0 : i32
    return %c0_i32, %c0_i32_0, %c0_i32_1 : i32, i32, i32
  }
  func.func @transform_26(%arg0: i32) -> (i32, i32, i32) {
    %c0_i32 = arith.constant 0 : i32
    %c0_i32_0 = arith.constant 0 : i32
    %c0_i32_1 = arith.constant 0 : i32
    %c0_i32_2 = arith.constant 0 : i32
    return %c0_i32, %c0_i32_0, %c0_i32_1 : i32, i32, i32
  }
  func.func @transform_27(%arg0: i32) -> (i32, i32, i32) {
    %c0_i32 = arith.constant 0 : i32
    %c0_i32_0 = arith.constant 0 : i32
    %c0_i32_1 = arith.constant 0 : i32
    %c0_i32_2 = arith.constant 0 : i32
    return %c0_i32, %c0_i32_0, %c0_i32_1 : i32, i32, i32
  }
  func.func @transform_28(%arg0: i32) -> (i32, i32) {
    %c0_i32 = arith.constant 0 : i32
    %c0_i32_0 = arith.constant 0 : i32
    %c0_i32_1 = arith.constant 0 : i32
    return %c0_i32, %c0_i32_0 : i32, i32
  }
  func.func @transform_29(%arg0: i32) -> (i32, i32) {
    %c0_i32 = arith.constant 0 : i32
    %c0_i32_0 = arith.constant 0 : i32
    %c0_i32_1 = arith.constant 0 : i32
    return %c0_i32, %c0_i32_0 : i32, i32
  }
  func.func @transform_30(%arg0: i32) -> (i32, i32) {
    %c0_i32 = arith.constant 0 : i32
    %c0_i32_0 = arith.constant 0 : i32
    %c0_i32_1 = arith.constant 0 : i32
    return %c0_i32, %c0_i32_0 : i32, i32
  }
  func.func @transform_31(%arg0: i32) -> (i32, i32) {
    %c0_i32 = arith.constant 0 : i32
    %c0_i32_0 = arith.constant 0 : i32
    %c0_i32_1 = arith.constant 0 : i32
    return %c0_i32, %c0_i32_0 : i32, i32
  }
  func.func @transform_32(%arg0: i32) -> (i32, i32) {
    %c0_i32 = arith.constant 0 : i32
    %c0_i32_0 = arith.constant 0 : i32
    %c0_i32_1 = arith.constant 0 : i32
    return %c0_i32, %c0_i32_0 : i32, i32
  }
  func.func @transform_33(%arg0: i32) -> (i32, i32) {
    %c0_i32 = arith.constant 0 : i32
    %c0_i32_0 = arith.constant 0 : i32
    %c0_i32_1 = arith.constant 0 : i32
    return %c0_i32, %c0_i32_0 : i32, i32
  }
  func.func @transform_34(%arg0: i32) -> (i32, i32) {
    %c0_i32 = arith.constant 0 : i32
    %c0_i32_0 = arith.constant 0 : i32
    %c0_i32_1 = arith.constant 0 : i32
    return %c0_i32, %c0_i32_0 : i32, i32
  }
  func.func @transform_35(%arg0: i32) -> (i32, i32) {
    %c0_i32 = arith.constant 0 : i32
    %c0_i32_0 = arith.constant 0 : i32
    %c0_i32_1 = arith.constant 0 : i32
    return %c0_i32, %c0_i32_0 : i32, i32
  }
  func.func @transform_36(%arg0: i32) -> (i32, i32) {
    %c0_i32 = arith.constant 0 : i32
    %c0_i32_0 = arith.constant 0 : i32
    %c0_i32_1 = arith.constant 0 : i32
    return %c0_i32, %c0_i32_0 : i32, i32
  }
  func.func @transform_37(%arg0: i32) -> (i32, i32) {
    %c0_i32 = arith.constant 0 : i32
    %c0_i32_0 = arith.constant 0 : i32
    %c0_i32_1 = arith.constant 0 : i32
    return %c0_i32, %c0_i32_0 : i32, i32
  }
  func.func @transform_38(%arg0: i32) -> (i32, i32, i32) {
    %c0_i32 = arith.constant 0 : i32
    %c0_i32_0 = arith.constant 0 : i32
    %c0_i32_1 = arith.constant 0 : i32
    return %arg0, %c0_i32, %c0_i32_0 : i32, i32, i32
  }
}

</mosaic_0001>

<bundles_post_ra>
// kernel: forward.1
= control target key start
LH: loop header
LB: loop body
LE: loop exit
PB: predicated region body
PF: predicated region fallthrough
CT: control target
= control target key end

     0   :  { %s12118_s6 = smov 1   ;;  %s12119_s10 = smov 2   ;;  %s15145_s0 = inlined_call_operand.smem [shape: u32[39], index: -1, kind: input, shape index: {}] }
   0x1   :  { %s12176_s5 = sld [smem:[%s15145_s0]]   ;;  %s12120_s14 = smov 3  }
   0x2   :  { %s12181_s9 = sld [smem:[%s15145_s0 + %s12118_s6]]   ;;  %s12121_s18 = smov 4  }
   0x3   :  { %s12186_s13 = sld [smem:[%s15145_s0 + %s12119_s10]]   ;;  %s12122_s22 = smov 5  }
   0x4   :  { %s12191_s17 = sld [smem:[%s15145_s0 + %s12120_s14]]   ;;  %s12123_s26 = smov 6  }
   0x5   :  { %s12196_s21 = sld [smem:[%s15145_s0 + %s12121_s18]]   ;;  %s12124_s30 = smov 7  }
   0x6   :  { %s12201_s25 = sld [smem:[%s15145_s0 + %s12122_s22]]   ;;  %s12125_s4 = smov 8  }
   0x7   :  { %15176 = sst [smem:[#allocation2_spill]] %s12176_s5  ;;  %s12126_s10 = smov 9  }
   0x8   :  { %s12206_s29 = sld [smem:[%s15145_s0 + %s12123_s26]]   ;;  %s12127_s15 = smov 10  }
   0x9   :  { %s12211_s3 = sld [smem:[%s15145_s0 + %s12124_s30]]   ;;  %s12128_s20 = smov 11  }
   0xa   :  { %s12216_s8 = sld [smem:[%s15145_s0 + %s12125_s4]]   ;;  %s12129_s26 = smov 12  }
   0xb   :  { %s12221_s14 = sld [smem:[%s15145_s0 + %s12126_s10]]   ;;  %s12130_s1 = smov 13  }
   0xc   :  { %s12226_s19 = sld [smem:[%s15145_s0 + %s12127_s15]]   ;;  %s12131_s7 = smov 14  }
   0xd   :  { %s12231_s24 = sld [smem:[%s15145_s0 + %s12128_s20]]   ;;  %s12132_s15 = smov 15  }
   0xe   :  { %s12236_s30 = sld [smem:[%s15145_s0 + %s12129_s26]]   ;;  %s12133_s22 = smov 16  }
   0xf   :  { %15177 = sst [smem:[#allocation3_spill]] %s12211_s3  ;;  %s12134_s28 = smov 17  }
  0x10   :  { %s12241_s6 = sld [smem:[%s15145_s0 + %s12130_s1]]  }
  0x11   :  { %s12246_s12 = sld [smem:[%s15145_s0 + %s12131_s7]]   ;;  %s12135_s7 = smov 18  }
  0x12   :  { %s12251_s20 = sld [smem:[%s15145_s0 + %s12132_s15]]   ;;  %s12136_s15 = smov 19  }
  0x13   :  { %s12256_s27 = sld [smem:[%s15145_s0 + %s12133_s22]]   ;;  %s12137_s22 = smov 20  }
  0x14   :  { %15178 = sst [smem:[#allocation4_spill]] %s12236_s30 }
  0x15   :  { %s12261_s4 = sld [smem:[%s15145_s0 + %s12134_s28]]   ;;  %s12138_s28 = smov 21  }
  0x16   :  { %15179 = sst [smem:[#allocation5_spill]] %s12241_s6 }
  0x17   :  { %s12266_s30 = sld [smem:[%s15145_s0 + %s12135_s7]]   ;;  %s12139_s7 = smov 22  }
  0x18   :  { %15180 = sst [smem:[#allocation6_spill]] %s12251_s20 }
  0x19   :  { %15181 = sst [smem:[#allocation7_spill]] %s12256_s27 }
  0x1a   :  { %s12271_s20 = sld [smem:[%s15145_s0 + %s12136_s15]]   ;;  %s12140_s15 = smov 23  }
  0x1b   :  { %15182 = sst [smem:[#allocation8_spill]] %s12261_s4 }
  0x1c   :  { %s12276_s27 = sld [smem:[%s15145_s0 + %s12137_s22]]   ;;  %s12141_s22 = smov 24  }
  0x1d   :  { %15183 = sst [smem:[#allocation9_spill]] %s12266_s30 }
  0x1e   :  { %s12281_s4 = sld [smem:[%s15145_s0 + %s12138_s28]]   ;;  %s12142_s28 = smov 25  }
  0x1f   :  { %s12286_s30 = sld [smem:[%s15145_s0 + %s12139_s7]]   ;;  %s12143_s7 = smov 26  }
  0x20   :  { %15184 = sst [smem:[#allocation10_spill]] %s12271_s20 }
  0x21   :  { %s12291_s20 = sld [smem:[%s15145_s0 + %s12140_s15]]   ;;  %s12144_s15 = smov 27  }
  0x22   :  { %15185 = sst [smem:[#allocation11_spill]] %s12276_s27 }
  0x23   :  { %s12296_s27 = sld [smem:[%s15145_s0 + %s12141_s22]]   ;;  %s12145_s22 = smov 28  }
  0x24   :  { %15186 = sst [smem:[#allocation12_spill]] %s12281_s4 }
  0x25   :  { %15187 = sst [smem:[#allocation13_spill]] %s12286_s30 }
  0x26   :  { %s12301_s4 = sld [smem:[%s15145_s0 + %s12142_s28]]   ;;  %s12146_s28 = smov 29  }
  0x27   :  { %15188 = sst [smem:[#allocation14_spill]] %s12291_s20 }
  0x28   :  { %s12306_s30 = sld [smem:[%s15145_s0 + %s12143_s7]]   ;;  %s12147_s7 = smov 30  }
  0x29   :  { %15189 = sst [smem:[#allocation15_spill]] %s12296_s27 }
  0x2a   :  { %s12311_s20 = sld [smem:[%s15145_s0 + %s12144_s15]]   ;;  %s12148_s15 = smov 31  }
  0x2b   :  { %s12316_s27 = sld [smem:[%s15145_s0 + %s12145_s22]]   ;;  %s12149_s22 = smov 32  }
  0x2c   :  { %15190 = sst [smem:[#allocation16_spill]] %s12301_s4 }
  0x2d   :  { %s12321_s4 = sld [smem:[%s15145_s0 + %s12146_s28]]   ;;  %s12150_s28 = smov 33  }
  0x2e   :  { %15191 = sst [smem:[#allocation17_spill]] %s12306_s30 }
  0x2f   :  { %s12326_s30 = sld [smem:[%s15145_s0 + %s12147_s7]]   ;;  %s12151_s7 = smov 34  }
  0x30   :  { %15192 = sst [smem:[#allocation18_spill]] %s12311_s20 }
  0x31   :  { %15193 = sst [smem:[#allocation19_spill]] %s12316_s27 }
  0x32   :  { %s12331_s20 = sld [smem:[%s15145_s0 + %s12148_s15]]   ;;  %s12152_s15 = smov 35  }
  0x33   :  { %15194 = sst [smem:[#allocation20_spill]] %s12321_s4 }
  0x34   :  { %s12336_s27 = sld [smem:[%s15145_s0 + %s12149_s22]]   ;;  %s12153_s22 = smov 36  }
  0x35   :  { %15195 = sst [smem:[#allocation21_spill]] %s12326_s30 }
  0x36   :  { %s12341_s4 = sld [smem:[%s15145_s0 + %s12150_s28]]   ;;  %s12154_s28 = smov 37  }
  0x37   :  { %s12346_s30 = sld [smem:[%s15145_s0 + %s12151_s7]]   ;;  %s12155_s7 = smov 38  }
  0x38   :  { %15196 = sst [smem:[#allocation22_spill]] %s12331_s20 }
  0x39   :  { %s12351_s20 = sld [smem:[%s15145_s0 + %s12152_s15]]   ;;  %s12368_s15 = smov 0  }
  0x3a   :  { %15197 = sst [smem:[#allocation23_spill]] %s12336_s27 }
  0x3b   :  { %s12356_s27 = sld [smem:[%s15145_s0 + %s12153_s22]]  }
  0x3c   :  { %15198 = sst [smem:[#allocation24_spill]] %s12341_s4 }
  0x3d   :  { %15199 = sst [smem:[#allocation25_spill]] %s12346_s30 }
  0x3e   :  { %s12361_s4 = sld [smem:[%s15145_s0 + %s12154_s28]]  }
  0x3f   :  { %s12366_s30 = sld [smem:[%s15145_s0 + %s12155_s7]]  }
  0x40 LB: > { %s9615_s16 = sadd.s32 4294967295, %s12044_s15   ;;  %p9619_p0 = scmp.ge.s32.totalorder %s12044_s15, 1  ;;  %s12044_s15 = sphi %s12368_s15, %s87_s15  }
  0x41   : > { %p1061_p1 = scmp.lt.s32.totalorder %s12044_s15, 3 }
  0x43   : > { %p1062_p2 = pnand %p9619_p0, %p1061_p1 }
  0x44   : > { %v11381_v0 = vld [vmem:[%s12186_s13 + $0x40] sm:$0xff] (!%p1062_p2)   ;;  %p1160_p3 = scmp.lt.s32.totalorder (!%p1062_p2), %s9615_s16, 1  ;;  %v11383_v2 = vld [vmem:[%s12186_s13 + $0x48] sm:$0xff] (!%p1062_p2)   ;;  %s15200_s5 = sld [smem:[#allocation2_spill]] (!%p1062_p2)  ;;  %v11385_v4 = vld [vmem:[%s12186_s13 + $0x50] sm:$0xff] (!%p1062_p2)   ;;  %vm15165_vm0 = vcmask (!%p1062_p2), 523264  }
  0x45   : > { %1065 = sbr.rel (%p1062_p2) target bundleno = 10939 (0x2abb), region = 172  ;;  %v11382_v1 = vld [vmem:[%s12186_s13] sm:$0xff] (!%p1062_p2)   ;;  %10146 = vmatprep.subr.bf16.mxu0 (!%p1062_p2), %v11381_v0  ;;  %v11384_v3 = vld [vmem:[%s12186_s13 + $0x8] sm:$0xff] (!%p1062_p2)   ;;  %v11386_v5 = vld [vmem:[%s12186_s13 + $0x10] sm:$0xff] (!%p1062_p2)   ;;  %s15201_s3 = sld [smem:[#allocation3_spill]] (!%p1062_p2)  ;;  %vm15163_vm1 = vmmov (!%p1062_p2), 0  }
  0x46   : > { %10147 = vmatpush3.bf16.msra.mxu0 (!%p1062_p2), %v11382_v1  ;;  %v11387_v6 = vld [vmem:[%s12186_s13 + $0x58] sm:$0xff] (!%p1062_p2)   ;;  %v11389_v8 = vld [vmem:[%s12186_s13 + $0x60] sm:$0xff] (!%p1062_p2)   ;;  %v11391_v10 = vld [vmem:[%s12186_s13 + $0x68] sm:$0xff] (!%p1062_p2)   ;;  %vm15162_vm2 = vcmask (!%p1062_p2), 130048   ;;  %vm2147_vm4 = vcmask (!%p1062_p2), 326656   ;;  %s15202_s6 = sld [smem:[#allocation5_spill]] (!%p1062_p2) }
  0x47   : > { %10148 = vmatprep.subr.bf16.mxu0 (!%p1062_p2), %v11383_v2  ;;  %v11388_v7 = vld [vmem:[%s12186_s13 + $0x18] sm:$0xff] (!%p1062_p2)   ;;  %v11390_v9 = vld [vmem:[%s12186_s13 + $0x20] sm:$0xff] (!%p1062_p2)   ;;  %v1361_v13 = vld [vmem:[%s12196_s21 + $0x10] sm:$0xff] (!%p1062_p2)  ;;  %s15203_s28 = sld [smem:[#allocation4_spill]] (!%p1062_p2)  ;;  %s12951_s1 = smov (!%p1062_p2), 0  }
  0x48   : > { %v1359_v12 = vld [vmem:[%s12196_s21] sm:$0xff] (!%p1062_p2)  ;;  %v11392_v14 = vld [vmem:[%s12186_s13 + $0x28] sm:$0xff] (!%p1062_p2)   ;;  %v1448_v17 = vsel (!%p1062_p2), %vm15165_vm0, %v1361_v13, 0.0  ;;  %v1362_v19 = vld [vmem:[%s12196_s21 + $0x18] sm:$0xff] (!%p1062_p2) }
  0x49   : > { %v1442_v16 = vsel (!%p1062_p2), %vm15165_vm0, %v1359_v12, 0.0  ;;  %v1360_v18 = vld [vmem:[%s12196_s21 + $0x8] sm:$0xff] (!%p1062_p2)  ;;  %v11393_v20 = vld [vmem:[%s12186_s13 + $0x70] sm:$0xff] (!%p1062_p2)   ;;  %1449 = vadd.xlane.f32.xlu1 (!%p1062_p2), %v1448_v17  ;;  %v1451_v22 = vsel (!%p1062_p2), %vm15165_vm0, %v1362_v19, 0.0  ;;  %v11395_v24 = vld [vmem:[%s12186_s13 + $0x78] sm:$0xff] (!%p1062_p2)  }
  0x4a   : > { %10149 = vmatpush3.bf16.msra.mxu0 (!%p1062_p2), %v11384_v3  ;;  %1443 = vadd.xlane.f32.xlu0 (!%p1062_p2), %v1442_v16  ;;  %v1445_v21 = vsel (!%p1062_p2), %vm15165_vm0, %v1360_v18, 0.0  ;;  %v11394_v23 = vld [vmem:[%s12186_s13 + $0x30] sm:$0xff] (!%p1062_p2)   ;;  %v11396_v25 = vld [vmem:[%s12186_s13 + $0x38] sm:$0xff] (!%p1062_p2)   ;;  %v9626_v43 = vld [vmem:[%s12191_s17] ss:$0 sm:$0xff] (!%p1062_p2) }
  0x4b   : > { %10150 = vmatprep.subr.bf16.mxu0 (!%p1062_p2), %v11385_v4  ;;  %v9646_v16 = vld [vmem:[%s12216_s8] ss:$0 sm:$0xff] (!%p1062_p2) }
  0x4c   : > { %s15418_s16 = smov (!%p1160_p3, %s9615_s16), 1 }
  0x4d   : > { %s10143_s0 = sshll.u32 %s15418_s16, 3  ;;  %s10145_s22 = sshll.u32 %s15418_s16, 4  ;;  %1452 = vadd.xlane.f32.xlu1 %v1451_v22 }
  0x4e   : > { %s12382_s18 = scalar_lea.vmem %s12181_s9, %s10143_s0  ;;  %s12386_s23 = scalar_lea.vmem %s12366_s30, %s10145_s22  ;;  %10151 = vmatpush3.bf16.msra.mxu0 %v11386_v5  ;;  %1446 = vadd.xlane.f32.xlu0 %v1445_v21 }
  0x4f   : > { %10152 = vmatprep.subr.bf16.mxu0 %v11387_v6  ;;  %s1164_s26 = scalar_lea.vmem %s15200_s5, %s10143_s0 }
  0x50   : > { %v1176_v11 = vld [vmem:[%s1164_s26] sm:$0xff] }
  0x51   : > { %v9628_v15 = vcombine.high %v1176_v11, %v1176_v11  ;;  %v9627_v26 = vcombine.low %v1176_v11, %v1176_v11  ;;  %v9645_v11 = vld [vmem:[%s15201_s3] ss:$0 sm:$0xff] }
  0x52   : > { %10153 = vmatpush3.bf16.msra.mxu0 %v11388_v7 }
  0x53   : > { %10154 = vmatprep.subr.bf16.mxu0 %v11389_v8  ;;  %1351 = vmatprep.mubr.bf16.mxu0 %v9628_v15 }
  0x56   : > { %10155 = vmatpush3.bf16.msra.mxu0 %v11390_v9 }
  0x57   : > { %10156 = vmatprep.subr.bf16.mxu0 %v11391_v10 }
  0x5a   : > { %10157 = vmatpush3.bf16.msra.mxu0 %v11392_v14 }
  0x5b   : > { %10158 = vmatprep.subr.bf16.mxu0 %v11393_v20 }
  0x5e   : > { %10159 = vmatpush3.bf16.msra.mxu0 %v11394_v23 }
  0x5f   : > { %10160 = vmatprep.subr.bf16.mxu0 %v11395_v24 }
  0x62   : > { %10161 = vmatpush3.bf16.msra.mxu0 %v11396_v25 }
  0x65   : > { %1352 = vmatmul.mubr.bf16.vlgmr.msra.gmra.mrb[0].mxu0 %v9627_v26 }
  0xd6   : > { %v1450_v28 = vpop.xlane.xlu1 %1449 }
  0xd7   : > { %v1444_v27 = vpop.xlane.xlu0 %1443  ;;  %v1460_v30 = vmul.f32 0.015625, %v1450_v28 }
  0xd8   : > { %v1458_v29 = vmul.f32 0.015625, %v1444_v27 }
  0xd9   : > { %v1465_v32 = vsub.f32 %v1361_v13, %v1460_v30  ;;  %v11399_v30 = vld [vmem:[%s12201_s25] sm:$0xff]  }
  0xda   : > { %v1463_v31 = vsub.f32 %v1359_v12, %v1458_v29  ;;  %v1453_v39 = vpop.xlane.xlu1 %1452  ;;  %10636 = vmatprep.mubr.msk.bf16.mxu1 %vm15165_vm0, %v11399_v30 }
  0xdb   : > { %v1470_v34 = vmul.f32 %v1465_v32, %v1465_v32  ;;  %v1447_v37 = vpop.xlane.xlu0 %1446  ;;  %v1461_v42 = vmul.f32 0.015625, %v1453_v39 }
  0xdc   : > { %v1468_v33 = vmul.f32 %v1463_v31, %v1463_v31  ;;  %v1459_v38 = vmul.f32 0.015625, %v1447_v37 }
  0xdd   : > { %v1479_v36 = vsel %vm15165_vm0, %v1470_v34, 0.0  ;;  %v1466_v49 = vsub.f32 %v1362_v19, %v1461_v42  ;;  %v11402_v42 = vld [vmem:[%s12201_s25 + $0x18] sm:$0xff]  }
  0xde   : > { %v1473_v35 = vsel %vm15165_vm0, %v1468_v33, 0.0  ;;  %v1464_v41 = vsub.f32 %v1360_v18, %v1459_v38 }
  0xdf   : > { %1474 = vadd.xlane.f32.xlu1 %v1473_v35  ;;  %v1471_v53 = vmul.f32 %v1466_v49, %v1466_v49 }
  0xe0   : > { %v1469_v50 = vmul.f32 %v1464_v41, %v1464_v41 }
  0xe1   : > { %v1482_v54 = vsel %vm15165_vm0, %v1471_v53, 0.0 }
  0xe2   : > { %v1476_v52 = vsel %vm15165_vm0, %v1469_v50, 0.0  ;;  %v11408_v50 = vld [vmem:[%s12201_s25 + $0x48] sm:$0xff]  }
  0xe3   : > { %1480 = vadd.xlane.f32.xlu1 %v1479_v36 }
 0x138   : > { %v10162_v40 = vpop.f32.mrb[0].mxu0 }
 0x139   : > { %v10163_v44 = vpop.f32.mrb[1].mxu0 }
 0x13a   : > { %v10164_v45 = vadd.f32 %v10163_v44, %v10162_v40  ;;  %v10165_v46 = vpop.f32.mrb[2].mxu0  ;;  %v11400_v40 = vld [vmem:[%s12201_s25 + $0x8] sm:$0xff]  }
 0x13b   : > { %v10166_v47 = vpop.f32.mrb[3].mxu0  ;;  %v11404_v44 = vld [vmem:[%s12201_s25 + $0x28] sm:$0xff]   ;;  %v11406_v46 = vld [vmem:[%s12201_s25 + $0x38] sm:$0xff]  }
 0x13c   : > { %v12410_v48 = vadd.f32 %v10164_v45, %v9626_v43  ;;  %v11403_v43 = vld [vmem:[%s12201_s25 + $0x20] sm:$0xff]   ;;  %v11405_v45 = vld [vmem:[%s12201_s25 + $0x30] sm:$0xff]   ;;  %v12156_v47 = vmov 0.0  }
 0x13d   : > { %10660 = vmatprep.subr.bf16.mxu0 %v12156_v47  ;;  %10662 = vmatprep.mubr.msk.bf16.mxu0 %vm15163_vm1, %v12156_v47 }
 0x13e   : > { %v1454_v51 = vsel %vm15165_vm0, %v12410_v48, 0.0 }
 0x13f   : > { %1455 = vadd.xlane.f32.xlu0 %v1454_v51 }
 0x143   : > { %1477 = vadd.xlane.f32.xlu0 %v1476_v52 }
 0x147   : > { %1483 = vadd.xlane.f32.xlu0 %v1482_v54 }
 0x16c   : > { %v1475_v55 = vpop.xlane.xlu1 %1474 }
 0x16d   : > { %v1488_v56 = vmul.f32 0.015625, %v1475_v55 }
 0x16f   : > { %v1493_v58 = vadd.f32 1e-05, %v1488_v56 }
 0x170   : > { %v1481_v57 = vpop.xlane.xlu1 %1480 }
 0x171   : > { %v1490_v59 = vmul.f32 0.015625, %v1481_v57  ;;  %11443 = vrsqrt.f32 %v1493_v58  ;;  %v11409_v57 = vld [vmem:[%s12201_s25 + $0x50] sm:$0xff]   ;;  %v11410_v58 = vld [vmem:[%s12201_s25 + $0x58] sm:$0xff]  }
 0x173   : > { %v1495_v62 = vadd.f32 1e-05, %v1490_v59 }
 0x175   : > { %11445 = vrsqrt.f32 %v1495_v62 }
 0x17b   : > { %v11444_v8 = vpop.eup %11443 }
 0x17c   : > { %v1503_v9 = vmul.f32 %v11444_v8, %v1463_v31 }
 0x17e   : > { %v1514_v15 = vmul.f32 %v9645_v11, %v1503_v9 }
 0x17f   : > { %v11446_v10 = vpop.eup %11445 }
 0x180   : > { %v1505_v13 = vmul.f32 %v11446_v10, %v1465_v32  ;;  %v1525_v20 = vadd.f32 %v9646_v16, %v1514_v15 }
 0x182   : > { %v1516_v22 = vmul.f32 %v9645_v11, %v1505_v13 }
 0x184   : > { %v1527_v26 = vadd.f32 %v9646_v16, %v1516_v22 }
 0x1cc   : > { %v1456_v60 = vpop.xlane.xlu0 %1455 }
 0x1cd   : > { %v1462_v61 = vmul.f32 0.015625, %v1456_v60 }
 0x1cf   : > { %v1467_v63 = vsub.f32 %v12410_v48, %v1462_v61 }
 0x1d0   : > { %v1478_v0 = vpop.xlane.xlu0 %1477 }
 0x1d1   : > { %v1489_v1 = vmul.f32 0.015625, %v1478_v0  ;;  %v1472_v2 = vmul.f32 %v1467_v63, %v1467_v63 }
 0x1d3   : > { %v1494_v3 = vadd.f32 1e-05, %v1489_v1  ;;  %v1485_v4 = vsel %vm15165_vm0, %v1472_v2, 0.0 }
 0x1d4   : > { %1486 = vadd.xlane.f32.xlu1 %v1485_v4  ;;  %v1484_v5 = vpop.xlane.xlu0 %1483 }
 0x1d5   : > { %11447 = vrsqrt.f32 %v1494_v3  ;;  %v1491_v6 = vmul.f32 0.015625, %v1484_v5 }
 0x1d7   : > { %v1496_v7 = vadd.f32 1e-05, %v1491_v6 }
 0x1d9   : > { %11449 = vrsqrt.f32 %v1496_v7 }
 0x1df   : > { %v11448_v12 = vpop.eup %11447 }
 0x1e0   : > { %v1504_v14 = vmul.f32 %v11448_v12, %v1464_v41  ;;  %v11401_v41 = vld [vmem:[%s12201_s25 + $0x10] sm:$0xff]  }
 0x1e2   : > { %v1515_v17 = vmul.f32 %v9645_v11, %v1504_v14 }
 0x1e3   : > { %v11450_v18 = vpop.eup %11449 }
 0x1e4   : > { %v1506_v19 = vmul.f32 %v11450_v18, %v1466_v49  ;;  %v1526_v21 = vadd.f32 %v9646_v16, %v1515_v17  ;;  %v11407_v49 = vld [vmem:[%s12201_s25 + $0x40] sm:$0xff]  }
 0x1e6   : > { %v1530_v23 = vpack.c.bf16 %v1526_v21, %v1525_v20  ;;  %v1517_v24 = vmul.f32 %v9645_v11, %v1506_v19 }
 0x1e8   : > { %11126 = vmatprep.subr.msk.bf16.mxu1 %vm15165_vm0, %v1530_v23  ;;  %v1630_v25 = vsel %vm15165_vm0, %v1530_v23, 0  ;;  %v1528_v27 = vadd.f32 %v9646_v16, %v1517_v24 }
 0x1e9   : > { %10631 = vmatpush3.bf16.xpose.msra.mxu1 %v1630_v25 }
 0x1ea   : > { %v1531_v28 = vpack.c.bf16 %v1528_v27, %v1527_v26 }
 0x1ec   : > { %11127 = vmatprep.subr.msk.bf16.mxu1 %vm15165_vm0, %v1531_v28  ;;  %v1633_v29 = vsel %vm15165_vm0, %v1531_v28, 0 }
 0x1f1   : > { %10633 = vmatpush3.bf16.xpose.msra.mxu1 %v1633_v29 }
 0x261   : > { %v1487_v31 = vpop.xlane.xlu1 %1486 }
 0x262   : > { %v1492_v32 = vmul.f32 0.015625, %v1487_v31 }
 0x264   : > { %v1497_v33 = vadd.f32 1e-05, %v1492_v32 }
 0x266   : > { %11451 = vrsqrt.f32 %v1497_v33 }
 0x270   : > { %v11452_v34 = vpop.eup %11451 }
 0x271   : > { %v1507_v35 = vmul.f32 %v11452_v34, %v1467_v63 }
 0x273   : > { %v1518_v36 = vmul.f32 %v9645_v11, %v1507_v35 }
 0x275   : > { %v1529_v37 = vadd.f32 %v9646_v16, %v1518_v36 }
 0x277   : > { %v1532_v38 = vpack.c.bf16 %v1529_v37, %v1529_v37  ;;  %v2124_v37 = vlaneseq }
 0x279   : > { %11128 = vmatprep.subr.msk.bf16.mxu1 %vm15165_vm0, %v1532_v38  ;;  %v1636_v39 = vsel %vm15165_vm0, %v1532_v38, 0  ;;  %v12521_v38 = vand.u32 127, %v2124_v37 }
 0x27a   : > { %10635 = vmatpush3.bf16.xpose.msra.mxu1 %v1636_v39 }
 0x27b   : > { %10688 = vmatprep.subr.bf16.mxu1 %v12156_v47  ;;  %vm2126_vm3 = vcmp.lt.s32.totalorder %v12521_v38, 36 }
 0x281   : > { %10637 = vmatmul.mubr.msk.bf16.vlgmr.msra.gmra.mrb[0].mxu1 %vm15165_vm0, %v11400_v40 }
 0x282   : > { %10640 = vmatprep.mubr.msk.bf16.mxu1 %vm15165_vm0, %v11401_v41 }
 0x289   : > { %10641 = vmatmul.mubr.msk.bf16.gmra.mrb[4].mxu1 %vm15165_vm0, %v11402_v42 }
 0x28a   : > { %10644 = vmatprep.mubr.msk.bf16.mxu1 %vm15165_vm0, %v11403_v43 }
 0x291   : > { %10645 = vmatmul.mubr.msk.bf16.gmra.mrb[8].mxu1 %vm15165_vm0, %v11404_v44 }
 0x292   : > { %10648 = vmatprep.mubr.msk.bf16.mxu1 %vm15165_vm0, %v11405_v45 }
 0x299   : > { %10649 = vmatmul.mubr.msk.bf16.gmra.mrb[12].mxu1 %vm15165_vm0, %v11406_v46 }
 0x29a   : > { %10652 = vmatprep.mubr.msk.bf16.mxu1 %vm15165_vm0, %v11407_v49 }
 0x2a1   : > { %10653 = vmatmul.mubr.msk.bf16.gmra.mrb[16].mxu1 %vm15165_vm0, %v11408_v50 }
 0x2a2   : > { %10656 = vmatprep.mubr.msk.bf16.mxu1 %vm15165_vm0, %v11409_v57 }
 0x2a9   : > { %10657 = vmatmul.mubr.msk.bf16.gmra.mrb[20].mxu1 %vm15165_vm0, %v11410_v58 }
 0x2aa   : > { %10690 = vmatprep.mubr.msk.bf16.mxu1 %vm15163_vm1, %v12156_v47 }
 0x354   : > { %v10638_v51 = vpop.f32.mrb[0].mxu1 }
 0x355   : > { %v1672_v52 = vpop.f32.mrb[1].mxu1 }
 0x356   : > { %v10639_v53 = vpop.f32.mrb[2].mxu1 }
 0x357   : > { %v1768_v54 = vpack.c.bf16 %v10639_v53, %v10638_v51  ;;  %v1675_v55 = vpop.f32.mrb[3].mxu1 }
 0x358   : > { %v1767_v56 = vpack.c.bf16 %v1675_v55, %v1672_v52 }
 0x359   : > { %1861 = vxpose.xlu1.c.b16.start.end [1/1] (short) (narrow) %v1768_v54, 48 }
 0x35a   : > { %1779 = vxpose.xlu0.c.b16.start.end [1/1] (short) (narrow) %v1767_v56, 48 }
 0x35c   : > { %v10642_v59 = vpop.f32.mrb[4].mxu1 }
 0x35d   : > { %v1688_v60 = vpop.f32.mrb[5].mxu1 }
 0x35e   : > { %v10643_v61 = vpop.f32.mrb[6].mxu1 }
 0x35f   : > { %v1770_v62 = vpack.c.bf16 %v10643_v61, %v10642_v59  ;;  %v1691_v63 = vpop.f32.mrb[7].mxu1 }
 0x360   : > { %v1769_v0 = vpack.c.bf16 %v1691_v63, %v1688_v60 }
 0x362   : > { %2023 = vxpose.xlu1.c.b16.start.end [1/1] (short) (narrow) %v1770_v62, 48 }
 0x363   : > { %1942 = vxpose.xlu0.c.b16.start.end [1/1] (short) (narrow) %v1769_v0, 48 }
 0x364   : > { %v10646_v1 = vpop.f32.mrb[8].mxu1 }
 0x365   : > { %v1704_v2 = vpop.f32.mrb[9].mxu1 }
 0x366   : > { %v10647_v3 = vpop.f32.mrb[10].mxu1 }
 0x367   : > { %v1772_v4 = vpack.c.bf16 %v10647_v3, %v10646_v1  ;;  %v1707_v5 = vpop.f32.mrb[11].mxu1 }
 0x368   : > { %v1771_v6 = vpack.c.bf16 %v1707_v5, %v1704_v2 }
 0x36a   : > { %10661 = vmatpush3.bf16.msra.mxu0 %v1771_v6 }
 0x36b   : > { %10674 = vmatprep.subr.bf16.mxu0 %v12156_v47 }
 0x36c   : > { %v10650_v7 = vpop.f32.mrb[12].mxu1 }
 0x36d   : > { %v1720_v8 = vpop.f32.mrb[13].mxu1 }
 0x36e   : > { %v10651_v9 = vpop.f32.mrb[14].mxu1 }
 0x36f   : > { %v1774_v10 = vpack.c.bf16 %v10651_v9, %v10650_v7  ;;  %v1723_v11 = vpop.f32.mrb[15].mxu1 }
 0x370   : > { %v1773_v12 = vpack.c.bf16 %v1723_v11, %v1720_v8 }
 0x372   : > { %10689 = vmatpush3.bf16.msra.mxu1 %v1773_v12 }
 0x373   : > { %10716 = vmatprep.subr.bf16.mxu1 %v12156_v47 }
 0x374   : > { %v12496_v25 = vpop.f32.mrb[16].mxu1 }
 0x375   : > { %v12498_v26 = vpop.f32.mrb[17].mxu1 }
 0x376   : > { %v12500_v27 = vpop.f32.mrb[18].mxu1 }
 0x377   : > { %v1776_v28 = vpack.c.bf16 %v12500_v27, %v12496_v25  ;;  %v12504_v29 = vpop.f32.mrb[19].mxu1 }
 0x378   : > { %v1775_v30 = vpack.c.bf16 %v12504_v29, %v12498_v26 }
 0x37c   : > { %v12508_v31 = vpop.f32.mrb[20].mxu1 }
 0x37d   : > { %v12510_v32 = vpop.f32.mrb[21].mxu1 }
 0x37e   : > { %v12512_v33 = vpop.f32.mrb[22].mxu1 }
 0x37f   : > { %v1778_v34 = vpack.c.bf16 %v12512_v33, %v12508_v31  ;;  %v12516_v35 = vpop.f32.mrb[23].mxu1 }
 0x380   : > { %v1777_v36 = vpack.c.bf16 %v12516_v35, %v12510_v32  ;;  %v11414_v32 = vld [vmem:[%s12206_s29 + $0x18] sm:$0xff]  }
 0x3bf   : > { %v1869_v18 = vpop.trf.xlu1 }
 0x3c0   : > { %v1787_v13 = vpop.trf.xlu0 }
 0x3c1   : > { %10663 = vmatmul.mubr.msk.bf16.vlgmr.msra.gmra.mrb[4].mxu0 %vm15162_vm2, %v1787_v13 }
 0x3c2   : > { %10675 = vmatpush3.bf16.msra.mxu0 %v1772_v4  ;;  %10666 = vmatprep.mubr.msk.bf16.mxu0 %vm15163_vm1, %v12156_v47 }
 0x3c3   : > { %10702 = vmatprep.subr.bf16.mxu0 %v12156_v47  ;;  %v1870_v20 = vpop.trf.xlu1 }
 0x3c4   : > { %v1788_v14 = vpop.trf.xlu0 }
 0x3c7   : > { %v1871_v21 = vpop.trf.xlu1 }
 0x3c8   : > { %v1789_v15 = vpop.trf.xlu0 }
 0x3c9   : > { %10667 = vmatmul.mubr.msk.bf16.gmra.mrb[8].mxu0 %vm15162_vm2, %v1788_v14 }
 0x3ca   : > { %10670 = vmatprep.mubr.msk.bf16.mxu0 %vm15163_vm1, %v12156_v47 }
 0x3cb   : > { %v2031_v22 = vpop.trf.xlu1 }
 0x3cc   : > { %v1950_v16 = vpop.trf.xlu0 }
 0x3cd   : > { %10691 = vmatmul.mubr.msk.bf16.vlgmr.msra.gmra.mrb[24].mxu1 %vm15162_vm2, %v1950_v16 }
 0x3ce   : > { %10694 = vmatprep.mubr.msk.bf16.mxu1 %vm15163_vm1, %v12156_v47 }
 0x3cf   : > { %v2032_v23 = vpop.trf.xlu1 }
 0x3d0   : > { %v1951_v17 = vpop.trf.xlu0 }
 0x3d1   : > { %10671 = vmatmul.mubr.msk.bf16.gmra.mrb[12].mxu0 %vm15162_vm2, %v1789_v15 }
 0x3d2   : > { %10676 = vmatprep.mubr.msk.bf16.mxu0 %vm15163_vm1, %v12156_v47 }
 0x3d3   : > { %v2033_v24 = vpop.trf.xlu1 }
 0x3d4   : > { %v1952_v19 = vpop.trf.xlu0 }
 0x3d5   : > { %10695 = vmatmul.mubr.msk.bf16.gmra.mrb[28].mxu1 %vm15162_vm2, %v1951_v17 }
 0x3d6   : > { %10698 = vmatprep.mubr.msk.bf16.mxu1 %vm15163_vm1, %v12156_v47 }
 0x3d9   : > { %10677 = vmatmul.mubr.msk.bf16.vlgmr.msra.gmra.mrb[16].mxu0 %vm15162_vm2, %v1869_v18 }
 0x3da   : > { %10703 = vmatpush3.bf16.msra.mxu0 %v1774_v10  ;;  %10680 = vmatprep.mubr.msk.bf16.mxu0 %vm15163_vm1, %v12156_v47 }
 0x3db   : > { %10726 = vmatprep.subr.bf16.mxu0 %v12156_v47 }
 0x3dd   : > { %10699 = vmatmul.mubr.msk.bf16.gmra.mrb[32].mxu1 %vm15162_vm2, %v1952_v19 }
 0x3de   : > { %10722 = vmatprep.mubr.msk.bf16.mxu1 %vm15163_vm1, %v12156_v47 }
 0x3e1   : > { %10681 = vmatmul.mubr.msk.bf16.gmra.mrb[20].mxu0 %vm15162_vm2, %v1870_v20 }
 0x3e2   : > { %10684 = vmatprep.mubr.msk.bf16.mxu0 %vm15163_vm1, %v12156_v47 }
 0x3e9   : > { %10685 = vmatmul.mubr.msk.bf16.gmra.mrb[24].mxu0 %vm15162_vm2, %v1871_v21 }
 0x3ea   : > { %10704 = vmatprep.mubr.msk.bf16.mxu0 %vm15163_vm1, %v12156_v47 }
 0x3f1   : > { %10705 = vmatmul.mubr.msk.bf16.vlgmr.msra.gmra.mrb[28].mxu0 %vm15162_vm2, %v2031_v22 }
 0x3f2   : > { %10708 = vmatprep.mubr.msk.bf16.mxu0 %vm15163_vm1, %v12156_v47 }
 0x3f9   : > { %10709 = vmatmul.mubr.msk.bf16.gmra.mrb[32].mxu0 %vm15162_vm2, %v2032_v23 }
 0x3fa   : > { %10712 = vmatprep.mubr.msk.bf16.mxu0 %vm15163_vm1, %v12156_v47 }
 0x401   : > { %10713 = vmatmul.mubr.msk.bf16.gmra.mrb[36].mxu0 %vm15162_vm2, %v2033_v24 }
 0x402   : > { %10732 = vmatprep.mubr.msk.bf16.mxu0 %vm15163_vm1, %v12156_v47 }
 0x494   : > { %v1839_v39 = vpop.f32.mrb[4].mxu0 }
 0x495   : > { %v2104_v40 = vmul.f32 0.25, %v1839_v39  ;;  %v10664_v41 = vpop.f32.mrb[5].mxu0 }
 0x496   : > { %v1842_v42 = vpop.f32.mrb[6].mxu0 }
 0x497   : > { %v2105_v43 = vmul.f32 0.25, %v1842_v42  ;;  %v10665_v44 = vpop.f32.mrb[7].mxu0  ;;  %v12526_v45 = vsel %vm2126_vm3, %v2104_v40, -1e+30 }
 0x498   : > { %v2148_v46 = vsel %vm2147_vm4, %v12526_v45, -inf }
 0x499   : > { %2149 = vmax.xlane.f32.xlu0 %v2148_v46  ;;  %v12532_v49 = vsel %vm2126_vm3, %v2105_v43, -1e+30 }
 0x49a   : > { %v2151_v50 = vsel %vm2147_vm4, %v12532_v49, -inf }
 0x49b   : > { %2152 = vmax.xlane.f32.xlu1 %v2151_v50 }
 0x49c   : > { %v1847_v51 = vpop.f32.mrb[8].mxu0 }
 0x49d   : > { %v10668_v52 = vpop.f32.mrb[9].mxu0  ;;  %v2106_v4 = vmul.f32 0.25, %v1847_v51 }
 0x49e   : > { %v1850_v53 = vpop.f32.mrb[10].mxu0 }
 0x49f   : > { %v10669_v54 = vpop.f32.mrb[11].mxu0  ;;  %v2107_v8 = vmul.f32 0.25, %v1850_v53  ;;  %v12550_v15 = vsel %vm2126_vm3, %v2106_v4, -1e+30 }
 0x4a0   : > { %v2001_v55 = vpop.f32.mrb[24].mxu1  ;;  %v2154_v22 = vsel %vm2147_vm4, %v12550_v15, -inf }
 0x4a1   : > { %v10692_v56 = vpop.f32.mrb[25].mxu1  ;;  %v12556_v19 = vsel %vm2126_vm3, %v2107_v8, -1e+30  ;;  %v2114_v46 = vmul.f32 0.25, %v2001_v55 }
 0x4a2   : > { %v2004_v57 = vpop.f32.mrb[26].mxu1  ;;  %v2157_v41 = vsel %vm2147_vm4, %v12556_v19, -inf }
 0x4a3   : > { %v10693_v58 = vpop.f32.mrb[27].mxu1  ;;  %v2115_v54 = vmul.f32 0.25, %v2004_v57  ;;  %v12580_v55 = vsel %vm2126_vm3, %v2114_v46, -1e+30 }
 0x4a4   : > { %v1855_v59 = vpop.f32.mrb[12].mxu0 }
 0x4a5   : > { %v10672_v60 = vpop.f32.mrb[13].mxu0  ;;  %v2108_v23 = vmul.f32 0.25, %v1855_v59  ;;  %v12592_v57 = vsel %vm2126_vm3, %v2115_v54, -1e+30 }
 0x4a6   : > { %v1858_v61 = vpop.f32.mrb[14].mxu0  ;;  %v2181_v4 = vsel %vm2147_vm4, %v12592_v57, -inf }
 0x4a7   : > { %v10673_v62 = vpop.f32.mrb[15].mxu0  ;;  %v12574_v52 = vsel %vm2126_vm3, %v2108_v23, -1e+30 }
 0x4a8   : > { %v2009_v63 = vpop.f32.mrb[28].mxu1  ;;  %v2160_v58 = vsel %vm2147_vm4, %v12574_v52, -inf  ;;  %v2178_v62 = vsel %vm2147_vm4, %v12580_v55, -inf }
 0x4a9   : > { %v10696_v0 = vpop.f32.mrb[29].mxu1 }
 0x4aa   : > { %v2012_v1 = vpop.f32.mrb[30].mxu1 }
 0x4ab   : > { %v10697_v2 = vpop.f32.mrb[31].mxu1 }
 0x4ac   : > { %v1920_v3 = vpop.f32.mrb[16].mxu0 }
 0x4ad   : > { %v2109_v5 = vmul.f32 0.25, %v1920_v3  ;;  %v10678_v6 = vpop.f32.mrb[17].mxu0 }
 0x4ae   : > { %v1923_v7 = vpop.f32.mrb[18].mxu0 }
 0x4af   : > { %v2110_v9 = vmul.f32 0.25, %v1923_v7  ;;  %v10679_v10 = vpop.f32.mrb[19].mxu0  ;;  %v12538_v11 = vsel %vm2126_vm3, %v2109_v5, -1e+30  ;;  %v2116_v5 = vmul.f32 0.25, %v2009_v63 }
 0x4b0   : > { %v2163_v12 = vsel %vm2147_vm4, %v12538_v11, -inf  ;;  %v12542_v13 = vpop.f32.mrb[32].mxu1  ;;  %v2117_v10 = vmul.f32 0.25, %v2012_v1 }
 0x4b1   : > { %2164 = vmax.xlane.f32.xlu0 %v2163_v12  ;;  %v12546_v14 = vsel %vm2126_vm3, %v2110_v9, -1e+30  ;;  %v10700_v16 = vpop.f32.mrb[33].mxu1  ;;  %v2118_v23 = vmul.f32 0.25, %v12542_v13 }
 0x4b2   : > { %v2166_v17 = vsel %vm2147_vm4, %v12546_v14, -inf  ;;  %v2020_v18 = vpop.f32.mrb[34].mxu1 }
 0x4b3   : > { %2167 = vmax.xlane.f32.xlu1 %v2166_v17  ;;  %v10701_v20 = vpop.f32.mrb[35].mxu1  ;;  %v12604_v18 = vsel %vm2126_vm3, %v2116_v5, -1e+30 }
 0x4b4   : > { %v1928_v21 = vpop.f32.mrb[20].mxu0 }
 0x4b5   : > { %v2111_v24 = vmul.f32 0.25, %v1928_v21  ;;  %2155 = vmax.xlane.f32.xlu0 %v2154_v22  ;;  %v10682_v39 = vpop.f32.mrb[21].mxu0  ;;  %v2184_v21 = vsel %vm2147_vm4, %v12604_v18, -inf  ;;  %v12618_v22 = vsel %vm2126_vm3, %v2117_v10, -1e+30 }
 0x4b6   : > { %v1931_v40 = vpop.f32.mrb[22].mxu0 }
 0x4b7   : > { %v2112_v42 = vmul.f32 0.25, %v1931_v40  ;;  %2158 = vmax.xlane.f32.xlu1 %v2157_v41  ;;  %v10683_v43 = vpop.f32.mrb[23].mxu0  ;;  %v12564_v44 = vsel %vm2126_vm3, %v2111_v24, -1e+30 }
 0x4b8   : > { %v2169_v50 = vsel %vm2147_vm4, %v12564_v44, -inf }
 0x4b9   : > { %2170 = vmax.xlane.f32.xlu0 %v2169_v50  ;;  %v12570_v51 = vsel %vm2126_vm3, %v2112_v42, -1e+30  ;;  %v2187_v42 = vsel %vm2147_vm4, %v12618_v22, -inf }
 0x4ba   : > { %v2172_v53 = vsel %vm2147_vm4, %v12570_v51, -inf }
 0x4bb   : > { %2173 = vmax.xlane.f32.xlu1 %v2172_v53  ;;  %v12629_v53 = vsel %vm2126_vm3, %v2118_v23, -1e+30 }
 0x4bc   : > { %v1936_v56 = vpop.f32.mrb[24].mxu0 }
 0x4bd   : > { %v2113_v59 = vmul.f32 0.25, %v1936_v56  ;;  %2161 = vmax.xlane.f32.xlu0 %v2160_v58  ;;  %v10686_v60 = vpop.f32.mrb[25].mxu0  ;;  %v2190_v58 = vsel %vm2147_vm4, %v12629_v53, -inf }
 0x4be   : > { %v1939_v61 = vpop.f32.mrb[26].mxu0 }
 0x4bf   : > { %v10687_v0 = vpop.f32.mrb[27].mxu0  ;;  %v12588_v2 = vsel %vm2126_vm3, %v2113_v59, -1e+30 }
 0x4c0   : > { %v2175_v3 = vsel %vm2147_vm4, %v12588_v2, -inf }
 0x4c1   : > { %2176 = vmax.xlane.f32.xlu1 %v2175_v3  ;;  %2179 = vmax.xlane.f32.xlu0 %v2178_v62 }
 0x4c4   : > { %v2082_v6 = vpop.f32.mrb[28].mxu0 }
 0x4c5   : > { %v2119_v7 = vmul.f32 0.25, %v2082_v6  ;;  %v10706_v8 = vpop.f32.mrb[29].mxu0  ;;  %2182 = vmax.xlane.f32.xlu1 %v2181_v4 }
 0x4c6   : > { %v2085_v9 = vpop.f32.mrb[30].mxu0 }
 0x4c7   : > { %v2120_v12 = vmul.f32 0.25, %v2085_v9  ;;  %v10707_v16 = vpop.f32.mrb[31].mxu0  ;;  %v12600_v17 = vsel %vm2126_vm3, %v2119_v7, -1e+30 }
 0x4c8   : > { %v2193_v20 = vsel %vm2147_vm4, %v12600_v17, -inf }
 0x4c9   : > { %2194 = vmax.xlane.f32.xlu0 %v2193_v20  ;;  %v12610_v63 = vsel %vm2126_vm3, %v2120_v12, -1e+30 }
 0x4ca   : > { %v2196_v1 = vsel %vm2147_vm4, %v12610_v63, -inf }
 0x4cb   : > { %2197 = vmax.xlane.f32.xlu1 %v2196_v1 }
 0x4cc   : > { %v2090_v24 = vpop.f32.mrb[32].mxu0 }
 0x4cd   : > { %v2121_v39 = vmul.f32 0.25, %v2090_v24  ;;  %v10710_v40 = vpop.f32.mrb[33].mxu0  ;;  %2185 = vmax.xlane.f32.xlu0 %v2184_v21 }
 0x4ce   : > { %v2093_v41 = vpop.f32.mrb[34].mxu0 }
 0x4cf   : > { %v2122_v43 = vmul.f32 0.25, %v2093_v41  ;;  %v10711_v46 = vpop.f32.mrb[35].mxu0  ;;  %2188 = vmax.xlane.f32.xlu1 %v2187_v42  ;;  %v12625_v50 = vsel %vm2126_vm3, %v2121_v39, -1e+30 }
 0x4d0   : > { %v2199_v13 = vsel %vm2147_vm4, %v12625_v50, -inf }
 0x4d1   : > { %2200 = vmax.xlane.f32.xlu0 %v2199_v13  ;;  %v12635_v54 = vsel %vm2126_vm3, %v2122_v43, -1e+30 }
 0x4d2   : > { %v2202_v56 = vsel %vm2147_vm4, %v12635_v54, -inf }
 0x4d3   : > { %2203 = vmax.xlane.f32.xlu1 %v2202_v56 }
 0x4d4   : > { %v2098_v59 = vpop.f32.mrb[36].mxu0 }
 0x4d5   : > { %v2123_v60 = vmul.f32 0.25, %v2098_v59  ;;  %v10714_v61 = vpop.f32.mrb[37].mxu0  ;;  %2191 = vmax.xlane.f32.xlu0 %v2190_v58 }
 0x4d6   : > { %v2101_v62 = vpop.f32.mrb[38].mxu0 }
 0x4d7   : > { %v10715_v0 = vpop.f32.mrb[39].mxu0  ;;  %v12643_v3 = vsel %vm2126_vm3, %v2123_v60, -1e+30 }
 0x4d8   : > { %v2205_v4 = vsel %vm2147_vm4, %v12643_v3, -inf }
 0x4d9   : > { %2206 = vmax.xlane.f32.xlu1 %v2205_v4 }
 0x526   : > { %v2150_v5 = vpop.xlane.xlu0 %2149 }
 0x527   : > { %v2208_v6 = vsub.f32 %v12526_v45, %v2150_v5 }
 0x528   : > { %v2153_v7 = vpop.xlane.xlu1 %2152 }
 0x529   : > { %v2228_v8 = vmul.f32 1.442695, %v2208_v6  ;;  %v2209_v9 = vsub.f32 %v12532_v49, %v2153_v7 }
 0x52b   : > { %11453 = vpow2.f32 %v2228_v8  ;;  %v2230_v10 = vmul.f32 1.442695, %v2209_v9 }
 0x52d   : > { %11455 = vpow2.f32 %v2230_v10 }
 0x535   : > { %v12649_v12 = vpop.eup %11453 }
 0x536   : > { %v2268_v16 = vsel %vm2147_vm4, %v12649_v12, 0.0 }
 0x537   : > { %v12653_v20 = vpop.eup %11455  ;;  %2269 = vadd.xlane.f32.xlu0 %v2268_v16 }
 0x538   : > { %v2271_v1 = vsel %vm2147_vm4, %v12653_v20, 0.0 }
 0x539   : > { %2272 = vadd.xlane.f32.xlu1 %v2271_v1 }
 0x53e   : > { %v2165_v45 = vpop.xlane.xlu0 %2164 }
 0x53f   : > { %v2213_v21 = vsub.f32 %v12538_v11, %v2165_v45 }
 0x540   : > { %v2168_v23 = vpop.xlane.xlu1 %2167 }
 0x541   : > { %v2238_v49 = vmul.f32 1.442695, %v2213_v21  ;;  %v2214_v24 = vsub.f32 %v12546_v14, %v2168_v23 }
 0x542   : > { %v2156_v39 = vpop.xlane.xlu0 %2155 }
 0x543   : > { %11457 = vpow2.f32 %v2238_v49  ;;  %v2240_v40 = vmul.f32 1.442695, %v2214_v24  ;;  %v2210_v41 = vsub.f32 %v12550_v15, %v2156_v39 }
 0x544   : > { %v2159_v42 = vpop.xlane.xlu1 %2158 }
 0x545   : > { %11459 = vpow2.f32 %v2240_v40  ;;  %v2232_v43 = vmul.f32 1.442695, %v2210_v41  ;;  %v2211_v46 = vsub.f32 %v12556_v19, %v2159_v42 }
 0x546   : > { %v2171_v13 = vpop.xlane.xlu0 %2170 }
 0x547   : > { %11461 = vpow2.f32 %v2232_v43  ;;  %v2234_v56 = vmul.f32 1.442695, %v2211_v46  ;;  %v2215_v58 = vsub.f32 %v12564_v44, %v2171_v13 }
 0x548   : > { %v2174_v11 = vpop.xlane.xlu1 %2173 }
 0x549   : > { %11463 = vpow2.f32 %v2234_v56  ;;  %v2242_v59 = vmul.f32 1.442695, %v2215_v58  ;;  %v2216_v14 = vsub.f32 %v12570_v51, %v2174_v11 }
 0x54a   : > { %v2162_v60 = vpop.xlane.xlu0 %2161 }
 0x54b   : > { %11465 = vpow2.f32 %v2242_v59  ;;  %v2244_v61 = vmul.f32 1.442695, %v2216_v14  ;;  %v2212_v15 = vsub.f32 %v12574_v52, %v2162_v60 }
 0x54d   : > { %v12664_v62 = vpop.eup %11457  ;;  %11467 = vpow2.f32 %v2244_v61  ;;  %v2236_v0 = vmul.f32 1.442695, %v2212_v15 }
 0x54e   : > { %v2177_v19 = vpop.xlane.xlu1 %2176  ;;  %v2180_v4 = vpop.xlane.xlu0 %2179  ;;  %v2283_v5 = vsel %vm2147_vm4, %v12664_v62, 0.0 }
 0x54f   : > { %v12668_v44 = vpop.eup %11459  ;;  %11469 = vpow2.f32 %v2236_v0  ;;  %v2217_v6 = vsub.f32 %v12588_v2, %v2177_v19  ;;  %v2218_v51 = vsub.f32 %v12580_v55, %v2180_v4  ;;  %2284 = vadd.xlane.f32.xlu0 %v2283_v5 }
 0x550   : > { %v2286_v52 = vsel %vm2147_vm4, %v12668_v44, 0.0 }
 0x551   : > { %v12674_v7 = vpop.eup %11461  ;;  %v2246_v8 = vmul.f32 1.442695, %v2217_v6  ;;  %v2248_v9 = vmul.f32 1.442695, %v2218_v51  ;;  %2287 = vadd.xlane.f32.xlu1 %v2286_v52 }
 0x552   : > { %v2183_v10 = vpop.xlane.xlu1 %2182  ;;  %v2274_v16 = vsel %vm2147_vm4, %v12674_v7, 0.0 }
 0x553   : > { %v12678_v1 = vpop.eup %11463  ;;  %11471 = vpow2.f32 %v2246_v8  ;;  %v2219_v2 = vsub.f32 %v12592_v57, %v2183_v10  ;;  %2275 = vadd.xlane.f32.xlu0 %v2274_v16 }
 0x554   : > { %11473 = vpow2.f32 %v2248_v9  ;;  %v2277_v55 = vsel %vm2147_vm4, %v12678_v1, 0.0 }
 0x555   : > { %v12683_v45 = vpop.eup %11465  ;;  %v2250_v21 = vmul.f32 1.442695, %v2219_v2  ;;  %2278 = vadd.xlane.f32.xlu1 %v2277_v55 }
 0x556   : > { %v2195_v23 = vpop.xlane.xlu0 %2194  ;;  %v2289_v49 = vsel %vm2147_vm4, %v12683_v45, 0.0 }
 0x557   : > { %v12687_v24 = vpop.eup %11467  ;;  %11475 = vpow2.f32 %v2250_v21  ;;  %v2223_v39 = vsub.f32 %v12600_v17, %v2195_v23  ;;  %2290 = vadd.xlane.f32.xlu0 %v2289_v49 }
 0x558   : > { %v2198_v57 = vpop.xlane.xlu1 %2197  ;;  %v2292_v40 = vsel %vm2147_vm4, %v12687_v24, 0.0 }
 0x559   : > { %v12692_v41 = vpop.eup %11469  ;;  %v2258_v42 = vmul.f32 1.442695, %v2223_v39  ;;  %v2224_v43 = vsub.f32 %v12610_v63, %v2198_v57  ;;  %2293 = vadd.xlane.f32.xlu1 %v2292_v40 }
 0x55a   : > { %v2186_v46 = vpop.xlane.xlu0 %2185  ;;  %v2280_v13 = vsel %vm2147_vm4, %v12692_v41, 0.0 }
 0x55b   : > { %11477 = vpow2.f32 %v2258_v42  ;;  %v2260_v56 = vmul.f32 1.442695, %v2224_v43  ;;  %v2220_v58 = vsub.f32 %v12604_v18, %v2186_v46  ;;  %2281 = vadd.xlane.f32.xlu0 %v2280_v13 }
 0x55c   : > { %v2189_v17 = vpop.xlane.xlu1 %2188 }
 0x55d   : > { %v12698_v11 = vpop.eup %11471  ;;  %11479 = vpow2.f32 %v2260_v56  ;;  %v2252_v59 = vmul.f32 1.442695, %v2220_v58  ;;  %v2221_v14 = vsub.f32 %v12618_v22, %v2189_v17 }
 0x55e   : > { %v12701_v60 = vpop.eup %11473  ;;  %v2201_v63 = vpop.xlane.xlu0 %2200  ;;  %v2295_v61 = vsel %vm2147_vm4, %v12698_v11, 0.0 }
 0x55f   : > { %11481 = vpow2.f32 %v2252_v59  ;;  %v2254_v15 = vmul.f32 1.442695, %v2221_v14  ;;  %v2225_v0 = vsub.f32 %v12625_v50, %v2201_v63  ;;  %2296 = vadd.xlane.f32.xlu1 %v2295_v61  ;;  %v2298_v18 = vsel %vm2147_vm4, %v12701_v60, 0.0 }
 0x560   : > { %2299 = vadd.xlane.f32.xlu0 %v2298_v18  ;;  %v2204_v19 = vpop.xlane.xlu1 %2203 }
 0x561   : > { %v12708_v4 = vpop.eup %11475  ;;  %11483 = vpow2.f32 %v2254_v15  ;;  %v2262_v22 = vmul.f32 1.442695, %v2225_v0  ;;  %v2226_v5 = vsub.f32 %v12635_v54, %v2204_v19 }
 0x562   : > { %v2192_v6 = vpop.xlane.xlu0 %2191  ;;  %v2301_v51 = vsel %vm2147_vm4, %v12708_v4, 0.0 }
 0x563   : > { %11485 = vpow2.f32 %v2262_v22  ;;  %v2264_v52 = vmul.f32 1.442695, %v2226_v5  ;;  %v2222_v50 = vsub.f32 %v12629_v53, %v2192_v6  ;;  %2302 = vadd.xlane.f32.xlu1 %v2301_v51 }
 0x565   : > { %v12714_v8 = vpop.eup %11477  ;;  %11487 = vpow2.f32 %v2264_v52  ;;  %v2256_v9 = vmul.f32 1.442695, %v2222_v50 }
 0x566   : > { %v2207_v10 = vpop.xlane.xlu1 %2206  ;;  %v2313_v16 = vsel %vm2147_vm4, %v12714_v8, 0.0 }
 0x567   : > { %v12718_v2 = vpop.eup %11479  ;;  %11489 = vpow2.f32 %v2256_v9  ;;  %v2227_v54 = vsub.f32 %v12643_v3, %v2207_v10  ;;  %2314 = vadd.xlane.f32.xlu0 %v2313_v16 }
 0x568   : > { %v2316_v55 = vsel %vm2147_vm4, %v12718_v2, 0.0 }
 0x569   : > { %v12723_v21 = vpop.eup %11481  ;;  %v2266_v53 = vmul.f32 1.442695, %v2227_v54  ;;  %2317 = vadd.xlane.f32.xlu1 %v2316_v55 }
 0x56a   : > { %v2304_v23 = vsel %vm2147_vm4, %v12723_v21, 0.0 }
 0x56b   : > { %v12727_v49 = vpop.eup %11483  ;;  %11491 = vpow2.f32 %v2266_v53  ;;  %2305 = vadd.xlane.f32.xlu0 %v2304_v23 }
 0x56c   : > { %v2307_v39 = vsel %vm2147_vm4, %v12727_v49, 0.0 }
 0x56d   : > { %v12731_v57 = vpop.eup %11485  ;;  %2308 = vadd.xlane.f32.xlu1 %v2307_v39 }
 0x56e   : > { %v2319_v3 = vsel %vm2147_vm4, %v12731_v57, 0.0 }
 0x56f   : > { %v12735_v40 = vpop.eup %11487  ;;  %2320 = vadd.xlane.f32.xlu0 %v2319_v3 }
 0x570   : > { %v2322_v42 = vsel %vm2147_vm4, %v12735_v40, 0.0 }
 0x571   : > { %v12739_v43 = vpop.eup %11489  ;;  %2323 = vadd.xlane.f32.xlu1 %v2322_v42 }
 0x572   : > { %v2310_v46 = vsel %vm2147_vm4, %v12739_v43, 0.0 }
 0x573   : > { %2311 = vadd.xlane.f32.xlu0 %v2310_v46 }
 0x575   : > { %v12743_v13 = vpop.eup %11491 }
 0x576   : > { %v2325_v56 = vsel %vm2147_vm4, %v12743_v13, 0.0 }
 0x577   : > { %2326 = vadd.xlane.f32.xlu1 %v2325_v56 }
 0x5c4   : > { %v2270_v58 = vpop.xlane.xlu0 %2269 }
 0x5c5   : > { %11493 = vrcp.f32 %v2270_v58 }
 0x5c6   : > { %v2273_v17 = vpop.xlane.xlu1 %2272 }
 0x5c7   : > { %11495 = vrcp.f32 %v2273_v17 }
 0x5cf   : > { %v11494_v59 = vpop.eup %11493 }
 0x5d0   : > { %v2348_v63 = vmul.f32 %v11494_v59, %v12649_v12 }
 0x5d1   : > { %v11496_v14 = vpop.eup %11495 }
 0x5d2   : > { %v2349_v61 = vmul.f32 %v11496_v14, %v12653_v20 }
 0x5d4   : > { %v2368_v15 = vpack.c.bf16 %v2349_v61, %v2348_v63 }
 0x5d6   : > { %v2384_v0 = vsel %vm2147_vm4, %v2368_v15, 0 }
 0x5d7   : > { %10717 = vmatpush3.bf16.xpose.msra.mxu1 %v2384_v0 }
 0x5d8   : > { %10718 = vmatprep.subr.bf16.mxu1 %v12156_v47 }
 0x5dc   : > { %v2285_v18 = vpop.xlane.xlu0 %2284 }
 0x5dd   : > { %11497 = vrcp.f32 %v2285_v18 }
 0x5de   : > { %v2288_v19 = vpop.xlane.xlu1 %2287 }
 0x5df   : > { %11499 = vrcp.f32 %v2288_v19 }
 0x5e0   : > { %v2276_v22 = vpop.xlane.xlu0 %2275 }
 0x5e1   : > { %11501 = vrcp.f32 %v2276_v22 }
 0x5e2   : > { %v2279_v5 = vpop.xlane.xlu1 %2278 }
 0x5e3   : > { %11503 = vrcp.f32 %v2279_v5 }
 0x5e4   : > { %v2291_v6 = vpop.xlane.xlu0 %2290 }
 0x5e5   : > { %11505 = vrcp.f32 %v2291_v6 }
 0x5e6   : > { %v2294_v51 = vpop.xlane.xlu1 %2293 }
 0x5e7   : > { %v11498_v12 = vpop.eup %11497  ;;  %11507 = vrcp.f32 %v2294_v51 }
 0x5e8   : > { %v2282_v20 = vpop.xlane.xlu0 %2281  ;;  %v2353_v50 = vmul.f32 %v11498_v12, %v12664_v62 }
 0x5e9   : > { %v11500_v52 = vpop.eup %11499  ;;  %11509 = vrcp.f32 %v2282_v20 }
 0x5ea   : > { %v2354_v9 = vmul.f32 %v11500_v52, %v12668_v44 }
 0x5eb   : > { %v11502_v10 = vpop.eup %11501 }
 0x5ec   : > { %v2297_v16 = vpop.xlane.xlu1 %2296  ;;  %v2371_v54 = vpack.c.bf16 %v2354_v9, %v2353_v50  ;;  %v2350_v39 = vmul.f32 %v11502_v10, %v12674_v7 }
 0x5ed   : > { %v11504_v55 = vpop.eup %11503  ;;  %11511 = vrcp.f32 %v2297_v16  ;;  %v2300_v53 = vpop.xlane.xlu0 %2299 }
 0x5ee   : > { %v2437_v23 = vsel %vm2147_vm4, %v2371_v54, 0  ;;  %v2351_v3 = vmul.f32 %v11504_v55, %v12678_v1  ;;  %11513 = vrcp.f32 %v2300_v53 }
 0x5ef   : > { %v11506_v42 = vpop.eup %11505  ;;  %10727 = vmatpush3.bf16.xpose.msra.mxu0 %v2437_v23 }
 0x5f0   : > { %v2303_v46 = vpop.xlane.xlu1 %2302  ;;  %v2369_v56 = vpack.c.bf16 %v2351_v3, %v2350_v39  ;;  %10728 = vmatprep.subr.bf16.mxu0 %v12156_v47  ;;  %v2355_v58 = vmul.f32 %v11506_v42, %v12683_v45 }
 0x5f1   : > { %v11508_v62 = vpop.eup %11507  ;;  %11515 = vrcp.f32 %v2303_v46 }
 0x5f2   : > { %v2387_v44 = vsel %vm2147_vm4, %v2369_v56, 0  ;;  %v2356_v17 = vmul.f32 %v11508_v62, %v12687_v24 }
 0x5f3   : > { %v11510_v59 = vpop.eup %11509  ;;  %10719 = vmatpush3.bf16.xpose.msra.mxu1 %v2387_v44  ;;  %v11412_v44 = vld [vmem:[%s12206_s29 + $0x8] sm:$0xff]  }
 0x5f4   : > { %v2315_v7 = vpop.xlane.xlu0 %2314  ;;  %v2372_v14 = vpack.c.bf16 %v2356_v17, %v2355_v58  ;;  %10720 = vmatprep.subr.bf16.mxu1 %v12156_v47  ;;  %v2352_v1 = vmul.f32 %v11510_v59, %v12692_v41  ;;  %v11413_v58 = vld [vmem:[%s12206_s29 + $0x10] sm:$0xff]  }
 0x5f5   : > { %11517 = vrcp.f32 %v2315_v7 }
 0x5f6   : > { %v2318_v63 = vpop.xlane.xlu1 %2317  ;;  %v2440_v61 = vsel %vm2147_vm4, %v2372_v14, 0  ;;  %v2370_v15 = vpack.c.bf16 %v2352_v1, %v2352_v1 }
 0x5f7   : > { %v11512_v0 = vpop.eup %11511  ;;  %11519 = vrcp.f32 %v2318_v63  ;;  %10729 = vmatpush3.bf16.xpose.msra.mxu0 %v2440_v61 }
 0x5f8   : > { %v2306_v18 = vpop.xlane.xlu0 %2305  ;;  %10730 = vmatprep.subr.bf16.mxu0 %v12156_v47  ;;  %v2357_v45 = vmul.f32 %v11512_v0, %v12698_v11  ;;  %v11514_v24 = vpop.eup %11513  ;;  %v2390_v22 = vsel %vm2147_vm4, %v2370_v15, 0 }
 0x5f9   : > { %11521 = vrcp.f32 %v2306_v18  ;;  %v2358_v51 = vmul.f32 %v11514_v24, %v12701_v60 }
 0x5fa   : > { %v2309_v19 = vpop.xlane.xlu1 %2308  ;;  %v2373_v5 = vpack.c.bf16 %v2357_v45, %v2357_v45 }
 0x5fb   : > { %v11516_v41 = vpop.eup %11515  ;;  %11523 = vrcp.f32 %v2309_v19  ;;  %10721 = vmatpush3.bf16.xpose.msra.mxu1 %v2390_v22 }
 0x5fc   : > { %v2321_v6 = vpop.xlane.xlu0 %2320  ;;  %10736 = vmatprep.subr.bf16.mxu1 %v12156_v47  ;;  %v2359_v12 = vmul.f32 %v11516_v41, %v12708_v4  ;;  %v2443_v11 = vsel %vm2147_vm4, %v2373_v5, 0 }
 0x5fd   : > { %11525 = vrcp.f32 %v2321_v6 }
 0x5fe   : > { %v2324_v20 = vpop.xlane.xlu1 %2323  ;;  %v2374_v52 = vpack.c.bf16 %v2359_v12, %v2358_v51 }
 0x5ff   : > { %v11518_v50 = vpop.eup %11517  ;;  %11527 = vrcp.f32 %v2324_v20  ;;  %10731 = vmatpush3.bf16.xpose.msra.mxu0 %v2443_v11  ;;  %v11543_v20 = vld [vmem:[%s12196_s21] sm:$0xff] }
 0x600   : > { %v2312_v9 = vpop.xlane.xlu0 %2311  ;;  %10746 = vmatprep.subr.bf16.mxu0 %v12156_v47  ;;  %v2490_v60 = vsel %vm2147_vm4, %v2374_v52, 0  ;;  %v2363_v4 = vmul.f32 %v11518_v50, %v12714_v8 }
 0x601   : > { %v11520_v10 = vpop.eup %11519  ;;  %11529 = vrcp.f32 %v2312_v9  ;;  %v11544_v9 = vld [vmem:[%s12196_s21 + $0x8] sm:$0xff] }
 0x602   : > { %10723 = vmatmul.mubr.msk.bf16.vlgmr.msra.gmra.mrb[36].mxu1 %vm2147_vm4, %v1775_v30  ;;  %v2364_v16 = vmul.f32 %v11520_v10, %v12718_v2 }
 0x603   : > { %v11522_v54 = vpop.eup %11521  ;;  %10737 = vmatpush3.bf16.xpose.msra.mxu1 %v2490_v60  ;;  %10742 = vmatprep.mubr.msk.bf16.mxu1 %vm15163_vm1, %v12156_v47 }
 0x604   : > { %v2327_v55 = vpop.xlane.xlu1 %2326  ;;  %v2377_v53 = vpack.c.bf16 %v2364_v16, %v2363_v4  ;;  %10738 = vmatprep.subr.bf16.mxu1 %v12156_v47  ;;  %v2360_v29 = vmul.f32 %v11522_v54, %v12723_v21 }
 0x605   : > { %v11524_v23 = vpop.eup %11523  ;;  %11531 = vrcp.f32 %v2327_v55  ;;  %v11545_v55 = vld [vmem:[%s12196_s21 + $0x10] sm:$0xff] }
 0x606   : > { %10733 = vmatmul.mubr.msk.bf16.vlgmr.msra.gmra.mrb[40].mxu0 %vm2147_vm4, %v1776_v28  ;;  %v2543_v26 = vsel %vm2147_vm4, %v2377_v53, 0  ;;  %v2361_v30 = vmul.f32 %v11524_v23, %v12727_v49 }
 0x607   : > { %v11526_v8 = vpop.eup %11525  ;;  %10747 = vmatpush3.bf16.xpose.msra.mxu0 %v2543_v26  ;;  %10752 = vmatprep.mubr.msk.bf16.mxu0 %vm15163_vm1, %v12156_v47 }
 0x608   : > { %v2375_v2 = vpack.c.bf16 %v2361_v30, %v2360_v29  ;;  %10748 = vmatprep.subr.bf16.mxu0 %v12156_v47  ;;  %v2365_v25 = vmul.f32 %v11526_v8, %v12731_v57  ;;  %v11546_v29 = vld [vmem:[%s12196_s21 + $0x18] sm:$0xff] }
 0x609   : > { %v11528_v39 = vpop.eup %11527 }
 0x60a   : > { %v2493_v3 = vsel %vm2147_vm4, %v2375_v2, 0  ;;  %v2366_v27 = vmul.f32 %v11528_v39, %v12735_v40 }
 0x60b   : > { %v11530_v28 = vpop.eup %11529  ;;  %10739 = vmatpush3.bf16.xpose.msra.mxu1 %v2493_v3 }
 0x60c   : > { %v2378_v21 = vpack.c.bf16 %v2366_v27, %v2365_v25  ;;  %10740 = vmatprep.subr.bf16.mxu1 %v12156_v47  ;;  %v2362_v49 = vmul.f32 %v11530_v28, %v12739_v43 }
 0x60e   : > { %v2546_v42 = vsel %vm2147_vm4, %v2378_v21, 0  ;;  %v2376_v46 = vpack.c.bf16 %v2362_v49, %v2362_v49 }
 0x60f   : > { %v11532_v56 = vpop.eup %11531  ;;  %10749 = vmatpush3.bf16.xpose.msra.mxu0 %v2546_v42 }
 0x610   : > { %10750 = vmatprep.subr.bf16.mxu0 %v12156_v47  ;;  %v2367_v57 = vmul.f32 %v11532_v56, %v12743_v13  ;;  %v2496_v40 = vsel %vm2147_vm4, %v2376_v46, 0  ;;  %v11411_v13 = vld [vmem:[%s12206_s29] sm:$0xff]  }
 0x612   : > { %v2379_v62 = vpack.c.bf16 %v2367_v57, %v2367_v57 }
 0x613   : > { %10741 = vmatpush3.bf16.xpose.msra.mxu1 %v2496_v40 }
 0x614   : > { %10756 = vmatprep.subr.bf16.mxu1 %v12156_v47  ;;  %v2549_v43 = vsel %vm2147_vm4, %v2379_v62, 0 }
 0x617   : > { %10751 = vmatpush3.bf16.xpose.msra.mxu0 %v2549_v43 }
 0x61a   : > { %10743 = vmatmul.mubr.msk.bf16.vlgmr.msra.gmra.mrb[40].mxu1 %vm2147_vm4, %v1777_v36 }
 0x61b   : > { %10764 = vmatprep.mubr.msk.bf16.mxu1 %vm15163_vm1, %v12156_v47  ;;  %10757 = vmatpush3.bf16.msra.mxu1 %v11411_v13 }
 0x61c   : > { %10758 = vmatprep.subr.bf16.mxu1 %v12156_v47 }
 0x61e   : > { %10753 = vmatmul.mubr.msk.bf16.vlgmr.msra.gmra.mrb[44].mxu0 %vm2147_vm4, %v1778_v34 }
 0x61f   : > { %10759 = vmatpush3.bf16.msra.mxu1 %v11412_v44 }
 0x620   : > { %10760 = vmatprep.subr.bf16.mxu1 %v12156_v47 }
 0x623   : > { %10761 = vmatpush3.bf16.msra.mxu1 %v11413_v58 }
 0x624   : > { %10762 = vmatprep.subr.bf16.mxu1 %v12156_v47 }
 0x627   : > { %10763 = vmatpush3.bf16.msra.mxu1 %v11414_v32 }
 0x6d5   : > { %v2426_v35 = vpop.f32.mrb[36].mxu1 }
 0x6d6   : > { %v10724_v36 = vpop.f32.mrb[37].mxu1 }
 0x6d7   : > { %v2429_v17 = vpop.f32.mrb[38].mxu1 }
 0x6d8   : > { %v2592_v31 = vpack.c.bf16 %v2429_v17, %v2426_v35  ;;  %v10725_v33 = vpop.f32.mrb[39].mxu1 }
 0x6d9   : > { %v2479_v34 = vpop.f32.mrb[40].mxu0 }
 0x6da   : > { %v10734_v59 = vpop.f32.mrb[41].mxu0  ;;  %2596 = vxpose.xlu0.c.b16.start [1/4] (short) (narrow) %v2592_v31, 48 }
 0x6db   : > { %v2482_v7 = vpop.f32.mrb[42].mxu0 }
 0x6dc   : > { %v2593_v14 = vpack.c.bf16 %v2482_v7, %v2479_v34  ;;  %v10735_v1 = vpop.f32.mrb[43].mxu0 }
 0x6de   : > { %2597 = vxpose.xlu0.c.b16.cont [2/4] (short) (narrow) %v2593_v14, 48 }
 0x6ed   : > { %v2532_v63 = vpop.f32.mrb[40].mxu1 }
 0x6ee   : > { %v10744_v61 = vpop.f32.mrb[41].mxu1 }
 0x6ef   : > { %v2535_v15 = vpop.f32.mrb[42].mxu1 }
 0x6f0   : > { %v2594_v0 = vpack.c.bf16 %v2535_v15, %v2532_v63  ;;  %v10745_v18 = vpop.f32.mrb[43].mxu1 }
 0x6f1   : > { %v2585_v45 = vpop.f32.mrb[44].mxu0  ;;  %v11415_v18 = vld [vmem:[%s12221_s14] ss:$8 sps:$4 sm:$0xff]  }
 0x6f2   : > { %v10754_v24 = vpop.f32.mrb[45].mxu0  ;;  %2598 = vxpose.xlu0.c.b16.cont [3/4] (short) (narrow) %v2594_v0, 48  ;;  %v11417_v0 = vld [vmem:[%s12221_s14 + $0x4] ss:$8 sps:$4 sm:$0xff]  }
 0x6f3   : > { %v2588_v19 = vpop.f32.mrb[46].mxu0  ;;  %2856 = vmatprep.subr.bf16.mxu0 %v11417_v0  ;;  %v11418_v24 = vld [vmem:[%s12221_s14 + $0x10] ss:$8 sps:$4 sm:$0xff]  }
 0x6f4   : > { %v2595_v22 = vpack.c.bf16 %v2588_v19, %v2585_v45  ;;  %v10755_v5 = vpop.f32.mrb[47].mxu0  ;;  %2857 = vmatpush1.bf16.msra.mxu0 %v11415_v18  ;;  %v11420_v45 = vld [vmem:[%s12221_s14 + $0x14] ss:$8 sps:$4 sm:$0xff]   ;;  %v11423_v19 = vld [vmem:[%s12221_s14 + $0x24] ss:$8 sps:$4 sm:$0xff]  }
 0x6f5   : > { %2858 = vmatprep.subr.bf16.mxu0 %v11420_v45  ;;  %v11426_v5 = vld [vmem:[%s12221_s14 + $0x34] ss:$8 sps:$4 sm:$0xff]  }
 0x6f6   : > { %2599 = vxpose.xlu0.c.b16.end [4/4] (short) (narrow) %v2595_v22, 48  ;;  %v11421_v22 = vld [vmem:[%s12221_s14 + $0x20] ss:$8 sps:$4 sm:$0xff]  }
 0x6f8   : > { %2859 = vmatpush1.bf16.msra.mxu0 %v11418_v24 }
 0x6f9   : > { %2860 = vmatprep.subr.bf16.mxu0 %v11423_v19  ;;  %v11438_v19 = vld [vmem:[%s12231_s24 + $0x28] sm:$0xff]  }
 0x6fc   : > { %2861 = vmatpush1.bf16.msra.mxu0 %v11421_v22  ;;  %v11439_v22 = vld [vmem:[%s12231_s24 + $0x70] sm:$0xff]  }
 0x6fd   : > { %2862 = vmatprep.subr.bf16.mxu0 %v11426_v5  ;;  %v11440_v5 = vld [vmem:[%s12231_s24 + $0x30] sm:$0xff]  }
 0x750   : > { %v2604_v41 = vpop.trf.xlu0 }
 0x751   : > { %10765 = vmatmul.mubr.msk.bf16.vlgmr.msra.gmra.mrb[44].mxu1 %vm15165_vm0, %v2604_v41  ;;  %v11424_v41 = vld [vmem:[%s12221_s14 + $0x30] ss:$8 sps:$4 sm:$0xff]  }
 0x752   : > { %10768 = vmatprep.mubr.msk.bf16.mxu1 %vm15163_vm1, %v12156_v47  ;;  %2863 = vmatpush1.bf16.msra.mxu0 %v11424_v41  ;;  %v11442_v41 = vld [vmem:[%s12231_s24 + $0x38] sm:$0xff]  }
 0x754   : > { %v2605_v6 = vpop.trf.xlu0 }
 0x758   : > { %v2606_v51 = vpop.trf.xlu0 }
 0x759   : > { %10769 = vmatmul.mubr.msk.bf16.gmra.mrb[48].mxu1 %vm15165_vm0, %v2605_v6  ;;  %v15168_v6 = vmov 0  }
 0x75a   : > { %10772 = vmatprep.mubr.msk.bf16.mxu1 %vm15163_vm1, %v12156_v47  ;;  %2888 = vmatprep.mubr.bf16.mxu0 %v15168_v6 }
 0x761   : > { %10773 = vmatmul.mubr.msk.bf16.gmra.mrb[52].mxu1 %vm15165_vm0, %v2606_v51  ;;  %v11427_v51 = vld [vmem:[%s12231_s24 + $0x40] sm:$0xff]  }
 0x762   : > { %10222 = vmatprep.subr.bf16.mxu1 %v11427_v51  ;;  %v12915_v51 = vshrl.u32 %v2124_v37, 7 }
 0x824   : > { %v2679_v12 = vpop.f32.mrb[44].mxu1 }
 0x825   : > { %v12827_v11 = vadd.f32 %v11543_v20, %v2679_v12  ;;  %v10766_v52 = vpop.f32.mrb[45].mxu1  ;;  %v11428_v12 = vld [vmem:[%s12231_s24] sm:$0xff]   ;;  %v11429_v20 = vld [vmem:[%s12231_s24 + $0x48] sm:$0xff]  }
 0x826   : > { %v2682_v50 = vpop.f32.mrb[46].mxu1  ;;  %10223 = vmatpush3.bf16.msra.mxu1 %v11428_v12  ;;  %v11430_v52 = vld [vmem:[%s12231_s24 + $0x8] sm:$0xff]   ;;  %v12918_v12 = vsub.s32 0, %v12915_v51 }
 0x827   : > { %v12830_v10 = vadd.f32 %v11544_v9, %v2682_v50  ;;  %v10767_v60 = vpop.f32.mrb[47].mxu1  ;;  %v2706_v4 = vsel %vm15165_vm0, %v12827_v11, 0.0  ;;  %10224 = vmatprep.subr.bf16.mxu1 %v11429_v20  ;;  %v11431_v50 = vld [vmem:[%s12231_s24 + $0x50] sm:$0xff]   ;;  %v1405_v20 = vld [vmem:[%s12226_s19] sm:$0x3] }
 0x828   : > { %2707 = vadd.xlane.f32.xlu1 %v2706_v4  ;;  %v11432_v9 = vld [vmem:[%s12231_s24 + $0x10] sm:$0xff]   ;;  %v11433_v60 = vld [vmem:[%s12231_s24 + $0x58] sm:$0xff]  }
 0x829   : > { %v2709_v16 = vsel %vm15165_vm0, %v12830_v10, 0.0  ;;  %v11434_v4 = vld [vmem:[%s12231_s24 + $0x18] sm:$0xff]  }
 0x82a   : > { %10225 = vmatpush3.bf16.msra.mxu1 %v11430_v52  ;;  %v12922_v52 = vsub.s32 1, %v12915_v51 }
 0x82b   : > { %10226 = vmatprep.subr.bf16.mxu1 %v11431_v50  ;;  %v2800_v50 = vrot.slane %v1405_v20, %v12918_v12 }
 0x82c   : > { %2710 = vadd.xlane.f32.xlu1 %v2709_v16  ;;  %v2687_v54 = vpop.f32.mrb[48].mxu1  ;;  %v11435_v16 = vld [vmem:[%s12231_s24 + $0x60] sm:$0xff]  }
 0x82d   : > { %v12837_v53 = vadd.f32 %v11545_v55, %v2687_v54  ;;  %v10770_v23 = vpop.f32.mrb[49].mxu1  ;;  %v11436_v54 = vld [vmem:[%s12231_s24 + $0x20] sm:$0xff]   ;;  %v11437_v55 = vld [vmem:[%s12231_s24 + $0x68] sm:$0xff]  }
 0x82e   : > { %v2690_v26 = vpop.f32.mrb[50].mxu1  ;;  %10227 = vmatpush3.bf16.msra.mxu1 %v11432_v9  ;;  %v2804_v9 = vrot.slane %v1405_v20, %v12922_v52 }
 0x82f   : > { %v12840_v30 = vadd.f32 %v11546_v29, %v2690_v26  ;;  %v10771_v8 = vpop.f32.mrb[51].mxu1  ;;  %v2712_v2 = vsel %vm15165_vm0, %v12837_v53, 0.0  ;;  %10228 = vmatprep.subr.bf16.mxu1 %v11433_v60 }
 0x830   : > { %2713 = vadd.xlane.f32.xlu1 %v2712_v2 }
 0x831   : > { %v2715_v39 = vsel %vm15165_vm0, %v12840_v30, 0.0 }
 0x832   : > { %10229 = vmatpush3.bf16.msra.mxu1 %v11434_v4 }
 0x833   : > { %10230 = vmatprep.subr.bf16.mxu1 %v11435_v16 }
 0x834   : > { %2716 = vadd.xlane.f32.xlu1 %v2715_v39  ;;  %v2695_v3 = vpop.f32.mrb[52].mxu1 }
 0x835   : > { %v2705_v25 = vadd.f32 %v2695_v3, %v12410_v48  ;;  %v10774_v27 = vpop.f32.mrb[53].mxu1 }
 0x836   : > { %v2698_v28 = vpop.f32.mrb[54].mxu1  ;;  %10231 = vmatpush3.bf16.msra.mxu1 %v11436_v54 }
 0x837   : > { %v2718_v21 = vsel %vm15165_vm0, %v2705_v25, 0.0  ;;  %v10775_v49 = vpop.f32.mrb[55].mxu1  ;;  %10232 = vmatprep.subr.bf16.mxu1 %v11437_v55 }
 0x838   : > { %2719 = vadd.xlane.f32.xlu1 %v2718_v21 }
 0x83a   : > { %10233 = vmatpush3.bf16.msra.mxu1 %v11438_v19 }
 0x83b   : > { %10234 = vmatprep.subr.bf16.mxu1 %v11439_v22 }
 0x83e   : > { %10235 = vmatpush3.bf16.msra.mxu1 %v11440_v5 }
 0x8b5   : > { %v2708_v42 = vpop.xlane.xlu1 %2707 }
 0x8b6   : > { %v2721_v46 = vmul.f32 0.015625, %v2708_v42 }
 0x8b8   : > { %v12849_v56 = vsub.f32 %v12827_v11, %v2721_v46 }
 0x8b9   : > { %v2711_v57 = vpop.xlane.xlu1 %2710 }
 0x8ba   : > { %v2722_v40 = vmul.f32 0.015625, %v2711_v57  ;;  %v2731_v62 = vmul.f32 %v12849_v56, %v12849_v56 }
 0x8bc   : > { %v12854_v43 = vsub.f32 %v12830_v10, %v2722_v40  ;;  %v2736_v48 = vsel %vm15165_vm0, %v2731_v62, 0.0  ;;  %v9694_v40 = vld [vmem:[%s15202_s6] ss:$0 sm:$0xff] }
 0x8bd   : > { %v2714_v13 = vpop.xlane.xlu1 %2713  ;;  %2737 = vadd.xlane.f32.xlu1 %v2736_v48 }
 0x8be   : > { %v2723_v44 = vmul.f32 0.015625, %v2714_v13  ;;  %v2732_v58 = vmul.f32 %v12854_v43, %v12854_v43 }
 0x8c0   : > { %v12860_v32 = vsub.f32 %v12837_v53, %v2723_v44  ;;  %v2739_v35 = vsel %vm15165_vm0, %v2732_v58, 0.0 }
 0x8c1   : > { %v2717_v36 = vpop.xlane.xlu1 %2716  ;;  %2740 = vadd.xlane.f32.xlu1 %v2739_v35  ;;  %v9695_v35 = vld [vmem:[%s12246_s12] ss:$0 sm:$0xff] }
 0x8c2   : > { %v2724_v17 = vmul.f32 0.015625, %v2717_v36  ;;  %v2733_v31 = vmul.f32 %v12860_v32, %v12860_v32 }
 0x8c4   : > { %v12866_v33 = vsub.f32 %v12840_v30, %v2724_v17  ;;  %v2742_v34 = vsel %vm15165_vm0, %v2733_v31, 0.0 }
 0x8c5   : > { %2743 = vadd.xlane.f32.xlu1 %v2742_v34  ;;  %v2720_v59 = vpop.xlane.xlu1 %2719 }
 0x8c6   : > { %v2725_v7 = vmul.f32 0.015625, %v2720_v59  ;;  %v2734_v14 = vmul.f32 %v12866_v33, %v12866_v33 }
 0x8c8   : > { %v12871_v1 = vsub.f32 %v2705_v25, %v2725_v7  ;;  %v2745_v63 = vsel %vm15165_vm0, %v2734_v14, 0.0 }
 0x8c9   : > { %2746 = vadd.xlane.f32.xlu1 %v2745_v63 }
 0x8ca   : > { %v2735_v61 = vmul.f32 %v12871_v1, %v12871_v1 }
 0x8cc   : > { %v2748_v15 = vsel %vm15165_vm0, %v2735_v61, 0.0 }
 0x8cd   : > { %2749 = vadd.xlane.f32.xlu1 %v2748_v15 }
 0x94a   : > { %v2738_v23 = vpop.xlane.xlu1 %2737 }
 0x94b   : > { %v2751_v26 = vmul.f32 0.015625, %v2738_v23 }
 0x94d   : > { %v2756_v29 = vadd.f32 1e-05, %v2751_v26 }
 0x94e   : > { %v2741_v8 = vpop.xlane.xlu1 %2740 }
 0x94f   : > { %11533 = vrsqrt.f32 %v2756_v29  ;;  %v2752_v2 = vmul.f32 0.015625, %v2741_v8 }
 0x951   : > { %v2757_v39 = vadd.f32 1e-05, %v2752_v2 }
 0x952   : > { %v2744_v3 = vpop.xlane.xlu1 %2743 }
 0x953   : > { %11535 = vrsqrt.f32 %v2757_v39  ;;  %v2753_v25 = vmul.f32 0.015625, %v2744_v3 }
 0x955   : > { %v2758_v27 = vadd.f32 1e-05, %v2753_v25 }
 0x956   : > { %v2747_v28 = vpop.xlane.xlu1 %2746 }
 0x957   : > { %11537 = vrsqrt.f32 %v2758_v27  ;;  %v2754_v21 = vmul.f32 0.015625, %v2747_v28 }
 0x959   : > { %v11534_v49 = vpop.eup %11533  ;;  %v2759_v42 = vadd.f32 1e-05, %v2754_v21 }
 0x95a   : > { %v2766_v46 = vmul.f32 %v11534_v49, %v12849_v56  ;;  %v2750_v57 = vpop.xlane.xlu1 %2749 }
 0x95b   : > { %11539 = vrsqrt.f32 %v2759_v42  ;;  %v2755_v62 = vmul.f32 0.015625, %v2750_v57 }
 0x95c   : > { %v2777_v44 = vmul.f32 %v9694_v40, %v2766_v46 }
 0x95d   : > { %v11536_v48 = vpop.eup %11535  ;;  %v2760_v13 = vadd.f32 1e-05, %v2755_v62 }
 0x95e   : > { %v2767_v58 = vmul.f32 %v11536_v48, %v12854_v43  ;;  %v2788_v34 = vadd.f32 %v9695_v35, %v2777_v44 }
 0x95f   : > { %11541 = vrsqrt.f32 %v2760_v13 }
 0x960   : > { %v2778_v36 = vmul.f32 %v9694_v40, %v2767_v58 }
 0x961   : > { %v11538_v17 = vpop.eup %11537 }
 0x962   : > { %v2768_v31 = vmul.f32 %v11538_v17, %v12860_v32  ;;  %v2789_v59 = vadd.f32 %v9695_v35, %v2778_v36 }
 0x964   : > { %v2793_v7 = vpack.c.bf16 %v2789_v59, %v2788_v34  ;;  %v2779_v63 = vmul.f32 %v9694_v40, %v2768_v31 }
 0x965   : > { %v11540_v14 = vpop.eup %11539 }
 0x966   : > { %v2769_v56 = vmul.f32 %v11540_v14, %v12866_v33  ;;  %9704 = vmatmul.mubr.msk.bf16.vlgmr.msra.gmra.mrb[48].mxu0 %vm15165_vm0, %v2793_v7  ;;  %v2790_v32 = vadd.f32 %v9695_v35, %v2779_v63 }
 0x967   : > { %2898 = vmatprep.mubr.bf16.mxu0 %v15168_v6 }
 0x968   : > { %v2780_v43 = vmul.f32 %v9694_v40, %v2769_v56 }
 0x969   : > { %v11542_v61 = vpop.eup %11541 }
 0x96a   : > { %v2770_v15 = vmul.f32 %v11542_v61, %v12871_v1  ;;  %v2791_v0 = vadd.f32 %v9695_v35, %v2780_v43  ;;  %v11441_v1 = vld [vmem:[%s12231_s24 + $0x78] sm:$0xff]  }
 0x96b   : > { %10236 = vmatprep.subr.bf16.mxu1 %v11441_v1 }
 0x96c   : > { %v2794_v18 = vpack.c.bf16 %v2791_v0, %v2790_v32  ;;  %v2781_v45 = vmul.f32 %v9694_v40, %v2770_v15  ;;  %10237 = vmatpush3.bf16.msra.mxu1 %v11442_v41  ;;  %v9707_v15 = vld [vmem:[%s15203_s28] ss:$0 sm:$0xff] }
 0x96e   : > { %9705 = vmatmul.mubr.msk.bf16.gmra.mrb[52].mxu0 %vm15165_vm0, %v2794_v18  ;;  %v2792_v33 = vadd.f32 %v9695_v35, %v2781_v45 }
 0x96f   : > { %2908 = vmatprep.mubr.bf16.mxu0 %v15168_v6 }
 0x970   : > { %v2795_v24 = vpack.c.bf16 %v2792_v33, %v2792_v33 }
 0x976   : > { %9706 = vmatmul.mubr.msk.bf16.gmra.mrb[56].mxu0 %vm15165_vm0, %v2795_v24 }
 0xa39   : > { %v2890_v60 = vpop.f32.mrb[48].mxu0 }
 0xa3a   : > { %v2891_v4 = vadd.f32 %v2890_v60, %v2800_v50  ;;  %v2892_v16 = vpop.f32.mrb[49].mxu0 }
 0xa3b   : > { %v2893_v54 = vadd.f32 %v2892_v16, %v2804_v9  ;;  %v2894_v55 = vpop.f32.mrb[50].mxu0 }
 0xa3c   : > { %v2895_v23 = vadd.f32 %v2894_v55, %v2800_v50  ;;  %v2896_v26 = vpop.f32.mrb[51].mxu0  ;;  %v2917_v29 = vmax.f32 %v2891_v4, 0.0 }
 0xa3d   : > { %v2897_v37 = vadd.f32 %v2896_v26, %v2804_v9  ;;  %v2918_v2 = vmax.f32 %v2893_v54, 0.0 }
 0xa3e   : > { %v2919_v8 = vmax.f32 %v2895_v23, 0.0 }
 0xa3f   : > { %v2920_v39 = vmax.f32 %v2897_v37, 0.0 }
 0xa40   : > { %v2927_v3 = vpack.c.bf16 %v2919_v8, %v2917_v29  ;;  %v12935_v8 = vmov 0.0  }
 0xa41   : > { %v2928_v25 = vpack.c.bf16 %v2920_v39, %v2918_v2  ;;  %v2900_v27 = vpop.f32.mrb[52].mxu0  ;;  %v12937_v2 = vmov 0.0   ;;  %v12939_v39 = vmov 0.0  }
 0xa42   : > { %v2901_v28 = vadd.f32 %v2900_v27, %v2800_v50  ;;  %v2902_v21 = vpop.f32.mrb[53].mxu0  ;;  %v12945_v27 = vmov 1e+30  }
 0xa43   : > { %v2903_v49 = vadd.f32 %v2902_v21, %v2804_v9  ;;  %v2904_v42 = vpop.f32.mrb[54].mxu0  ;;  %3067 = vmatprep.mubr.bf16.mxu1 %v2928_v25  ;;  %v12943_v25 = vmov 1e+30  }
 0xa44   : > { %v2905_v46 = vadd.f32 %v2904_v42, %v2800_v50  ;;  %v2906_v57 = vpop.f32.mrb[55].mxu0  ;;  %3068 = vmatmul.mubr.bf16.vlgmr.msra.gmra.mrb[56].mxu1 %v2927_v3  ;;  %v2921_v62 = vmax.f32 %v2901_v28, 0.0  ;;  %v12941_v3 = vmov 0.0  }
 0xa45   : > { %v2907_v40 = vadd.f32 %v2906_v57, %v2804_v9  ;;  %v2922_v13 = vmax.f32 %v2903_v49, 0.0 }
 0xa46   : > { %v2923_v48 = vmax.f32 %v2905_v46, 0.0 }
 0xa47   : > { %v2924_v44 = vmax.f32 %v2907_v40, 0.0 }
 0xa48   : > { %v2929_v58 = vpack.c.bf16 %v2923_v48, %v2921_v62 }
 0xa49   : > { %v2930_v35 = vpack.c.bf16 %v2924_v44, %v2922_v13  ;;  %v2910_v36 = vpop.f32.mrb[56].mxu0 }
 0xa4a   : > { %v2911_v17 = vadd.f32 %v2910_v36, %v2800_v50  ;;  %v2912_v31 = vpop.f32.mrb[57].mxu0 }
 0xa4b   : > { %v2913_v34 = vadd.f32 %v2912_v31, %v2804_v9  ;;  %v2914_v59 = vpop.f32.mrb[58].mxu0  ;;  %3075 = vmatprep.mubr.bf16.mxu1 %v2930_v35 }
 0xa4c   : > { %v2915_v7 = vpop.f32.mrb[59].mxu0  ;;  %3076 = vmatmul.mubr.bf16.gmra.mrb[60].mxu1 %v2929_v58  ;;  %v2925_v56 = vmax.f32 %v2911_v17, 0.0 }
 0xa4d   : > { %v2926_v14 = vmax.f32 %v2913_v34, 0.0 }
 0xa4e   : > { %v2931_v43 = vpack.c.bf16 %v2925_v56, %v2925_v56 }
 0xa4f   : > { %v2932_v63 = vpack.c.bf16 %v2926_v14, %v2926_v14 }
 0xa51   : > { %3083 = vmatprep.mubr.bf16.mxu1 %v2932_v63 }
 0xa54   : > { %3084 = vmatmul.mubr.bf16.gmra.mrb[64].mxu1 %v2931_v43 }
 0xb17   : > { %v10238_v61 = vpop.f32.mrb[56].mxu1 }
 0xb18   : > { %v10239_v32 = vpop.f32.mrb[57].mxu1 }
 0xb19   : > { %v10240_v0 = vadd.f32 %v10239_v32, %v10238_v61  ;;  %v10241_v18 = vpop.f32.mrb[58].mxu1 }
 0xb1a   : > { %v10242_v45 = vpop.f32.mrb[59].mxu1 }
 0xb1b   : > { %v3070_v33 = vadd.f32 %v10240_v0, %v9707_v15  ;;  %v10243_v24 = vadd.f32 %v10242_v45, %v10241_v18 }
 0xb1d   : > { %v3073_v19 = vadd.f32 %v10243_v24, %v9707_v15  ;;  %v3090_v22 = vadd.f32 %v3070_v33, %v12827_v11 }
 0xb1f   : > { %v3091_v5 = vadd.f32 %v3073_v19, %v12830_v10  ;;  %v10244_v1 = vpop.f32.mrb[60].mxu1 }
 0xb20   : > { %v10245_v41 = vpop.f32.mrb[61].mxu1 }
 0xb21   : > { %v12929_v20 = vpack.c.bf16 %v3091_v5, %v3090_v22  ;;  %v10246_v50 = vadd.f32 %v10245_v41, %v10244_v1  ;;  %v10247_v9 = vpop.f32.mrb[62].mxu1 }
 0xb22   : > { %v10248_v60 = vpop.f32.mrb[63].mxu1 }
 0xb23   : > { %v3078_v4 = vadd.f32 %v10246_v50, %v9707_v15  ;;  %v10249_v16 = vadd.f32 %v10248_v60, %v10247_v9 }
 0xb25   : > { %v3081_v54 = vadd.f32 %v10249_v16, %v9707_v15  ;;  %v3092_v55 = vadd.f32 %v3078_v4, %v12837_v53  ;;  %v12947_v53 = vmov 1e+30  }
 0xb27   : > { %v3093_v23 = vadd.f32 %v3081_v54, %v12840_v30  ;;  %v10250_v26 = vpop.f32.mrb[64].mxu1  ;;  %v12949_v30 = vmov 1e+30  }
 0xb28   : > { %v10251_v37 = vpop.f32.mrb[65].mxu1 }
 0xb29   : > { %v12933_v29 = vpack.c.bf16 %v3093_v23, %v3092_v55  ;;  %v10253_v11 = vpop.f32.mrb[66].mxu1 }
 0xb2a   : > { %v10254_v10 = vpop.f32.mrb[67].mxu1 }
 0xb2b LB: >> { %s15204_s2 = sld [smem:[#allocation6_spill]]  ;;  %vm15205_vm0 = vcmask 523264   ;;  %s9724_s7 = sshll.u32 %s12080_s1, 9  ;;  %s12080_s1 = sphi %s12951_s1, %s3101_s1   ;;  %v12076_v30 = vphi %v12949_v30, %v15218_v30   ;;  %v12072_v53 = vphi %v12947_v53, %v15217_v53   ;;  %v12068_v27 = vphi %v12945_v27, %v15216_v27   ;;  %v12064_v25 = vphi %v12943_v25, %v15215_v25   ;;  %v12060_v3 = vphi %v12941_v3, %v15214_v3   ;;  %v12056_v39 = vphi %v12939_v39, %v15213_v39   ;;  %v12052_v2 = vphi %v12937_v2, %v15212_v2   ;;  %v12048_v8 = vphi %v12935_v8, %v15211_v8  }
 0xb2c   : >> { %10272 = vmatprep.mubr.msk.bf16.mxu0 %vm15205_vm0, %v12929_v20  ;;  %10292 = vmatprep.mubr.msk.bf16.mxu1 %vm15205_vm0, %v12929_v20  ;;  %s3111_s10 = sshra.s32 %s9724_s7, 3  ;;  %s15206_s0 = sld [smem:[#allocation7_spill]] }
 0xb2d   : >> { %s9725_s11 = sshll.u32 %s3111_s10, 2  ;;  %s3179_s22 = sshra.s32 %s9724_s7, 7 }
 0xb2e   : >> { %s3101_s1 = sadd.s32 1, %s12080_s1  }
 0xb2f   : >> { %p3098_p4 = scmp.ge.s32.totalorder %s3101_s1, 16  }
 0xb30   : > { %s15219_s28 = sld [smem:[#allocation8_spill]] (%p3098_p4)  ;;  %s15229_s1 = sld [smem:[#allocation9_spill]] (%p3098_p4) }
 0xb31   : >> { %s12988_s16 = scalar_lea.vmem %s15204_s2, %s9725_s11  ;;  %s15235_s2 = sld [smem:[#allocation11_spill]] (%p3098_p4) }
 0xb32   : >> { %v12991_v28 = vld [vmem:[%s12988_s16 + $0x40] sm:$0xff]   ;;  %v13009_v57 = vld [vmem:[%s12988_s16 + $0x48] sm:$0xff]   ;;  %v13029_v58 = vld [vmem:[%s12988_s16 + $0x50] sm:$0xff]   ;;  %s3181_s26 = scalar_lea.vmem %s15206_s0, %s3179_s22  ;;  %s15236_s7 = sld [smem:[#allocation12_spill]] (%p3098_p4) }
 0xb33   : >> { %v12994_v21 = vld [vmem:[%s12988_s16 + $0xc0] sm:$0xff]   ;;  %11129 = vmatprep.subr.msk.bf16.mxu0 %vm15205_vm0, %v12991_v28  ;;  %v13014_v62 = vld [vmem:[%s12988_s16 + $0xc8] sm:$0xff]   ;;  %v13034_v36 = vld [vmem:[%s12988_s16 + $0xd0] sm:$0xff]   ;;  %s15265_s10 = sld [smem:[#allocation10_spill]] (%p3098_p4)  ;;  %s15277_s11 = sld [smem:[#allocation13_spill]] (%p3098_p4) }
 0xb34   : >> { %v12999_v49 = vld [vmem:[%s12988_s16] sm:$0xff]   ;;  %11137 = vmatprep.subr.msk.bf16.mxu1 %vm15205_vm0, %v12994_v21  ;;  %v13019_v48 = vld [vmem:[%s12988_s16 + $0x8] sm:$0xff]   ;;  %v13039_v17 = vld [vmem:[%s12988_s16 + $0x10] sm:$0xff]   ;;  %s15282_s0 = sld [smem:[#allocation17_spill]] (%p3098_p4)  ;;  %s15283_s22 = sld [smem:[#allocation18_spill]] (%p3098_p4) }
 0xb35   : >> { %v13004_v42 = vld [vmem:[%s12988_s16 + $0x80] sm:$0xff]   ;;  %v3350_v46 = vsel %vm15205_vm0, %v12999_v49, 0  ;;  %v13024_v13 = vld [vmem:[%s12988_s16 + $0x88] sm:$0xff]   ;;  %v3353_v44 = vsel %vm15205_vm0, %v13019_v48, 0  ;;  %v13044_v31 = vld [vmem:[%s12988_s16 + $0x90] sm:$0xff]   ;;  %v3356_v34 = vsel %vm15205_vm0, %v13039_v17, 0 }
 0xb36   : >> { %10257 = vmatpush3.bf16.xpose.msra.mxu0 %v3350_v46  ;;  %v3398_v40 = vsel %vm15205_vm0, %v13004_v42, 0  ;;  %v3401_v35 = vsel %vm15205_vm0, %v13024_v13, 0  ;;  %v13049_v59 = vld [vmem:[%s12988_s16 + $0x58] sm:$0xff]   ;;  %v3404_v7 = vsel %vm15205_vm0, %v13044_v31, 0  ;;  %v13069_v61 = vld [vmem:[%s12988_s16 + $0x60] sm:$0xff]   ;;  %v11567_v33 = vld [vmem:[%s12988_s16 + $0x68] sm:$0xff]  }
 0xb37   : >> { %10277 = vmatpush3.bf16.xpose.msra.mxu1 %v3398_v40  ;;  %11130 = vmatprep.subr.msk.bf16.mxu0 %vm15205_vm0, %v13009_v57  ;;  %v13054_v14 = vld [vmem:[%s12988_s16 + $0xd8] sm:$0xff]   ;;  %v13074_v32 = vld [vmem:[%s12988_s16 + $0xe0] sm:$0xff]   ;;  %v11568_v19 = vld [vmem:[%s12988_s16 + $0xe8] sm:$0xff]   ;;  %s15288_s3 = sld [smem:[#allocation16_spill]] (%p3098_p4) }
 0xb38   : >> { %11138 = vmatprep.subr.msk.bf16.mxu1 %vm15205_vm0, %v13014_v62  ;;  %v13059_v56 = vld [vmem:[%s12988_s16 + $0x18] sm:$0xff]   ;;  %v11565_v0 = vld [vmem:[%s12988_s16 + $0x20] sm:$0xff]   ;;  %v11569_v22 = vld [vmem:[%s12988_s16 + $0x28] sm:$0xff]  }
 0xb39   : >> { %v13064_v63 = vld [vmem:[%s12988_s16 + $0x98] sm:$0xff]   ;;  %v3359_v43 = vsel %vm15205_vm0, %v13059_v56, 0  ;;  %v11566_v18 = vld [vmem:[%s12988_s16 + $0xa0] sm:$0xff]   ;;  %v3362_v45 = vsel %vm15205_vm0, %v11565_v0, 0  ;;  %v11570_v5 = vld [vmem:[%s12988_s16 + $0xa8] sm:$0xff]   ;;  %v3365_v1 = vsel %vm15205_vm0, %v11569_v22, 0 }
 0xb3a   : >> { %v3407_v15 = vsel %vm15205_vm0, %v13064_v63, 0  ;;  %v3410_v24 = vsel %vm15205_vm0, %v11566_v18, 0  ;;  %v11571_v41 = vld [vmem:[%s12988_s16 + $0x70] sm:$0xff]   ;;  %v3413_v50 = vsel %vm15205_vm0, %v11570_v5, 0  ;;  %v11575_v54 = vld [vmem:[%s12988_s16 + $0x78] sm:$0xff]  }
 0xb3b   : >> { %v11572_v9 = vld [vmem:[%s12988_s16 + $0xf0] sm:$0xff]   ;;  %v11576_v23 = vld [vmem:[%s12988_s16 + $0xf8] sm:$0xff]  }
 0xb3c   : >> { %v11573_v60 = vld [vmem:[%s12988_s16 + $0x30] sm:$0xff]   ;;  %v11577_v26 = vld [vmem:[%s12988_s16 + $0x38] sm:$0xff]  }
 0xb3d   : >> { %v11574_v4 = vld [vmem:[%s12988_s16 + $0xb0] sm:$0xff]   ;;  %v3368_v16 = vsel %vm15205_vm0, %v11573_v60, 0  ;;  %v11578_v37 = vld [vmem:[%s12988_s16 + $0xb8] sm:$0xff]   ;;  %v3371_v11 = vsel %vm15205_vm0, %v11577_v26, 0  ;;  %s15281_s16 = sld [smem:[#allocation15_spill]] (%p3098_p4) }
 0xb3e   : >> { %10259 = vmatpush3.bf16.xpose.msra.mxu0 %v3353_v44  ;;  %v3416_v55 = vsel %vm15205_vm0, %v11574_v4, 0  ;;  %v3419_v10 = vsel %vm15205_vm0, %v11578_v37, 0 }
 0xb3f   : >> { %10279 = vmatpush3.bf16.xpose.msra.mxu1 %v3401_v35  ;;  %11131 = vmatprep.subr.msk.bf16.mxu0 %vm15205_vm0, %v13029_v58 }
 0xb40   : >> { %11139 = vmatprep.subr.msk.bf16.mxu1 %vm15205_vm0, %v13034_v36 }
 0xb46   : >> { %10261 = vmatpush3.bf16.xpose.msra.mxu0 %v3356_v34 }
 0xb47   : >> { %10281 = vmatpush3.bf16.xpose.msra.mxu1 %v3404_v7  ;;  %11132 = vmatprep.subr.msk.bf16.mxu0 %vm15205_vm0, %v13049_v59 }
 0xb48   : >> { %11140 = vmatprep.subr.msk.bf16.mxu1 %vm15205_vm0, %v13054_v14 }
 0xb4e   : >> { %10263 = vmatpush3.bf16.xpose.msra.mxu0 %v3359_v43 }
 0xb4f   : >> { %10283 = vmatpush3.bf16.xpose.msra.mxu1 %v3407_v15  ;;  %11133 = vmatprep.subr.msk.bf16.mxu0 %vm15205_vm0, %v13069_v61 }
 0xb50   : >> { %11141 = vmatprep.subr.msk.bf16.mxu1 %vm15205_vm0, %v13074_v32 }
 0xb56   : >> { %10265 = vmatpush3.bf16.xpose.msra.mxu0 %v3362_v45 }
 0xb57   : >> { %10285 = vmatpush3.bf16.xpose.msra.mxu1 %v3410_v24  ;;  %11134 = vmatprep.subr.msk.bf16.mxu0 %vm15205_vm0, %v11567_v33 }
 0xb58   : >> { %11142 = vmatprep.subr.msk.bf16.mxu1 %vm15205_vm0, %v11568_v19 }
 0xb5e   : >> { %10267 = vmatpush3.bf16.xpose.msra.mxu0 %v3365_v1 }
 0xb5f   : >> { %10287 = vmatpush3.bf16.xpose.msra.mxu1 %v3413_v50  ;;  %11135 = vmatprep.subr.msk.bf16.mxu0 %vm15205_vm0, %v11571_v41 }
 0xb60   : >> { %11143 = vmatprep.subr.msk.bf16.mxu1 %vm15205_vm0, %v11572_v9 }
 0xb66   : >> { %10269 = vmatpush3.bf16.xpose.msra.mxu0 %v3368_v16 }
 0xb67   : >> { %10289 = vmatpush3.bf16.xpose.msra.mxu1 %v3416_v55  ;;  %11136 = vmatprep.subr.msk.bf16.mxu0 %vm15205_vm0, %v11575_v54 }
 0xb68   : >> { %11144 = vmatprep.subr.msk.bf16.mxu1 %vm15205_vm0, %v11576_v23 }
 0xb6e   : >> { %10271 = vmatpush3.bf16.xpose.msra.mxu0 %v3371_v11 }
 0xb6f   : >> { %10291 = vmatpush3.bf16.xpose.msra.mxu1 %v3419_v10  ;;  %10296 = vmatprep.subr.bf16.mxu0 %v12991_v28  ;;  %v3182_v28 = vld [vmem:[%s3181_s26] sm:$0xf]  ;;  %s15286_s26 = sld [smem:[#allocation14_spill]] (%p3098_p4) }
 0xb70   : >> { %10324 = vmatprep.subr.bf16.mxu1 %v12994_v21  ;;  %v15167_v21 = vsub.s32 2, %v12915_v51  ;;  %v3575_v40 = vrot.slane %v3182_v28, %v12922_v52 }
 0xb75   : >> { %10273 = vmatmul.mubr.msk.bf16.vlgmr.msra.gmra.mrb[0].mxu0 %vm15205_vm0, %v12929_v20 }
 0xb76   : >> { %10293 = vmatmul.mubr.msk.bf16.vlgmr.msra.gmra.mrb[0].mxu1 %vm15205_vm0, %v12929_v20  ;;  %10274 = vmatprep.mubr.msk.bf16.mxu0 %vm15205_vm0, %v12933_v29 }
 0xb77   : >> { %10294 = vmatprep.mubr.msk.bf16.mxu1 %vm15205_vm0, %v12933_v29  ;;  %10297 = vmatpush3.bf16.msra.mxu0 %v12999_v49  ;;  %v15166_v49 = vsub.s32 3, %v12915_v51 }
 0xb78   : >> { %10325 = vmatpush3.bf16.msra.mxu1 %v13004_v42  ;;  %10298 = vmatprep.subr.bf16.mxu0 %v13009_v57  ;;  %v3571_v42 = vrot.slane %v3182_v28, %v12918_v12  ;;  %v3579_v57 = vrot.slane %v3182_v28, %v15167_v21 }
 0xb79   : >> { %10326 = vmatprep.subr.bf16.mxu1 %v13014_v62  ;;  %v3583_v44 = vrot.slane %v3182_v28, %v15166_v49 }
 0xb7b   : >> { %10299 = vmatpush3.bf16.msra.mxu0 %v13019_v48 }
 0xb7c   : >> { %10327 = vmatpush3.bf16.msra.mxu1 %v13024_v13  ;;  %10300 = vmatprep.subr.bf16.mxu0 %v13029_v58 }
 0xb7d   : >> { %10275 = vmatmul.mubr.msk.bf16.gmra.mrb[4].mxu0 %vm15205_vm0, %v12933_v29  ;;  %10328 = vmatprep.subr.bf16.mxu1 %v13034_v36 }
 0xb7e   : >> { %10295 = vmatmul.mubr.msk.bf16.gmra.mrb[4].mxu1 %vm15205_vm0, %v12933_v29 }
 0xb7f   : >> { %10301 = vmatpush3.bf16.msra.mxu0 %v13039_v17 }
 0xb80   : >> { %10329 = vmatpush3.bf16.msra.mxu1 %v13044_v31  ;;  %10302 = vmatprep.subr.bf16.mxu0 %v13049_v59 }
 0xb81   : >> { %10330 = vmatprep.subr.bf16.mxu1 %v13054_v14 }
 0xb83   : >> { %10303 = vmatpush3.bf16.msra.mxu0 %v13059_v56 }
 0xb84   : >> { %10331 = vmatpush3.bf16.msra.mxu1 %v13064_v63  ;;  %10304 = vmatprep.subr.bf16.mxu0 %v13069_v61 }
 0xb85   : >> { %10332 = vmatprep.subr.bf16.mxu1 %v13074_v32 }
 0xb87   : >> { %10305 = vmatpush3.bf16.msra.mxu0 %v11565_v0 }
 0xb88   : >> { %10333 = vmatpush3.bf16.msra.mxu1 %v11566_v18  ;;  %10306 = vmatprep.subr.bf16.mxu0 %v11567_v33 }
 0xb89   : >> { %10334 = vmatprep.subr.bf16.mxu1 %v11568_v19 }
 0xb8b   : >> { %10307 = vmatpush3.bf16.msra.mxu0 %v11569_v22 }
 0xb8c   : >> { %10335 = vmatpush3.bf16.msra.mxu1 %v11570_v5  ;;  %10308 = vmatprep.subr.bf16.mxu0 %v11571_v41 }
 0xb8d   : >> { %10336 = vmatprep.subr.bf16.mxu1 %v11572_v9 }
 0xb8f   : >> { %10309 = vmatpush3.bf16.msra.mxu0 %v11573_v60 }
 0xb90   : >> { %10337 = vmatpush3.bf16.msra.mxu1 %v11574_v4  ;;  %10310 = vmatprep.subr.bf16.mxu0 %v11575_v54 }
 0xb91   : >> { %10338 = vmatprep.subr.bf16.mxu1 %v11576_v23 }
 0xb93   : >> { %10311 = vmatpush3.bf16.msra.mxu0 %v11577_v26 }
 0xb94   : >> { %10339 = vmatpush3.bf16.msra.mxu1 %v11578_v37 }
 0xb95   : > { %10806 = vmatprep.subr.bf16.mxu1 (%p3098_p4), %v12156_v47 }
 0xc48   : >> { %v3479_v46 = vpop.f32.mrb[0].mxu0 }
 0xc49   : >> { %v3551_v62 = vmul.f32 2.0, %v3479_v46  ;;  %v3532_v48 = vpop.f32.mrb[0].mxu1  ;;  %v3481_v13 = vpop.f32.mrb[1].mxu0 }
 0xc4a   : >> { %v3553_v58 = vmul.f32 2.0, %v3532_v48  ;;  %v3552_v35 = vmul.f32 2.0, %v3481_v13  ;;  %v3534_v36 = vpop.f32.mrb[1].mxu1  ;;  %v3483_v17 = vpop.f32.mrb[2].mxu0 }
 0xc4b   : >> { %v13149_v31 = vsub.f32 %v3571_v42, %v3551_v62  ;;  %v3554_v34 = vmul.f32 2.0, %v3534_v36  ;;  %v3555_v59 = vmul.f32 2.0, %v3483_v17  ;;  %v3536_v7 = vpop.f32.mrb[2].mxu1  ;;  %v3485_v14 = vpop.f32.mrb[3].mxu0 }
 0xc4c   : >> { %v13151_v56 = vsub.f32 %v3579_v57, %v3553_v58  ;;  %v3589_v63 = vsub.f32 %v3575_v40, %v3552_v35  ;;  %v3557_v43 = vmul.f32 2.0, %v3536_v7  ;;  %v3556_v61 = vmul.f32 2.0, %v3485_v14  ;;  %v3538_v15 = vpop.f32.mrb[3].mxu1 }
 0xc4d   : >> { %v13153_v32 = vsub.f32 %v3571_v42, %v3555_v59  ;;  %v3558_v0 = vmul.f32 2.0, %v3538_v15  ;;  %v13155_v18 = vsub.f32 %v3583_v44, %v3554_v34 }
 0xc4e   : >> { %v13157_v45 = vsub.f32 %v3579_v57, %v3557_v43  ;;  %v13159_v33 = vsub.f32 %v3575_v40, %v3556_v61  ;;  %v3604_v24 = vmin.f32 %v13149_v31, %v3589_v63 }
 0xc4f   : >> { %v13162_v19 = vsub.f32 %v3583_v44, %v3558_v0  ;;  %v13195_v0 = vadd.s32 128, %v12521_v38 }
 0xc50   : >> { %v3609_v22 = vmin.f32 %v13153_v32, %v13159_v33  ;;  %v3489_v5 = vpop.f32.mrb[4].mxu0  ;;  %v3605_v1 = vmin.f32 %v3604_v24, %v13151_v56 }
 0xc51   : >> { %v3559_v41 = vmul.f32 2.0, %v3489_v5  ;;  %v3542_v50 = vpop.f32.mrb[4].mxu1  ;;  %v3491_v9 = vpop.f32.mrb[5].mxu0 }
 0xc52   : >> { %v3561_v60 = vmul.f32 2.0, %v3542_v50  ;;  %v3560_v4 = vmul.f32 2.0, %v3491_v9  ;;  %v3544_v16 = vpop.f32.mrb[5].mxu1  ;;  %v3493_v54 = vpop.f32.mrb[6].mxu0  ;;  %v3606_v55 = vmin.f32 %v3605_v1, %v13155_v18  ;;  %v3610_v23 = vmin.f32 %v3609_v22, %v13157_v45 }
 0xc53   : >> { %v13169_v26 = vsub.f32 %v3571_v42, %v3559_v41  ;;  %v3562_v37 = vmul.f32 2.0, %v3544_v16  ;;  %v3563_v11 = vmul.f32 2.0, %v3493_v54  ;;  %v3546_v10 = vpop.f32.mrb[6].mxu1  ;;  %v3495_v28 = vpop.f32.mrb[7].mxu0  ;;  %v13208_v22 = vadd.s32 384, %v12521_v38 }
 0xc54   : >> { %v13171_v46 = vsub.f32 %v3579_v57, %v3561_v60  ;;  %v13173_v62 = vsub.f32 %v3575_v40, %v3560_v4  ;;  %v3565_v48 = vmul.f32 2.0, %v3546_v10  ;;  %v3564_v13 = vmul.f32 2.0, %v3495_v28  ;;  %v3548_v58 = vpop.f32.mrb[7].mxu1  ;;  %3607 = vmin.xlane.f32.xlu0 %v3606_v55 }
 0xc55   : >> { %v13175_v35 = vsub.f32 %v3571_v42, %v3563_v11  ;;  %v3566_v36 = vmul.f32 2.0, %v3548_v58  ;;  %v13177_v17 = vsub.f32 %v3583_v44, %v3562_v37  ;;  %v3611_v7 = vmin.f32 %v3610_v23, %v13162_v19 }
 0xc56   : >> { %v13179_v34 = vsub.f32 %v3579_v57, %v3565_v48  ;;  %v13181_v59 = vsub.f32 %v3575_v40, %v3564_v13  ;;  %v3614_v14 = vmin.f32 %v13169_v26, %v13173_v62 }
 0xc57   : >> { %v13186_v43 = vsub.f32 %v3583_v44, %v3566_v36  ;;  %v13200_v44 = vadd.s32 256, %v12521_v38 }
 0xc58   : >> { %v3619_v61 = vmin.f32 %v13175_v35, %v13181_v59  ;;  %3612 = vmin.xlane.f32.xlu0 %v3611_v7  ;;  %v3615_v42 = vmin.f32 %v3614_v14, %v13171_v46 }
 0xc5a   : >> { %v3616_v15 = vmin.f32 %v3615_v42, %v13177_v17  ;;  %v3620_v57 = vmin.f32 %v3619_v61, %v13179_v34 }
 0xc5c   : >> { %3617 = vmin.xlane.f32.xlu1 %v3616_v15  ;;  %v3621_v40 = vmin.f32 %v3620_v57, %v13186_v43 }
 0xc60   : >> { %3622 = vmin.xlane.f32.xlu1 %v3621_v40 }
 0xce1   : >> { %v13197_v24 = vpop.xlane.xlu0 %3607 }
 0xce2   : >> { %vm3627_vm5 = vcmp.le.f32.partialorder %v13149_v31, %v13197_v24  ;;  %vm3628_vm6 = vcmp.le.f32.partialorder %v3589_v63, %v13197_v24  ;;  %vm3629_vm7 = vcmp.le.f32.partialorder %v13151_v56, %v13197_v24  ;;  %vm3630_vm8 = vcmp.le.f32.partialorder %v13155_v18, %v13197_v24 }
 0xce3   : >> { %v3643_v5 = vsel %vm3627_vm5, %v12521_v38, 512  ;;  %v3644_v1 = vsel %vm3628_vm6, %v13195_v0, 512  ;;  %vm3925_vm10 = vcmp.lt.f32.partialorder %v13197_v24, %v12076_v30  ;;  %v3645_v63 = vsel %vm3629_vm7, %v13200_v44, 512 }
 0xce4   : >> { %vm3659_vm9 = vcmp.lt.s32.totalorder %v3643_v5, %v3644_v1  ;;  %v13224_v56 = vsel %vm3925_vm10, %v13197_v24, %v12076_v30   ;;  %v3646_v18 = vsel %vm3630_vm8, %v13208_v22, 512 }
 0xce5   : >> { %v13216_v31 = vpop.xlane.xlu0 %3612  ;;  %v3660_v41 = vsel %vm3659_vm9, %v3643_v5, %v3644_v1 }
 0xce6   : >> { %vm3661_vm11 = vcmp.lt.s32.totalorder %v3660_v41, %v3645_v63  ;;  %vm3631_vm12 = vcmp.le.f32.partialorder %v13153_v32, %v13216_v31  ;;  %vm3632_vm13 = vcmp.le.f32.partialorder %v13159_v33, %v13216_v31  ;;  %vm3633_vm14 = vcmp.le.f32.partialorder %v13157_v45, %v13216_v31 }
 0xce7   : >> { %v3662_v50 = vsel %vm3661_vm11, %v3660_v41, %v3645_v63  ;;  %v3647_v9 = vsel %vm3631_vm12, %v12521_v38, 512  ;;  %v3648_v60 = vsel %vm3632_vm13, %v13195_v0, 512  ;;  %vm3634_vm3 = vcmp.le.f32.partialorder %v13162_v19, %v13216_v31 }
 0xce8   : >> { %vm3663_vm15 = vcmp.lt.s32.totalorder %v3662_v50, %v3646_v18  ;;  %vm3679_vm4 = vcmp.lt.s32.totalorder %v3647_v9, %v3648_v60  ;;  %v3649_v33 = vsel %vm3633_vm14, %v13200_v44, 512  ;;  %v3650_v45 = vsel %vm3634_vm3, %v13208_v22, 512 }
 0xce9   : >> { %v13237_v4 = vpop.xlane.xlu1 %3617  ;;  %v3664_v32 = vsel %vm3663_vm15, %v3662_v50, %v3646_v18  ;;  %v3680_v16 = vsel %vm3679_vm4, %v3647_v9, %v3648_v60  ;;  %vm3926_vm4 = vcmp.lt.f32.partialorder %v13216_v31, %v12072_v53 }
 0xcea   : >> { %v3666_v54 = vshra.s32 %v3664_v32, 16  ;;  %vm3681_vm5 = vcmp.lt.s32.totalorder %v3680_v16, %v3649_v33  ;;  %vm3635_vm6 = vcmp.le.f32.partialorder %v13169_v26, %v13237_v4  ;;  %vm3636_vm7 = vcmp.le.f32.partialorder %v13173_v62, %v13237_v4 }
 0xceb   : >> { %v3682_v55 = vsel %vm3681_vm5, %v3680_v16, %v3649_v33  ;;  %vm3637_vm8 = vcmp.le.f32.partialorder %v13171_v46, %v13237_v4  ;;  %v3651_v19 = vsel %vm3635_vm6, %v12521_v38, 512  ;;  %v3652_v37 = vsel %vm3636_vm7, %v13195_v0, 512 }
 0xcec   : >> { %v3668_v23 = vcvt.s32.f32 %v3666_v54  ;;  %vm3683_vm9 = vcmp.lt.s32.totalorder %v3682_v55, %v3650_v45  ;;  %vm3638_vm11 = vcmp.le.f32.partialorder %v13177_v17, %v13237_v4  ;;  %v3653_v26 = vsel %vm3637_vm8, %v13200_v44, 512 }
 0xced   : >> { %v13249_v11 = vpop.xlane.xlu1 %3622  ;;  %v3684_v10 = vsel %vm3683_vm9, %v3682_v55, %v3650_v45  ;;  %vm3699_vm12 = vcmp.lt.s32.totalorder %v3651_v19, %v3652_v37  ;;  %v3654_v13 = vsel %vm3638_vm11, %v13208_v22, 512  ;;  %vm3927_vm9 = vcmp.lt.f32.partialorder %v13237_v4, %v12068_v27 }
 0xcee   : >> { %3669 = vmin.xlane.f32.xlu0 %v3668_v23  ;;  %v3686_v28 = vshra.s32 %v3684_v10, 16  ;;  %v3700_v62 = vsel %vm3699_vm12, %v3651_v19, %v3652_v37  ;;  %vm3639_vm13 = vcmp.le.f32.partialorder %v13175_v35, %v13249_v11  ;;  %vm3640_vm14 = vcmp.le.f32.partialorder %v13181_v59, %v13249_v11 }
 0xcef   : >> { %vm3701_vm15 = vcmp.lt.s32.totalorder %v3700_v62, %v3653_v26  ;;  %vm3641_vm3 = vcmp.le.f32.partialorder %v13179_v34, %v13249_v11  ;;  %v3655_v46 = vsel %vm3639_vm13, %v12521_v38, 512  ;;  %v3656_v36 = vsel %vm3640_vm14, %v13195_v0, 512 }
 0xcf0   : >> { %v3688_v48 = vcvt.s32.f32 %v3686_v28  ;;  %v3702_v58 = vsel %vm3701_vm15, %v3700_v62, %v3653_v26  ;;  %vm3642_vm6 = vcmp.le.f32.partialorder %v13186_v43, %v13249_v11  ;;  %vm3719_vm7 = vcmp.lt.s32.totalorder %v3655_v46, %v3656_v36 }
 0xcf1   : >> { %vm3703_vm5 = vcmp.lt.s32.totalorder %v3702_v58, %v3654_v13  ;;  %v3657_v17 = vsel %vm3641_vm3, %v13200_v44, 512  ;;  %v3720_v34 = vsel %vm3719_vm7, %v3655_v46, %v3656_v36  ;;  %v13273_v59 = vsel %vm3926_vm4, %v13216_v31, %v12072_v53  }
 0xcf2   : >> { %3689 = vmin.xlane.f32.xlu1 %v3688_v48  ;;  %v3704_v35 = vsel %vm3703_vm5, %v3702_v58, %v3654_v13  ;;  %vm3721_vm8 = vcmp.lt.s32.totalorder %v3720_v34, %v3657_v17  ;;  %v3658_v14 = vsel %vm3642_vm6, %v13208_v22, 512  ;;  %v13283_v61 = vsel %vm3927_vm9, %v13237_v4, %v12068_v27   ;;  %v3945_v4 = vld [vmem:[%s15219_s28] sm:$0xff] (%p3098_p4) }
 0xcf3   : >> { %v3706_v7 = vshra.s32 %v3704_v35, 16  ;;  %v3722_v43 = vsel %vm3721_vm8, %v3720_v34, %v3657_v17  ;;  %vm3928_vm11 = vcmp.lt.f32.partialorder %v13249_v11, %v12064_v25  ;;  %v3665_v1 = vand.u32 65535, %v3664_v32 }
 0xcf4   : >> { %vm3723_vm12 = vcmp.lt.s32.totalorder %v3722_v43, %v3658_v14  ;;  %v13292_v15 = vsel %vm3928_vm11, %v13249_v11, %v12064_v25   ;;  %v3685_v18 = vand.u32 65535, %v3684_v10  ;;  %v3705_v33 = vand.u32 65535, %v3704_v35 }
 0xcf5   : >> { %v3708_v42 = vcvt.s32.f32 %v3706_v7  ;;  %v3724_v57 = vsel %vm3723_vm12, %v3722_v43, %v3658_v14  ;;  %v3667_v41 = vcvt.s32.f32 %v3665_v1  ;;  %v12159_v43 = vmov 1.0|1.0  }
 0xcf6   : >> { %v3726_v40 = vshra.s32 %v3724_v57, 16  ;;  %v3687_v60 = vcvt.s32.f32 %v3685_v18  ;;  %v3707_v45 = vcvt.s32.f32 %v3705_v33  ;;  %v3725_v55 = vand.u32 65535, %v3724_v57 }
 0xcf7   : >> { %3709 = vmin.xlane.f32.xlu0 %v3708_v42  ;;  %v15215_v25 = vmov %v13292_v15  ;;  %v15216_v27 = vmov %v13283_v61  ;;  %v15217_v53 = vmov %v13273_v59 }
 0xcf8   : >> { %v3728_v5 = vcvt.s32.f32 %v3726_v40  ;;  %v3727_v32 = vcvt.s32.f32 %v3725_v55 }
 0xcfa   : >> { %3729 = vmin.xlane.f32.xlu1 %v3728_v5 }
 0xd7b   : >> { %v3670_v63 = vpop.xlane.xlu0 %3669 }
 0xd7c   : >> { %vm3671_vm13 = vcmp.eq.f32.partialorder %v3668_v23, %v3670_v63  ;;  %v3676_v23 = vcvt.f32.s32 %v3670_v63 }
 0xd7d   : >> { %v3672_v50 = vsel %vm3671_vm13, %v3667_v41, inf }
 0xd7e   : >> { %3673 = vmin.xlane.f32.xlu0 %v3672_v50  ;;  %v3677_v46 = vshll.u32 %v3676_v23, 16 }
 0xd7f   : >> { %v3690_v9 = vpop.xlane.xlu1 %3689 }
 0xd80   : >> { %vm3691_vm14 = vcmp.eq.f32.partialorder %v3688_v48, %v3690_v9  ;;  %v3696_v28 = vcvt.f32.s32 %v3690_v9 }
 0xd81   : >> { %v3692_v16 = vsel %vm3691_vm14, %v3687_v60, inf }
 0xd82   : >> { %3693 = vmin.xlane.f32.xlu1 %v3692_v16  ;;  %v3697_v13 = vshll.u32 %v3696_v28, 16 }
 0xd84   : >> { %v3710_v54 = vpop.xlane.xlu0 %3709 }
 0xd85   : >> { %vm3711_vm15 = vcmp.eq.f32.partialorder %v3708_v42, %v3710_v54  ;;  %v3716_v17 = vcvt.f32.s32 %v3710_v54 }
 0xd86   : >> { %v3712_v19 = vsel %vm3711_vm15, %v3707_v45, inf }
 0xd87   : >> { %3713 = vmin.xlane.f32.xlu0 %v3712_v19  ;;  %v3730_v37 = vpop.xlane.xlu1 %3729  ;;  %v3717_v42 = vshll.u32 %v3716_v17, 16 }
 0xd88   : >> { %vm3731_vm3 = vcmp.eq.f32.partialorder %v3728_v5, %v3730_v37  ;;  %v3736_v7 = vcvt.f32.s32 %v3730_v37 }
 0xd89   : >> { %v3732_v26 = vsel %vm3731_vm3, %v3727_v32, inf }
 0xd8a   : >> { %3733 = vmin.xlane.f32.xlu1 %v3732_v26  ;;  %v3737_v40 = vshll.u32 %v3736_v7, 16 }
 0xe0b   : >> { %v3674_v10 = vpop.xlane.xlu0 %3673 }
 0xe0c   : >> { %v3675_v62 = vcvt.f32.s32 %v3674_v10 }
 0xe0e   : >> { %v3678_v58 = vadd.s32 %v3677_v46, %v3675_v62 }
 0xe0f   : >> { %v3694_v48 = vpop.xlane.xlu1 %3693 }
 0xe10   : >> { %v3695_v36 = vcvt.f32.s32 %v3694_v48  ;;  %vm3740_vm5 = vcmp.eq.s32.totalorder %v13195_v0, %v3678_v58  ;;  %vm3742_vm13 = vcmp.eq.s32.totalorder %v13208_v22, %v3678_v58  ;;  %vm3739_vm3 = vcmp.eq.s32.totalorder %v12521_v38, %v3678_v58 }
 0xe11   : >> { %vm3741_vm1 = vcmp.eq.s32.totalorder %v13200_v44, %v3678_v58 }
 0xe12   : >> { %v3698_v35 = vadd.s32 %v3697_v13, %v3695_v36 }
 0xe14   : >> { %v3714_v34 = vpop.xlane.xlu0 %3713  ;;  %vm3744_vm6 = vcmp.eq.s32.totalorder %v13195_v0, %v3698_v35  ;;  %vm3746_vm7 = vcmp.eq.s32.totalorder %v13208_v22, %v3698_v35  ;;  %vm3743_vm8 = vcmp.eq.s32.totalorder %v12521_v38, %v3698_v35  ;;  %vm3745_vm14 = vcmp.eq.s32.totalorder %v13200_v44, %v3698_v35 }
 0xe15   : >> { %v3715_v14 = vcvt.f32.s32 %v3714_v34  ;;  %vm9778_vm12 = vmpackc.low %vm3744_vm6, %vm3740_vm5 }
 0xe16   : >> { %9779 = vmatprep.mubr.msk.bf16.mxu0 %vm9778_vm12, %v12159_v43  ;;  %vm9786_vm15 = vmpackc.low %vm3746_vm7, %vm3742_vm13 }
 0xe17   : >> { %9787 = vmatprep.mubr.msk.bf16.mxu1 %vm9786_vm15, %v12159_v43  ;;  %vm9780_vm2 = vmpackc.low %vm3743_vm8, %vm3739_vm3  ;;  %v3734_v57 = vpop.xlane.xlu1 %3733  ;;  %v3718_v5 = vadd.s32 %v3717_v42, %v3715_v14  ;;  %v3946_v14 = vld [vmem:[%s15219_s28 + $0x8] sm:$0xff] (%p3098_p4) }
 0xe18   : >> { %9781 = vmatmul.mubr.msk.bf16.vlgmr.msra.gmra.mrb[8].mxu0 %vm9780_vm2, %v12159_v43  ;;  %vm9788_vm0 = vmpackc.low %vm3745_vm14, %vm3741_vm1  ;;  %v3735_v1 = vcvt.f32.s32 %v3734_v57 }
 0xe19   : >> { %9789 = vmatmul.mubr.msk.bf16.vlgmr.msra.gmra.mrb[8].mxu1 %vm9788_vm0, %v12159_v43  ;;  %vm3748_vm5 = vcmp.eq.s32.totalorder %v13195_v0, %v3718_v5  ;;  %vm3750_vm8 = vcmp.eq.s32.totalorder %v13208_v22, %v3718_v5  ;;  %vm3747_vm14 = vcmp.eq.s32.totalorder %v12521_v38, %v3718_v5  ;;  %vm3749_vm15 = vcmp.eq.s32.totalorder %v13200_v44, %v3718_v5 }
 0xe1a   : >> { %v3738_v63 = vadd.s32 %v3737_v40, %v3735_v1 }
 0xe1c   : >> { %vm3752_vm6 = vcmp.eq.s32.totalorder %v13195_v0, %v3738_v63  ;;  %vm3754_vm7 = vcmp.eq.s32.totalorder %v13208_v22, %v3738_v63  ;;  %vm3751_vm12 = vcmp.eq.s32.totalorder %v12521_v38, %v3738_v63  ;;  %vm3753_vm2 = vcmp.eq.s32.totalorder %v13200_v44, %v3738_v63 }
 0xe1d   : >> { %vm9782_vm13 = vmpackc.low %vm3752_vm6, %vm3748_vm5  ;;  %vm15224_vm5 = vmmov (%p3098_p4), 0  }
 0xe1e   : >> { %9783 = vmatprep.mubr.msk.bf16.mxu0 %vm9782_vm13, %v12159_v43  ;;  %vm9790_vm1 = vmpackc.low %vm3754_vm7, %vm3750_vm8 }
 0xe1f   : >> { %9791 = vmatprep.mubr.msk.bf16.mxu1 %vm9790_vm1, %v12159_v43  ;;  %vm9784_vm0 = vmpackc.low %vm3751_vm12, %vm3747_vm14 }
 0xe20   : >> { %9785 = vmatmul.mubr.msk.bf16.gmra.mrb[12].mxu0 %vm9784_vm0, %v12159_v43  ;;  %vm9792_vm3 = vmpackc.low %vm3753_vm2, %vm3749_vm15 }
 0xe21   : >> { %9793 = vmatmul.mubr.msk.bf16.gmra.mrb[12].mxu1 %vm9792_vm3, %v12159_v43 }
 0xe22   : > { %10808 = vmatprep.mubr.msk.bf16.mxu1 (%p3098_p4), %vm15224_vm5, %v12156_v47 }
 0xeeb   : >> { %v10312_v41 = vpop.f32.mrb[8].mxu0 }
 0xeec   : >> { %v10340_v18 = vpop.f32.mrb[8].mxu1  ;;  %v10313_v50 = vpop.f32.mrb[9].mxu0 }
 0xeed   : >> { %v10314_v9 = vadd.f32 %v10313_v50, %v10312_v41  ;;  %v10341_v60 = vpop.f32.mrb[9].mxu1  ;;  %v10315_v33 = vpop.f32.mrb[10].mxu0 }
 0xeee   : >> { %v10342_v16 = vadd.f32 %v10341_v60, %v10340_v18  ;;  %v10343_v54 = vpop.f32.mrb[10].mxu1  ;;  %v10316_v45 = vpop.f32.mrb[11].mxu0 }
 0xeef   : >> { %v10317_v55 = vadd.f32 %v10316_v45, %v10315_v33  ;;  %v10344_v19 = vpop.f32.mrb[11].mxu1 }
 0xef0   : >> { %v3911_v37 = vadd.f32 %v10342_v16, %v10314_v9  ;;  %v10345_v32 = vadd.f32 %v10344_v19, %v10343_v54 }
 0xef2   : >> { %v13314_v3 = vsel %vm3925_vm10, %v3911_v37, %v12060_v3   ;;  %v3914_v23 = vadd.f32 %v10345_v32, %v10317_v55  ;;  %vm15220_vm10 = vcmask (%p3098_p4), 523264  }
 0xef3   : >> { %v15207_v26 = vmov %v13314_v3  ;;  %v10318_v28 = vpop.f32.mrb[12].mxu0 }
 0xef4   : >> { %v13320_v39 = vsel %vm3926_vm4, %v3914_v23, %v12056_v39   ;;  %v10346_v62 = vpop.f32.mrb[12].mxu1  ;;  %v10319_v46 = vpop.f32.mrb[13].mxu0  ;;  %v4031_v11 = vsel (%p3098_p4), %vm15220_vm10, %v15207_v26, 0.0  ;;  %vm15221_vm4 = vmmov (%p3098_p4), %vm15220_vm10 }
 0xef5   : >> { %v15208_v10 = vmov %v13320_v39  ;;  %v10320_v48 = vadd.f32 %v10319_v46, %v10318_v28  ;;  %v10347_v13 = vpop.f32.mrb[13].mxu1  ;;  %v10321_v58 = vpop.f32.mrb[14].mxu0  ;;  %vm15225_vm6 = vmmov (%p3098_p4), %vm15221_vm4  ;;  %4032 = vadd.xlane.f32.xlu1 (%p3098_p4), %v4031_v11 }
 0xef6   : >> { %v10348_v36 = vadd.f32 %v10347_v13, %v10346_v62  ;;  %v10349_v35 = vpop.f32.mrb[14].mxu1  ;;  %v10322_v17 = vpop.f32.mrb[15].mxu0  ;;  %v4034_v15 = vsel (%p3098_p4), %vm15221_vm4, %v15208_v10, 0.0  ;;  %v4025_v20 = vsel (%p3098_p4), %vm15225_vm6, %v3945_v4, 0.0  ;;  %vm15226_vm7 = vmmov (%p3098_p4), %vm15221_vm4 }
 0xef7   : >> { %v10323_v34 = vadd.f32 %v10322_v17, %v10321_v58  ;;  %v10350_v30 = vpop.f32.mrb[15].mxu1  ;;  %v4028_v29 = vsel (%p3098_p4), %vm15226_vm7, %v3946_v14, 0.0  ;;  %4026 = vadd.xlane.f32.xlu0 (%p3098_p4), %v4025_v20  ;;  %vm15227_vm12 = vmmov (%p3098_p4), %vm15221_vm4 }
 0xef8   : >> { %v3919_v24 = vadd.f32 %v10348_v36, %v10320_v48  ;;  %v10351_v3 = vadd.f32 %v10350_v30, %v10349_v35  ;;  %v15218_v30 = vmov %v13224_v56  ;;  %3100 = sbr.rel (!%p3098_p4) target bundleno = 2859 (0xb2b), region = 271  ;;  %vm15228_vm13 = vmmov (%p3098_p4), %vm15221_vm4  ;;  %v11579_v48 = vld [vmem:[%s15229_s1] sm:$0xff] (%p3098_p4)  }
 0xef9   : > { %4035 = vadd.xlane.f32.xlu1 (%p3098_p4), %v4034_v15  ;;  %vm15230_vm8 = vmmov (%p3098_p4), %vm15221_vm4 }
 0xefa   : >> { %v13326_v2 = vsel %vm3927_vm9, %v3919_v24, %v12052_v2   ;;  %v3922_v39 = vadd.f32 %v10351_v3, %v10323_v34  ;;  %v15214_v3 = vmov %v15207_v26  ;;  %vm15222_vm9 = vmmov (%p3098_p4), %vm15221_vm4 }
 0xefb   : >> { %v15209_v31 = vmov %v13326_v2  ;;  %4029 = vadd.xlane.f32.xlu0 (%p3098_p4), %v4028_v29  ;;  %vm15231_vm2 = vmmov (%p3098_p4), %vm15221_vm4 }
 0xefc   : >> { %v13332_v8 = vsel %vm3928_vm11, %v3922_v39, %v12048_v8   ;;  %v15212_v2 = vmov %v15209_v31  ;;  %v15213_v39 = vmov %v15208_v10  ;;  %v4037_v61 = vsel (%p3098_p4), %vm15222_vm9, %v15209_v31, 0.0  ;;  %vm15223_vm11 = vmmov (%p3098_p4), %vm15221_vm4 }
 0xefd   : >> { %v15210_v7 = vmov %v13332_v8  ;;  %vm15232_vm1 = vmmov (%p3098_p4), %vm15231_vm2 }
 0xefe   : >> { %v15211_v8 = vmov %v15210_v7  ;;  %v4040_v59 = vsel (%p3098_p4), %vm15223_vm11, %v15210_v7, 0.0  ;;  %vm15233_vm14 = vmmov (%p3098_p4), %vm15232_vm1 }
 0xeff   : > { %4041 = vadd.xlane.f32.xlu1 %v4040_v59  ;;  %4038 = vadd.xlane.f32.xlu0 %v4037_v61  ;;  %vm15234_vm0 = vmmov %vm15232_vm1 }
 0xf00   : > { %10782 = vmatprep.mubr.msk.bf16.mxu0 %vm15234_vm0, %v11579_v48  ;;  %vm15237_vm15 = vmmov %vm15234_vm0 }
 0xf01   : > { %vm15238_vm3 = vmmov %vm15234_vm0 }
 0xf02   : > { %vm15239_vm10 = vmmov %vm15234_vm0 }
 0xf03   : > { %vm15240_vm4 = vmmov %vm15234_vm0 }
 0xf04   : > { %vm15241_vm9 = vmmov %vm15234_vm0 }
 0xf05   : > { %vm15242_vm11 = vmmov %vm15234_vm0 }
 0xf06   : > { %vm15243_vm6 = vmmov %vm15234_vm0 }
 0xf07   : > { %vm15244_vm7 = vmmov %vm15234_vm0 }
 0xf82   : > { %v4033_v8 = vpop.xlane.xlu1 %4032 }
 0xf83   : > { %v4045_v25 = vmul.f32 0.015625, %v4033_v8 }
 0xf84   : > { %v4027_v2 = vpop.xlane.xlu0 %4026 }
 0xf85   : > { %v4043_v27 = vmul.f32 0.015625, %v4027_v2  ;;  %v13377_v53 = vsub.f32 %v15207_v26, %v4045_v25  ;;  %v9794_v25 = vld [vmem:[%s15235_s2] ss:$0 sm:$0xff] }
 0xf86   : > { %v4036_v56 = vpop.xlane.xlu1 %4035 }
 0xf87   : > { %v4049_v43 = vsub.f32 %v3945_v4, %v4043_v27  ;;  %v4046_v57 = vmul.f32 0.015625, %v4036_v56  ;;  %v4057_v1 = vmul.f32 %v13377_v53, %v13377_v53 }
 0xf88   : > { %v4030_v42 = vpop.xlane.xlu0 %4029 }
 0xf89   : > { %v4044_v40 = vmul.f32 0.015625, %v4030_v42  ;;  %v4055_v5 = vmul.f32 %v4049_v43, %v4049_v43  ;;  %v13382_v63 = vsub.f32 %v15208_v10, %v4046_v57  ;;  %v4067_v16 = vsel %vm15228_vm13, %v4057_v1, 0.0  ;;  %vm15246_vm13 = vmmov %vm15234_vm0 }
 0xf8b   : > { %v4061_v41 = vsel %vm15227_vm12, %v4055_v5, 0.0  ;;  %v4050_v50 = vsub.f32 %v3946_v14, %v4044_v40  ;;  %v4058_v45 = vmul.f32 %v13382_v63, %v13382_v63  ;;  %v9795_v40 = vld [vmem:[%s15236_s7] ss:$0 sm:$0xff]  ;;  %vm15245_vm12 = vmmov %vm15234_vm0 }
 0xf8c   : > { %v4042_v18 = vpop.xlane.xlu1 %4041  ;;  %4062 = vadd.xlane.f32.xlu0 %v4061_v41  ;;  %v4039_v9 = vpop.xlane.xlu0 %4038 }
 0xf8d   : > { %v4048_v60 = vmul.f32 0.015625, %v4042_v18  ;;  %v4047_v33 = vmul.f32 0.015625, %v4039_v9  ;;  %v4056_v54 = vmul.f32 %v4050_v50, %v4050_v50  ;;  %v4070_v32 = vsel %vm15231_vm2, %v4058_v45, 0.0  ;;  %vm15248_vm2 = vmmov %vm15234_vm0 }
 0xf8f   : > { %v13389_v55 = vsub.f32 %v15210_v7, %v4048_v60  ;;  %v4053_v19 = vsub.f32 %v15209_v31, %v4047_v33  ;;  %v4064_v37 = vsel %vm15230_vm8, %v4056_v54, 0.0  ;;  %vm15247_vm8 = vmmov %vm15234_vm0 }
 0xf90   : > { %4068 = vadd.xlane.f32.xlu0 %v4067_v16  ;;  %4065 = vadd.xlane.f32.xlu1 %v4064_v37 }
 0xf91   : > { %v4059_v23 = vmul.f32 %v4053_v19, %v4053_v19  ;;  %v4060_v28 = vmul.f32 %v13389_v55, %v13389_v55 }
 0xf93   : > { %v4073_v62 = vsel %vm15232_vm1, %v4059_v23, 0.0  ;;  %v4076_v46 = vsel %vm15233_vm14, %v4060_v28, 0.0  ;;  %vm15249_vm1 = vmmov %vm15234_vm0 }
 0xf94   : > { %4071 = vadd.xlane.f32.xlu1 %v4070_v32  ;;  %4074 = vadd.xlane.f32.xlu0 %v4073_v62  ;;  %vm15250_vm14 = vmmov %vm15234_vm0 }
 0xf98   : > { %4077 = vadd.xlane.f32.xlu1 %v4076_v46 }
0x1019   : > { %v4063_v13 = vpop.xlane.xlu0 %4062 }
0x101a   : > { %v4079_v58 = vmul.f32 0.015625, %v4063_v13 }
0x101c   : > { %v4085_v36 = vadd.f32 1e-05, %v4079_v58  ;;  %v11580_v58 = vld [vmem:[%s15229_s1 + $0x8] sm:$0xff]  }
0x101d   : > { %v4066_v35 = vpop.xlane.xlu1 %4065  ;;  %v4069_v17 = vpop.xlane.xlu0 %4068 }
0x101e   : > { %11671 = vrsqrt.f32 %v4085_v36  ;;  %v4080_v34 = vmul.f32 0.015625, %v4066_v35  ;;  %v4081_v30 = vmul.f32 0.015625, %v4069_v17  ;;  %v11581_v36 = vld [vmem:[%s15229_s1 + $0x10] sm:$0xff]   ;;  %v11582_v35 = vld [vmem:[%s15229_s1 + $0x18] sm:$0xff]   ;;  %v11583_v17 = vld [vmem:[%s15229_s1 + $0x20] sm:$0xff]  }
0x1020   : > { %v4086_v24 = vadd.f32 1e-05, %v4080_v34  ;;  %v4087_v3 = vadd.f32 1e-05, %v4081_v30  ;;  %v11584_v34 = vld [vmem:[%s15229_s1 + $0x28] sm:$0xff]   ;;  %v11585_v30 = vld [vmem:[%s15229_s1 + $0x30] sm:$0xff]  }
0x1021   : > { %v4072_v39 = vpop.xlane.xlu1 %4071  ;;  %v4075_v4 = vpop.xlane.xlu0 %4074 }
0x1022   : > { %11673 = vrsqrt.f32 %v4086_v24  ;;  %v4082_v11 = vmul.f32 0.015625, %v4072_v39  ;;  %v4083_v14 = vmul.f32 0.015625, %v4075_v4  ;;  %v11586_v24 = vld [vmem:[%s15229_s1 + $0x38] sm:$0xff]  }
0x1023   : > { %11675 = vrsqrt.f32 %v4087_v3 }
0x1024   : > { %v4088_v15 = vadd.f32 1e-05, %v4082_v11  ;;  %v4089_v61 = vadd.f32 1e-05, %v4083_v14 }
0x1025   : > { %v4078_v59 = vpop.xlane.xlu1 %4077 }
0x1026   : > { %11677 = vrsqrt.f32 %v4088_v15  ;;  %v4084_v20 = vmul.f32 0.015625, %v4078_v59 }
0x1027   : > { %11679 = vrsqrt.f32 %v4089_v61  ;;  %v11587_v61 = vld [vmem:[%s15229_s1 + $0x40] sm:$0xff]  }
0x1028   : > { %v11672_v29 = vpop.eup %11671  ;;  %v4090_v8 = vadd.f32 1e-05, %v4084_v20 }
0x1029   : > { %v4097_v2 = vmul.f32 %v11672_v29, %v4049_v43 }
0x102a   : > { %11681 = vrsqrt.f32 %v4090_v8 }
0x102b   : > { %v4109_v57 = vmul.f32 %v9794_v25, %v4097_v2 }
0x102c   : > { %v11674_v27 = vpop.eup %11673 }
0x102d   : > { %v11676_v56 = vpop.eup %11675  ;;  %v4098_v42 = vmul.f32 %v11674_v27, %v4050_v50  ;;  %v4121_v9 = vadd.f32 %v9795_v40, %v4109_v57  ;;  %v11588_v27 = vld [vmem:[%s15229_s1 + $0x48] sm:$0xff]  }
0x102e   : > { %v4099_v5 = vmul.f32 %v11676_v56, %v13377_v53  ;;  %v11589_v56 = vld [vmem:[%s15229_s1 + $0x50] sm:$0xff]  }
0x102f   : > { %v4110_v1 = vmul.f32 %v9794_v25, %v4098_v42 }
0x1030   : > { %v11678_v41 = vpop.eup %11677  ;;  %v4111_v16 = vmul.f32 %v9794_v25, %v4099_v5 }
0x1031   : > { %v11680_v18 = vpop.eup %11679  ;;  %v4122_v60 = vadd.f32 %v9795_v40, %v4110_v1  ;;  %v4100_v33 = vmul.f32 %v11678_v41, %v13382_v63 }
0x1032   : > { %v4101_v43 = vmul.f32 %v11680_v18, %v4053_v19  ;;  %v4123_v32 = vadd.f32 %v9795_v40, %v4111_v16  ;;  %v11590_v18 = vld [vmem:[%s15229_s1 + $0x58] sm:$0xff]  }
0x1033   : > { %v4127_v54 = vpack.c.bf16 %v4122_v60, %v4121_v9  ;;  %v4112_v45 = vmul.f32 %v9794_v25, %v4100_v33 }
0x1034   : > { %v11682_v37 = vpop.eup %11681  ;;  %v4113_v62 = vmul.f32 %v9794_v25, %v4101_v43 }
0x1035   : > { %11145 = vmatprep.subr.msk.bf16.mxu0 %vm15237_vm15, %v4127_v54  ;;  %v4227_v50 = vsel %vm15238_vm3, %v4127_v54, 0  ;;  %v4124_v23 = vadd.f32 %v9795_v40, %v4112_v45  ;;  %v4102_v53 = vmul.f32 %v11682_v37, %v13389_v55  ;;  %vm15251_vm15 = vmmov %vm15234_vm0 }
0x1036   : > { %10777 = vmatpush3.bf16.xpose.msra.mxu0 %v4227_v50  ;;  %v4125_v46 = vadd.f32 %v9795_v40, %v4113_v62  ;;  %vm15252_vm3 = vmmov %vm15234_vm0 }
0x1037   : > { %v4128_v28 = vpack.c.bf16 %v4124_v23, %v4123_v32  ;;  %v4114_v63 = vmul.f32 %v9794_v25, %v4102_v53 }
0x1039   : > { %11146 = vmatprep.subr.msk.bf16.mxu0 %vm15239_vm10, %v4128_v28  ;;  %v4126_v19 = vadd.f32 %v9795_v40, %v4114_v63  ;;  %v4230_v48 = vsel %vm15240_vm4, %v4128_v28, 0  ;;  %vm15253_vm10 = vcmask 130048  }
0x103a   : > { %vm15254_vm4 = vmmov %vm15253_vm10 }
0x103b   : > { %v4129_v13 = vpack.c.bf16 %v4126_v19, %v4125_v46 }
0x103d   : > { %v4233_v55 = vsel %vm15242_vm11, %v4129_v13, 0  ;;  %vm15256_vm11 = vmmov %vm15254_vm4 }
0x103e   : > { %10779 = vmatpush3.bf16.xpose.msra.mxu0 %v4230_v48 }
0x103f   : > { %11147 = vmatprep.subr.msk.bf16.mxu0 %vm15241_vm9, %v4129_v13  ;;  %vm15255_vm9 = vmmov %vm15254_vm4 }
0x1046   : > { %10781 = vmatpush3.bf16.xpose.msra.mxu0 %v4233_v55 }
0x1047   : > { %10848 = vmatprep.subr.bf16.mxu0 %v12156_v47 }
0x104d   : > { %10783 = vmatmul.mubr.msk.bf16.vlgmr.msra.gmra.mrb[0].mxu0 %vm15243_vm6, %v11580_v58  ;;  %vm15257_vm6 = vmmov %vm15254_vm4 }
0x104e   : > { %10786 = vmatprep.mubr.msk.bf16.mxu0 %vm15244_vm7, %v11581_v36  ;;  %vm15258_vm7 = vmmov %vm15254_vm4 }
0x1055   : > { %10787 = vmatmul.mubr.msk.bf16.gmra.mrb[4].mxu0 %vm15245_vm12, %v11582_v35  ;;  %vm15259_vm12 = vmmov %vm15254_vm4 }
0x1056   : > { %10790 = vmatprep.mubr.msk.bf16.mxu0 %vm15246_vm13, %v11583_v17  ;;  %vm15260_vm13 = vmmov %vm15254_vm4 }
0x105d   : > { %10791 = vmatmul.mubr.msk.bf16.gmra.mrb[8].mxu0 %vm15247_vm8, %v11584_v34  ;;  %vm15261_vm8 = vmmov %vm15254_vm4 }
0x105e   : > { %10794 = vmatprep.mubr.msk.bf16.mxu0 %vm15248_vm2, %v11585_v30  ;;  %vm15262_vm2 = vmmov %vm15254_vm4 }
0x1065   : > { %10795 = vmatmul.mubr.msk.bf16.gmra.mrb[12].mxu0 %vm15249_vm1, %v11586_v24  ;;  %vm15263_vm1 = vmmov %vm15262_vm2 }
0x1066   : > { %10798 = vmatprep.mubr.msk.bf16.mxu0 %vm15250_vm14, %v11587_v61  ;;  %vm15264_vm14 = vmmov %vm15263_vm1 }
0x106d   : > { %10799 = vmatmul.mubr.msk.bf16.gmra.mrb[16].mxu0 %vm15234_vm0, %v11588_v27  ;;  %vm4728_vm0 = vcmask 392192  }
0x106e   : > { %10802 = vmatprep.mubr.msk.bf16.mxu0 %vm15251_vm15, %v11589_v56  ;;  %vm15266_vm15 = vmmov %vm15252_vm3 }
0x1075   : > { %10803 = vmatmul.mubr.msk.bf16.gmra.mrb[20].mxu0 %vm15252_vm3, %v11590_v18 }
0x1076   : > { %10850 = vmatprep.mubr.msk.bf16.mxu0 %vm15224_vm5, %v12156_v47 }
0x1120   : > { %v10784_v3 = vpop.f32.mrb[0].mxu0 }
0x1121   : > { %v4269_v39 = vpop.f32.mrb[1].mxu0 }
0x1122   : > { %v10785_v4 = vpop.f32.mrb[2].mxu0 }
0x1123   : > { %v4365_v11 = vpack.c.bf16 %v10785_v4, %v10784_v3  ;;  %v4272_v14 = vpop.f32.mrb[3].mxu0 }
0x1124   : > { %v4364_v15 = vpack.c.bf16 %v4272_v14, %v4269_v39 }
0x1125   : > { %4458 = vxpose.xlu1.c.b16.start.end [1/1] (short) (narrow) %v4365_v11, 48 }
0x1126   : > { %4376 = vxpose.xlu0.c.b16.start.end [1/1] (short) (narrow) %v4364_v15, 48 }
0x1128   : > { %v10788_v59 = vpop.f32.mrb[4].mxu0 }
0x1129   : > { %v4285_v20 = vpop.f32.mrb[5].mxu0 }
0x112a   : > { %v10789_v29 = vpop.f32.mrb[6].mxu0 }
0x112b   : > { %v4367_v8 = vpack.c.bf16 %v10789_v29, %v10788_v59  ;;  %v4288_v2 = vpop.f32.mrb[7].mxu0 }
0x112c   : > { %v4366_v25 = vpack.c.bf16 %v4288_v2, %v4285_v20 }
0x112e   : > { %4622 = vxpose.xlu1.c.b16.start.end [1/1] (short) (narrow) %v4367_v8, 48 }
0x112f   : > { %4540 = vxpose.xlu0.c.b16.start.end [1/1] (short) (narrow) %v4366_v25, 48 }
0x1130   : > { %v10792_v42 = vpop.f32.mrb[8].mxu0 }
0x1131   : > { %v4301_v57 = vpop.f32.mrb[9].mxu0 }
0x1132   : > { %v10793_v40 = vpop.f32.mrb[10].mxu0 }
0x1133   : > { %v4369_v5 = vpack.c.bf16 %v10793_v40, %v10792_v42  ;;  %v4304_v1 = vpop.f32.mrb[11].mxu0 }
0x1134   : > { %v4368_v41 = vpack.c.bf16 %v4304_v1, %v4301_v57 }
0x1136   : > { %10807 = vmatpush3.bf16.msra.mxu1 %v4368_v41 }
0x1137   : > { %10820 = vmatprep.subr.bf16.mxu1 %v12156_v47 }
0x1138   : > { %v10796_v9 = vpop.f32.mrb[12].mxu0 }
0x1139   : > { %v4317_v60 = vpop.f32.mrb[13].mxu0 }
0x113a   : > { %v10797_v33 = vpop.f32.mrb[14].mxu0 }
0x113b   : > { %v4371_v16 = vpack.c.bf16 %v10797_v33, %v10796_v9  ;;  %v4320_v54 = vpop.f32.mrb[15].mxu0 }
0x113c   : > { %v4370_v45 = vpack.c.bf16 %v4320_v54, %v4317_v60 }
0x113d   : > { %10849 = vmatpush3.bf16.msra.mxu0 %v4371_v16 }
0x113e   : > { %10872 = vmatprep.subr.bf16.mxu0 %v12156_v47 }
0x1140   : > { %v13476_v13 = vpop.f32.mrb[16].mxu0 }
0x1141   : > { %v13478_v55 = vpop.f32.mrb[17].mxu0 }
0x1142   : > { %v13480_v58 = vpop.f32.mrb[18].mxu0 }
0x1143   : > { %v4373_v36 = vpack.c.bf16 %v13480_v58, %v13476_v13  ;;  %v13484_v35 = vpop.f32.mrb[19].mxu0 }
0x1144   : > { %v4372_v17 = vpack.c.bf16 %v13484_v35, %v13478_v55 }
0x1148   : > { %v13488_v34 = vpop.f32.mrb[20].mxu0 }
0x1149   : > { %v13490_v30 = vpop.f32.mrb[21].mxu0 }
0x114a   : > { %v13492_v24 = vpop.f32.mrb[22].mxu0 }
0x114b   : > { %v4375_v3 = vpack.c.bf16 %v13492_v24, %v13488_v34  ;;  %v13496_v39 = vpop.f32.mrb[23].mxu0 }
0x114c   : > { %v4374_v4 = vpack.c.bf16 %v13496_v39, %v13490_v30  ;;  %v11594_v30 = vld [vmem:[%s15265_s10 + $0x18] sm:$0xff]  }
0x118b   : > { %v4466_v43 = vpop.trf.xlu1 }
0x118c   : > { %v4384_v37 = vpop.trf.xlu0 }
0x118d   : > { %10809 = vmatmul.mubr.msk.bf16.vlgmr.msra.gmra.mrb[0].mxu1 %vm15253_vm10, %v4384_v37  ;;  %vm15267_vm10 = vmmov %vm15252_vm3 }
0x118e   : > { %10821 = vmatpush3.bf16.msra.mxu1 %v4369_v5  ;;  %10812 = vmatprep.mubr.msk.bf16.mxu1 %vm15224_vm5, %v12156_v47 }
0x118f   : > { %10834 = vmatprep.subr.bf16.mxu1 %v12156_v47  ;;  %v4467_v50 = vpop.trf.xlu1 }
0x1190   : > { %v4385_v32 = vpop.trf.xlu0 }
0x1193   : > { %v4468_v23 = vpop.trf.xlu1 }
0x1194   : > { %v4386_v28 = vpop.trf.xlu0 }
0x1195   : > { %10813 = vmatmul.mubr.msk.bf16.gmra.mrb[4].mxu1 %vm15254_vm4, %v4385_v32  ;;  %vm15268_vm4 = vmmov %vm15252_vm3 }
0x1196   : > { %10816 = vmatprep.mubr.msk.bf16.mxu1 %vm15224_vm5, %v12156_v47 }
0x1197   : > { %v4630_v53 = vpop.trf.xlu1 }
0x1198   : > { %10851 = vmatmul.mubr.msk.bf16.vlgmr.msra.gmra.mrb[24].mxu0 %vm15255_vm9, %v4630_v53  ;;  %v4548_v19 = vpop.trf.xlu0  ;;  %vm15269_vm9 = vmmov %vm15252_vm3 }
0x1199   : > { %10854 = vmatprep.mubr.msk.bf16.mxu0 %vm15224_vm5, %v12156_v47 }
0x119b   : > { %v4631_v62 = vpop.trf.xlu1 }
0x119c   : > { %v4549_v46 = vpop.trf.xlu0 }
0x119d   : > { %10817 = vmatmul.mubr.msk.bf16.gmra.mrb[8].mxu1 %vm15256_vm11, %v4386_v28  ;;  %vm15270_vm11 = vmmov %vm15252_vm3 }
0x119e   : > { %10822 = vmatprep.mubr.msk.bf16.mxu1 %vm15224_vm5, %v12156_v47 }
0x119f   : > { %v4632_v63 = vpop.trf.xlu1 }
0x11a0   : > { %10855 = vmatmul.mubr.msk.bf16.gmra.mrb[28].mxu0 %vm15257_vm6, %v4631_v62  ;;  %v4550_v48 = vpop.trf.xlu0  ;;  %vm15271_vm6 = vmmov %vm15252_vm3 }
0x11a1   : > { %10858 = vmatprep.mubr.msk.bf16.mxu0 %vm15224_vm5, %v12156_v47 }
0x11a5   : > { %10823 = vmatmul.mubr.msk.bf16.vlgmr.msra.gmra.mrb[12].mxu1 %vm15258_vm7, %v4466_v43  ;;  %vm15272_vm7 = vmmov %vm15252_vm3 }
0x11a6   : > { %10835 = vmatpush3.bf16.msra.mxu1 %v4370_v45  ;;  %10826 = vmatprep.mubr.msk.bf16.mxu1 %vm15224_vm5, %v12156_v47 }
0x11a7   : > { %10862 = vmatprep.subr.bf16.mxu1 %v12156_v47 }
0x11a8   : > { %10859 = vmatmul.mubr.msk.bf16.gmra.mrb[32].mxu0 %vm15259_vm12, %v4632_v63  ;;  %vm15273_vm12 = vmmov %vm15252_vm3 }
0x11a9   : > { %10878 = vmatprep.mubr.msk.bf16.mxu0 %vm15224_vm5, %v12156_v47 }
0x11ad   : > { %10827 = vmatmul.mubr.msk.bf16.gmra.mrb[16].mxu1 %vm15260_vm13, %v4467_v50  ;;  %vm15274_vm13 = vmmov %vm15252_vm3 }
0x11ae   : > { %10830 = vmatprep.mubr.msk.bf16.mxu1 %vm15224_vm5, %v12156_v47 }
0x11b5   : > { %10831 = vmatmul.mubr.msk.bf16.gmra.mrb[20].mxu1 %vm15261_vm8, %v4468_v23  ;;  %vm15275_vm8 = vmmov %vm15252_vm3 }
0x11b6   : > { %10836 = vmatprep.mubr.msk.bf16.mxu1 %vm15224_vm5, %v12156_v47 }
0x11bd   : > { %10837 = vmatmul.mubr.msk.bf16.vlgmr.msra.gmra.mrb[24].mxu1 %vm15262_vm2, %v4548_v19  ;;  %vm15276_vm2 = vmmov %vm15252_vm3 }
0x11be   : > { %10840 = vmatprep.mubr.msk.bf16.mxu1 %vm15224_vm5, %v12156_v47 }
0x11c5   : > { %10841 = vmatmul.mubr.msk.bf16.gmra.mrb[28].mxu1 %vm15263_vm1, %v4549_v46  ;;  %vm15278_vm1 = vmmov %vm15276_vm2 }
0x11c6   : > { %10844 = vmatprep.mubr.msk.bf16.mxu1 %vm15224_vm5, %v12156_v47 }
0x11cd   : > { %10845 = vmatmul.mubr.msk.bf16.gmra.mrb[32].mxu1 %vm15264_vm14, %v4550_v48  ;;  %vm15279_vm14 = vmmov %vm15278_vm1 }
0x11ce   : > { %10868 = vmatprep.mubr.msk.bf16.mxu1 %vm15224_vm5, %v12156_v47 }
0x1260   : > { %v4435_v11 = vpop.f32.mrb[0].mxu1 }
0x1261   : > { %v13500_v14 = vmul.f32 0.25, %v4435_v11  ;;  %v10810_v15 = vpop.f32.mrb[1].mxu1 }
0x1262   : > { %v4438_v61 = vpop.f32.mrb[2].mxu1 }
0x1263   : > { %v13502_v59 = vmul.f32 0.25, %v4438_v61  ;;  %v10811_v20 = vpop.f32.mrb[3].mxu1  ;;  %v4729_v29 = vsel %vm4728_vm0, %v13500_v14, -inf }
0x1264   : > { %4730 = vmax.xlane.f32.xlu0 %v4729_v29 }
0x1265   : > { %v4732_v8 = vsel %vm4728_vm0, %v13502_v59, -inf }
0x1266   : > { %4733 = vmax.xlane.f32.xlu1 %v4732_v8 }
0x1268   : > { %v4443_v2 = vpop.f32.mrb[4].mxu1 }
0x1269   : > { %v10814_v25 = vpop.f32.mrb[5].mxu1  ;;  %v13516_v32 = vmul.f32 0.25, %v4443_v2 }
0x126a   : > { %v4446_v27 = vpop.f32.mrb[6].mxu1 }
0x126b   : > { %v10815_v56 = vpop.f32.mrb[7].mxu1  ;;  %v4681_v42 = vpop.f32.mrb[24].mxu0  ;;  %v13524_v19 = vmul.f32 0.25, %v4446_v27  ;;  %v4735_v15 = vsel %vm4728_vm0, %v13516_v32, -inf }
0x126c   : > { %v10852_v57 = vpop.f32.mrb[25].mxu0 }
0x126d   : > { %v13508_v40 = vpop.f32.mrb[26].mxu0  ;;  %v4738_v8 = vsel %vm4728_vm0, %v13524_v19, -inf }
0x126e   : > { %v10853_v5 = vpop.f32.mrb[27].mxu0 }
0x1270   : > { %v4451_v1 = vpop.f32.mrb[8].mxu1 }
0x1271   : > { %v10818_v41 = vpop.f32.mrb[9].mxu1  ;;  %v13536_v25 = vmul.f32 0.25, %v4451_v1 }
0x1272   : > { %v4454_v18 = vpop.f32.mrb[10].mxu1 }
0x1273   : > { %v10819_v9 = vpop.f32.mrb[11].mxu1  ;;  %v13510_v60 = vpop.f32.mrb[28].mxu0  ;;  %v13542_v5 = vmul.f32 0.25, %v4454_v18 }
0x1274   : > { %v10856_v33 = vpop.f32.mrb[29].mxu0  ;;  %v4741_v9 = vsel %vm4728_vm0, %v13536_v25, -inf }
0x1275   : > { %v13512_v16 = vpop.f32.mrb[30].mxu0 }
0x1276   : > { %v10857_v54 = vpop.f32.mrb[31].mxu0 }
0x1278   : > { %v4517_v45 = vpop.f32.mrb[12].mxu1 }
0x1279   : > { %v13514_v43 = vmul.f32 0.25, %v4517_v45  ;;  %v10824_v37 = vpop.f32.mrb[13].mxu1  ;;  %v4744_v45 = vsel %vm4728_vm0, %v13542_v5, -inf }
0x127a   : > { %v4520_v50 = vpop.f32.mrb[14].mxu1 }
0x127b   : > { %v13518_v23 = vmul.f32 0.25, %v4520_v50  ;;  %v10825_v53 = vpop.f32.mrb[15].mxu1  ;;  %v4747_v28 = vsel %vm4728_vm0, %v13514_v43, -inf  ;;  %v13522_v62 = vpop.f32.mrb[32].mxu0 }
0x127c   : > { %4748 = vmax.xlane.f32.xlu0 %v4747_v28  ;;  %v10860_v63 = vpop.f32.mrb[33].mxu0 }
0x127d   : > { %v4750_v46 = vsel %vm4728_vm0, %v13518_v23, -inf  ;;  %v13528_v48 = vpop.f32.mrb[34].mxu0 }
0x127e   : > { %4751 = vmax.xlane.f32.xlu1 %v4750_v46  ;;  %v10861_v11 = vpop.f32.mrb[35].mxu0 }
0x1280   : > { %4736 = vmax.xlane.f32.xlu0 %v4735_v15  ;;  %v4525_v61 = vpop.f32.mrb[16].mxu1  ;;  %v13560_v15 = vmul.f32 0.25, %v4681_v42 }
0x1281   : > { %v13532_v20 = vmul.f32 0.25, %v4525_v61  ;;  %v10828_v29 = vpop.f32.mrb[17].mxu1 }
0x1282   : > { %4739 = vmax.xlane.f32.xlu1 %v4738_v8  ;;  %v4528_v2 = vpop.f32.mrb[18].mxu1 }
0x1283   : > { %v13538_v27 = vmul.f32 0.25, %v4528_v2  ;;  %v10829_v56 = vpop.f32.mrb[19].mxu1  ;;  %v4753_v57 = vsel %vm4728_vm0, %v13532_v20, -inf }
0x1284   : > { %4754 = vmax.xlane.f32.xlu0 %v4753_v57  ;;  %v13567_v56 = vmul.f32 0.25, %v13508_v40 }
0x1285   : > { %v4756_v41 = vsel %vm4728_vm0, %v13538_v27, -inf }
0x1286   : > { %4757 = vmax.xlane.f32.xlu1 %v4756_v41  ;;  %v4783_v41 = vsel %vm4728_vm0, %v13560_v15, -inf }
0x1288   : > { %4742 = vmax.xlane.f32.xlu0 %v4741_v9  ;;  %v4533_v33 = vpop.f32.mrb[20].mxu1 }
0x1289   : > { %v13548_v1 = vmul.f32 0.25, %v4533_v33  ;;  %v10832_v54 = vpop.f32.mrb[21].mxu1 }
0x128a   : > { %4745 = vmax.xlane.f32.xlu1 %v4744_v45  ;;  %v4536_v37 = vpop.f32.mrb[22].mxu1  ;;  %v13576_v54 = vmul.f32 0.25, %v13510_v60  ;;  %v4786_v45 = vsel %vm4728_vm0, %v13567_v56, -inf }
0x128b   : > { %v13552_v50 = vmul.f32 0.25, %v4536_v37  ;;  %v10833_v18 = vpop.f32.mrb[23].mxu1  ;;  %v4759_v53 = vsel %vm4728_vm0, %v13548_v1, -inf }
0x128c   : > { %4760 = vmax.xlane.f32.xlu0 %v4759_v53  ;;  %v4789_v60 = vsel %vm4728_vm0, %v13576_v54, -inf }
0x128d   : > { %v4762_v28 = vsel %vm4728_vm0, %v13552_v50, -inf }
0x128e   : > { %4763 = vmax.xlane.f32.xlu1 %v4762_v28  ;;  %v13585_v28 = vmul.f32 0.25, %v13512_v16 }
0x1290   : > { %v4599_v63 = vpop.f32.mrb[24].mxu1 }
0x1291   : > { %v13558_v46 = vmul.f32 0.25, %v4599_v63  ;;  %v10838_v11 = vpop.f32.mrb[25].mxu1 }
0x1292   : > { %v4602_v61 = vpop.f32.mrb[26].mxu1 }
0x1293   : > { %v13562_v29 = vmul.f32 0.25, %v4602_v61  ;;  %v10839_v8 = vpop.f32.mrb[27].mxu1  ;;  %v4765_v2 = vsel %vm4728_vm0, %v13558_v46, -inf }
0x1294   : > { %4766 = vmax.xlane.f32.xlu0 %v4765_v2  ;;  %v13594_v2 = vmul.f32 0.25, %v13522_v62 }
0x1295   : > { %v4768_v57 = vsel %vm4728_vm0, %v13562_v29, -inf }
0x1296   : > { %4769 = vmax.xlane.f32.xlu1 %v4768_v57  ;;  %v4792_v57 = vsel %vm4728_vm0, %v13585_v28, -inf  ;;  %v4795_v62 = vsel %vm4728_vm0, %v13594_v2, -inf }
0x1298   : > { %v4607_v42 = vpop.f32.mrb[28].mxu1  ;;  %4784 = vmax.xlane.f32.xlu0 %v4783_v41 }
0x1299   : > { %v13573_v9 = vmul.f32 0.25, %v4607_v42  ;;  %v10842_v33 = vpop.f32.mrb[29].mxu1 }
0x129a   : > { %v4610_v40 = vpop.f32.mrb[30].mxu1  ;;  %4787 = vmax.xlane.f32.xlu1 %v4786_v45  ;;  %v13603_v45 = vmul.f32 0.25, %v13528_v48 }
0x129b   : > { %v13580_v37 = vmul.f32 0.25, %v4610_v40  ;;  %v10843_v18 = vpop.f32.mrb[31].mxu1  ;;  %v4771_v53 = vsel %vm4728_vm0, %v13573_v9, -inf }
0x129c   : > { %4772 = vmax.xlane.f32.xlu0 %v4771_v53  ;;  %v4798_v18 = vsel %vm4728_vm0, %v13603_v45, -inf }
0x129d   : > { %v4774_v63 = vsel %vm4728_vm0, %v13580_v37, -inf }
0x129e   : > { %4775 = vmax.xlane.f32.xlu1 %v4774_v63 }
0x12a0   : > { %v4615_v11 = vpop.f32.mrb[32].mxu1  ;;  %4790 = vmax.xlane.f32.xlu0 %v4789_v60 }
0x12a1   : > { %v13591_v61 = vmul.f32 0.25, %v4615_v11  ;;  %v10846_v8 = vpop.f32.mrb[33].mxu1 }
0x12a2   : > { %v4618_v16 = vpop.f32.mrb[34].mxu1  ;;  %4793 = vmax.xlane.f32.xlu1 %v4792_v57 }
0x12a3   : > { %v13598_v41 = vmul.f32 0.25, %v4618_v16  ;;  %v10847_v42 = vpop.f32.mrb[35].mxu1  ;;  %v4777_v33 = vsel %vm4728_vm0, %v13591_v61, -inf }
0x12a4   : > { %4778 = vmax.xlane.f32.xlu0 %v4777_v33 }
0x12a5   : > { %v4780_v40 = vsel %vm4728_vm0, %v13598_v41, -inf }
0x12a6   : > { %4781 = vmax.xlane.f32.xlu1 %v4780_v40 }
0x12a8   : > { %4796 = vmax.xlane.f32.xlu0 %v4795_v62 }
0x12aa   : > { %4799 = vmax.xlane.f32.xlu1 %v4798_v18 }
0x12f1   : > { %v4731_v53 = vpop.xlane.xlu0 %4730 }
0x12f2   : > { %v4801_v63 = vsub.f32 %v13500_v14, %v4731_v53 }
0x12f3   : > { %v4734_v60 = vpop.xlane.xlu1 %4733 }
0x12f4   : > { %v4825_v11 = vmul.f32 1.442695, %v4801_v63  ;;  %v4802_v48 = vsub.f32 %v13502_v59, %v4734_v60 }
0x12f6   : > { %11683 = vpow2.f32 %v4825_v11  ;;  %v4827_v8 = vmul.f32 1.442695, %v4802_v48 }
0x12f8   : > { %11685 = vpow2.f32 %v4827_v8 }
0x1300   : > { %v13613_v57 = vpop.eup %11683 }
0x1301   : > { %v4873_v16 = vsel %vm4728_vm0, %v13613_v57, 0.0 }
0x1302   : > { %v13617_v42 = vpop.eup %11685  ;;  %4874 = vadd.xlane.f32.xlu0 %v4873_v16 }
0x1303   : > { %v4876_v33 = vsel %vm4728_vm0, %v13617_v42, 0.0 }
0x1304   : > { %4877 = vadd.xlane.f32.xlu1 %v4876_v33 }
0x1309   : > { %v4749_v14 = vpop.xlane.xlu0 %4748 }
0x130a   : > { %v4807_v40 = vsub.f32 %v13514_v43, %v4749_v14 }
0x130b   : > { %v4752_v62 = vpop.xlane.xlu1 %4751 }
0x130c   : > { %v4837_v59 = vmul.f32 1.442695, %v4807_v40  ;;  %v4808_v18 = vsub.f32 %v13518_v23, %v4752_v62 }
0x130d   : > { %v4737_v53 = vpop.xlane.xlu0 %4736 }
0x130e   : > { %11687 = vpow2.f32 %v4837_v59  ;;  %v4839_v63 = vmul.f32 1.442695, %v4808_v18  ;;  %v4803_v60 = vsub.f32 %v13516_v32, %v4737_v53 }
0x130f   : > { %v4740_v11 = vpop.xlane.xlu1 %4739 }
0x1310   : > { %11689 = vpow2.f32 %v4839_v63  ;;  %v4829_v48 = vmul.f32 1.442695, %v4803_v60  ;;  %v4804_v8 = vsub.f32 %v13524_v19, %v4740_v11 }
0x1311   : > { %v4755_v16 = vpop.xlane.xlu0 %4754 }
0x1312   : > { %11691 = vpow2.f32 %v4829_v48  ;;  %v4831_v33 = vmul.f32 1.442695, %v4804_v8  ;;  %v4809_v49 = vsub.f32 %v13532_v20, %v4755_v16 }
0x1313   : > { %v4758_v43 = vpop.xlane.xlu1 %4757 }
0x1314   : > { %11693 = vpow2.f32 %v4831_v33  ;;  %v4841_v14 = vmul.f32 1.442695, %v4809_v49  ;;  %v4810_v23 = vsub.f32 %v13538_v27, %v4758_v43 }
0x1315   : > { %v4743_v40 = vpop.xlane.xlu0 %4742 }
0x1316   : > { %11695 = vpow2.f32 %v4841_v14  ;;  %v4843_v62 = vmul.f32 1.442695, %v4810_v23  ;;  %v4805_v32 = vsub.f32 %v13536_v25, %v4743_v40 }
0x1317   : > { %v4746_v59 = vpop.xlane.xlu1 %4745 }
0x1318   : > { %v13628_v18 = vpop.eup %11687  ;;  %11697 = vpow2.f32 %v4843_v62  ;;  %v4833_v19 = vmul.f32 1.442695, %v4805_v32  ;;  %v4806_v53 = vsub.f32 %v13542_v5, %v4746_v59 }
0x1319   : > { %v4761_v63 = vpop.xlane.xlu0 %4760  ;;  %v4891_v20 = vsel %vm4728_vm0, %v13628_v18, 0.0 }
0x131a   : > { %v13633_v60 = vpop.eup %11689  ;;  %11699 = vpow2.f32 %v4833_v19  ;;  %v4835_v49 = vmul.f32 1.442695, %v4806_v53  ;;  %v4811_v27 = vsub.f32 %v13548_v1, %v4761_v63  ;;  %4892 = vadd.xlane.f32.xlu0 %v4891_v20 }
0x131b   : > { %v4764_v11 = vpop.xlane.xlu1 %4763  ;;  %v4894_v25 = vsel %vm4728_vm0, %v13633_v60, 0.0 }
0x131c   : > { %v13638_v48 = vpop.eup %11691  ;;  %11701 = vpow2.f32 %v4835_v49  ;;  %v4845_v8 = vmul.f32 1.442695, %v4811_v27  ;;  %v4812_v5 = vsub.f32 %v13552_v50, %v4764_v11  ;;  %4895 = vadd.xlane.f32.xlu1 %v4894_v25 }
0x131d   : > { %v4879_v16 = vsel %vm4728_vm0, %v13638_v48, 0.0 }
0x131e   : > { %v13643_v33 = vpop.eup %11693  ;;  %11703 = vpow2.f32 %v4845_v8  ;;  %v4847_v43 = vmul.f32 1.442695, %v4812_v5  ;;  %4880 = vadd.xlane.f32.xlu0 %v4879_v16 }
0x131f   : > { %v4882_v1 = vsel %vm4728_vm0, %v13643_v33, 0.0 }
0x1320   : > { %v13647_v14 = vpop.eup %11695  ;;  %11705 = vpow2.f32 %v4847_v43  ;;  %4883 = vadd.xlane.f32.xlu1 %v4882_v1 }
0x1321   : > { %v4767_v23 = vpop.xlane.xlu0 %4766  ;;  %v4897_v50 = vsel %vm4728_vm0, %v13647_v14, 0.0 }
0x1322   : > { %v13651_v40 = vpop.eup %11697  ;;  %v4813_v62 = vsub.f32 %v13558_v46, %v4767_v23  ;;  %4898 = vadd.xlane.f32.xlu0 %v4897_v50 }
0x1323   : > { %v4770_v32 = vpop.xlane.xlu1 %4769  ;;  %v4900_v59 = vsel %vm4728_vm0, %v13651_v40, 0.0 }
0x1324   : > { %v13656_v19 = vpop.eup %11699  ;;  %v4849_v53 = vmul.f32 1.442695, %v4813_v62  ;;  %v4814_v63 = vsub.f32 %v13562_v29, %v4770_v32  ;;  %4901 = vadd.xlane.f32.xlu1 %v4900_v59 }
0x1325   : > { %v4785_v20 = vpop.xlane.xlu0 %4784  ;;  %v4885_v49 = vsel %vm4728_vm0, %v13656_v19, 0.0 }
0x1326   : > { %v13661_v27 = vpop.eup %11701  ;;  %11707 = vpow2.f32 %v4849_v53  ;;  %v4851_v11 = vmul.f32 1.442695, %v4814_v63  ;;  %v4819_v46 = vsub.f32 %v13560_v15, %v4785_v20  ;;  %4886 = vadd.xlane.f32.xlu0 %v4885_v49 }
0x1327   : > { %v4788_v25 = vpop.xlane.xlu1 %4787  ;;  %v4888_v8 = vsel %vm4728_vm0, %v13661_v27, 0.0 }
0x1328   : > { %v13666_v5 = vpop.eup %11703  ;;  %11709 = vpow2.f32 %v4851_v11  ;;  %v4861_v29 = vmul.f32 1.442695, %v4819_v46  ;;  %v4820_v16 = vsub.f32 %v13567_v56, %v4788_v25  ;;  %4889 = vadd.xlane.f32.xlu1 %v4888_v8 }
0x1329   : > { %v4773_v43 = vpop.xlane.xlu0 %4772  ;;  %v4903_v1 = vsel %vm4728_vm0, %v13666_v5, 0.0 }
0x132a   : > { %v13671_v23 = vpop.eup %11705  ;;  %11711 = vpow2.f32 %v4861_v29  ;;  %v4863_v15 = vmul.f32 1.442695, %v4820_v16  ;;  %v4815_v50 = vsub.f32 %v13573_v9, %v4773_v43  ;;  %4904 = vadd.xlane.f32.xlu0 %v4903_v1 }
0x132b   : > { %v4776_v62 = vpop.xlane.xlu1 %4775  ;;  %v4906_v32 = vsel %vm4728_vm0, %v13671_v23, 0.0 }
0x132c   : > { %11713 = vpow2.f32 %v4863_v15  ;;  %v4853_v59 = vmul.f32 1.442695, %v4815_v50  ;;  %v4816_v56 = vsub.f32 %v13580_v37, %v4776_v62  ;;  %4907 = vadd.xlane.f32.xlu1 %v4906_v32 }
0x132d   : > { %v4791_v53 = vpop.xlane.xlu0 %4790 }
0x132e   : > { %11715 = vpow2.f32 %v4853_v59  ;;  %v4855_v63 = vmul.f32 1.442695, %v4816_v56  ;;  %v4821_v20 = vsub.f32 %v13576_v54, %v4791_v53 }
0x132f   : > { %v4794_v49 = vpop.xlane.xlu1 %4793 }
0x1330   : > { %v13678_v11 = vpop.eup %11707  ;;  %11717 = vpow2.f32 %v4855_v63  ;;  %v4865_v9 = vmul.f32 1.442695, %v4821_v20  ;;  %v4822_v46 = vsub.f32 %v13585_v28, %v4794_v49 }
0x1331   : > { %v4779_v25 = vpop.xlane.xlu0 %4778  ;;  %v4909_v8 = vsel %vm4728_vm0, %v13678_v11, 0.0 }
0x1332   : > { %v13683_v29 = vpop.eup %11709  ;;  %11719 = vpow2.f32 %v4865_v9  ;;  %v4867_v37 = vmul.f32 1.442695, %v4822_v46  ;;  %v4817_v16 = vsub.f32 %v13591_v61, %v4779_v25  ;;  %4910 = vadd.xlane.f32.xlu0 %v4909_v8 }
0x1333   : > { %v4782_v43 = vpop.xlane.xlu1 %4781  ;;  %v4912_v54 = vsel %vm4728_vm0, %v13683_v29, 0.0 }
0x1334   : > { %v13688_v1 = vpop.eup %11711  ;;  %11721 = vpow2.f32 %v4867_v37  ;;  %v4857_v15 = vmul.f32 1.442695, %v4817_v16  ;;  %v4818_v28 = vsub.f32 %v13598_v41, %v4782_v43  ;;  %4913 = vadd.xlane.f32.xlu1 %v4912_v54 }
0x1335   : > { %v4797_v50 = vpop.xlane.xlu0 %4796  ;;  %v4927_v62 = vsel %vm4728_vm0, %v13688_v1, 0.0 }
0x1336   : > { %v13693_v32 = vpop.eup %11713  ;;  %11723 = vpow2.f32 %v4857_v15  ;;  %v4859_v61 = vmul.f32 1.442695, %v4818_v28  ;;  %v4823_v59 = vsub.f32 %v13594_v2, %v4797_v50  ;;  %4928 = vadd.xlane.f32.xlu0 %v4927_v62 }
0x1337   : > { %v4800_v56 = vpop.xlane.xlu1 %4799  ;;  %v4930_v53 = vsel %vm4728_vm0, %v13693_v32, 0.0 }
0x1338   : > { %v13698_v63 = vpop.eup %11715  ;;  %11725 = vpow2.f32 %v4859_v61  ;;  %v4869_v41 = vmul.f32 1.442695, %v4823_v59  ;;  %v4824_v20 = vsub.f32 %v13603_v45, %v4800_v56  ;;  %4931 = vadd.xlane.f32.xlu1 %v4930_v53 }
0x1339   : > { %v4915_v49 = vsel %vm4728_vm0, %v13698_v63, 0.0 }
0x133a   : > { %v13703_v9 = vpop.eup %11717  ;;  %11727 = vpow2.f32 %v4869_v41  ;;  %v4871_v46 = vmul.f32 1.442695, %v4824_v20  ;;  %4916 = vadd.xlane.f32.xlu0 %v4915_v49 }
0x133b   : > { %v4918_v2 = vsel %vm4728_vm0, %v13703_v9, 0.0 }
0x133c   : > { %v13707_v25 = vpop.eup %11719  ;;  %11729 = vpow2.f32 %v4871_v46  ;;  %4919 = vadd.xlane.f32.xlu1 %v4918_v2 }
0x133d   : > { %v4933_v8 = vsel %vm4728_vm0, %v13707_v25, 0.0 }
0x133e   : > { %v13711_v45 = vpop.eup %11721  ;;  %4934 = vadd.xlane.f32.xlu0 %v4933_v8 }
0x133f   : > { %v4936_v37 = vsel %vm4728_vm0, %v13711_v45, 0.0 }
0x1340   : > { %v13715_v16 = vpop.eup %11723  ;;  %4937 = vadd.xlane.f32.xlu1 %v4936_v37 }
0x1341   : > { %v4921_v43 = vsel %vm4728_vm0, %v13715_v16, 0.0 }
0x1342   : > { %v13719_v54 = vpop.eup %11725  ;;  %4922 = vadd.xlane.f32.xlu0 %v4921_v43 }
0x1343   : > { %v4924_v15 = vsel %vm4728_vm0, %v13719_v54, 0.0 }
0x1344   : > { %v13723_v28 = vpop.eup %11727  ;;  %4925 = vadd.xlane.f32.xlu1 %v4924_v15 }
0x1345   : > { %v4939_v50 = vsel %vm4728_vm0, %v13723_v28, 0.0 }
0x1346   : > { %v13727_v62 = vpop.eup %11729  ;;  %4940 = vadd.xlane.f32.xlu0 %v4939_v50 }
0x1347   : > { %v4942_v61 = vsel %vm4728_vm0, %v13727_v62, 0.0 }
0x1348   : > { %4943 = vadd.xlane.f32.xlu1 %v4942_v61 }
0x138f   : > { %v4875_v59 = vpop.xlane.xlu0 %4874 }
0x1390   : > { %11731 = vrcp.f32 %v4875_v59 }
0x1391   : > { %v4878_v56 = vpop.xlane.xlu1 %4877 }
0x1392   : > { %11733 = vrcp.f32 %v4878_v56 }
0x139a   : > { %v11732_v53 = vpop.eup %11731 }
0x139b   : > { %v4969_v20 = vmul.f32 %v11732_v53, %v13613_v57 }
0x139c   : > { %v11734_v41 = vpop.eup %11733 }
0x139d   : > { %v4970_v49 = vmul.f32 %v11734_v41, %v13617_v42 }
0x139f   : > { %v4993_v46 = vpack.c.bf16 %v4970_v49, %v4969_v20 }
0x13a1   : > { %v5009_v2 = vsel %vm4728_vm0, %v4993_v46, 0 }
0x13a2   : > { %10863 = vmatpush3.bf16.xpose.msra.mxu1 %v5009_v2 }
0x13a3   : > { %10864 = vmatprep.subr.bf16.mxu1 %v12156_v47 }
0x13a7   : > { %v4893_v8 = vpop.xlane.xlu0 %4892 }
0x13a8   : > { %11735 = vrcp.f32 %v4893_v8 }
0x13a9   : > { %v4896_v37 = vpop.xlane.xlu1 %4895 }
0x13aa   : > { %11737 = vrcp.f32 %v4896_v37 }
0x13ab   : > { %v4881_v43 = vpop.xlane.xlu0 %4880 }
0x13ac   : > { %11739 = vrcp.f32 %v4881_v43 }
0x13ad   : > { %v4884_v15 = vpop.xlane.xlu1 %4883 }
0x13ae   : > { %11741 = vrcp.f32 %v4884_v15 }
0x13af   : > { %v4899_v50 = vpop.xlane.xlu0 %4898 }
0x13b0   : > { %11743 = vrcp.f32 %v4899_v50 }
0x13b1   : > { %v4902_v61 = vpop.xlane.xlu1 %4901 }
0x13b2   : > { %v11736_v57 = vpop.eup %11735  ;;  %11745 = vrcp.f32 %v4902_v61 }
0x13b3   : > { %v4887_v42 = vpop.xlane.xlu0 %4886  ;;  %v4975_v53 = vmul.f32 %v11736_v57, %v13628_v18 }
0x13b4   : > { %v11738_v59 = vpop.eup %11737  ;;  %11747 = vrcp.f32 %v4887_v42 }
0x13b5   : > { %v4890_v56 = vpop.xlane.xlu1 %4889  ;;  %v4976_v41 = vmul.f32 %v11738_v59, %v13633_v60 }
0x13b6   : > { %v11740_v20 = vpop.eup %11739  ;;  %11749 = vrcp.f32 %v4890_v56 }
0x13b7   : > { %v4905_v49 = vpop.xlane.xlu0 %4904  ;;  %v4996_v46 = vpack.c.bf16 %v4976_v41, %v4975_v53  ;;  %v4971_v43 = vmul.f32 %v11740_v20, %v13638_v48 }
0x13b8   : > { %v11742_v2 = vpop.eup %11741  ;;  %11751 = vrcp.f32 %v4905_v49 }
0x13b9   : > { %v4908_v8 = vpop.xlane.xlu1 %4907  ;;  %v5062_v37 = vsel %vm4728_vm0, %v4996_v46, 0  ;;  %v4972_v15 = vmul.f32 %v11742_v2, %v13643_v33 }
0x13ba   : > { %v11744_v50 = vpop.eup %11743  ;;  %11753 = vrcp.f32 %v4908_v8  ;;  %10873 = vmatpush3.bf16.xpose.msra.mxu0 %v5062_v37 }
0x13bb   : > { %v4994_v61 = vpack.c.bf16 %v4972_v15, %v4971_v43  ;;  %10874 = vmatprep.subr.bf16.mxu0 %v12156_v47  ;;  %v4977_v57 = vmul.f32 %v11744_v50, %v13647_v14 }
0x13bc   : > { %v11746_v18 = vpop.eup %11745 }
0x13bd   : > { %v5012_v60 = vsel %vm4728_vm0, %v4994_v61, 0  ;;  %v4978_v42 = vmul.f32 %v11746_v18, %v13651_v40 }
0x13be   : > { %v11748_v59 = vpop.eup %11747  ;;  %10865 = vmatpush3.bf16.xpose.msra.mxu1 %v5012_v60 }
0x13bf   : > { %v4911_v56 = vpop.xlane.xlu0 %4910  ;;  %v4997_v53 = vpack.c.bf16 %v4978_v42, %v4977_v57  ;;  %10866 = vmatprep.subr.bf16.mxu1 %v12156_v47  ;;  %v4973_v20 = vmul.f32 %v11748_v59, %v13656_v19 }
0x13c0   : > { %v11750_v48 = vpop.eup %11749  ;;  %11755 = vrcp.f32 %v4911_v56 }
0x13c1   : > { %v4914_v33 = vpop.xlane.xlu1 %4913  ;;  %v5065_v41 = vsel %vm4728_vm0, %v4997_v53, 0  ;;  %v4974_v49 = vmul.f32 %v11750_v48, %v13661_v27 }
0x13c2   : > { %v11752_v46 = vpop.eup %11751  ;;  %11757 = vrcp.f32 %v4914_v33  ;;  %10875 = vmatpush3.bf16.xpose.msra.mxu0 %v5065_v41 }
0x13c3   : > { %v4929_v14 = vpop.xlane.xlu0 %4928  ;;  %v4995_v40 = vpack.c.bf16 %v4974_v49, %v4973_v20  ;;  %10876 = vmatprep.subr.bf16.mxu0 %v12156_v47  ;;  %v4979_v43 = vmul.f32 %v11752_v46, %v13666_v5 }
0x13c4   : > { %v11754_v2 = vpop.eup %11753  ;;  %11759 = vrcp.f32 %v4929_v14 }
0x13c5   : > { %v4932_v8 = vpop.xlane.xlu1 %4931  ;;  %v5015_v37 = vsel %vm4728_vm0, %v4995_v40, 0  ;;  %v4980_v15 = vmul.f32 %v11754_v2, %v13671_v23 }
0x13c6   : > { %11761 = vrcp.f32 %v4932_v8  ;;  %10867 = vmatpush3.bf16.xpose.msra.mxu1 %v5015_v37 }
0x13c7   : > { %v4917_v19 = vpop.xlane.xlu0 %4916  ;;  %v4998_v27 = vpack.c.bf16 %v4980_v15, %v4979_v43  ;;  %10882 = vmatprep.subr.bf16.mxu1 %v12156_v47 }
0x13c8   : > { %11763 = vrcp.f32 %v4917_v19 }
0x13c9   : > { %v4920_v50 = vpop.xlane.xlu1 %4919  ;;  %v5068_v61 = vsel %vm4728_vm0, %v4998_v27, 0 }
0x13ca   : > { %v11756_v18 = vpop.eup %11755  ;;  %11765 = vrcp.f32 %v4920_v50  ;;  %10877 = vmatpush3.bf16.xpose.msra.mxu0 %v5068_v61 }
0x13cb   : > { %v4935_v60 = vpop.xlane.xlu0 %4934  ;;  %10892 = vmatprep.subr.bf16.mxu0 %v12156_v47  ;;  %v4981_v23 = vmul.f32 %v11756_v18, %v13678_v11 }
0x13cc   : > { %v11758_v57 = vpop.eup %11757  ;;  %11767 = vrcp.f32 %v4935_v60 }
0x13cd   : > { %10869 = vmatmul.mubr.msk.bf16.vlgmr.msra.gmra.mrb[36].mxu1 %vm4728_vm0, %v4372_v17  ;;  %v4938_v5 = vpop.xlane.xlu1 %4937  ;;  %v4982_v42 = vmul.f32 %v11758_v57, %v13683_v29 }
0x13ce   : > { %v11760_v59 = vpop.eup %11759  ;;  %11769 = vrcp.f32 %v4938_v5  ;;  %10888 = vmatprep.mubr.msk.bf16.mxu1 %vm15224_vm5, %v12156_v47 }
0x13cf   : > { %v4923_v56 = vpop.xlane.xlu0 %4922  ;;  %v4999_v53 = vpack.c.bf16 %v4982_v42, %v4981_v23  ;;  %v4987_v17 = vmul.f32 %v11760_v59, %v13688_v1 }
0x13d0   : > { %v11762_v48 = vpop.eup %11761  ;;  %11771 = vrcp.f32 %v4923_v56 }
0x13d1   : > { %10879 = vmatmul.mubr.msk.bf16.vlgmr.msra.gmra.mrb[36].mxu0 %vm4728_vm0, %v4373_v36  ;;  %v4926_v55 = vpop.xlane.xlu1 %4925  ;;  %v5115_v35 = vsel %vm4728_vm0, %v4999_v53, 0  ;;  %v4988_v11 = vmul.f32 %v11762_v48, %v13693_v32 }
0x13d2   : > { %v11764_v29 = vpop.eup %11763  ;;  %11773 = vrcp.f32 %v4926_v55  ;;  %10883 = vmatpush3.bf16.xpose.msra.mxu1 %v5115_v35  ;;  %10898 = vmatprep.mubr.msk.bf16.mxu0 %vm15224_vm5, %v12156_v47 }
0x13d3   : > { %v4941_v33 = vpop.xlane.xlu0 %4940  ;;  %v5002_v41 = vpack.c.bf16 %v4988_v11, %v4987_v17  ;;  %10884 = vmatprep.subr.bf16.mxu1 %v12156_v47  ;;  %v4983_v20 = vmul.f32 %v11764_v29, %v13698_v63 }
0x13d4   : > { %v11766_v13 = vpop.eup %11765  ;;  %11775 = vrcp.f32 %v4941_v33 }
0x13d5   : > { %v4944_v58 = vpop.xlane.xlu1 %4943  ;;  %v5168_v36 = vsel %vm4728_vm0, %v5002_v41, 0  ;;  %v4984_v1 = vmul.f32 %v11766_v13, %v13703_v9 }
0x13d6   : > { %v11768_v32 = vpop.eup %11767  ;;  %11777 = vrcp.f32 %v4944_v58  ;;  %10893 = vmatpush3.bf16.xpose.msra.mxu0 %v5168_v36 }
0x13d7   : > { %v5000_v49 = vpack.c.bf16 %v4984_v1, %v4983_v20  ;;  %10894 = vmatprep.subr.bf16.mxu0 %v12156_v47  ;;  %v4989_v40 = vmul.f32 %v11768_v32, %v13707_v25  ;;  %v11911_v20 = vld [vmem:[%s15219_s28] sm:$0xff] }
0x13d8   : > { %v11770_v46 = vpop.eup %11769 }
0x13d9   : > { %v5118_v14 = vsel %vm4728_vm0, %v5000_v49, 0  ;;  %v4990_v2 = vmul.f32 %v11770_v46, %v13711_v45  ;;  %v11912_v46 = vld [vmem:[%s15219_s28 + $0x8] sm:$0xff] }
0x13da   : > { %v11772_v8 = vpop.eup %11771  ;;  %10885 = vmatpush3.bf16.xpose.msra.mxu1 %v5118_v14 }
0x13db   : > { %v5003_v37 = vpack.c.bf16 %v4990_v2, %v4989_v40  ;;  %10886 = vmatprep.subr.bf16.mxu1 %v12156_v47  ;;  %v4985_v43 = vmul.f32 %v11772_v8, %v13715_v16 }
0x13dc   : > { %v11774_v63 = vpop.eup %11773 }
0x13dd   : > { %v5171_v9 = vsel %vm4728_vm0, %v5003_v37, 0  ;;  %v4986_v15 = vmul.f32 %v11774_v63, %v13719_v54  ;;  %v11591_v54 = vld [vmem:[%s15265_s10] sm:$0xff]  }
0x13de   : > { %v11776_v19 = vpop.eup %11775  ;;  %10895 = vmatpush3.bf16.xpose.msra.mxu0 %v5171_v9 }
0x13df   : > { %v5001_v27 = vpack.c.bf16 %v4986_v15, %v4985_v43  ;;  %10896 = vmatprep.subr.bf16.mxu0 %v12156_v47  ;;  %v4991_v50 = vmul.f32 %v11776_v19, %v13723_v28  ;;  %v11592_v28 = vld [vmem:[%s15265_s10 + $0x8] sm:$0xff]  }
0x13e0   : > { %v11778_v25 = vpop.eup %11777 }
0x13e1   : > { %v5121_v45 = vsel %vm4728_vm0, %v5001_v27, 0  ;;  %v4992_v61 = vmul.f32 %v11778_v25, %v13727_v62  ;;  %v11593_v62 = vld [vmem:[%s15265_s10 + $0x10] sm:$0xff]  }
0x13e2   : > { %10887 = vmatpush3.bf16.xpose.msra.mxu1 %v5121_v45 }
0x13e3   : > { %v5004_v18 = vpack.c.bf16 %v4992_v61, %v4991_v50  ;;  %10902 = vmatprep.subr.bf16.mxu1 %v12156_v47 }
0x13e5   : > { %v5174_v16 = vsel %vm4728_vm0, %v5004_v18, 0 }
0x13e6   : > { %10897 = vmatpush3.bf16.xpose.msra.mxu0 %v5174_v16 }
0x13e9   : > { %10889 = vmatmul.mubr.msk.bf16.vlgmr.msra.gmra.mrb[40].mxu1 %vm4728_vm0, %v4374_v4 }
0x13ea   : > { %10910 = vmatprep.mubr.msk.bf16.mxu1 %vm15224_vm5, %v12156_v47  ;;  %10903 = vmatpush3.bf16.msra.mxu1 %v11591_v54 }
0x13eb   : > { %10904 = vmatprep.subr.bf16.mxu1 %v12156_v47 }
0x13ed   : > { %10899 = vmatmul.mubr.msk.bf16.vlgmr.msra.gmra.mrb[40].mxu0 %vm4728_vm0, %v4375_v3 }
0x13ee   : > { %5530 = vmatprep.mubr.bf16.mxu0 %v15168_v6  ;;  %10905 = vmatpush3.bf16.msra.mxu1 %v11592_v28 }
0x13ef   : > { %10906 = vmatprep.subr.bf16.mxu1 %v12156_v47 }
0x13f2   : > { %10907 = vmatpush3.bf16.msra.mxu1 %v11593_v62 }
0x13f3   : > { %10908 = vmatprep.subr.bf16.mxu1 %v12156_v47 }
0x13f6   : > { %10909 = vmatpush3.bf16.msra.mxu1 %v11594_v30 }
0x14a0   : > { %v5051_v39 = vpop.f32.mrb[36].mxu1 }
0x14a1   : > { %v10870_v34 = vpop.f32.mrb[37].mxu1 }
0x14a2   : > { %v5054_v24 = vpop.f32.mrb[38].mxu1 }
0x14a3   : > { %v5217_v3 = vpack.c.bf16 %v5054_v24, %v5051_v39  ;;  %v10871_v4 = vpop.f32.mrb[39].mxu1 }
0x14a4   : > { %v5104_v60 = vpop.f32.mrb[36].mxu0 }
0x14a5   : > { %5221 = vxpose.xlu0.c.b16.start [1/4] (short) (narrow) %v5217_v3, 48  ;;  %v10880_v57 = vpop.f32.mrb[37].mxu0 }
0x14a6   : > { %v5107_v5 = vpop.f32.mrb[38].mxu0 }
0x14a7   : > { %v5218_v23 = vpack.c.bf16 %v5107_v5, %v5104_v60  ;;  %v10881_v42 = vpop.f32.mrb[39].mxu0 }
0x14a9   : > { %5222 = vxpose.xlu0.c.b16.cont [2/4] (short) (narrow) %v5218_v23, 48 }
0x14bc   : > { %v5157_v59 = vpop.f32.mrb[40].mxu1 }
0x14bd   : > { %v10890_v56 = vpop.f32.mrb[41].mxu1 }
0x14be   : > { %v5160_v53 = vpop.f32.mrb[42].mxu1 }
0x14bf   : > { %v5219_v48 = vpack.c.bf16 %v5160_v53, %v5157_v59  ;;  %v10891_v55 = vpop.f32.mrb[43].mxu1 }
0x14c0   : > { %v5210_v35 = vpop.f32.mrb[40].mxu0 }
0x14c1   : > { %v10900_v17 = vpop.f32.mrb[41].mxu0  ;;  %5223 = vxpose.xlu0.c.b16.cont [3/4] (short) (narrow) %v5219_v48, 48 }
0x14c2   : > { %v5213_v11 = vpop.f32.mrb[42].mxu0 }
0x14c3   : > { %v5220_v29 = vpack.c.bf16 %v5213_v11, %v5210_v35  ;;  %v10901_v33 = vpop.f32.mrb[43].mxu0 }
0x14c5   : > { %5224 = vxpose.xlu0.c.b16.end [4/4] (short) (narrow) %v5220_v29, 48 }
0x151f   : > { %v5229_v41 = vpop.trf.xlu0 }
0x1520   : > { %10911 = vmatmul.mubr.msk.bf16.vlgmr.msra.gmra.mrb[44].mxu1 %vm15266_vm15, %v5229_v41  ;;  %vm15280_vm15 = vmmov %vm15278_vm1 }
0x1521   : > { %10914 = vmatprep.mubr.msk.bf16.mxu1 %vm15224_vm5, %v12156_v47 }
0x1523   : > { %v5230_v13 = vpop.trf.xlu0 }
0x1527   : > { %v5231_v58 = vpop.trf.xlu0 }
0x1528   : > { %10915 = vmatmul.mubr.msk.bf16.gmra.mrb[48].mxu1 %vm15252_vm3, %v5230_v13  ;;  %vm15284_vm3 = vmmov %vm15278_vm1 }
0x1529   : > { %10918 = vmatprep.mubr.msk.bf16.mxu1 %vm15224_vm5, %v12156_v47 }
0x1530   : > { %10919 = vmatmul.mubr.msk.bf16.gmra.mrb[52].mxu1 %vm15267_vm10, %v5231_v58  ;;  %vm15285_vm10 = vmmov %vm15278_vm1 }
0x15f3   : > { %v5304_v36 = vpop.f32.mrb[44].mxu1 }
0x15f4   : > { %v13816_v1 = vadd.f32 %v11911_v20, %v5304_v36  ;;  %v10912_v32 = vpop.f32.mrb[45].mxu1 }
0x15f5   : > { %v5307_v49 = vpop.f32.mrb[46].mxu1  ;;  %v11597_v32 = vld [vmem:[%s15277_s11 + $0x4] ss:$8 sps:$4 sm:$0xff]  }
0x15f6   : > { %v13819_v14 = vadd.f32 %v11912_v46, %v5307_v49  ;;  %v10913_v40 = vpop.f32.mrb[47].mxu1  ;;  %v5333_v2 = vsel %vm15268_vm4, %v13816_v1, 0.0  ;;  %v11595_v49 = vld [vmem:[%s15277_s11] ss:$8 sps:$4 sm:$0xff]   ;;  %5498 = vmatprep.subr.bf16.mxu0 %v11597_v32  ;;  %v11600_v46 = vld [vmem:[%s15277_s11 + $0x14] ss:$8 sps:$4 sm:$0xff]   ;;  %vm15287_vm4 = vmmov %vm15278_vm1 }
0x15f7   : > { %5334 = vadd.xlane.f32.xlu1 %v5333_v2  ;;  %5499 = vmatpush1.bf16.msra.mxu0 %v11595_v49  ;;  %v11598_v40 = vld [vmem:[%s15277_s11 + $0x10] ss:$8 sps:$4 sm:$0xff]   ;;  %v11603_v2 = vld [vmem:[%s15277_s11 + $0x24] ss:$8 sps:$4 sm:$0xff]   ;;  %v9844_v32 = vld [vmem:[%s15283_s22] ss:$0 sm:$0xff] }
0x15f8   : > { %v5336_v8 = vsel %vm15269_vm9, %v13819_v14, 0.0  ;;  %5500 = vmatprep.subr.bf16.mxu0 %v11600_v46  ;;  %vm15289_vm9 = vmmov %vm15278_vm1 }
0x15fb   : > { %5337 = vadd.xlane.f32.xlu1 %v5336_v8  ;;  %v5312_v37 = vpop.f32.mrb[48].mxu1  ;;  %5501 = vmatpush1.bf16.msra.mxu0 %v11598_v40  ;;  %v11601_v8 = vld [vmem:[%s15277_s11 + $0x20] ss:$8 sps:$4 sm:$0xff]  }
0x15fc   : > { %v13826_v63 = vadd.f32 %v5312_v37, %v15207_v26  ;;  %v10916_v9 = vpop.f32.mrb[49].mxu1  ;;  %5502 = vmatprep.subr.bf16.mxu0 %v11603_v2  ;;  %v11606_v37 = vld [vmem:[%s15277_s11 + $0x34] ss:$8 sps:$4 sm:$0xff]  }
0x15fd   : > { %v5315_v43 = vpop.f32.mrb[50].mxu1  ;;  %v11604_v9 = vld [vmem:[%s15277_s11 + $0x30] ss:$8 sps:$4 sm:$0xff]  }
0x15fe   : > { %v13829_v15 = vadd.f32 %v5315_v43, %v15208_v10  ;;  %v10917_v19 = vpop.f32.mrb[51].mxu1  ;;  %v5339_v27 = vsel %vm15270_vm11, %v13826_v63, 0.0  ;;  %v11607_v43 = vld [vmem:[%s15281_s16 + $0x40] sm:$0xff]   ;;  %vm15290_vm11 = vmmov %vm15278_vm1 }
0x15ff   : > { %5340 = vadd.xlane.f32.xlu1 %v5339_v27  ;;  %5503 = vmatpush1.bf16.msra.mxu0 %v11601_v8  ;;  %v11608_v19 = vld [vmem:[%s15281_s16] sm:$0xff]   ;;  %v11609_v27 = vld [vmem:[%s15281_s16 + $0x48] sm:$0xff]  }
0x1600   : > { %v5342_v25 = vsel %vm15271_vm6, %v13829_v15, 0.0  ;;  %5504 = vmatprep.subr.bf16.mxu0 %v11606_v37  ;;  %10406 = vmatprep.subr.bf16.mxu1 %v11607_v43  ;;  %vm15291_vm6 = vmmov %vm15278_vm1 }
0x1601   : > { %10407 = vmatpush3.bf16.msra.mxu1 %v11608_v19 }
0x1602   : > { %10408 = vmatprep.subr.bf16.mxu1 %v11609_v27 }
0x1603   : > { %5343 = vadd.xlane.f32.xlu1 %v5342_v25  ;;  %v5320_v45 = vpop.f32.mrb[52].mxu1  ;;  %5505 = vmatpush1.bf16.msra.mxu0 %v11604_v9  ;;  %v11610_v25 = vld [vmem:[%s15281_s16 + $0x8] sm:$0xff]  }
0x1604   : > { %v13836_v50 = vadd.f32 %v5320_v45, %v15209_v31  ;;  %v10920_v26 = vpop.f32.mrb[53].mxu1  ;;  %v11611_v45 = vld [vmem:[%s15281_s16 + $0x50] sm:$0xff]  }
0x1605   : > { %v5323_v61 = vpop.f32.mrb[54].mxu1  ;;  %10409 = vmatpush3.bf16.msra.mxu1 %v11610_v25  ;;  %v11612_v26 = vld [vmem:[%s15281_s16 + $0x10] sm:$0xff]  }
0x1606   : > { %v13839_v18 = vadd.f32 %v5323_v61, %v15210_v7  ;;  %v10921_v10 = vpop.f32.mrb[55].mxu1  ;;  %v5345_v16 = vsel %vm15272_vm7, %v13836_v50, 0.0  ;;  %10410 = vmatprep.subr.bf16.mxu1 %v11611_v45  ;;  %v11613_v61 = vld [vmem:[%s15281_s16 + $0x58] sm:$0xff]   ;;  %vm15292_vm7 = vmmov %vm15278_vm1 }
0x1607   : > { %5346 = vadd.xlane.f32.xlu1 %v5345_v16  ;;  %v11614_v10 = vld [vmem:[%s15281_s16 + $0x18] sm:$0xff]   ;;  %v11615_v16 = vld [vmem:[%s15281_s16 + $0x60] sm:$0xff]  }
0x1608   : > { %v5348_v54 = vsel %vm15273_vm12, %v13839_v18, 0.0  ;;  %vm15293_vm12 = vmmov %vm15278_vm1 }
0x1609   : > { %10411 = vmatpush3.bf16.msra.mxu1 %v11612_v26 }
0x160a   : > { %10412 = vmatprep.subr.bf16.mxu1 %v11613_v61 }
0x160b   : > { %5349 = vadd.xlane.f32.xlu1 %v5348_v54  ;;  %v11616_v54 = vld [vmem:[%s15281_s16 + $0x20] sm:$0xff]  }
0x160d   : > { %10413 = vmatpush3.bf16.msra.mxu1 %v11614_v10 }
0x160e   : > { %10414 = vmatprep.subr.bf16.mxu1 %v11615_v16 }
0x1611   : > { %10415 = vmatpush3.bf16.msra.mxu1 %v11616_v54 }
0x1684   : > { %v5335_v28 = vpop.xlane.xlu1 %5334 }
0x1685   : > { %v5351_v62 = vmul.f32 0.015625, %v5335_v28  ;;  %v11617_v28 = vld [vmem:[%s15281_s16 + $0x68] sm:$0xff]  }
0x1686   : > { %10416 = vmatprep.subr.bf16.mxu1 %v11617_v28 }
0x1687   : > { %v13846_v30 = vsub.f32 %v13816_v1, %v5351_v62 }
0x1688   : > { %v5338_v31 = vpop.xlane.xlu1 %5337 }
0x1689   : > { %v5352_v39 = vmul.f32 0.015625, %v5338_v31  ;;  %v5363_v7 = vmul.f32 %v13846_v30, %v13846_v30 }
0x168b   : > { %v13851_v34 = vsub.f32 %v13819_v14, %v5352_v39  ;;  %v5369_v24 = vsel %vm15274_vm13, %v5363_v7, 0.0  ;;  %vm15294_vm13 = vmmov %vm15278_vm1 }
0x168c   : > { %v5341_v3 = vpop.xlane.xlu1 %5340  ;;  %5370 = vadd.xlane.f32.xlu1 %v5369_v24 }
0x168d   : > { %v5353_v4 = vmul.f32 0.015625, %v5341_v3  ;;  %v5364_v60 = vmul.f32 %v13851_v34, %v13851_v34 }
0x168f   : > { %v13857_v57 = vsub.f32 %v13826_v63, %v5353_v4  ;;  %v5372_v5 = vsel %vm15275_vm8, %v5364_v60, 0.0  ;;  %vm15295_vm8 = vmmov %vm15278_vm1 }
0x1690   : > { %v5344_v23 = vpop.xlane.xlu1 %5343  ;;  %5373 = vadd.xlane.f32.xlu1 %v5372_v5 }
0x1691   : > { %v5354_v42 = vmul.f32 0.015625, %v5344_v23  ;;  %v5365_v59 = vmul.f32 %v13857_v57, %v13857_v57 }
0x1693   : > { %v5375_v56 = vsel %vm15276_vm2, %v5365_v59, 0.0  ;;  %v13864_v53 = vsub.f32 %v13829_v15, %v5354_v42  ;;  %vm15296_vm2 = vmmov %vm15278_vm1 }
0x1694   : > { %v5347_v48 = vpop.xlane.xlu1 %5346  ;;  %5376 = vadd.xlane.f32.xlu1 %v5375_v56 }
0x1695   : > { %v5355_v55 = vmul.f32 0.015625, %v5347_v48  ;;  %v5366_v35 = vmul.f32 %v13864_v53, %v13864_v53 }
0x1697   : > { %v13869_v17 = vsub.f32 %v13836_v50, %v5355_v55  ;;  %v5378_v11 = vsel %vm15278_vm1, %v5366_v35, 0.0 }
0x1698   : > { %5379 = vadd.xlane.f32.xlu1 %v5378_v11  ;;  %v5350_v29 = vpop.xlane.xlu1 %5349  ;;  %v9843_v11 = vld [vmem:[%s15282_s0] ss:$0 sm:$0xff] }
0x1699   : > { %v5356_v33 = vmul.f32 0.015625, %v5350_v29  ;;  %v5367_v41 = vmul.f32 %v13869_v17, %v13869_v17 }
0x169b   : > { %v13875_v13 = vsub.f32 %v13839_v18, %v5356_v33  ;;  %v5381_v58 = vsel %vm15279_vm14, %v5367_v41, 0.0  ;;  %vm15297_vm14 = vmmov %vm15278_vm1 }
0x169c   : > { %5382 = vadd.xlane.f32.xlu1 %v5381_v58 }
0x169d   : > { %v5368_v36 = vmul.f32 %v13875_v13, %v13875_v13 }
0x169f   : > { %v5384_v20 = vsel %vm15280_vm15, %v5368_v36, 0.0  ;;  %vm15298_vm15 = vmmov %vm15278_vm1 }
0x16a0   : > { %5385 = vadd.xlane.f32.xlu1 %v5384_v20 }
0x1719   : > { %v5371_v62 = vpop.xlane.xlu1 %5370 }
0x171a   : > { %v5387_v31 = vmul.f32 0.015625, %v5371_v62 }
0x171c   : > { %v5393_v39 = vadd.f32 1e-05, %v5387_v31  ;;  %v11618_v31 = vld [vmem:[%s15281_s16 + $0x28] sm:$0xff]  }
0x171d   : > { %v5374_v7 = vpop.xlane.xlu1 %5373  ;;  %10417 = vmatpush3.bf16.msra.mxu1 %v11618_v31 }
0x171e   : > { %11779 = vrsqrt.f32 %v5393_v39  ;;  %v5388_v24 = vmul.f32 0.015625, %v5374_v7  ;;  %v11620_v39 = vld [vmem:[%s15281_s16 + $0x30] sm:$0xff]   ;;  %v11621_v7 = vld [vmem:[%s15281_s16 + $0x78] sm:$0xff]  }
0x1720   : > { %v5394_v3 = vadd.f32 1e-05, %v5388_v24  ;;  %v11622_v24 = vld [vmem:[%s15281_s16 + $0x38] sm:$0xff]  }
0x1721   : > { %v5377_v4 = vpop.xlane.xlu1 %5376 }
0x1722   : > { %11781 = vrsqrt.f32 %v5394_v3  ;;  %v5389_v60 = vmul.f32 0.015625, %v5377_v4 }
0x1724   : > { %v5395_v5 = vadd.f32 1e-05, %v5389_v60 }
0x1725   : > { %v5380_v23 = vpop.xlane.xlu1 %5379 }
0x1726   : > { %11783 = vrsqrt.f32 %v5395_v5  ;;  %v5390_v42 = vmul.f32 0.015625, %v5380_v23 }
0x1728   : > { %v11780_v59 = vpop.eup %11779  ;;  %v5396_v56 = vadd.f32 1e-05, %v5390_v42 }
0x1729   : > { %v5405_v48 = vmul.f32 %v11780_v59, %v13846_v30  ;;  %v5383_v55 = vpop.xlane.xlu1 %5382 }
0x172a   : > { %11785 = vrsqrt.f32 %v5396_v56  ;;  %v5391_v35 = vmul.f32 0.015625, %v5383_v55 }
0x172b   : > { %v5417_v36 = vmul.f32 %v9843_v11, %v5405_v48 }
0x172c   : > { %v11782_v29 = vpop.eup %11781  ;;  %v5397_v33 = vadd.f32 1e-05, %v5391_v35 }
0x172d   : > { %v5406_v41 = vmul.f32 %v11782_v29, %v13851_v34  ;;  %v5386_v58 = vpop.xlane.xlu1 %5385  ;;  %v5429_v2 = vadd.f32 %v9844_v32, %v5417_v36 }
0x172e   : > { %11787 = vrsqrt.f32 %v5397_v33  ;;  %v5392_v20 = vmul.f32 0.015625, %v5386_v58 }
0x172f   : > { %v5418_v49 = vmul.f32 %v9843_v11, %v5406_v41 }
0x1730   : > { %v11784_v46 = vpop.eup %11783  ;;  %v5398_v40 = vadd.f32 1e-05, %v5392_v20 }
0x1731   : > { %v5430_v8 = vadd.f32 %v9844_v32, %v5418_v49  ;;  %v5407_v30 = vmul.f32 %v11784_v46, %v13857_v57 }
0x1732   : > { %11789 = vrsqrt.f32 %v5398_v40 }
0x1733   : > { %v5435_v37 = vpack.c.bf16 %v5430_v8, %v5429_v2  ;;  %v5419_v34 = vmul.f32 %v9843_v11, %v5407_v30 }
0x1734   : > { %v11786_v9 = vpop.eup %11785 }
0x1735   : > { %9853 = vmatmul.mubr.msk.bf16.vlgmr.msra.gmra.mrb[44].mxu0 %vm15284_vm3, %v5435_v37  ;;  %v5408_v43 = vmul.f32 %v11786_v9, %v13864_v53  ;;  %v5431_v25 = vadd.f32 %v9844_v32, %v5419_v34  ;;  %vm15299_vm3 = vmmov %vm15278_vm1 }
0x1736   : > { %5540 = vmatprep.mubr.bf16.mxu0 %v15168_v6 }
0x1737   : > { %v5420_v19 = vmul.f32 %v9843_v11, %v5408_v43 }
0x1738   : > { %v11788_v27 = vpop.eup %11787 }
0x1739   : > { %v5432_v45 = vadd.f32 %v9844_v32, %v5420_v19  ;;  %v5409_v26 = vmul.f32 %v11788_v27, %v13869_v17  ;;  %v11619_v17 = vld [vmem:[%s15281_s16 + $0x70] sm:$0xff]  }
0x173a   : > { %10418 = vmatprep.subr.bf16.mxu1 %v11619_v17 }
0x173b   : > { %v5436_v57 = vpack.c.bf16 %v5432_v45, %v5431_v25  ;;  %v5421_v10 = vmul.f32 %v9843_v11, %v5409_v26  ;;  %10419 = vmatpush3.bf16.msra.mxu1 %v11620_v39 }
0x173c   : > { %v11790_v61 = vpop.eup %11789  ;;  %10420 = vmatprep.subr.bf16.mxu1 %v11621_v7  ;;  %v9856_v7 = vld [vmem:[%s15288_s3] ss:$0 sm:$0xff] }
0x173d   : > { %9854 = vmatmul.mubr.msk.bf16.gmra.mrb[48].mxu0 %vm15285_vm10, %v5436_v57  ;;  %v5410_v53 = vmul.f32 %v11790_v61, %v13875_v13  ;;  %v5433_v54 = vadd.f32 %v9844_v32, %v5421_v10  ;;  %v3989_v13 = vld [vmem:[%s15286_s26] sm:$0x3]  ;;  %vm15300_vm10 = vmmov %vm15278_vm1 }
0x173e   : > { %5550 = vmatprep.mubr.bf16.mxu0 %v15168_v6  ;;  %v5442_v3 = vrot.slane %v3989_v13, %v12918_v12  ;;  %v5446_v4 = vrot.slane %v3989_v13, %v12922_v52 }
0x173f   : > { %v5422_v16 = vmul.f32 %v9843_v11, %v5410_v53  ;;  %10421 = vmatpush3.bf16.msra.mxu1 %v11622_v24 }
0x1740   : > { %10952 = vmatprep.subr.bf16.mxu1 %v12156_v47 }
0x1741   : > { %v5434_v28 = vadd.f32 %v9844_v32, %v5422_v16 }
0x1743   : > { %v5437_v62 = vpack.c.bf16 %v5434_v28, %v5433_v54 }
0x1745   : > { %9855 = vmatmul.mubr.msk.bf16.gmra.mrb[52].mxu0 %vm15287_vm4, %v5437_v62  ;;  %vm15301_vm4 = vmmov %vm15278_vm1 }
0x1808   : > { %v5532_v60 = vpop.f32.mrb[44].mxu0 }
0x1809   : > { %v5533_v5 = vadd.f32 %v5532_v60, %v5442_v3  ;;  %v5534_v23 = vpop.f32.mrb[45].mxu0 }
0x180a   : > { %v5535_v42 = vadd.f32 %v5534_v23, %v5446_v4  ;;  %v5536_v59 = vpop.f32.mrb[46].mxu0 }
0x180b   : > { %v5537_v56 = vadd.f32 %v5536_v59, %v5442_v3  ;;  %v5538_v48 = vpop.f32.mrb[47].mxu0  ;;  %v5561_v35 = vmax.f32 %v5533_v5, 0.0 }
0x180c   : > { %v5539_v55 = vadd.f32 %v5538_v48, %v5446_v4  ;;  %v5562_v29 = vmax.f32 %v5535_v42, 0.0 }
0x180d   : > { %v5563_v11 = vmax.f32 %v5537_v56, 0.0 }
0x180e   : > { %v5564_v33 = vmax.f32 %v5539_v55, 0.0 }
0x180f   : > { %v5573_v41 = vpack.c.bf16 %v5563_v11, %v5561_v35 }
0x1810   : > { %v5574_v58 = vpack.c.bf16 %v5564_v33, %v5562_v29  ;;  %v5542_v36 = vpop.f32.mrb[48].mxu0 }
0x1811   : > { %v5543_v20 = vadd.f32 %v5542_v36, %v5442_v3  ;;  %v5544_v32 = vpop.f32.mrb[49].mxu0 }
0x1812   : > { %v5545_v49 = vadd.f32 %v5544_v32, %v5446_v4  ;;  %v5546_v46 = vpop.f32.mrb[50].mxu0  ;;  %5713 = vmatprep.mubr.bf16.mxu1 %v5574_v58 }
0x1813   : > { %v5547_v40 = vadd.f32 %v5546_v46, %v5442_v3  ;;  %v5548_v2 = vpop.f32.mrb[51].mxu0  ;;  %5714 = vmatmul.mubr.bf16.vlgmr.msra.gmra.mrb[56].mxu1 %v5573_v41  ;;  %v5565_v30 = vmax.f32 %v5543_v20, 0.0 }
0x1814   : > { %v5549_v8 = vadd.f32 %v5548_v2, %v5446_v4  ;;  %v5566_v9 = vmax.f32 %v5545_v49, 0.0 }
0x1815   : > { %v5567_v37 = vmax.f32 %v5547_v40, 0.0 }
0x1816   : > { %v5568_v43 = vmax.f32 %v5549_v8, 0.0 }
0x1817   : > { %v5575_v34 = vpack.c.bf16 %v5567_v37, %v5565_v30 }
0x1818   : > { %v5576_v19 = vpack.c.bf16 %v5568_v43, %v5566_v9  ;;  %v5552_v27 = vpop.f32.mrb[52].mxu0 }
0x1819   : > { %v5553_v25 = vadd.f32 %v5552_v27, %v5442_v3  ;;  %v5554_v45 = vpop.f32.mrb[53].mxu0 }
0x181a   : > { %v5555_v26 = vadd.f32 %v5554_v45, %v5446_v4  ;;  %v5556_v57 = vpop.f32.mrb[54].mxu0  ;;  %5721 = vmatprep.mubr.bf16.mxu1 %v5576_v19 }
0x181b   : > { %v5557_v61 = vadd.f32 %v5556_v57, %v5442_v3  ;;  %v5558_v53 = vpop.f32.mrb[55].mxu0  ;;  %5722 = vmatmul.mubr.bf16.gmra.mrb[60].mxu1 %v5575_v34  ;;  %v5569_v16 = vmax.f32 %v5553_v25, 0.0 }
0x181c   : > { %v5559_v10 = vadd.f32 %v5558_v53, %v5446_v4  ;;  %v5570_v28 = vmax.f32 %v5555_v26, 0.0 }
0x181d   : > { %v5571_v54 = vmax.f32 %v5557_v61, 0.0 }
0x181e   : > { %v5572_v62 = vmax.f32 %v5559_v10, 0.0 }
0x181f   : > { %v5577_v31 = vpack.c.bf16 %v5571_v54, %v5569_v16 }
0x1820   : > { %v5578_v17 = vpack.c.bf16 %v5572_v62, %v5570_v28 }
0x1822   : > { %5729 = vmatprep.mubr.bf16.mxu1 %v5578_v17 }
0x1823   : > { %5730 = vmatmul.mubr.bf16.gmra.mrb[64].mxu1 %v5577_v31 }
0x1824   : > { %10954 = vmatprep.mubr.msk.bf16.mxu1 %vm15224_vm5, %v12156_v47 }
0x18e6   : > { %v10422_v39 = vpop.f32.mrb[56].mxu1 }
0x18e7   : > { %v10423_v24 = vpop.f32.mrb[57].mxu1 }
0x18e8   : > { %v10424_v13 = vadd.f32 %v10423_v24, %v10422_v39  ;;  %v10425_v60 = vpop.f32.mrb[58].mxu1 }
0x18e9   : > { %v10426_v3 = vpop.f32.mrb[59].mxu1 }
0x18ea   : > { %v5716_v5 = vadd.f32 %v10424_v13, %v9856_v7  ;;  %v10427_v23 = vadd.f32 %v10426_v3, %v10425_v60 }
0x18ec   : > { %v13926_v4 = vadd.f32 %v5716_v5, %v13816_v1  ;;  %v5719_v42 = vadd.f32 %v10427_v23, %v9856_v7 }
0x18ee   : > { %v13929_v59 = vadd.f32 %v5719_v42, %v13819_v14  ;;  %v10428_v56 = vpop.f32.mrb[60].mxu1  ;;  %v5832_v48 = vsel %vm15289_vm9, %v13926_v4, 0.0  ;;  %vm15302_vm9 = vmmov %vm15278_vm1 }
0x18ef   : > { %v10429_v55 = vpop.f32.mrb[61].mxu1  ;;  %5833 = vadd.xlane.f32.xlu1 %v5832_v48 }
0x18f0   : > { %v10430_v35 = vadd.f32 %v10429_v55, %v10428_v56  ;;  %v10431_v11 = vpop.f32.mrb[62].mxu1  ;;  %v5835_v58 = vsel %vm15290_vm11, %v13929_v59, 0.0  ;;  %vm15303_vm11 = vmmov %vm15278_vm1 }
0x18f1   : > { %v10432_v29 = vpop.f32.mrb[63].mxu1 }
0x18f2   : > { %v5724_v33 = vadd.f32 %v10430_v35, %v9856_v7  ;;  %v10433_v41 = vadd.f32 %v10432_v29, %v10431_v11  ;;  %v11623_v11 = vld [vmem:[%s15229_s1 + $0x60] sm:$0xff]  }
0x18f3   : > { %5836 = vadd.xlane.f32.xlu1 %v5835_v58  ;;  %10928 = vmatprep.mubr.msk.bf16.mxu0 %vm15300_vm10, %v11623_v11  ;;  %vm15313_vm10 = vmmov %vm15278_vm1 }
0x18f4   : > { %v13936_v1 = vadd.f32 %v5724_v33, %v13826_v63  ;;  %v5727_v14 = vadd.f32 %v10433_v41, %v9856_v7 }
0x18f6   : > { %v13939_v36 = vadd.f32 %v5727_v14, %v13829_v15  ;;  %v10434_v20 = vpop.f32.mrb[64].mxu1  ;;  %v5838_v32 = vsel %vm15291_vm6, %v13936_v1, 0.0  ;;  %vm15304_vm6 = vmmov %vm15278_vm1 }
0x18f7   : > { %v10435_v49 = vpop.f32.mrb[65].mxu1  ;;  %5839 = vadd.xlane.f32.xlu1 %v5838_v32 }
0x18f8   : > { %v10436_v46 = vadd.f32 %v10435_v49, %v10434_v20  ;;  %v10437_v40 = vpop.f32.mrb[66].mxu1  ;;  %v5841_v2 = vsel %vm15292_vm7, %v13939_v36, 0.0  ;;  %vm15305_vm7 = vmmov %vm15278_vm1 }
0x18f9   : > { %v10438_v8 = vpop.f32.mrb[67].mxu1  ;;  %5842 = vadd.xlane.f32.xlu0 %v5841_v2 }
0x18fa   : > { %v5732_v30 = vadd.f32 %v10436_v46, %v9856_v7  ;;  %v10439_v63 = vadd.f32 %v10438_v8, %v10437_v40 }
0x18fc   : > { %v13946_v37 = vadd.f32 %v5732_v30, %v13836_v50  ;;  %v5735_v15 = vadd.f32 %v10439_v63, %v9856_v7 }
0x18fe   : > { %v13949_v9 = vadd.f32 %v5735_v15, %v13839_v18  ;;  %v5844_v43 = vsel %vm15293_vm12, %v13946_v37, 0.0  ;;  %vm15306_vm12 = vmmov %vm15278_vm1 }
0x18ff   : > { %5845 = vadd.xlane.f32.xlu1 %v5844_v43 }
0x1900   : > { %v5847_v34 = vsel %vm15294_vm13, %v13949_v9, 0.0  ;;  %vm15307_vm13 = vmmov %vm15278_vm1 }
0x1903   : > { %5848 = vadd.xlane.f32.xlu1 %v5847_v34  ;;  %v9951_v34 = vld [vmem:[%s15235_s2 + $0x1] ss:$0 sm:$0xff] }
0x197c   : > { %v5834_v19 = vpop.xlane.xlu1 %5833 }
0x197d   : > { %v5850_v27 = vmul.f32 0.015625, %v5834_v19 }
0x197f   : > { %v5856_v25 = vsub.f32 %v13926_v4, %v5850_v27 }
0x1980   : > { %v5837_v45 = vpop.xlane.xlu1 %5836 }
0x1981   : > { %v5851_v26 = vmul.f32 0.015625, %v5837_v45  ;;  %v5862_v50 = vmul.f32 %v5856_v25, %v5856_v25 }
0x1983   : > { %v5857_v57 = vsub.f32 %v13929_v59, %v5851_v26  ;;  %v5868_v18 = vsel %vm15295_vm8, %v5862_v50, 0.0  ;;  %vm15308_vm8 = vmmov %vm15278_vm1 }
0x1984   : > { %5869 = vadd.xlane.f32.xlu1 %v5868_v18  ;;  %v5840_v61 = vpop.xlane.xlu1 %5839 }
0x1985   : > { %v5852_v53 = vmul.f32 0.015625, %v5840_v61  ;;  %v5863_v10 = vmul.f32 %v5857_v57, %v5857_v57  ;;  %v9952_v61 = vld [vmem:[%s15236_s7 + $0x1] ss:$0 sm:$0xff] }
0x1986   : > { %v5843_v16 = vpop.xlane.xlu0 %5842 }
0x1987   : > { %v5858_v54 = vsub.f32 %v13936_v1, %v5852_v53  ;;  %v5853_v28 = vmul.f32 0.015625, %v5843_v16  ;;  %v5871_v62 = vsel %vm15296_vm2, %v5863_v10, 0.0  ;;  %vm15309_vm2 = vmmov %vm15278_vm1 }
0x1988   : > { %5872 = vadd.xlane.f32.xlu0 %v5871_v62 }
0x1989   : > { %v5859_v31 = vsub.f32 %v13939_v36, %v5853_v28  ;;  %v5864_v17 = vmul.f32 %v5858_v54, %v5858_v54 }
0x198b   : > { %v5874_v39 = vsel %vm15278_vm1, %v5864_v17, 0.0  ;;  %v5865_v7 = vmul.f32 %v5859_v31, %v5859_v31 }
0x198c   : > { %5875 = vadd.xlane.f32.xlu1 %v5874_v39  ;;  %v5846_v24 = vpop.xlane.xlu1 %5845 }
0x198d   : > { %v5854_v13 = vmul.f32 0.015625, %v5846_v24  ;;  %v5877_v60 = vsel %vm15297_vm14, %v5865_v7, 0.0  ;;  %vm15310_vm14 = vmmov %vm15278_vm1 }
0x198e   : > { %5878 = vadd.xlane.f32.xlu0 %v5877_v60 }
0x198f   : > { %v5860_v3 = vsub.f32 %v13946_v37, %v5854_v13 }
0x1990   : > { %v5849_v5 = vpop.xlane.xlu1 %5848 }
0x1991   : > { %v5855_v23 = vmul.f32 0.015625, %v5849_v5  ;;  %v5866_v42 = vmul.f32 %v5860_v3, %v5860_v3 }
0x1993   : > { %v5861_v56 = vsub.f32 %v13949_v9, %v5855_v23  ;;  %v5880_v48 = vsel %vm15298_vm15, %v5866_v42, 0.0  ;;  %vm15311_vm15 = vmmov %vm15278_vm1 }
0x1994   : > { %5881 = vadd.xlane.f32.xlu1 %v5880_v48 }
0x1995   : > { %v5867_v55 = vmul.f32 %v5861_v56, %v5861_v56 }
0x1997   : > { %v5883_v35 = vsel %vm15299_vm3, %v5867_v55, 0.0  ;;  %vm15312_vm3 = vmmov %vm15278_vm1 }
0x1998   : > { %5884 = vadd.xlane.f32.xlu0 %v5883_v35 }
0x1a11   : > { %v5870_v29 = vpop.xlane.xlu1 %5869 }
0x1a12   : > { %v5886_v33 = vmul.f32 0.015625, %v5870_v29 }
0x1a14   : > { %v5892_v41 = vadd.f32 1e-05, %v5886_v33 }
0x1a15   : > { %v5873_v58 = vpop.xlane.xlu0 %5872 }
0x1a16   : > { %11791 = vrsqrt.f32 %v5892_v41  ;;  %v5887_v14 = vmul.f32 0.015625, %v5873_v58  ;;  %v11624_v58 = vld [vmem:[%s15229_s1 + $0x68] sm:$0xff]  }
0x1a18   : > { %v5893_v20 = vadd.f32 1e-05, %v5887_v14  ;;  %v11625_v14 = vld [vmem:[%s15229_s1 + $0x70] sm:$0xff]  }
0x1a19   : > { %v5876_v32 = vpop.xlane.xlu1 %5875 }
0x1a1a   : > { %11793 = vrsqrt.f32 %v5893_v20  ;;  %v5888_v49 = vmul.f32 0.015625, %v5876_v32  ;;  %v11627_v20 = vld [vmem:[%s15229_s1 + $0x80] sm:$0xff]   ;;  %v11628_v32 = vld [vmem:[%s15229_s1 + $0x88] sm:$0xff]  }
0x1a1b   : > { %v5879_v46 = vpop.xlane.xlu0 %5878 }
0x1a1c   : > { %v5894_v40 = vadd.f32 1e-05, %v5888_v49  ;;  %v5889_v2 = vmul.f32 0.015625, %v5879_v46  ;;  %v11629_v49 = vld [vmem:[%s15229_s1 + $0x90] sm:$0xff]   ;;  %v11630_v46 = vld [vmem:[%s15229_s1 + $0x98] sm:$0xff]  }
0x1a1e   : > { %11795 = vrsqrt.f32 %v5894_v40  ;;  %v5895_v8 = vadd.f32 1e-05, %v5889_v2 }
0x1a20   : > { %v11792_v30 = vpop.eup %11791  ;;  %11797 = vrsqrt.f32 %v5895_v8 }
0x1a21   : > { %v5882_v63 = vpop.xlane.xlu1 %5881  ;;  %v5904_v15 = vmul.f32 %v11792_v30, %v5856_v25 }
0x1a22   : > { %v5890_v43 = vmul.f32 0.015625, %v5882_v63 }
0x1a23   : > { %v5916_v50 = vmul.f32 %v9951_v34, %v5904_v15 }
0x1a24   : > { %v11794_v19 = vpop.eup %11793  ;;  %v5896_v27 = vadd.f32 1e-05, %v5890_v43  ;;  %v11631_v43 = vld [vmem:[%s15229_s1 + $0xa0] sm:$0xff]  }
0x1a25   : > { %v5885_v45 = vpop.xlane.xlu0 %5884  ;;  %v5905_v26 = vmul.f32 %v11794_v19, %v5857_v57  ;;  %v5928_v28 = vadd.f32 %v9952_v61, %v5916_v50 }
0x1a26   : > { %11799 = vrsqrt.f32 %v5896_v27  ;;  %v5891_v18 = vmul.f32 0.015625, %v5885_v45 }
0x1a27   : > { %v5917_v53 = vmul.f32 %v9951_v34, %v5905_v26 }
0x1a28   : > { %v11796_v10 = vpop.eup %11795  ;;  %v5897_v16 = vadd.f32 1e-05, %v5891_v18 }
0x1a29   : > { %v5929_v62 = vadd.f32 %v9952_v61, %v5917_v53  ;;  %v5906_v17 = vmul.f32 %v11796_v10, %v5858_v54  ;;  %v11634_v53 = vld [vmem:[%s15229_s1 + $0xb8] sm:$0xff]  }
0x1a2a   : > { %v11798_v39 = vpop.eup %11797  ;;  %11801 = vrsqrt.f32 %v5897_v16 }
0x1a2b   : > { %v5934_v7 = vpack.c.bf16 %v5929_v62, %v5928_v28  ;;  %v5907_v25 = vmul.f32 %v11798_v39, %v5859_v31  ;;  %v5918_v24 = vmul.f32 %v9951_v34, %v5906_v17 }
0x1a2d   : > { %11148 = vmatprep.subr.msk.bf16.mxu0 %vm15301_vm4, %v5934_v7  ;;  %v6034_v13 = vsel %vm15302_vm9, %v5934_v7, 0  ;;  %v5919_v57 = vmul.f32 %v9951_v34, %v5907_v25  ;;  %v5930_v60 = vadd.f32 %v9952_v61, %v5918_v24  ;;  %vm15314_vm4 = vmmov %vm15278_vm1 }
0x1a2e   : > { %10923 = vmatpush3.bf16.xpose.msra.mxu0 %v6034_v13  ;;  %vm15315_vm9 = vmmov %vm15278_vm1 }
0x1a2f   : > { %v5931_v5 = vadd.f32 %v9952_v61, %v5919_v57 }
0x1a30   : > { %v11800_v23 = vpop.eup %11799 }
0x1a31   : > { %v5935_v42 = vpack.c.bf16 %v5931_v5, %v5930_v60  ;;  %v5908_v48 = vmul.f32 %v11800_v23, %v5860_v3 }
0x1a33   : > { %11149 = vmatprep.subr.msk.bf16.mxu0 %vm15303_vm11, %v5935_v42  ;;  %v6037_v55 = vsel %vm15304_vm6, %v5935_v42, 0  ;;  %v5920_v35 = vmul.f32 %v9951_v34, %v5908_v48  ;;  %vm15316_vm11 = vmmov %vm15278_vm1  ;;  %vm15317_vm6 = vcmask 130048  }
0x1a34   : > { %v11802_v54 = vpop.eup %11801 }
0x1a35   : > { %v5909_v31 = vmul.f32 %v11802_v54, %v5861_v56  ;;  %v5932_v29 = vadd.f32 %v9952_v61, %v5920_v35  ;;  %v11626_v56 = vld [vmem:[%s15229_s1 + $0x78] sm:$0xff]  }
0x1a36   : > { %10925 = vmatpush3.bf16.xpose.msra.mxu0 %v6037_v55 }
0x1a37   : > { %v5921_v11 = vmul.f32 %v9951_v34, %v5909_v31  ;;  %v11632_v34 = vld [vmem:[%s15229_s1 + $0xa8] sm:$0xff]  }
0x1a39   : > { %v5933_v33 = vadd.f32 %v9952_v61, %v5921_v11  ;;  %v11633_v61 = vld [vmem:[%s15229_s1 + $0xb0] sm:$0xff]  }
0x1a3b   : > { %v5936_v41 = vpack.c.bf16 %v5933_v33, %v5932_v29 }
0x1a3d   : > { %11150 = vmatprep.subr.msk.bf16.mxu0 %vm15305_vm7, %v5936_v41  ;;  %v6040_v3 = vsel %vm15306_vm12, %v5936_v41, 0  ;;  %vm15318_vm7 = vmmov %vm15317_vm6 }
0x1a3e   : > { %10927 = vmatpush3.bf16.xpose.msra.mxu0 %v6040_v3  ;;  %vm15319_vm12 = vmmov %vm15317_vm6 }
0x1a3f   : > { %10980 = vmatprep.subr.bf16.mxu0 %v12156_v47 }
0x1a45   : > { %10929 = vmatmul.mubr.msk.bf16.vlgmr.msra.gmra.mrb[56].mxu0 %vm15307_vm13, %v11624_v58  ;;  %vm15320_vm13 = vmmov %vm15317_vm6 }
0x1a46   : > { %10932 = vmatprep.mubr.msk.bf16.mxu0 %vm15308_vm8, %v11625_v14  ;;  %vm15321_vm8 = vmmov %vm15317_vm6 }
0x1a4d   : > { %10933 = vmatmul.mubr.msk.bf16.gmra.mrb[60].mxu0 %vm15309_vm2, %v11626_v56  ;;  %vm15322_vm2 = vmmov %vm15317_vm6 }
0x1a4e   : > { %10936 = vmatprep.mubr.msk.bf16.mxu0 %vm15278_vm1, %v11627_v20  ;;  %vm15323_vm1 = vmmov %vm15322_vm2 }
0x1a55   : > { %10937 = vmatmul.mubr.msk.bf16.gmra.mrb[64].mxu0 %vm15310_vm14, %v11628_v32  ;;  %vm15324_vm14 = vmmov %vm15323_vm1 }
0x1a56   : > { %10940 = vmatprep.mubr.msk.bf16.mxu0 %vm15311_vm15, %v11629_v49  ;;  %vm15325_vm15 = vmmov %vm15323_vm1 }
0x1a5d   : > { %10941 = vmatmul.mubr.msk.bf16.gmra.mrb[68].mxu0 %vm15312_vm3, %v11630_v46  ;;  %vm15326_vm3 = vmmov %vm15323_vm1 }
0x1a5e   : > { %10944 = vmatprep.mubr.msk.bf16.mxu0 %vm15313_vm10, %v11631_v43  ;;  %vm15327_vm10 = vmmov %vm15323_vm1 }
0x1a65   : > { %10945 = vmatmul.mubr.msk.bf16.gmra.mrb[72].mxu0 %vm15314_vm4, %v11632_v34  ;;  %vm15328_vm4 = vmmov %vm15323_vm1 }
0x1a66   : > { %10948 = vmatprep.mubr.msk.bf16.mxu0 %vm15315_vm9, %v11633_v61 }
0x1a6d   : > { %10949 = vmatmul.mubr.msk.bf16.gmra.mrb[76].mxu0 %vm15316_vm11, %v11634_v53 }
0x1a6e   : > { %10982 = vmatprep.mubr.msk.bf16.mxu0 %vm15224_vm5, %v12156_v47 }
0x1b18   : > { %v10930_v40 = vpop.f32.mrb[56].mxu0 }
0x1b19   : > { %v6076_v2 = vpop.f32.mrb[57].mxu0 }
0x1b1a   : > { %v10931_v8 = vpop.f32.mrb[58].mxu0 }
0x1b1b   : > { %v6172_v30 = vpack.c.bf16 %v10931_v8, %v10930_v40  ;;  %v6079_v63 = vpop.f32.mrb[59].mxu0 }
0x1b1c   : > { %v6171_v15 = vpack.c.bf16 %v6079_v63, %v6076_v2 }
0x1b1d   : > { %6265 = vxpose.xlu0.c.b16.start.end [1/1] (short) (narrow) %v6172_v30, 48 }
0x1b1e   : > { %6183 = vxpose.xlu1.c.b16.start.end [1/1] (short) (narrow) %v6171_v15, 48 }
0x1b20   : > { %v10934_v19 = vpop.f32.mrb[60].mxu0 }
0x1b21   : > { %v6092_v27 = vpop.f32.mrb[61].mxu0 }
0x1b22   : > { %v10935_v45 = vpop.f32.mrb[62].mxu0 }
0x1b23   : > { %v6174_v26 = vpack.c.bf16 %v10935_v45, %v10934_v19  ;;  %v6095_v50 = vpop.f32.mrb[63].mxu0 }
0x1b24   : > { %v6173_v18 = vpack.c.bf16 %v6095_v50, %v6092_v27 }
0x1b26   : > { %6429 = vxpose.xlu0.c.b16.start.end [1/1] (short) (narrow) %v6174_v26, 48 }
0x1b27   : > { %6347 = vxpose.xlu1.c.b16.start.end [1/1] (short) (narrow) %v6173_v18, 48 }
0x1b28   : > { %v10938_v10 = vpop.f32.mrb[64].mxu0 }
0x1b29   : > { %v6108_v16 = vpop.f32.mrb[65].mxu0 }
0x1b2a   : > { %v10939_v28 = vpop.f32.mrb[66].mxu0 }
0x1b2b   : > { %v6176_v62 = vpack.c.bf16 %v10939_v28, %v10938_v10  ;;  %v6111_v17 = vpop.f32.mrb[67].mxu0 }
0x1b2c   : > { %v6175_v39 = vpack.c.bf16 %v6111_v17, %v6108_v16 }
0x1b2e   : > { %10953 = vmatpush3.bf16.msra.mxu1 %v6175_v39 }
0x1b2f   : > { %10966 = vmatprep.subr.bf16.mxu1 %v12156_v47 }
0x1b30   : > { %v10942_v7 = vpop.f32.mrb[68].mxu0 }
0x1b31   : > { %v6124_v25 = vpop.f32.mrb[69].mxu0 }
0x1b32   : > { %v10943_v24 = vpop.f32.mrb[70].mxu0 }
0x1b33   : > { %v6178_v13 = vpack.c.bf16 %v10943_v24, %v10942_v7  ;;  %v6127_v57 = vpop.f32.mrb[71].mxu0 }
0x1b34   : > { %v6177_v60 = vpack.c.bf16 %v6127_v57, %v6124_v25 }
0x1b36   : > { %10981 = vmatpush3.bf16.msra.mxu0 %v6177_v60 }
0x1b37   : > { %11008 = vmatprep.subr.bf16.mxu0 %v12156_v47 }
0x1b38   : > { %v14042_v3 = vpop.f32.mrb[72].mxu0 }
0x1b39   : > { %v14044_v58 = vpop.f32.mrb[73].mxu0 }
0x1b3a   : > { %v14046_v14 = vpop.f32.mrb[74].mxu0 }
0x1b3b   : > { %v6180_v56 = vpack.c.bf16 %v14046_v14, %v14042_v3  ;;  %v14050_v20 = vpop.f32.mrb[75].mxu0 }
0x1b3c   : > { %v6179_v32 = vpack.c.bf16 %v14050_v20, %v14044_v58 }
0x1b40   : > { %v14054_v49 = vpop.f32.mrb[76].mxu0 }
0x1b41   : > { %v14056_v46 = vpop.f32.mrb[77].mxu0 }
0x1b42   : > { %v14058_v40 = vpop.f32.mrb[78].mxu0 }
0x1b43   : > { %v6182_v2 = vpack.c.bf16 %v14058_v40, %v14054_v49  ;;  %v14062_v8 = vpop.f32.mrb[79].mxu0 }
0x1b44   : > { %v6181_v30 = vpack.c.bf16 %v14062_v8, %v14056_v46  ;;  %v11638_v46 = vld [vmem:[%s15265_s10 + $0x38] sm:$0xff]  }
0x1b83   : > { %v6273_v55 = vpop.trf.xlu0 }
0x1b84   : > { %v6191_v5 = vpop.trf.xlu1 }
0x1b85   : > { %10955 = vmatmul.mubr.msk.bf16.vlgmr.msra.gmra.mrb[68].mxu1 %vm15317_vm6, %v6191_v5 }
0x1b86   : > { %10967 = vmatpush3.bf16.msra.mxu1 %v6176_v62  ;;  %10958 = vmatprep.mubr.msk.bf16.mxu1 %vm15224_vm5, %v12156_v47 }
0x1b87   : > { %10994 = vmatprep.subr.bf16.mxu1 %v12156_v47  ;;  %v6274_v35 = vpop.trf.xlu0 }
0x1b88   : > { %v6192_v23 = vpop.trf.xlu1 }
0x1b8b   : > { %v6275_v11 = vpop.trf.xlu0 }
0x1b8c   : > { %v6193_v42 = vpop.trf.xlu1 }
0x1b8d   : > { %10959 = vmatmul.mubr.msk.bf16.gmra.mrb[72].mxu1 %vm15318_vm7, %v6192_v23 }
0x1b8e   : > { %10962 = vmatprep.mubr.msk.bf16.mxu1 %vm15224_vm5, %v12156_v47 }
0x1b8f   : > { %v6437_v29 = vpop.trf.xlu0 }
0x1b90   : > { %v6355_v48 = vpop.trf.xlu1 }
0x1b91   : > { %10983 = vmatmul.mubr.msk.bf16.vlgmr.msra.gmra.mrb[80].mxu0 %vm15319_vm12, %v6355_v48 }
0x1b92   : > { %10986 = vmatprep.mubr.msk.bf16.mxu0 %vm15224_vm5, %v12156_v47 }
0x1b93   : > { %v6438_v33 = vpop.trf.xlu0 }
0x1b94   : > { %v6356_v54 = vpop.trf.xlu1 }
0x1b95   : > { %10963 = vmatmul.mubr.msk.bf16.gmra.mrb[76].mxu1 %vm15320_vm13, %v6193_v42 }
0x1b96   : > { %10968 = vmatprep.mubr.msk.bf16.mxu1 %vm15224_vm5, %v12156_v47 }
0x1b97   : > { %v6439_v41 = vpop.trf.xlu0 }
0x1b98   : > { %v6357_v31 = vpop.trf.xlu1 }
0x1b99   : > { %10987 = vmatmul.mubr.msk.bf16.gmra.mrb[84].mxu0 %vm15321_vm8, %v6356_v54 }
0x1b9a   : > { %10990 = vmatprep.mubr.msk.bf16.mxu0 %vm15224_vm5, %v12156_v47 }
0x1b9d   : > { %10969 = vmatmul.mubr.msk.bf16.vlgmr.msra.gmra.mrb[80].mxu1 %vm15322_vm2, %v6273_v55 }
0x1b9e   : > { %10995 = vmatpush3.bf16.msra.mxu1 %v6178_v13  ;;  %10972 = vmatprep.mubr.msk.bf16.mxu1 %vm15224_vm5, %v12156_v47 }
0x1b9f   : > { %11018 = vmatprep.subr.bf16.mxu1 %v12156_v47 }
0x1ba1   : > { %10991 = vmatmul.mubr.msk.bf16.gmra.mrb[88].mxu0 %vm15323_vm1, %v6357_v31 }
0x1ba2   : > { %11014 = vmatprep.mubr.msk.bf16.mxu0 %vm15224_vm5, %v12156_v47 }
0x1ba5   : > { %10973 = vmatmul.mubr.msk.bf16.gmra.mrb[84].mxu1 %vm15324_vm14, %v6274_v35 }
0x1ba6   : > { %10976 = vmatprep.mubr.msk.bf16.mxu1 %vm15224_vm5, %v12156_v47 }
0x1bad   : > { %10977 = vmatmul.mubr.msk.bf16.gmra.mrb[88].mxu1 %vm15325_vm15, %v6275_v11 }
0x1bae   : > { %10996 = vmatprep.mubr.msk.bf16.mxu1 %vm15224_vm5, %v12156_v47 }
0x1bb5   : > { %10997 = vmatmul.mubr.msk.bf16.vlgmr.msra.gmra.mrb[92].mxu1 %vm15326_vm3, %v6437_v29 }
0x1bb6   : > { %11000 = vmatprep.mubr.msk.bf16.mxu1 %vm15224_vm5, %v12156_v47 }
0x1bbd   : > { %11001 = vmatmul.mubr.msk.bf16.gmra.mrb[96].mxu1 %vm15327_vm10, %v6438_v33 }
0x1bbe   : > { %11004 = vmatprep.mubr.msk.bf16.mxu1 %vm15224_vm5, %v12156_v47 }
0x1bc5   : > { %11005 = vmatmul.mubr.msk.bf16.gmra.mrb[100].mxu1 %vm15328_vm4, %v6439_v41 }
0x1bc6   : > { %11024 = vmatprep.mubr.msk.bf16.mxu1 %vm15224_vm5, %v12156_v47 }
0x1c58   : > { %v6242_v63 = vpop.f32.mrb[68].mxu1 }
0x1c59   : > { %v14066_v15 = vmul.f32 0.25, %v6242_v63  ;;  %v10956_v43 = vpop.f32.mrb[69].mxu1 }
0x1c5a   : > { %v6245_v34 = vpop.f32.mrb[70].mxu1 }
0x1c5b   : > { %v14068_v19 = vmul.f32 0.25, %v6245_v34  ;;  %v10957_v27 = vpop.f32.mrb[71].mxu1  ;;  %v6535_v45 = vsel %vm4728_vm0, %v14066_v15, -inf }
0x1c5c   : > { %6536 = vmax.xlane.f32.xlu1 %v6535_v45 }
0x1c5d   : > { %v6538_v26 = vsel %vm4728_vm0, %v14068_v19, -inf }
0x1c5e   : > { %6539 = vmax.xlane.f32.xlu0 %v6538_v26 }
0x1c60   : > { %v6250_v50 = vpop.f32.mrb[72].mxu1 }
0x1c61   : > { %v10960_v18 = vpop.f32.mrb[73].mxu1  ;;  %v14076_v54 = vmul.f32 0.25, %v6250_v50 }
0x1c62   : > { %v6253_v61 = vpop.f32.mrb[74].mxu1 }
0x1c63   : > { %v10961_v53 = vpop.f32.mrb[75].mxu1  ;;  %v14082_v29 = vmul.f32 0.25, %v6253_v61  ;;  %v6541_v43 = vsel %vm4728_vm0, %v14076_v54, -inf }
0x1c64   : > { %v6406_v10 = vpop.f32.mrb[80].mxu0 }
0x1c65   : > { %v10984_v16 = vpop.f32.mrb[81].mxu0  ;;  %v6544_v50 = vsel %vm4728_vm0, %v14082_v29, -inf }
0x1c66   : > { %v6409_v28 = vpop.f32.mrb[82].mxu0 }
0x1c67   : > { %v10985_v62 = vpop.f32.mrb[83].mxu0 }
0x1c68   : > { %v6258_v17 = vpop.f32.mrb[76].mxu1 }
0x1c69   : > { %v10964_v39 = vpop.f32.mrb[77].mxu1  ;;  %v14092_v61 = vmul.f32 0.25, %v6258_v17 }
0x1c6a   : > { %v6261_v7 = vpop.f32.mrb[78].mxu1 }
0x1c6b   : > { %v10965_v25 = vpop.f32.mrb[79].mxu1  ;;  %v14098_v39 = vmul.f32 0.25, %v6261_v7 }
0x1c6c   : > { %v6414_v24 = vpop.f32.mrb[84].mxu0 }
0x1c6d   : > { %v10988_v13 = vpop.f32.mrb[85].mxu0 }
0x1c6e   : > { %v6417_v57 = vpop.f32.mrb[86].mxu0  ;;  %v6547_v13 = vsel %vm4728_vm0, %v14092_v61, -inf }
0x1c6f   : > { %v10989_v60 = vpop.f32.mrb[87].mxu0 }
0x1c70   : > { %v6324_v5 = vpop.f32.mrb[80].mxu1 }
0x1c71   : > { %v14074_v23 = vmul.f32 0.25, %v6324_v5  ;;  %v10970_v42 = vpop.f32.mrb[81].mxu1 }
0x1c72   : > { %v6327_v48 = vpop.f32.mrb[82].mxu1  ;;  %v6550_v42 = vsel %vm4728_vm0, %v14098_v39, -inf }
0x1c73   : > { %v14078_v55 = vmul.f32 0.25, %v6327_v48  ;;  %v10971_v31 = vpop.f32.mrb[83].mxu1  ;;  %v6553_v35 = vsel %vm4728_vm0, %v14074_v23, -inf  ;;  %v14108_v48 = vmul.f32 0.25, %v6406_v10 }
0x1c74   : > { %6554 = vmax.xlane.f32.xlu1 %v6553_v35  ;;  %v6422_v11 = vpop.f32.mrb[88].mxu0 }
0x1c75   : > { %v6556_v33 = vsel %vm4728_vm0, %v14078_v55, -inf  ;;  %v10992_v41 = vpop.f32.mrb[89].mxu0 }
0x1c76   : > { %6557 = vmax.xlane.f32.xlu0 %v6556_v33  ;;  %v6425_v63 = vpop.f32.mrb[90].mxu0  ;;  %v14114_v41 = vmul.f32 0.25, %v6409_v28 }
0x1c77   : > { %v10993_v34 = vpop.f32.mrb[91].mxu0 }
0x1c78   : > { %6542 = vmax.xlane.f32.xlu1 %v6541_v43  ;;  %v6332_v27 = vpop.f32.mrb[84].mxu1  ;;  %v6571_v34 = vsel %vm4728_vm0, %v14108_v48, -inf }
0x1c79   : > { %v14088_v45 = vmul.f32 0.25, %v6332_v27  ;;  %v10974_v26 = vpop.f32.mrb[85].mxu1 }
0x1c7a   : > { %6545 = vmax.xlane.f32.xlu0 %v6544_v50  ;;  %v6335_v18 = vpop.f32.mrb[86].mxu1  ;;  %v6574_v50 = vsel %vm4728_vm0, %v14114_v41, -inf }
0x1c7b   : > { %v14094_v53 = vmul.f32 0.25, %v6335_v18  ;;  %v10975_v16 = vpop.f32.mrb[87].mxu1  ;;  %v6559_v62 = vsel %vm4728_vm0, %v14088_v45, -inf  ;;  %v14124_v18 = vmul.f32 0.25, %v6414_v24 }
0x1c7c   : > { %6560 = vmax.xlane.f32.xlu1 %v6559_v62 }
0x1c7d   : > { %v6562_v25 = vsel %vm4728_vm0, %v14094_v53, -inf }
0x1c7e   : > { %6563 = vmax.xlane.f32.xlu0 %v6562_v25 }
0x1c80   : > { %6548 = vmax.xlane.f32.xlu1 %v6547_v13  ;;  %v6340_v60 = vpop.f32.mrb[88].mxu1  ;;  %v14130_v13 = vmul.f32 0.25, %v6417_v57 }
0x1c81   : > { %v14104_v17 = vmul.f32 0.25, %v6340_v60  ;;  %v10978_v5 = vpop.f32.mrb[89].mxu1 }
0x1c82   : > { %6551 = vmax.xlane.f32.xlu0 %v6550_v42  ;;  %v6343_v7 = vpop.f32.mrb[90].mxu1  ;;  %v6577_v5 = vsel %vm4728_vm0, %v14124_v18, -inf }
0x1c83   : > { %v14110_v31 = vmul.f32 0.25, %v6343_v7  ;;  %v10979_v35 = vpop.f32.mrb[91].mxu1  ;;  %v6565_v33 = vsel %vm4728_vm0, %v14104_v17, -inf }
0x1c84   : > { %6566 = vmax.xlane.f32.xlu1 %v6565_v33  ;;  %v6580_v35 = vsel %vm4728_vm0, %v14130_v13, -inf  ;;  %v14140_v33 = vmul.f32 0.25, %v6422_v11 }
0x1c85   : > { %v6568_v43 = vsel %vm4728_vm0, %v14110_v31, -inf }
0x1c86   : > { %6569 = vmax.xlane.f32.xlu0 %v6568_v43 }
0x1c88   : > { %v6488_v10 = vpop.f32.mrb[92].mxu1  ;;  %6572 = vmax.xlane.f32.xlu1 %v6571_v34 }
0x1c89   : > { %v14120_v27 = vmul.f32 0.25, %v6488_v10  ;;  %v10998_v26 = vpop.f32.mrb[93].mxu1 }
0x1c8a   : > { %v6491_v16 = vpop.f32.mrb[94].mxu1  ;;  %6575 = vmax.xlane.f32.xlu0 %v6574_v50  ;;  %v14146_v26 = vmul.f32 0.25, %v6425_v63 }
0x1c8b   : > { %v14126_v28 = vmul.f32 0.25, %v6491_v16  ;;  %v10999_v62 = vpop.f32.mrb[95].mxu1  ;;  %v6589_v25 = vsel %vm4728_vm0, %v14120_v27, -inf  ;;  %v6583_v16 = vsel %vm4728_vm0, %v14140_v33, -inf }
0x1c8c   : > { %6590 = vmax.xlane.f32.xlu1 %v6589_v25 }
0x1c8d   : > { %v6592_v60 = vsel %vm4728_vm0, %v14126_v28, -inf }
0x1c8e   : > { %6593 = vmax.xlane.f32.xlu0 %v6592_v60  ;;  %v6586_v60 = vsel %vm4728_vm0, %v14146_v26, -inf }
0x1c90   : > { %v6496_v24 = vpop.f32.mrb[96].mxu1  ;;  %6578 = vmax.xlane.f32.xlu1 %v6577_v5 }
0x1c91   : > { %v14136_v42 = vmul.f32 0.25, %v6496_v24  ;;  %v11002_v7 = vpop.f32.mrb[97].mxu1 }
0x1c92   : > { %v6499_v43 = vpop.f32.mrb[98].mxu1  ;;  %6581 = vmax.xlane.f32.xlu0 %v6580_v35 }
0x1c93   : > { %v14142_v57 = vmul.f32 0.25, %v6499_v43  ;;  %v11003_v34 = vpop.f32.mrb[99].mxu1  ;;  %v6595_v10 = vsel %vm4728_vm0, %v14136_v42, -inf }
0x1c94   : > { %6596 = vmax.xlane.f32.xlu1 %v6595_v10 }
0x1c95   : > { %v6598_v50 = vsel %vm4728_vm0, %v14142_v57, -inf }
0x1c96   : > { %6599 = vmax.xlane.f32.xlu0 %v6598_v50 }
0x1c98   : > { %v6504_v11 = vpop.f32.mrb[100].mxu1  ;;  %6584 = vmax.xlane.f32.xlu1 %v6583_v16 }
0x1c99   : > { %v14152_v62 = vmul.f32 0.25, %v6504_v11  ;;  %v11006_v25 = vpop.f32.mrb[101].mxu1 }
0x1c9a   : > { %v6507_v5 = vpop.f32.mrb[102].mxu1  ;;  %6587 = vmax.xlane.f32.xlu0 %v6586_v60 }
0x1c9b   : > { %v14156_v24 = vmul.f32 0.25, %v6507_v5  ;;  %v11007_v63 = vpop.f32.mrb[103].mxu1  ;;  %v6601_v7 = vsel %vm4728_vm0, %v14152_v62, -inf }
0x1c9c   : > { %6602 = vmax.xlane.f32.xlu1 %v6601_v7 }
0x1c9d   : > { %v6604_v35 = vsel %vm4728_vm0, %v14156_v24, -inf }
0x1c9e   : > { %6605 = vmax.xlane.f32.xlu0 %v6604_v35 }
0x1ce9   : > { %v6537_v43 = vpop.xlane.xlu1 %6536 }
0x1cea   : > { %v6607_v34 = vsub.f32 %v14066_v15, %v6537_v43 }
0x1ceb   : > { %v6540_v10 = vpop.xlane.xlu0 %6539 }
0x1cec   : > { %v6631_v50 = vmul.f32 1.442695, %v6607_v34  ;;  %v6608_v16 = vsub.f32 %v14068_v19, %v6540_v10 }
0x1cee   : > { %11803 = vpow2.f32 %v6631_v50  ;;  %v6633_v11 = vmul.f32 1.442695, %v6608_v16 }
0x1cf0   : > { %11805 = vpow2.f32 %v6633_v11 }
0x1cf8   : > { %v14164_v25 = vpop.eup %11803 }
0x1cf9   : > { %v6679_v60 = vsel %vm4728_vm0, %v14164_v25, 0.0 }
0x1cfa   : > { %v14168_v5 = vpop.eup %11805  ;;  %6680 = vadd.xlane.f32.xlu1 %v6679_v60 }
0x1cfb   : > { %v6682_v63 = vsel %vm4728_vm0, %v14168_v5, 0.0 }
0x1cfc   : > { %6683 = vadd.xlane.f32.xlu0 %v6682_v63 }
0x1d01   : > { %v6555_v15 = vpop.xlane.xlu1 %6554 }
0x1d02   : > { %v6613_v7 = vsub.f32 %v14074_v23, %v6555_v15 }
0x1d03   : > { %v6558_v35 = vpop.xlane.xlu0 %6557 }
0x1d04   : > { %v6643_v19 = vmul.f32 1.442695, %v6613_v7  ;;  %v6614_v43 = vsub.f32 %v14078_v55, %v6558_v35 }
0x1d05   : > { %v6543_v34 = vpop.xlane.xlu1 %6542 }
0x1d06   : > { %11807 = vpow2.f32 %v6643_v19  ;;  %v6645_v10 = vmul.f32 1.442695, %v6614_v43  ;;  %v6609_v50 = vsub.f32 %v14076_v54, %v6543_v34 }
0x1d07   : > { %v6546_v16 = vpop.xlane.xlu0 %6545 }
0x1d08   : > { %11809 = vpow2.f32 %v6645_v10  ;;  %v6635_v11 = vmul.f32 1.442695, %v6609_v50  ;;  %v6610_v60 = vsub.f32 %v14082_v29, %v6546_v16 }
0x1d09   : > { %v6561_v21 = vpop.xlane.xlu1 %6560 }
0x1d0a   : > { %11811 = vpow2.f32 %v6635_v11  ;;  %v6637_v63 = vmul.f32 1.442695, %v6610_v60  ;;  %v6615_v6 = vsub.f32 %v14088_v45, %v6561_v21 }
0x1d0b   : > { %v6564_v23 = vpop.xlane.xlu0 %6563 }
0x1d0c   : > { %11813 = vpow2.f32 %v6637_v63  ;;  %v6647_v15 = vmul.f32 1.442695, %v6615_v6  ;;  %v6616_v55 = vsub.f32 %v14094_v53, %v6564_v23 }
0x1d0d   : > { %v6549_v7 = vpop.xlane.xlu1 %6548 }
0x1d0e   : > { %11815 = vpow2.f32 %v6647_v15  ;;  %v6649_v35 = vmul.f32 1.442695, %v6616_v55  ;;  %v6611_v54 = vsub.f32 %v14092_v61, %v6549_v7 }
0x1d0f   : > { %v6552_v19 = vpop.xlane.xlu0 %6551 }
0x1d10   : > { %v14179_v43 = vpop.eup %11807  ;;  %11817 = vpow2.f32 %v6649_v35  ;;  %v6639_v29 = vmul.f32 1.442695, %v6611_v54  ;;  %v6612_v34 = vsub.f32 %v14098_v39, %v6552_v19 }
0x1d11   : > { %v6567_v10 = vpop.xlane.xlu1 %6566  ;;  %v6697_v21 = vsel %vm4728_vm0, %v14179_v43, 0.0 }
0x1d12   : > { %v14184_v45 = vpop.eup %11809  ;;  %11819 = vpow2.f32 %v6639_v29  ;;  %v6641_v6 = vmul.f32 1.442695, %v6612_v34  ;;  %v6617_v53 = vsub.f32 %v14104_v17, %v6567_v10  ;;  %6698 = vadd.xlane.f32.xlu1 %v6697_v21 }
0x1d13   : > { %v6570_v50 = vpop.xlane.xlu0 %6569  ;;  %v6700_v61 = vsel %vm4728_vm0, %v14184_v45, 0.0 }
0x1d14   : > { %v14189_v16 = vpop.eup %11811  ;;  %11821 = vpow2.f32 %v6641_v6  ;;  %v6651_v11 = vmul.f32 1.442695, %v6617_v53  ;;  %v6618_v39 = vsub.f32 %v14110_v31, %v6570_v50  ;;  %6701 = vadd.xlane.f32.xlu0 %v6700_v61 }
0x1d15   : > { %v6573_v60 = vpop.xlane.xlu1 %6572  ;;  %v6685_v63 = vsel %vm4728_vm0, %v14189_v16, 0.0 }
0x1d16   : > { %v14194_v23 = vpop.eup %11813  ;;  %11823 = vpow2.f32 %v6651_v11  ;;  %v6653_v17 = vmul.f32 1.442695, %v6618_v39  ;;  %v6619_v15 = vsub.f32 %v14108_v48, %v6573_v60  ;;  %6686 = vadd.xlane.f32.xlu1 %v6685_v63 }
0x1d17   : > { %v6576_v55 = vpop.xlane.xlu0 %6575  ;;  %v6688_v7 = vsel %vm4728_vm0, %v14194_v23, 0.0 }
0x1d18   : > { %v14199_v35 = vpop.eup %11815  ;;  %11825 = vpow2.f32 %v6653_v17  ;;  %v6655_v31 = vmul.f32 1.442695, %v6619_v15  ;;  %v6620_v54 = vsub.f32 %v14114_v41, %v6576_v55  ;;  %6689 = vadd.xlane.f32.xlu0 %v6688_v7 }
0x1d19   : > { %v6591_v19 = vpop.xlane.xlu1 %6590  ;;  %v6703_v29 = vsel %vm4728_vm0, %v14199_v35, 0.0 }
0x1d1a   : > { %v14204_v34 = vpop.eup %11817  ;;  %11827 = vpow2.f32 %v6655_v31  ;;  %v6657_v48 = vmul.f32 1.442695, %v6620_v54  ;;  %v6625_v10 = vsub.f32 %v14120_v27, %v6591_v19  ;;  %6704 = vadd.xlane.f32.xlu1 %v6703_v29 }
0x1d1b   : > { %v6594_v21 = vpop.xlane.xlu0 %6593  ;;  %v6706_v6 = vsel %vm4728_vm0, %v14204_v34, 0.0 }
0x1d1c   : > { %v14209_v53 = vpop.eup %11819  ;;  %11829 = vpow2.f32 %v6657_v48  ;;  %v6667_v41 = vmul.f32 1.442695, %v6625_v10  ;;  %v6626_v50 = vsub.f32 %v14126_v28, %v6594_v21  ;;  %6707 = vadd.xlane.f32.xlu0 %v6706_v6 }
0x1d1d   : > { %v6579_v61 = vpop.xlane.xlu1 %6578  ;;  %v6691_v11 = vsel %vm4728_vm0, %v14209_v53, 0.0 }
0x1d1e   : > { %v14214_v39 = vpop.eup %11821  ;;  %11831 = vpow2.f32 %v6667_v41  ;;  %v6669_v27 = vmul.f32 1.442695, %v6626_v50  ;;  %v6621_v60 = vsub.f32 %v14124_v18, %v6579_v61  ;;  %6692 = vadd.xlane.f32.xlu1 %v6691_v11 }
0x1d1f   : > { %v6582_v63 = vpop.xlane.xlu0 %6581  ;;  %v6694_v17 = vsel %vm4728_vm0, %v14214_v39, 0.0 }
0x1d20   : > { %v14219_v15 = vpop.eup %11823  ;;  %11833 = vpow2.f32 %v6669_v27  ;;  %v6659_v28 = vmul.f32 1.442695, %v6621_v60  ;;  %v6622_v55 = vsub.f32 %v14130_v13, %v6582_v63  ;;  %6695 = vadd.xlane.f32.xlu0 %v6694_v17 }
0x1d21   : > { %v6597_v7 = vpop.xlane.xlu1 %6596  ;;  %v6709_v31 = vsel %vm4728_vm0, %v14219_v15, 0.0 }
0x1d22   : > { %v14224_v54 = vpop.eup %11825  ;;  %11835 = vpow2.f32 %v6659_v28  ;;  %v6661_v18 = vmul.f32 1.442695, %v6622_v55  ;;  %v6627_v19 = vsub.f32 %v14136_v42, %v6597_v7  ;;  %6710 = vadd.xlane.f32.xlu1 %v6709_v31 }
0x1d23   : > { %v6600_v29 = vpop.xlane.xlu0 %6599  ;;  %v6712_v48 = vsel %vm4728_vm0, %v14224_v54, 0.0 }
0x1d24   : > { %v14229_v10 = vpop.eup %11827  ;;  %11837 = vpow2.f32 %v6661_v18  ;;  %v6671_v13 = vmul.f32 1.442695, %v6627_v19  ;;  %v6628_v21 = vsub.f32 %v14142_v57, %v6600_v29  ;;  %6713 = vadd.xlane.f32.xlu0 %v6712_v48 }
0x1d25   : > { %v6585_v6 = vpop.xlane.xlu1 %6584  ;;  %v6715_v41 = vsel %vm4728_vm0, %v14229_v10, 0.0 }
0x1d26   : > { %v14234_v50 = vpop.eup %11829  ;;  %11839 = vpow2.f32 %v6671_v13  ;;  %v6673_v42 = vmul.f32 1.442695, %v6628_v21  ;;  %v6623_v61 = vsub.f32 %v14140_v33, %v6585_v6  ;;  %6716 = vadd.xlane.f32.xlu1 %v6715_v41 }
0x1d27   : > { %v6588_v11 = vpop.xlane.xlu0 %6587  ;;  %v6718_v27 = vsel %vm4728_vm0, %v14234_v50, 0.0 }
0x1d28   : > { %v14239_v60 = vpop.eup %11831  ;;  %11841 = vpow2.f32 %v6673_v42  ;;  %v6663_v57 = vmul.f32 1.442695, %v6623_v61  ;;  %v6624_v63 = vsub.f32 %v14146_v26, %v6588_v11  ;;  %6719 = vadd.xlane.f32.xlu0 %v6718_v27 }
0x1d29   : > { %v6603_v17 = vpop.xlane.xlu1 %6602  ;;  %v6733_v28 = vsel %vm4728_vm0, %v14239_v60, 0.0 }
0x1d2a   : > { %v14244_v55 = vpop.eup %11833  ;;  %11843 = vpow2.f32 %v6663_v57  ;;  %v6665_v33 = vmul.f32 1.442695, %v6624_v63  ;;  %v6629_v7 = vsub.f32 %v14152_v62, %v6603_v17  ;;  %6734 = vadd.xlane.f32.xlu1 %v6733_v28 }
0x1d2b   : > { %v6606_v31 = vpop.xlane.xlu0 %6605  ;;  %v6736_v18 = vsel %vm4728_vm0, %v14244_v55, 0.0 }
0x1d2c   : > { %v14249_v19 = vpop.eup %11835  ;;  %11845 = vpow2.f32 %v6665_v33  ;;  %v6675_v26 = vmul.f32 1.442695, %v6629_v7  ;;  %v6630_v29 = vsub.f32 %v14156_v24, %v6606_v31  ;;  %6737 = vadd.xlane.f32.xlu0 %v6736_v18 }
0x1d2d   : > { %v6721_v48 = vsel %vm4728_vm0, %v14249_v19, 0.0 }
0x1d2e   : > { %v14254_v13 = vpop.eup %11837  ;;  %11847 = vpow2.f32 %v6675_v26  ;;  %v6677_v21 = vmul.f32 1.442695, %v6630_v29  ;;  %6722 = vadd.xlane.f32.xlu1 %v6721_v48 }
0x1d2f   : > { %v6724_v62 = vsel %vm4728_vm0, %v14254_v13, 0.0 }
0x1d30   : > { %v14258_v6 = vpop.eup %11839  ;;  %11849 = vpow2.f32 %v6677_v21  ;;  %6725 = vadd.xlane.f32.xlu0 %v6724_v62 }
0x1d31   : > { %v6739_v41 = vsel %vm4728_vm0, %v14258_v6, 0.0 }
0x1d32   : > { %v14262_v24 = vpop.eup %11841  ;;  %6740 = vadd.xlane.f32.xlu1 %v6739_v41 }
0x1d33   : > { %v6742_v42 = vsel %vm4728_vm0, %v14262_v24, 0.0 }
0x1d34   : > { %v14266_v61 = vpop.eup %11843  ;;  %6743 = vadd.xlane.f32.xlu0 %v6742_v42 }
0x1d35   : > { %v6727_v11 = vsel %vm4728_vm0, %v14266_v61, 0.0 }
0x1d36   : > { %v14270_v27 = vpop.eup %11845  ;;  %6728 = vadd.xlane.f32.xlu1 %v6727_v11 }
0x1d37   : > { %v6730_v57 = vsel %vm4728_vm0, %v14270_v27, 0.0 }
0x1d38   : > { %v14274_v63 = vpop.eup %11847  ;;  %6731 = vadd.xlane.f32.xlu0 %v6730_v57 }
0x1d39   : > { %v6745_v17 = vsel %vm4728_vm0, %v14274_v63, 0.0 }
0x1d3a   : > { %v14278_v28 = vpop.eup %11849  ;;  %6746 = vadd.xlane.f32.xlu1 %v6745_v17 }
0x1d3b   : > { %v6748_v33 = vsel %vm4728_vm0, %v14278_v28, 0.0 }
0x1d3c   : > { %6749 = vadd.xlane.f32.xlu0 %v6748_v33 }
0x1d87   : > { %v6681_v7 = vpop.xlane.xlu1 %6680 }
0x1d88   : > { %11851 = vrcp.f32 %v6681_v7 }
0x1d89   : > { %v6684_v31 = vpop.xlane.xlu0 %6683 }
0x1d8a   : > { %11853 = vrcp.f32 %v6684_v31 }
0x1d92   : > { %v11852_v18 = vpop.eup %11851 }
0x1d93   : > { %v6775_v29 = vmul.f32 %v11852_v18, %v14164_v25 }
0x1d94   : > { %v11854_v26 = vpop.eup %11853 }
0x1d95   : > { %v6776_v48 = vmul.f32 %v11854_v26, %v14168_v5 }
0x1d97   : > { %v6799_v21 = vpack.c.bf16 %v6776_v48, %v6775_v29 }
0x1d99   : > { %v6815_v62 = vsel %vm4728_vm0, %v6799_v21, 0 }
0x1d9a   : > { %11009 = vmatpush3.bf16.xpose.msra.mxu0 %v6815_v62 }
0x1d9b   : > { %11010 = vmatprep.subr.bf16.mxu0 %v12156_v47 }
0x1d9f   : > { %v6699_v41 = vpop.xlane.xlu1 %6698 }
0x1da0   : > { %11855 = vrcp.f32 %v6699_v41 }
0x1da1   : > { %v6702_v42 = vpop.xlane.xlu0 %6701 }
0x1da2   : > { %11857 = vrcp.f32 %v6702_v42 }
0x1da3   : > { %v6687_v11 = vpop.xlane.xlu1 %6686 }
0x1da4   : > { %11859 = vrcp.f32 %v6687_v11 }
0x1da5   : > { %v6690_v57 = vpop.xlane.xlu0 %6689 }
0x1da6   : > { %11861 = vrcp.f32 %v6690_v57 }
0x1da7   : > { %v6705_v17 = vpop.xlane.xlu1 %6704 }
0x1da8   : > { %11863 = vrcp.f32 %v6705_v17 }
0x1da9   : > { %v6708_v33 = vpop.xlane.xlu0 %6707 }
0x1daa   : > { %v11856_v25 = vpop.eup %11855  ;;  %11865 = vrcp.f32 %v6708_v33 }
0x1dab   : > { %v6693_v5 = vpop.xlane.xlu1 %6692  ;;  %v6781_v18 = vmul.f32 %v11856_v25, %v14179_v43 }
0x1dac   : > { %v11858_v7 = vpop.eup %11857  ;;  %11867 = vrcp.f32 %v6693_v5 }
0x1dad   : > { %v6696_v31 = vpop.xlane.xlu0 %6695  ;;  %v6782_v26 = vmul.f32 %v11858_v7, %v14184_v45 }
0x1dae   : > { %v11860_v29 = vpop.eup %11859  ;;  %11869 = vrcp.f32 %v6696_v31 }
0x1daf   : > { %v6711_v48 = vpop.xlane.xlu1 %6710  ;;  %v6802_v21 = vpack.c.bf16 %v6782_v26, %v6781_v18  ;;  %v6777_v11 = vmul.f32 %v11860_v29, %v14189_v16 }
0x1db0   : > { %v11862_v62 = vpop.eup %11861  ;;  %11871 = vrcp.f32 %v6711_v48 }
0x1db1   : > { %v6714_v41 = vpop.xlane.xlu0 %6713  ;;  %v6868_v42 = vsel %vm4728_vm0, %v6802_v21, 0  ;;  %v6778_v57 = vmul.f32 %v11862_v62, %v14194_v23 }
0x1db2   : > { %v11864_v17 = vpop.eup %11863  ;;  %11873 = vrcp.f32 %v6714_v41  ;;  %11019 = vmatpush3.bf16.xpose.msra.mxu1 %v6868_v42 }
0x1db3   : > { %v6717_v33 = vpop.xlane.xlu1 %6716  ;;  %v6800_v43 = vpack.c.bf16 %v6778_v57, %v6777_v11  ;;  %11020 = vmatprep.subr.bf16.mxu1 %v12156_v47  ;;  %v6783_v7 = vmul.f32 %v11864_v17, %v14199_v35 }
0x1db4   : > { %v11866_v45 = vpop.eup %11865  ;;  %11875 = vrcp.f32 %v6717_v33 }
0x1db5   : > { %v6720_v25 = vpop.xlane.xlu0 %6719  ;;  %v6818_v5 = vsel %vm4728_vm0, %v6800_v43, 0  ;;  %v6784_v31 = vmul.f32 %v11866_v45, %v14204_v34 }
0x1db6   : > { %v11868_v18 = vpop.eup %11867  ;;  %11877 = vrcp.f32 %v6720_v25  ;;  %11011 = vmatpush3.bf16.xpose.msra.mxu0 %v6818_v5 }
0x1db7   : > { %v6735_v16 = vpop.xlane.xlu1 %6734  ;;  %v6803_v23 = vpack.c.bf16 %v6784_v31, %v6783_v7  ;;  %11012 = vmatprep.subr.bf16.mxu0 %v12156_v47  ;;  %v6779_v21 = vmul.f32 %v11868_v18, %v14209_v53 }
0x1db8   : > { %v11870_v26 = vpop.eup %11869  ;;  %11879 = vrcp.f32 %v6735_v16 }
0x1db9   : > { %v6738_v29 = vpop.xlane.xlu0 %6737  ;;  %v6871_v48 = vsel %vm4728_vm0, %v6803_v23, 0  ;;  %v6780_v62 = vmul.f32 %v11870_v26, %v14214_v39 }
0x1dba   : > { %v11872_v41 = vpop.eup %11871  ;;  %11881 = vrcp.f32 %v6738_v29  ;;  %11021 = vmatpush3.bf16.xpose.msra.mxu1 %v6871_v48 }
0x1dbb   : > { %v6723_v35 = vpop.xlane.xlu1 %6722  ;;  %v6801_v34 = vpack.c.bf16 %v6780_v62, %v6779_v21  ;;  %11022 = vmatprep.subr.bf16.mxu1 %v12156_v47  ;;  %v6785_v17 = vmul.f32 %v11872_v41, %v14219_v15 }
0x1dbc   : > { %v11874_v42 = vpop.eup %11873  ;;  %11883 = vrcp.f32 %v6723_v35 }
0x1dbd   : > { %v6726_v11 = vpop.xlane.xlu0 %6725  ;;  %v6821_v57 = vsel %vm4728_vm0, %v6801_v34, 0  ;;  %v6786_v33 = vmul.f32 %v11874_v42, %v14224_v54 }
0x1dbe   : > { %v11876_v43 = vpop.eup %11875  ;;  %11885 = vrcp.f32 %v6726_v11  ;;  %11013 = vmatpush3.bf16.xpose.msra.mxu0 %v6821_v57 }
0x1dbf   : > { %v6741_v53 = vpop.xlane.xlu1 %6740  ;;  %v6804_v39 = vpack.c.bf16 %v6786_v33, %v6785_v17  ;;  %11028 = vmatprep.subr.bf16.mxu0 %v12156_v47  ;;  %v6787_v7 = vmul.f32 %v11876_v43, %v14229_v10 }
0x1dc0   : > { %v11878_v45 = vpop.eup %11877  ;;  %11887 = vrcp.f32 %v6741_v53 }
0x1dc1   : > { %v6744_v25 = vpop.xlane.xlu0 %6743  ;;  %v6874_v5 = vsel %vm4728_vm0, %v6804_v39, 0  ;;  %v6788_v31 = vmul.f32 %v11878_v45, %v14234_v50  ;;  %v11637_v45 = vld [vmem:[%s15265_s10 + $0x30] sm:$0xff]  }
0x1dc2   : > { %v11880_v18 = vpop.eup %11879  ;;  %11889 = vrcp.f32 %v6744_v25  ;;  %11023 = vmatpush3.bf16.xpose.msra.mxu1 %v6874_v5 }
0x1dc3   : > { %v6729_v15 = vpop.xlane.xlu1 %6728  ;;  %v6805_v54 = vpack.c.bf16 %v6788_v31, %v6787_v7  ;;  %11038 = vmatprep.subr.bf16.mxu1 %v12156_v47  ;;  %v6793_v10 = vmul.f32 %v11880_v18, %v14239_v60 }
0x1dc4   : > { %v11882_v16 = vpop.eup %11881  ;;  %11891 = vrcp.f32 %v6729_v15 }
0x1dc5   : > { %11015 = vmatmul.mubr.msk.bf16.vlgmr.msra.gmra.mrb[92].mxu0 %vm4728_vm0, %v6179_v32  ;;  %v6732_v23 = vpop.xlane.xlu0 %6731  ;;  %v6921_v26 = vsel %vm4728_vm0, %v6805_v54, 0  ;;  %v6794_v50 = vmul.f32 %v11882_v16, %v14244_v55 }
0x1dc6   : > { %v11884_v29 = vpop.eup %11883  ;;  %11893 = vrcp.f32 %v6732_v23  ;;  %11029 = vmatpush3.bf16.xpose.msra.mxu0 %v6921_v26  ;;  %11034 = vmatprep.mubr.msk.bf16.mxu0 %vm15224_vm5, %v12156_v47 }
0x1dc7   : > { %v6747_v48 = vpop.xlane.xlu1 %6746  ;;  %v6808_v21 = vpack.c.bf16 %v6794_v50, %v6793_v10  ;;  %11030 = vmatprep.subr.bf16.mxu0 %v12156_v47  ;;  %v6789_v60 = vmul.f32 %v11884_v29, %v14249_v19 }
0x1dc8   : > { %v11886_v58 = vpop.eup %11885  ;;  %11895 = vrcp.f32 %v6747_v48 }
0x1dc9   : > { %11025 = vmatmul.mubr.msk.bf16.vlgmr.msra.gmra.mrb[104].mxu1 %vm4728_vm0, %v6180_v56  ;;  %v6750_v20 = vpop.xlane.xlu0 %6749  ;;  %v6974_v32 = vsel %vm4728_vm0, %v6808_v21, 0  ;;  %v6790_v55 = vmul.f32 %v11886_v58, %v14254_v13 }
0x1dca   : > { %v11888_v62 = vpop.eup %11887  ;;  %11897 = vrcp.f32 %v6750_v20  ;;  %11039 = vmatpush3.bf16.xpose.msra.mxu1 %v6974_v32  ;;  %11044 = vmatprep.mubr.msk.bf16.mxu1 %vm15224_vm5, %v12156_v47 }
0x1dcb   : > { %v6806_v41 = vpack.c.bf16 %v6790_v55, %v6789_v60  ;;  %11040 = vmatprep.subr.bf16.mxu1 %v12156_v47  ;;  %v6795_v14 = vmul.f32 %v11888_v62, %v14258_v6 }
0x1dcc   : > { %v11890_v35 = vpop.eup %11889 }
0x1dcd   : > { %v6924_v3 = vsel %vm4728_vm0, %v6806_v41, 0  ;;  %v6796_v56 = vmul.f32 %v11890_v35, %v14262_v24 }
0x1dce   : > { %v11892_v34 = vpop.eup %11891  ;;  %11031 = vmatpush3.bf16.xpose.msra.mxu0 %v6924_v3 }
0x1dcf   : > { %v6809_v19 = vpack.c.bf16 %v6796_v56, %v6795_v14  ;;  %11032 = vmatprep.subr.bf16.mxu0 %v12156_v47  ;;  %v6791_v11 = vmul.f32 %v11892_v34, %v14266_v61 }
0x1dd0   : > { %v11894_v13 = vpop.eup %11893 }
0x1dd1   : > { %v6977_v42 = vsel %vm4728_vm0, %v6809_v19, 0  ;;  %v6792_v57 = vmul.f32 %v11894_v13, %v14270_v27  ;;  %v15329_v27 = vmov 0  }
0x1dd2   : > { %v11896_v17 = vpop.eup %11895  ;;  %11041 = vmatpush3.bf16.xpose.msra.mxu1 %v6977_v42 }
0x1dd3   : > { %v6807_v33 = vpack.c.bf16 %v6792_v57, %v6791_v11  ;;  %11042 = vmatprep.subr.bf16.mxu1 %v12156_v47  ;;  %v6797_v43 = vmul.f32 %v11896_v17, %v14274_v63  ;;  %v11635_v63 = vld [vmem:[%s15265_s10 + $0x20] sm:$0xff]  }
0x1dd4   : > { %v11898_v6 = vpop.eup %11897 }
0x1dd5   : > { %v6927_v24 = vsel %vm4728_vm0, %v6807_v33, 0  ;;  %v6798_v53 = vmul.f32 %v11898_v6, %v14278_v28  ;;  %v11636_v28 = vld [vmem:[%s15265_s10 + $0x28] sm:$0xff]  }
0x1dd6   : > { %11033 = vmatpush3.bf16.xpose.msra.mxu0 %v6927_v24 }
0x1dd7   : > { %v6810_v39 = vpack.c.bf16 %v6798_v53, %v6797_v43  ;;  %11048 = vmatprep.subr.bf16.mxu0 %v12156_v47 }
0x1dd9   : > { %v6980_v61 = vsel %vm4728_vm0, %v6810_v39, 0 }
0x1dda   : > { %11043 = vmatpush3.bf16.xpose.msra.mxu1 %v6980_v61 }
0x1ddd   : > { %11035 = vmatmul.mubr.msk.bf16.vlgmr.msra.gmra.mrb[96].mxu0 %vm4728_vm0, %v6181_v30 }
0x1dde   : > { %11056 = vmatprep.mubr.msk.bf16.mxu0 %vm15224_vm5, %v12156_v47  ;;  %11049 = vmatpush3.bf16.msra.mxu0 %v11635_v63 }
0x1ddf   : > { %11050 = vmatprep.subr.bf16.mxu0 %v12156_v47 }
0x1de1   : > { %11045 = vmatmul.mubr.msk.bf16.vlgmr.msra.gmra.mrb[108].mxu1 %vm4728_vm0, %v6182_v2  ;;  %vm15330_vm0 = vmmov %vm15315_vm9 }
0x1de2   : > { %7336 = vmatprep.mubr.bf16.mxu1 %v15329_v27  ;;  %11051 = vmatpush3.bf16.msra.mxu0 %v11636_v28  ;;  %vm15331_vm9 = vmmov %vm15330_vm0 }
0x1de3   : > { %11052 = vmatprep.subr.bf16.mxu0 %v12156_v47  ;;  %vm15332_vm11 = vmmov %vm15330_vm0 }
0x1de4   : > { %vm15333_vm6 = vmmov %vm15330_vm0 }
0x1de5   : > { %vm15334_vm7 = vmmov %vm15330_vm0 }
0x1de6   : > { %11053 = vmatpush3.bf16.msra.mxu0 %v11637_v45  ;;  %vm15336_vm12 = vmmov %vm15330_vm0 }
0x1de7   : > { %11054 = vmatprep.subr.bf16.mxu0 %v12156_v47  ;;  %vm15337_vm13 = vmmov %vm15330_vm0 }
0x1de8   : > { %vm15338_vm8 = vmmov %vm15330_vm0 }
0x1de9   : > { %vm15339_vm2 = vmmov %vm15330_vm0 }
0x1dea   : > { %11055 = vmatpush3.bf16.msra.mxu0 %v11638_v46  ;;  %vm15340_vm1 = vmmov %vm15330_vm0 }
0x1deb   : > { %vm15341_vm14 = vmmov %vm15330_vm0 }
0x1dec   : > { %vm15342_vm15 = vmmov %vm15330_vm0 }
0x1ded   : > { %vm15343_vm3 = vmmov %vm15330_vm0 }
0x1dee   : > { %vm15344_vm10 = vmmov %vm15330_vm0 }
0x1def   : > { %vm15345_vm4 = vmmov %vm15330_vm0 }
0x1e98   : > { %v6857_v8 = vpop.f32.mrb[92].mxu0 }
0x1e99   : > { %v11016_v49 = vpop.f32.mrb[93].mxu0 }
0x1e9a   : > { %v6860_v40 = vpop.f32.mrb[94].mxu0 }
0x1e9b   : > { %v7023_v2 = vpack.c.bf16 %v6860_v40, %v6857_v8  ;;  %v11017_v30 = vpop.f32.mrb[95].mxu0 }
0x1e9c   : > { %v6910_v25 = vpop.f32.mrb[104].mxu1 }
0x1e9d   : > { %v11026_v5 = vpop.f32.mrb[105].mxu1  ;;  %7027 = vxpose.xlu1.c.b16.start [1/4] (short) (narrow) %v7023_v2, 48 }
0x1e9e   : > { %v6913_v7 = vpop.f32.mrb[106].mxu1 }
0x1e9f   : > { %v7024_v31 = vpack.c.bf16 %v6913_v7, %v6910_v25  ;;  %v11027_v18 = vpop.f32.mrb[107].mxu1 }
0x1ea1   : > { %7028 = vxpose.xlu1.c.b16.cont [2/4] (short) (narrow) %v7024_v31, 48 }
0x1eb0   : > { %v6963_v15 = vpop.f32.mrb[96].mxu0 }
0x1eb1   : > { %v11036_v54 = vpop.f32.mrb[97].mxu0 }
0x1eb2   : > { %v6966_v16 = vpop.f32.mrb[98].mxu0 }
0x1eb3   : > { %v7025_v23 = vpack.c.bf16 %v6966_v16, %v6963_v15  ;;  %v11037_v26 = vpop.f32.mrb[99].mxu0 }
0x1eb4   : > { %v7016_v10 = vpop.f32.mrb[108].mxu1 }
0x1eb5   : > { %v11046_v50 = vpop.f32.mrb[109].mxu1  ;;  %7029 = vxpose.xlu1.c.b16.cont [3/4] (short) (narrow) %v7025_v23, 48 }
0x1eb6   : > { %v7019_v29 = vpop.f32.mrb[110].mxu1 }
0x1eb7   : > { %v7026_v48 = vpack.c.bf16 %v7019_v29, %v7016_v10  ;;  %v11047_v21 = vpop.f32.mrb[111].mxu1 }
0x1eb9   : > { %7030 = vxpose.xlu1.c.b16.end [4/4] (short) (narrow) %v7026_v48, 48 }
0x1f13   : > { %v7035_v58 = vpop.trf.xlu1 }
0x1f14   : > { %11057 = vmatmul.mubr.msk.bf16.vlgmr.msra.gmra.mrb[100].mxu0 %vm15330_vm0, %v7035_v58 }
0x1f15   : > { %11060 = vmatprep.mubr.msk.bf16.mxu0 %vm15224_vm5, %v12156_v47 }
0x1f17   : > { %v7036_v20 = vpop.trf.xlu1 }
0x1f1b   : > { %v7037_v32 = vpop.trf.xlu1 }
0x1f1c   : > { %11061 = vmatmul.mubr.msk.bf16.gmra.mrb[104].mxu0 %vm15331_vm9, %v7036_v20  ;;  %vm15346_vm9 = vmmov %vm15330_vm0 }
0x1f1d   : > { %11064 = vmatprep.mubr.msk.bf16.mxu0 %vm15224_vm5, %v12156_v47  ;;  %vm15335_vm5 = vmmov %vm15330_vm0 }
0x1f24   : > { %11065 = vmatmul.mubr.msk.bf16.gmra.mrb[108].mxu0 %vm15332_vm11, %v7037_v32  ;;  %v11641_v32 = vld [vmem:[%s15277_s11 + $0x44] ss:$8 sps:$4 sm:$0xff]   ;;  %vm15349_vm11 = vmmov %vm15330_vm0 }
0x1f25   : > { %7304 = vmatprep.subr.bf16.mxu1 %v11641_v32 }
0x1fe7   : > { %v7110_v60 = vpop.f32.mrb[100].mxu0 }
0x1fe8   : > { %v7133_v55 = vadd.f32 %v7110_v60, %v13926_v4  ;;  %v11058_v62 = vpop.f32.mrb[101].mxu0  ;;  %v11639_v60 = vld [vmem:[%s15277_s11 + $0x40] ss:$8 sps:$4 sm:$0xff]  }
0x1fe9   : > { %v7113_v41 = vpop.f32.mrb[102].mxu0  ;;  %7305 = vmatpush1.bf16.msra.mxu1 %v11639_v60  ;;  %v11642_v62 = vld [vmem:[%s15277_s11 + $0x50] ss:$8 sps:$4 sm:$0xff]  }
0x1fea   : > { %v7134_v35 = vadd.f32 %v7113_v41, %v13929_v59  ;;  %v11059_v3 = vpop.f32.mrb[103].mxu0  ;;  %v7139_v14 = vsel %vm15333_vm6, %v7133_v55, 0.0  ;;  %v11647_v41 = vld [vmem:[%s15277_s11 + $0x64] ss:$8 sps:$4 sm:$0xff]   ;;  %vm15350_vm6 = vmmov %vm15330_vm0 }
0x1feb   : > { %7140 = vadd.xlane.f32.xlu0 %v7139_v14  ;;  %v11650_v3 = vld [vmem:[%s15277_s11 + $0x74] ss:$8 sps:$4 sm:$0xff]   ;;  %v11648_v14 = vld [vmem:[%s15277_s11 + $0x70] ss:$8 sps:$4 sm:$0xff]  }
0x1fec   : > { %v7142_v56 = vsel %vm15334_vm7, %v7134_v35, 0.0 }
0x1fef   : > { %7143 = vadd.xlane.f32.xlu0 %v7142_v56  ;;  %v7118_v34 = vpop.f32.mrb[104].mxu0  ;;  %v11651_v56 = vld [vmem:[%s15281_s16 + $0xc0] sm:$0xff]  }
0x1ff0   : > { %v14371_v19 = vadd.f32 %v7118_v34, %v13936_v1  ;;  %v11062_v13 = vpop.f32.mrb[105].mxu0  ;;  %v11652_v34 = vld [vmem:[%s15281_s16 + $0x80] sm:$0xff]   ;;  %10494 = vmatprep.subr.bf16.mxu0 %v11651_v56 }
0x1ff1   : > { %v7121_v42 = vpop.f32.mrb[106].mxu0  ;;  %v11653_v13 = vld [vmem:[%s15281_s16 + $0xc8] sm:$0xff]   ;;  %10495 = vmatpush3.bf16.msra.mxu0 %v11652_v34 }
0x1ff2   : > { %v14374_v11 = vadd.f32 %v7121_v42, %v13939_v36  ;;  %v11063_v4 = vpop.f32.mrb[107].mxu0  ;;  %v7145_v59 = vsel %vm15335_vm5, %v14371_v19, 0.0  ;;  %v11654_v42 = vld [vmem:[%s15281_s16 + $0x88] sm:$0xff]   ;;  %10496 = vmatprep.subr.bf16.mxu0 %v11653_v13 }
0x1ff3   : > { %7146 = vadd.xlane.f32.xlu0 %v7145_v59  ;;  %v11655_v4 = vld [vmem:[%s15281_s16 + $0xd0] sm:$0xff]  }
0x1ff4   : > { %v7148_v57 = vsel %vm15336_vm12, %v14374_v11, 0.0  ;;  %v11656_v59 = vld [vmem:[%s15281_s16 + $0x90] sm:$0xff]  }
0x1ff5   : > { %10497 = vmatpush3.bf16.msra.mxu0 %v11654_v42 }
0x1ff6   : > { %10498 = vmatprep.subr.bf16.mxu0 %v11655_v4 }
0x1ff7   : > { %7149 = vadd.xlane.f32.xlu0 %v7148_v57  ;;  %v7126_v17 = vpop.f32.mrb[108].mxu0  ;;  %v11657_v57 = vld [vmem:[%s15281_s16 + $0xd8] sm:$0xff]  }
0x1ff8   : > { %v14381_v33 = vadd.f32 %v7126_v17, %v13946_v37  ;;  %v11066_v1 = vpop.f32.mrb[109].mxu0  ;;  %v11658_v17 = vld [vmem:[%s15281_s16 + $0x98] sm:$0xff]  }
0x1ff9   : > { %v7129_v6 = vpop.f32.mrb[110].mxu0  ;;  %10499 = vmatpush3.bf16.msra.mxu0 %v11656_v59  ;;  %v11659_v1 = vld [vmem:[%s15281_s16 + $0xe0] sm:$0xff]  }
0x1ffa   : > { %v14384_v24 = vadd.f32 %v7129_v6, %v13949_v9  ;;  %v11067_v36 = vpop.f32.mrb[111].mxu0  ;;  %v7151_v43 = vsel %vm15337_vm13, %v14381_v33, 0.0  ;;  %10500 = vmatprep.subr.bf16.mxu0 %v11657_v57  ;;  %v11660_v6 = vld [vmem:[%s15281_s16 + $0xa0] sm:$0xff]  }
0x1ffb   : > { %7152 = vadd.xlane.f32.xlu0 %v7151_v43  ;;  %v11661_v36 = vld [vmem:[%s15281_s16 + $0xe8] sm:$0xff]  }
0x1ffc   : > { %v7154_v53 = vsel %vm15338_vm8, %v14384_v24, 0.0 }
0x1ffd   : > { %10501 = vmatpush3.bf16.msra.mxu0 %v11658_v17 }
0x1ffe   : > { %10502 = vmatprep.subr.bf16.mxu0 %v11659_v1 }
0x1fff   : > { %7155 = vadd.xlane.f32.xlu0 %v7154_v53 }
0x2001   : > { %10503 = vmatpush3.bf16.msra.mxu0 %v11660_v6  ;;  %v11662_v6 = vld [vmem:[%s15281_s16 + $0xa8] sm:$0xff]  }
0x2002   : > { %10504 = vmatprep.subr.bf16.mxu0 %v11661_v36  ;;  %v11664_v36 = vld [vmem:[%s15281_s16 + $0xb0] sm:$0xff]  }
0x2005   : > { %10505 = vmatpush3.bf16.msra.mxu0 %v11662_v6 }
0x2078   : > { %v7141_v39 = vpop.xlane.xlu0 %7140 }
0x2079   : > { %v7157_v61 = vmul.f32 0.015625, %v7141_v39 }
0x207b   : > { %v14390_v63 = vsub.f32 %v7133_v55, %v7157_v61  ;;  %v11644_v55 = vld [vmem:[%s15277_s11 + $0x54] ss:$8 sps:$4 sm:$0xff]  }
0x207c   : > { %v7144_v37 = vpop.xlane.xlu0 %7143  ;;  %7306 = vmatprep.subr.bf16.mxu1 %v11644_v55 }
0x207d   : > { %v7158_v28 = vmul.f32 0.015625, %v7144_v37  ;;  %v7169_v45 = vmul.f32 %v14390_v63, %v14390_v63  ;;  %7307 = vmatpush1.bf16.msra.mxu1 %v11642_v62 }
0x207e   : > { %7308 = vmatprep.subr.bf16.mxu1 %v11647_v41 }
0x207f   : > { %v14394_v9 = vsub.f32 %v7134_v35, %v7158_v28  ;;  %v7175_v46 = vsel %vm15339_vm2, %v7169_v45, 0.0  ;;  %v11645_v35 = vld [vmem:[%s15277_s11 + $0x60] ss:$8 sps:$4 sm:$0xff]  }
0x2080   : > { %v7147_v8 = vpop.xlane.xlu0 %7146  ;;  %7176 = vadd.xlane.f32.xlu0 %v7175_v46 }
0x2081   : > { %v7159_v49 = vmul.f32 0.015625, %v7147_v8  ;;  %v7170_v40 = vmul.f32 %v14394_v9, %v14394_v9  ;;  %7309 = vmatpush1.bf16.msra.mxu1 %v11645_v35 }
0x2082   : > { %7310 = vmatprep.subr.bf16.mxu1 %v11650_v3 }
0x2083   : > { %v14400_v2 = vsub.f32 %v14371_v19, %v7159_v49  ;;  %v7178_v30 = vsel %vm15340_vm1, %v7170_v40, 0.0 }
0x2084   : > { %v7150_v25 = vpop.xlane.xlu0 %7149  ;;  %7179 = vadd.xlane.f32.xlu0 %v7178_v30 }
0x2085   : > { %v7160_v5 = vmul.f32 0.015625, %v7150_v25  ;;  %v7171_v7 = vmul.f32 %v14400_v2, %v14400_v2  ;;  %7311 = vmatpush1.bf16.msra.mxu1 %v11648_v14 }
0x2087   : > { %v14406_v31 = vsub.f32 %v14374_v11, %v7160_v5  ;;  %v7181_v18 = vsel %vm15341_vm14, %v7171_v7, 0.0 }
0x2088   : > { %v7153_v15 = vpop.xlane.xlu0 %7152  ;;  %7182 = vadd.xlane.f32.xlu0 %v7181_v18 }
0x2089   : > { %v7161_v54 = vmul.f32 0.015625, %v7153_v15  ;;  %v7172_v16 = vmul.f32 %v14406_v31, %v14406_v31  ;;  %v10000_v15 = vld [vmem:[%s15282_s0 + $0x1] ss:$0 sm:$0xff]  ;;  %s15347_s0 = sld [smem:[#allocation19_spill]] }
0x208b   : > { %v14412_v23 = vsub.f32 %v14381_v33, %v7161_v54  ;;  %v7184_v26 = vsel %vm15342_vm15, %v7172_v16, 0.0 }
0x208c   : > { %7185 = vadd.xlane.f32.xlu0 %v7184_v26  ;;  %v7156_v10 = vpop.xlane.xlu0 %7155 }
0x208d   : > { %v7162_v50 = vmul.f32 0.015625, %v7156_v10  ;;  %v7173_v29 = vmul.f32 %v14412_v23, %v14412_v23 }
0x208f   : > { %v14418_v48 = vsub.f32 %v14384_v24, %v7162_v50  ;;  %v7187_v21 = vsel %vm15343_vm3, %v7173_v29, 0.0  ;;  %v11669_v6 = vld [vmem:[%s15347_s0 + $0x10] sm:$0xff]  }
0x2090   : > { %7188 = vadd.xlane.f32.xlu0 %v7187_v21  ;;  %v10001_v21 = vld [vmem:[%s15283_s22 + $0x1] ss:$0 sm:$0xff] }
0x2091   : > { %v7174_v58 = vmul.f32 %v14418_v48, %v14418_v48 }
0x2093   : > { %v7190_v20 = vsel %vm15344_vm10, %v7174_v58, 0.0 }
0x2094   : > { %7191 = vadd.xlane.f32.xlu0 %v7190_v20 }
0x210d   : > { %v7177_v43 = vpop.xlane.xlu0 %7176 }
0x210e   : > { %v7193_v53 = vmul.f32 0.015625, %v7177_v43  ;;  %v11665_v43 = vld [vmem:[%s15281_s16 + $0xf8] sm:$0xff]  }
0x2110   : > { %v7199_v39 = vadd.f32 1e-05, %v7193_v53  ;;  %v11666_v53 = vld [vmem:[%s15281_s16 + $0xb8] sm:$0xff]  }
0x2111   : > { %v7180_v61 = vpop.xlane.xlu0 %7179 }
0x2112   : > { %11899 = vrsqrt.f32 %v7199_v39  ;;  %v7194_v37 = vmul.f32 0.015625, %v7180_v61 }
0x2114   : > { %v7200_v28 = vadd.f32 1e-05, %v7194_v37 }
0x2115   : > { %v7183_v45 = vpop.xlane.xlu0 %7182 }
0x2116   : > { %11901 = vrsqrt.f32 %v7200_v28  ;;  %v7195_v46 = vmul.f32 0.015625, %v7183_v45 }
0x2118   : > { %v7201_v8 = vadd.f32 1e-05, %v7195_v46 }
0x2119   : > { %v7186_v49 = vpop.xlane.xlu0 %7185 }
0x211a   : > { %11903 = vrsqrt.f32 %v7201_v8  ;;  %v7196_v40 = vmul.f32 0.015625, %v7186_v49 }
0x211c   : > { %v11900_v30 = vpop.eup %11899  ;;  %v7202_v25 = vadd.f32 1e-05, %v7196_v40 }
0x211d   : > { %v7211_v5 = vmul.f32 %v11900_v30, %v14390_v63  ;;  %v7189_v7 = vpop.xlane.xlu0 %7188 }
0x211e   : > { %11905 = vrsqrt.f32 %v7202_v25  ;;  %v7197_v18 = vmul.f32 0.015625, %v7189_v7 }
0x211f   : > { %v7223_v50 = vmul.f32 %v10000_v15, %v7211_v5 }
0x2120   : > { %v11902_v54 = vpop.eup %11901  ;;  %v7203_v16 = vadd.f32 1e-05, %v7197_v18 }
0x2121   : > { %v7212_v26 = vmul.f32 %v11902_v54, %v14394_v9  ;;  %v7192_v10 = vpop.xlane.xlu0 %7191  ;;  %v7235_v60 = vadd.f32 %v10001_v21, %v7223_v50 }
0x2122   : > { %11907 = vrsqrt.f32 %v7203_v16  ;;  %v7198_v29 = vmul.f32 0.015625, %v7192_v10 }
0x2123   : > { %v7224_v58 = vmul.f32 %v10000_v15, %v7212_v26 }
0x2124   : > { %v11904_v20 = vpop.eup %11903  ;;  %v7204_v32 = vadd.f32 1e-05, %v7198_v29 }
0x2125   : > { %v7236_v55 = vadd.f32 %v10001_v21, %v7224_v58  ;;  %v7213_v63 = vmul.f32 %v11904_v20, %v14400_v2 }
0x2126   : > { %11909 = vrsqrt.f32 %v7204_v32 }
0x2127   : > { %v7241_v62 = vpack.c.bf16 %v7236_v55, %v7235_v60  ;;  %v7225_v9 = vmul.f32 %v10000_v15, %v7213_v63 }
0x2128   : > { %v11906_v41 = vpop.eup %11905 }
0x2129   : > { %10010 = vmatmul.mubr.msk.bf16.vlgmr.msra.gmra.mrb[112].mxu1 %vm15345_vm4, %v7241_v62  ;;  %v7214_v35 = vmul.f32 %v11906_v41, %v14406_v31  ;;  %v7237_v56 = vadd.f32 %v10001_v21, %v7225_v9 }
0x212a   : > { %7346 = vmatprep.mubr.bf16.mxu1 %v15329_v27 }
0x212b   : > { %v7226_v3 = vmul.f32 %v10000_v15, %v7214_v35 }
0x212c   : > { %v11908_v14 = vpop.eup %11907 }
0x212d   : > { %v7238_v34 = vadd.f32 %v10001_v21, %v7226_v3  ;;  %v7215_v13 = vmul.f32 %v11908_v14, %v14412_v23  ;;  %v11663_v23 = vld [vmem:[%s15281_s16 + $0xf0] sm:$0xff]  }
0x212e   : > { %10506 = vmatprep.subr.bf16.mxu0 %v11663_v23  ;;  %v11670_v23 = vld [vmem:[%s15347_s0 + $0x18] sm:$0xff]  }
0x212f   : > { %v7242_v2 = vpack.c.bf16 %v7238_v34, %v7237_v56  ;;  %v7227_v4 = vmul.f32 %v10000_v15, %v7215_v13  ;;  %10507 = vmatpush3.bf16.msra.mxu0 %v11664_v36 }
0x2130   : > { %v11910_v42 = vpop.eup %11909  ;;  %10508 = vmatprep.subr.bf16.mxu0 %v11665_v43 }
0x2131   : > { %10011 = vmatmul.mubr.msk.bf16.gmra.mrb[116].mxu1 %vm15330_vm0, %v7242_v2  ;;  %v7216_v31 = vmul.f32 %v11910_v42, %v14418_v48  ;;  %v7239_v57 = vadd.f32 %v10001_v21, %v7227_v4  ;;  %v9915_v48 = vld [vmem:[%s15286_s26 + $0x2] sm:$0x3] }
0x2132   : > { %7356 = vmatprep.mubr.bf16.mxu1 %v15329_v27  ;;  %v7248_v27 = vrot.slane %v9915_v48, %v12918_v12  ;;  %v7252_v39 = vrot.slane %v9915_v48, %v12922_v52 }
0x2133   : > { %v7228_v59 = vmul.f32 %v10000_v15, %v7216_v31  ;;  %10509 = vmatpush3.bf16.msra.mxu0 %v11666_v53 }
0x2135   : > { %v7240_v17 = vadd.f32 %v10001_v21, %v7228_v59 }
0x2137   : > { %v7243_v1 = vpack.c.bf16 %v7240_v17, %v7239_v57  ;;  %v11667_v17 = vld [vmem:[%s15347_s0] sm:$0xff]  }
0x2138   : > { %11068 = vmatprep.subr.bf16.mxu1 %v11667_v17 }
0x2139   : > { %10012 = vmatmul.mubr.msk.bf16.gmra.mrb[120].mxu1 %vm15346_vm9, %v7243_v1  ;;  %v11668_v1 = vld [vmem:[%s15347_s0 + $0x8] sm:$0xff]   ;;  %s15348_s0 = sld [smem:[#allocation20_spill]] }
0x213a   : > { %11069 = vmatpush3.bf16.msra.mxu1 %v11667_v17 }
0x213b   : > { %11070 = vmatprep.subr.bf16.mxu1 %v11668_v1 }
0x213e   : > { %11071 = vmatpush3.bf16.msra.mxu1 %v11668_v1 }
0x213f   : > { %11072 = vmatprep.subr.bf16.mxu1 %v11669_v6 }
0x2142   : > { %11073 = vmatpush3.bf16.msra.mxu1 %v11669_v6 }
0x2143   : > { %11074 = vmatprep.subr.bf16.mxu1 %v11670_v23 }
0x2146   : > { %11075 = vmatpush3.bf16.msra.mxu1 %v11670_v23 }
0x21fc   : > { %v7338_v61 = vpop.f32.mrb[112].mxu1 }
0x21fd   : > { %v7339_v37 = vadd.f32 %v7338_v61, %v7248_v27  ;;  %v7340_v28 = vpop.f32.mrb[113].mxu1 }
0x21fe   : > { %v7341_v45 = vadd.f32 %v7340_v28, %v7252_v39  ;;  %v7342_v46 = vpop.f32.mrb[114].mxu1 }
0x21ff   : > { %v7343_v8 = vadd.f32 %v7342_v46, %v7248_v27  ;;  %v7344_v49 = vpop.f32.mrb[115].mxu1  ;;  %v7367_v30 = vmax.f32 %v7339_v37, 0.0 }
0x2200   : > { %v7345_v40 = vadd.f32 %v7344_v49, %v7252_v39  ;;  %v7368_v5 = vmax.f32 %v7341_v45, 0.0 }
0x2201   : > { %v7369_v25 = vmax.f32 %v7343_v8, 0.0 }
0x2202   : > { %v7370_v7 = vmax.f32 %v7345_v40, 0.0 }
0x2203   : > { %v7379_v18 = vpack.c.bf16 %v7369_v25, %v7367_v30 }
0x2204   : > { %v7380_v15 = vpack.c.bf16 %v7370_v7, %v7368_v5  ;;  %v7348_v54 = vpop.f32.mrb[116].mxu1 }
0x2205   : > { %v7349_v16 = vadd.f32 %v7348_v54, %v7248_v27  ;;  %v7350_v26 = vpop.f32.mrb[117].mxu1 }
0x2206   : > { %v7351_v10 = vadd.f32 %v7350_v26, %v7252_v39  ;;  %v7352_v50 = vpop.f32.mrb[118].mxu1  ;;  %7519 = vmatprep.mubr.bf16.mxu0 %v7380_v15 }
0x2207   : > { %v7353_v29 = vadd.f32 %v7352_v50, %v7248_v27  ;;  %v7354_v21 = vpop.f32.mrb[119].mxu1  ;;  %7520 = vmatmul.mubr.bf16.vlgmr.msra.gmra.mrb[112].mxu0 %v7379_v18  ;;  %v7371_v20 = vmax.f32 %v7349_v16, 0.0 }
0x2208   : > { %v7355_v58 = vadd.f32 %v7354_v21, %v7252_v39  ;;  %v7372_v60 = vmax.f32 %v7351_v10, 0.0 }
0x2209   : > { %v7373_v32 = vmax.f32 %v7353_v29, 0.0 }
0x220a   : > { %v7374_v55 = vmax.f32 %v7355_v58, 0.0 }
0x220b   : > { %v7381_v63 = vpack.c.bf16 %v7373_v32, %v7371_v20 }
0x220c   : > { %v7382_v62 = vpack.c.bf16 %v7374_v55, %v7372_v60  ;;  %v7358_v41 = vpop.f32.mrb[120].mxu1 }
0x220d   : > { %v7359_v35 = vadd.f32 %v7358_v41, %v7248_v27  ;;  %v7360_v9 = vpop.f32.mrb[121].mxu1 }
0x220e   : > { %v7361_v3 = vadd.f32 %v7360_v9, %v7252_v39  ;;  %v7362_v14 = vpop.f32.mrb[122].mxu1  ;;  %7525 = vmatprep.mubr.bf16.mxu0 %v7382_v62  ;;  %v14480_v9 = vmov 0.0  }
0x220f   : > { %v7363_v56 = vadd.f32 %v7362_v14, %v7248_v27  ;;  %v7364_v34 = vpop.f32.mrb[123].mxu1  ;;  %7526 = vmatmul.mubr.bf16.gmra.mrb[116].mxu0 %v7381_v63  ;;  %v7375_v2 = vmax.f32 %v7359_v35, 0.0  ;;  %v14488_v14 = vmov 1e+30  }
0x2210   : > { %v7365_v13 = vadd.f32 %v7364_v34, %v7252_v39  ;;  %v7376_v31 = vmax.f32 %v7361_v3, 0.0  ;;  %v10013_v39 = vld [vmem:[%s15288_s3 + $0x1] ss:$0 sm:$0xff]  ;;  %v14486_v3 = vmov 0.0   ;;  %v14492_v34 = vmov 1e+30  }
0x2211   : > { %v7377_v42 = vmax.f32 %v7363_v56, 0.0  ;;  %v14490_v56 = vmov 1e+30  }
0x2212   : > { %v7378_v4 = vmax.f32 %v7365_v13, 0.0  ;;  %v14494_v13 = vmov 1e+30  }
0x2213   : > { %v7383_v59 = vpack.c.bf16 %v7377_v42, %v7375_v2 }
0x2214   : > { %v7384_v57 = vpack.c.bf16 %v7378_v4, %v7376_v31 }
0x2216   : > { %7533 = vmatprep.mubr.bf16.mxu0 %v7384_v57 }
0x2217   : > { %7534 = vmatmul.mubr.bf16.gmra.mrb[120].mxu0 %v7383_v59 }
0x22da   : > { %v10510_v36 = vpop.f32.mrb[112].mxu0 }
0x22db   : > { %v10511_v43 = vpop.f32.mrb[113].mxu0 }
0x22dc   : > { %v10513_v53 = vpop.f32.mrb[114].mxu0 }
0x22dd   : > { %v10514_v48 = vpop.f32.mrb[115].mxu0 }
0x22e2   : > { %v10516_v27 = vpop.f32.mrb[116].mxu0 }
0x22e3   : > { %v10517_v61 = vpop.f32.mrb[117].mxu0 }
0x22e4   : > { %v10518_v37 = vadd.f32 %v10517_v61, %v10516_v27  ;;  %v10519_v28 = vpop.f32.mrb[118].mxu0 }
0x22e5   : > { %v10520_v45 = vpop.f32.mrb[119].mxu0 }
0x22e6   : > { %v7528_v46 = vadd.f32 %v10518_v37, %v10013_v39  ;;  %v10521_v8 = vadd.f32 %v10520_v45, %v10519_v28 }
0x22e8   : > { %v7531_v49 = vadd.f32 %v10521_v8, %v10013_v39  ;;  %v7542_v40 = vadd.f32 %v7528_v46, %v14371_v19 }
0x22ea   : > { %v7543_v30 = vadd.f32 %v7531_v49, %v14374_v11  ;;  %v10522_v25 = vpop.f32.mrb[120].mxu0  ;;  %v10030_v11 = vld [vmem:[%s15348_s0] ss:$0 sm:$0xff]  ;;  %s14496_s0 = smov 0  }
0x22eb   : > { %v10523_v5 = vpop.f32.mrb[121].mxu0 }
0x22ec   : > { %v10524_v7 = vadd.f32 %v10523_v5, %v10522_v25  ;;  %v10525_v18 = vpop.f32.mrb[122].mxu0  ;;  %v7546_v15 = vpack.c.bf16 %v7543_v30, %v7542_v40 }
0x22ed   : > { %v10526_v54 = vpop.f32.mrb[123].mxu0 }
0x22ee   : > { %v7536_v16 = vadd.f32 %v10524_v7, %v10013_v39  ;;  %v10527_v26 = vadd.f32 %v10526_v54, %v10525_v18  ;;  %11076 = vmatprep.mubr.msk.bf16.mxu1 %vm15349_vm11, %v7546_v15 }
0x22f0   : > { %v7539_v10 = vadd.f32 %v10527_v26, %v10013_v39  ;;  %v7544_v50 = vadd.f32 %v7536_v16, %v14381_v33  ;;  %v14482_v33 = vmov 0.0  }
0x22f2   : > { %v7545_v29 = vadd.f32 %v7539_v10, %v14384_v24  ;;  %v14484_v24 = vmov 0.0  }
0x22f4   : > { %v7547_v21 = vpack.c.bf16 %v7545_v29, %v7544_v50 }
0x22f6   : > { %11077 = vmatmul.mubr.msk.bf16.vlgmr.msra.gmra.mrb[124].mxu1 %vm15350_vm6, %v7547_v21 }
0x23c9   : > { %v11078_v19 = vpop.f32.mrb[124].mxu1 }
0x23ca   : > { %v7627_v58 = vpop.f32.mrb[125].mxu1  ;;  %v7636_v32 = vadd.f32 %v11078_v19, %v10030_v11 }
0x23cb   : > { %v11079_v20 = vpop.f32.mrb[126].mxu1  ;;  %v7628_v63 = vadd.f32 %v10030_v11, %v7627_v58 }
0x23cc   : > { %v7639_v60 = vadd.f32 %v11079_v20, %v10030_v11  ;;  %v7630_v55 = vpop.f32.mrb[127].mxu1 }
0x23cd   : > { %v7631_v62 = vadd.f32 %v10030_v11, %v7630_v55 }
0x23ce   : > { %v14476_v41 = vpack.c.bf16 %v7639_v60, %v7636_v32 }
0x23cf   : > { %v14478_v35 = vpack.c.bf16 %v7631_v62, %v7628_v63 }
0x23d0 LB: >> { %s15351_s1 = sld [smem:[#allocation6_spill]]  ;;  %vm15352_vm7 = vcmask 523264   ;;  %s10037_s2 = sshll.u32 %s12116_s0, 9  ;;  %s12116_s0 = sphi %s14496_s0, %s7649_s0   ;;  %v12112_v13 = vphi %v14494_v13, %v15401_v13   ;;  %v12108_v34 = vphi %v14492_v34, %v15400_v34   ;;  %v12104_v56 = vphi %v14490_v56, %v15399_v56   ;;  %v12100_v14 = vphi %v14488_v14, %v15398_v14   ;;  %v12096_v3 = vphi %v14486_v3, %v15397_v3   ;;  %v12092_v24 = vphi %v14484_v24, %v15396_v24   ;;  %v12088_v33 = vphi %v14482_v33, %v15395_v33   ;;  %v12084_v9 = vphi %v14480_v9, %v15394_v9  }
0x23d1   : >> { %10550 = vmatprep.mubr.msk.bf16.mxu0 %vm15352_vm7, %v14478_v35  ;;  %vm15353_vm5 = vmmov %vm15352_vm7  ;;  %s7659_s3 = sshra.s32 %s10037_s2, 3  ;;  %s7649_s0 = sadd.s32 1, %s12116_s0  }
0x23d2   : >> { %10570 = vmatprep.mubr.msk.bf16.mxu1 %vm15353_vm5, %v14478_v35  ;;  %s10038_s5 = sshll.u32 %s7659_s3, 2  ;;  %vm15354_vm12 = vmmov %vm15353_vm5  ;;  %s7727_s3 = sshra.s32 %s10037_s2, 7 }
0x23d3   : >> { %vm15355_vm13 = vmmov %vm15353_vm5  ;;  %p7646_p5 = scmp.ge.s32.totalorder %s7649_s0, 16  }
0x23d4   : >> { %vm15356_vm8 = vmmov %vm15353_vm5  ;;  %s15411_s2 = sld [smem:[#allocation24_spill]] (%p7646_p5)  ;;  %s15412_s0 = sld [smem:[#allocation22_spill]] (%p7646_p5) }
0x23d5   : >> { %vm15357_vm2 = vmmov %vm15353_vm5 }
0x23d6   : >> { %s14533_s6 = scalar_lea.vmem %s15351_s1, %s10038_s5  ;;  %vm15358_vm1 = vmmov %vm15357_vm2  ;;  %s15391_s5 = sld [smem:[#allocation7_spill]] }
0x23d7   : >> { %v14536_v2 = vld [vmem:[%s14533_s6 + $0x40] sm:$0xff]   ;;  %v14554_v57 = vld [vmem:[%s14533_s6 + $0x48] sm:$0xff]   ;;  %vm15359_vm14 = vmmov %vm15358_vm1  ;;  %s15402_s1 = sld [smem:[#allocation21_spill]] (%p7646_p5) }
0x23d8   : >> { %v14539_v42 = vld [vmem:[%s14533_s6 + $0xc0] sm:$0xff]   ;;  %11151 = vmatprep.subr.msk.bf16.mxu0 %vm15354_vm12, %v14536_v2  ;;  %v14559_v1 = vld [vmem:[%s14533_s6 + $0xc8] sm:$0xff]   ;;  %vm15360_vm15 = vmmov %vm15358_vm1 }
0x23d9   : >> { %v14544_v31 = vld [vmem:[%s14533_s6] sm:$0xff]   ;;  %11159 = vmatprep.subr.msk.bf16.mxu1 %vm15355_vm13, %v14539_v42  ;;  %v14564_v6 = vld [vmem:[%s14533_s6 + $0x8] sm:$0xff]   ;;  %v14574_v43 = vld [vmem:[%s14533_s6 + $0x50] sm:$0xff]  }
0x23da   : >> { %v14549_v4 = vld [vmem:[%s14533_s6 + $0x80] sm:$0xff]   ;;  %v7898_v59 = vsel %vm15356_vm8, %v14544_v31, 0  ;;  %v14569_v23 = vld [vmem:[%s14533_s6 + $0x88] sm:$0xff]   ;;  %v7901_v36 = vsel %vm15360_vm15, %v14564_v6, 0  ;;  %vm15361_vm3 = vmmov %vm15358_vm1 }
0x23db   : >> { %10535 = vmatpush3.bf16.xpose.msra.mxu0 %v7898_v59  ;;  %v7946_v17 = vsel %vm15357_vm2, %v14549_v4, 0  ;;  %v7949_v53 = vsel %vm15361_vm3, %v14569_v23, 0  ;;  %v14579_v48 = vld [vmem:[%s14533_s6 + $0xd0] sm:$0xff]   ;;  %vm15362_vm10 = vmmov %vm15358_vm1  ;;  %v14594_v37 = vld [vmem:[%s14533_s6 + $0x58] sm:$0xff]  }
0x23dc   : >> { %10555 = vmatpush3.bf16.xpose.msra.mxu1 %v7946_v17  ;;  %11152 = vmatprep.subr.msk.bf16.mxu0 %vm15358_vm1, %v14554_v57  ;;  %v14584_v27 = vld [vmem:[%s14533_s6 + $0x10] sm:$0xff]   ;;  %vm15363_vm4 = vmmov %vm15358_vm1  ;;  %v14599_v45 = vld [vmem:[%s14533_s6 + $0xd8] sm:$0xff]  }
0x23dd   : >> { %11160 = vmatprep.subr.msk.bf16.mxu1 %vm15359_vm14, %v14559_v1  ;;  %v14589_v39 = vld [vmem:[%s14533_s6 + $0x90] sm:$0xff]   ;;  %vm15364_vm0 = vmmov %vm15358_vm1  ;;  %v14604_v46 = vld [vmem:[%s14533_s6 + $0x18] sm:$0xff]  }
0x23de   : >> { %v7904_v61 = vsel %vm15364_vm0, %v14584_v27, 0  ;;  %vm15365_vm9 = vmmov %vm15364_vm0  ;;  %v14609_v8 = vld [vmem:[%s14533_s6 + $0x98] sm:$0xff]   ;;  %v14614_v40 = vld [vmem:[%s14533_s6 + $0x60] sm:$0xff]  }
0x23df   : >> { %v7952_v28 = vsel %vm15365_vm9, %v14589_v39, 0  ;;  %vm15366_vm11 = vmmov %vm15364_vm0  ;;  %v14619_v25 = vld [vmem:[%s14533_s6 + $0xe0] sm:$0xff]   ;;  %v11933_v15 = vld [vmem:[%s14533_s6 + $0x68] sm:$0xff]  }
0x23e0   : >> { %vm15367_vm6 = vmmov %vm15364_vm0  ;;  %v11931_v5 = vld [vmem:[%s14533_s6 + $0x20] sm:$0xff]   ;;  %v11934_v16 = vld [vmem:[%s14533_s6 + $0xe8] sm:$0xff]  }
0x23e1   : >> { %vm15368_vm7 = vmmov %vm15364_vm0  ;;  %v11932_v7 = vld [vmem:[%s14533_s6 + $0xa0] sm:$0xff]   ;;  %v11935_v26 = vld [vmem:[%s14533_s6 + $0x28] sm:$0xff]  }
0x23e2   : >> { %v7907_v49 = vsel %vm15368_vm7, %v14604_v46, 0  ;;  %vm15369_vm5 = vmmov %vm15364_vm0  ;;  %v11936_v10 = vld [vmem:[%s14533_s6 + $0xa8] sm:$0xff]   ;;  %v11937_v29 = vld [vmem:[%s14533_s6 + $0x70] sm:$0xff]  }
0x23e3   : >> { %10537 = vmatpush3.bf16.xpose.msra.mxu0 %v7901_v36  ;;  %v7955_v30 = vsel %vm15369_vm5, %v14609_v8, 0  ;;  %vm15370_vm12 = vmmov %vm15364_vm0  ;;  %v11938_v19 = vld [vmem:[%s14533_s6 + $0xf0] sm:$0xff]   ;;  %v11941_v32 = vld [vmem:[%s14533_s6 + $0x78] sm:$0xff]  }
0x23e4   : >> { %10557 = vmatpush3.bf16.xpose.msra.mxu1 %v7949_v53  ;;  %11153 = vmatprep.subr.msk.bf16.mxu0 %vm15362_vm10, %v14574_v43  ;;  %vm15371_vm13 = vmmov %vm15364_vm0  ;;  %v11939_v11 = vld [vmem:[%s14533_s6 + $0x30] sm:$0xff]   ;;  %v11942_v55 = vld [vmem:[%s14533_s6 + $0xf8] sm:$0xff]  }
0x23e5   : >> { %11161 = vmatprep.subr.msk.bf16.mxu1 %vm15363_vm4, %v14579_v48  ;;  %vm15372_vm8 = vmmov %vm15364_vm0  ;;  %v11940_v58 = vld [vmem:[%s14533_s6 + $0xb0] sm:$0xff]   ;;  %v7916_v20 = vsel %vm15364_vm0, %v11939_v11, 0  ;;  %v11943_v63 = vld [vmem:[%s14533_s6 + $0x38] sm:$0xff]  }
0x23e6   : >> { %v7910_v18 = vsel %vm15372_vm8, %v11931_v5, 0  ;;  %vm15373_vm2 = vmmov %vm15364_vm0  ;;  %v11944_v62 = vld [vmem:[%s14533_s6 + $0xb8] sm:$0xff]   ;;  %s7729_s6 = scalar_lea.vmem %s15391_s5, %s7727_s3  ;;  %s15413_s5 = sld [smem:[#allocation25_spill]] (%p7646_p5) }
0x23e7   : >> { %v7958_v54 = vsel %vm15373_vm2, %v11932_v7, 0  ;;  %vm15374_vm1 = vmmov %vm15364_vm0 }
0x23e8   : >> { %vm15375_vm14 = vmmov %vm15364_vm0 }
0x23e9   : >> { %vm15376_vm15 = vmmov %vm15364_vm0 }
0x23ea   : >> { %v7913_v50 = vsel %vm15376_vm15, %v11935_v26, 0  ;;  %vm15377_vm3 = vmmov %vm15364_vm0 }
0x23eb   : >> { %10539 = vmatpush3.bf16.xpose.msra.mxu0 %v7904_v61  ;;  %v7961_v21 = vsel %vm15377_vm3, %v11936_v10, 0  ;;  %vm15378_vm10 = vmmov %vm15364_vm0 }
0x23ec   : >> { %10559 = vmatpush3.bf16.xpose.msra.mxu1 %v7952_v28  ;;  %11154 = vmatprep.subr.msk.bf16.mxu0 %vm15366_vm11, %v14594_v37  ;;  %vm15379_vm4 = vmmov %vm15364_vm0 }
0x23ed   : >> { %11162 = vmatprep.subr.msk.bf16.mxu1 %vm15367_vm6, %v14599_v45  ;;  %vm15380_vm9 = vmmov %vm15364_vm0 }
0x23ee   : >> { %v7964_v60 = vsel %vm15380_vm9, %v11940_v58, 0  ;;  %vm15381_vm11 = vmmov %vm15364_vm0 }
0x23ef   : >> { %vm15382_vm6 = vmmov %vm15364_vm0 }
0x23f0   : >> { %vm15383_vm7 = vmmov %vm15364_vm0 }
0x23f1   : >> { %v7919_v59 = vsel %vm15383_vm7, %v11943_v63, 0  ;;  %vm15384_vm5 = vmmov %vm15364_vm0 }
0x23f2   : >> { %v7967_v17 = vsel %vm15384_vm5, %v11944_v62, 0  ;;  %vm15387_vm8 = vmmov %vm15364_vm0 }
0x23f3   : >> { %10541 = vmatpush3.bf16.xpose.msra.mxu0 %v7907_v49  ;;  %vm15388_vm2 = vmmov %vm15364_vm0 }
0x23f4   : >> { %10561 = vmatpush3.bf16.xpose.msra.mxu1 %v7955_v30  ;;  %11155 = vmatprep.subr.msk.bf16.mxu0 %vm15370_vm12, %v14614_v40  ;;  %vm15385_vm12 = vmmov %vm15364_vm0 }
0x23f5   : >> { %11163 = vmatprep.subr.msk.bf16.mxu1 %vm15371_vm13, %v14619_v25  ;;  %vm15386_vm13 = vmmov %vm15364_vm0 }
0x23fb   : >> { %10543 = vmatpush3.bf16.xpose.msra.mxu0 %v7910_v18 }
0x23fc   : >> { %10563 = vmatpush3.bf16.xpose.msra.mxu1 %v7958_v54  ;;  %11156 = vmatprep.subr.msk.bf16.mxu0 %vm15374_vm1, %v11933_v15  ;;  %vm15389_vm1 = vmmov %vm15364_vm0 }
0x23fd   : >> { %11164 = vmatprep.subr.msk.bf16.mxu1 %vm15375_vm14, %v11934_v16  ;;  %vm15390_vm14 = vmmov %vm15364_vm0 }
0x2403   : >> { %10545 = vmatpush3.bf16.xpose.msra.mxu0 %v7913_v50 }
0x2404   : >> { %10565 = vmatpush3.bf16.xpose.msra.mxu1 %v7961_v21  ;;  %11157 = vmatprep.subr.msk.bf16.mxu0 %vm15378_vm10, %v11937_v29 }
0x2405   : >> { %11165 = vmatprep.subr.msk.bf16.mxu1 %vm15379_vm4, %v11938_v19 }
0x240b   : >> { %10547 = vmatpush3.bf16.xpose.msra.mxu0 %v7916_v20 }
0x240c   : >> { %10567 = vmatpush3.bf16.xpose.msra.mxu1 %v7964_v60  ;;  %11158 = vmatprep.subr.msk.bf16.mxu0 %vm15381_vm11, %v11941_v32 }
0x240d   : >> { %11166 = vmatprep.subr.msk.bf16.mxu1 %vm15382_vm6, %v11942_v55 }
0x2413   : >> { %10549 = vmatpush3.bf16.xpose.msra.mxu0 %v7919_v59 }
0x2414   : >> { %10569 = vmatpush3.bf16.xpose.msra.mxu1 %v7967_v17  ;;  %10574 = vmatprep.subr.bf16.mxu0 %v14536_v2  ;;  %v7730_v2 = vld [vmem:[%s7729_s6] sm:$0xf] }
0x2415   : >> { %10602 = vmatprep.subr.bf16.mxu1 %v14539_v42  ;;  %v8119_v42 = vrot.slane %v7730_v2, %v12918_v12 }
0x241a   : >> { %10551 = vmatmul.mubr.msk.bf16.vlgmr.msra.gmra.mrb[0].mxu0 %vm15385_vm12, %v14478_v35 }
0x241b   : >> { %10571 = vmatmul.mubr.msk.bf16.vlgmr.msra.gmra.mrb[0].mxu1 %vm15386_vm13, %v14478_v35  ;;  %10552 = vmatprep.mubr.msk.bf16.mxu0 %vm15387_vm8, %v14476_v41 }
0x241c   : >> { %10572 = vmatprep.mubr.msk.bf16.mxu1 %vm15388_vm2, %v14476_v41  ;;  %10575 = vmatpush3.bf16.msra.mxu0 %v14544_v31 }
0x241d   : >> { %10603 = vmatpush3.bf16.msra.mxu1 %v14549_v4  ;;  %10576 = vmatprep.subr.bf16.mxu0 %v14554_v57  ;;  %v15392_v4 = vsub.s32 2, %v12915_v51 }
0x241e   : >> { %10604 = vmatprep.subr.bf16.mxu1 %v14559_v1  ;;  %v8123_v1 = vrot.slane %v7730_v2, %v12922_v52 }
0x241f   : >> { %v8127_v57 = vrot.slane %v7730_v2, %v15392_v4 }
0x2420   : >> { %10577 = vmatpush3.bf16.msra.mxu0 %v14564_v6 }
0x2421   : >> { %10605 = vmatpush3.bf16.msra.mxu1 %v14569_v23  ;;  %10578 = vmatprep.subr.bf16.mxu0 %v14574_v43  ;;  %v15393_v43 = vsub.s32 3, %v12915_v51 }
0x2422   : >> { %10553 = vmatmul.mubr.msk.bf16.gmra.mrb[4].mxu0 %vm15389_vm1, %v14476_v41  ;;  %10606 = vmatprep.subr.bf16.mxu1 %v14579_v48 }
0x2423   : >> { %10573 = vmatmul.mubr.msk.bf16.gmra.mrb[4].mxu1 %vm15390_vm14, %v14476_v41  ;;  %v8131_v53 = vrot.slane %v7730_v2, %v15393_v43 }
0x2424   : >> { %10579 = vmatpush3.bf16.msra.mxu0 %v14584_v27 }
0x2425   : >> { %10607 = vmatpush3.bf16.msra.mxu1 %v14589_v39  ;;  %10580 = vmatprep.subr.bf16.mxu0 %v14594_v37 }
0x2426   : >> { %10608 = vmatprep.subr.bf16.mxu1 %v14599_v45 }
0x2428   : >> { %10581 = vmatpush3.bf16.msra.mxu0 %v14604_v46 }
0x2429   : >> { %10609 = vmatpush3.bf16.msra.mxu1 %v14609_v8  ;;  %10582 = vmatprep.subr.bf16.mxu0 %v14614_v40 }
0x242a   : >> { %10610 = vmatprep.subr.bf16.mxu1 %v14619_v25 }
0x242c   : >> { %10583 = vmatpush3.bf16.msra.mxu0 %v11931_v5 }
0x242d   : >> { %10611 = vmatpush3.bf16.msra.mxu1 %v11932_v7  ;;  %10584 = vmatprep.subr.bf16.mxu0 %v11933_v15 }
0x242e   : >> { %10612 = vmatprep.subr.bf16.mxu1 %v11934_v16 }
0x2430   : >> { %10585 = vmatpush3.bf16.msra.mxu0 %v11935_v26 }
0x2431   : >> { %10613 = vmatpush3.bf16.msra.mxu1 %v11936_v10  ;;  %10586 = vmatprep.subr.bf16.mxu0 %v11937_v29 }
0x2432   : >> { %10614 = vmatprep.subr.bf16.mxu1 %v11938_v19 }
0x2434   : >> { %10587 = vmatpush3.bf16.msra.mxu0 %v11939_v11 }
0x2435   : >> { %10615 = vmatpush3.bf16.msra.mxu1 %v11940_v58  ;;  %10588 = vmatprep.subr.bf16.mxu0 %v11941_v32 }
0x2436   : >> { %10616 = vmatprep.subr.bf16.mxu1 %v11942_v55 }
0x2438   : >> { %10589 = vmatpush3.bf16.msra.mxu0 %v11943_v63 }
0x2439   : >> { %10617 = vmatpush3.bf16.msra.mxu1 %v11944_v62 }
0x24ed   : >> { %v8027_v31 = vpop.f32.mrb[0].mxu0 }
0x24ee   : >> { %v8099_v6 = vmul.f32 2.0, %v8027_v31  ;;  %v8080_v23 = vpop.f32.mrb[0].mxu1  ;;  %v8029_v36 = vpop.f32.mrb[1].mxu0 }
0x24ef   : >> { %v8101_v48 = vmul.f32 2.0, %v8080_v23  ;;  %v8100_v27 = vmul.f32 2.0, %v8029_v36  ;;  %v8082_v39 = vpop.f32.mrb[1].mxu1  ;;  %v8031_v61 = vpop.f32.mrb[2].mxu0 }
0x24f0   : >> { %v8136_v37 = vsub.f32 %v8119_v42, %v8099_v6  ;;  %v8102_v28 = vmul.f32 2.0, %v8082_v39  ;;  %v8103_v45 = vmul.f32 2.0, %v8031_v61  ;;  %v8084_v46 = vpop.f32.mrb[2].mxu1  ;;  %v8033_v8 = vpop.f32.mrb[3].mxu0 }
0x24f1   : >> { %v8138_v49 = vsub.f32 %v8127_v57, %v8101_v48  ;;  %v8137_v40 = vsub.f32 %v8123_v1, %v8100_v27  ;;  %v8105_v30 = vmul.f32 2.0, %v8084_v46  ;;  %v8104_v25 = vmul.f32 2.0, %v8033_v8  ;;  %v8086_v5 = vpop.f32.mrb[3].mxu1 }
0x24f2   : >> { %v14692_v7 = vsub.f32 %v8119_v42, %v8103_v45  ;;  %v8106_v18 = vmul.f32 2.0, %v8086_v5  ;;  %v8139_v15 = vsub.f32 %v8131_v53, %v8102_v28 }
0x24f3   : >> { %v14694_v54 = vsub.f32 %v8127_v57, %v8105_v30  ;;  %v14696_v16 = vsub.f32 %v8123_v1, %v8104_v25  ;;  %v8152_v26 = vmin.f32 %v8136_v37, %v8137_v40 }
0x24f4   : >> { %v14698_v10 = vsub.f32 %v8131_v53, %v8106_v18 }
0x24f5   : >> { %v8157_v50 = vmin.f32 %v14692_v7, %v14696_v16  ;;  %v8037_v29 = vpop.f32.mrb[4].mxu0  ;;  %v8153_v21 = vmin.f32 %v8152_v26, %v8138_v49 }
0x24f6   : >> { %v8107_v19 = vmul.f32 2.0, %v8037_v29  ;;  %v8090_v11 = vpop.f32.mrb[4].mxu1  ;;  %v8039_v58 = vpop.f32.mrb[5].mxu0 }
0x24f7   : >> { %v8109_v20 = vmul.f32 2.0, %v8090_v11  ;;  %v8108_v32 = vmul.f32 2.0, %v8039_v58  ;;  %v8092_v60 = vpop.f32.mrb[5].mxu1  ;;  %v8041_v55 = vpop.f32.mrb[6].mxu0  ;;  %v8154_v63 = vmin.f32 %v8153_v21, %v8139_v15  ;;  %v8158_v62 = vmin.f32 %v8157_v50, %v14694_v54 }
0x24f8   : >> { %v14703_v59 = vsub.f32 %v8119_v42, %v8107_v19  ;;  %v8110_v17 = vmul.f32 2.0, %v8092_v60  ;;  %v8111_v2 = vmul.f32 2.0, %v8041_v55  ;;  %v8094_v31 = vpop.f32.mrb[6].mxu1  ;;  %v8043_v4 = vpop.f32.mrb[7].mxu0 }
0x24f9   : >> { %v14705_v6 = vsub.f32 %v8127_v57, %v8109_v20  ;;  %v8145_v23 = vsub.f32 %v8123_v1, %v8108_v32  ;;  %v8113_v36 = vmul.f32 2.0, %v8094_v31  ;;  %v8112_v43 = vmul.f32 2.0, %v8043_v4  ;;  %v8096_v48 = vpop.f32.mrb[7].mxu1  ;;  %8155 = vmin.xlane.f32.xlu0 %v8154_v63 }
0x24fa   : >> { %v14707_v27 = vsub.f32 %v8119_v42, %v8111_v2  ;;  %v8114_v39 = vmul.f32 2.0, %v8096_v48  ;;  %v14709_v61 = vsub.f32 %v8131_v53, %v8110_v17  ;;  %v8159_v46 = vmin.f32 %v8158_v62, %v14698_v10 }
0x24fb   : >> { %v14711_v28 = vsub.f32 %v8127_v57, %v8113_v36  ;;  %v14713_v45 = vsub.f32 %v8123_v1, %v8112_v43  ;;  %v8162_v8 = vmin.f32 %v14703_v59, %v8145_v23 }
0x24fc   : >> { %v14717_v30 = vsub.f32 %v8131_v53, %v8114_v39 }
0x24fd   : >> { %v8167_v25 = vmin.f32 %v14707_v27, %v14713_v45  ;;  %8160 = vmin.xlane.f32.xlu0 %v8159_v46  ;;  %v8163_v42 = vmin.f32 %v8162_v8, %v14705_v6 }
0x24ff   : >> { %v8164_v5 = vmin.f32 %v8163_v42, %v14709_v61  ;;  %v8168_v18 = vmin.f32 %v8167_v25, %v14711_v28 }
0x2501   : >> { %8165 = vmin.xlane.f32.xlu1 %v8164_v5  ;;  %v8169_v57 = vmin.f32 %v8168_v18, %v14717_v30 }
0x2505   : >> { %8170 = vmin.xlane.f32.xlu1 %v8169_v57 }
0x2586   : >> { %v14725_v1 = vpop.xlane.xlu0 %8155 }
0x2587   : >> { %vm8175_vm15 = vcmp.le.f32.partialorder %v8136_v37, %v14725_v1  ;;  %vm8176_vm3 = vcmp.le.f32.partialorder %v8137_v40, %v14725_v1  ;;  %vm8177_vm10 = vcmp.le.f32.partialorder %v8138_v49, %v14725_v1  ;;  %vm8178_vm4 = vcmp.le.f32.partialorder %v8139_v15, %v14725_v1 }
0x2588   : >> { %v8191_v53 = vsel %vm8175_vm15, %v12521_v38, 512  ;;  %v8192_v26 = vsel %vm8176_vm3, %v13195_v0, 512  ;;  %vm8473_vm9 = vcmp.lt.f32.partialorder %v14725_v1, %v12112_v13  ;;  %v8193_v29 = vsel %vm8177_vm10, %v13200_v44, 512 }
0x2589   : >> { %vm8207_vm0 = vcmp.lt.s32.totalorder %v8191_v53, %v8192_v26  ;;  %v14743_v37 = vsel %vm8473_vm9, %v14725_v1, %v12112_v13   ;;  %v8194_v49 = vsel %vm8178_vm4, %v13208_v22, 512 }
0x258a   : >> { %v14735_v50 = vpop.xlane.xlu0 %8160  ;;  %v8208_v21 = vsel %vm8207_vm0, %v8191_v53, %v8192_v26 }
0x258b   : >> { %vm8209_vm11 = vcmp.lt.s32.totalorder %v8208_v21, %v8193_v29  ;;  %vm8179_vm6 = vcmp.le.f32.partialorder %v14692_v7, %v14735_v50  ;;  %vm8180_vm7 = vcmp.le.f32.partialorder %v14696_v16, %v14735_v50  ;;  %vm8181_vm5 = vcmp.le.f32.partialorder %v14694_v54, %v14735_v50 }
0x258c   : >> { %v8210_v40 = vsel %vm8209_vm11, %v8208_v21, %v8193_v29  ;;  %v8195_v15 = vsel %vm8179_vm6, %v12521_v38, 512  ;;  %v8196_v19 = vsel %vm8180_vm7, %v13195_v0, 512  ;;  %vm8182_vm13 = vcmp.le.f32.partialorder %v14698_v10, %v14735_v50 }
0x258d   : >> { %vm8211_vm12 = vcmp.lt.s32.totalorder %v8210_v40, %v8194_v49  ;;  %vm8227_vm8 = vcmp.lt.s32.totalorder %v8195_v15, %v8196_v19  ;;  %v8197_v16 = vsel %vm8181_vm5, %v13200_v44, 512  ;;  %v8198_v54 = vsel %vm8182_vm13, %v13208_v22, 512 }
0x258e   : >> { %v14756_v11 = vpop.xlane.xlu1 %8165  ;;  %v8212_v7 = vsel %vm8211_vm12, %v8210_v40, %v8194_v49  ;;  %v8228_v58 = vsel %vm8227_vm8, %v8195_v15, %v8196_v19  ;;  %vm8474_vm5 = vcmp.lt.f32.partialorder %v14735_v50, %v12108_v34 }
0x258f   : >> { %v8214_v20 = vshra.s32 %v8212_v7, 16  ;;  %vm8229_vm2 = vcmp.lt.s32.totalorder %v8228_v58, %v8197_v16  ;;  %vm8183_vm1 = vcmp.le.f32.partialorder %v14703_v59, %v14756_v11  ;;  %vm8184_vm14 = vcmp.le.f32.partialorder %v8145_v23, %v14756_v11 }
0x2590   : >> { %v8230_v32 = vsel %vm8229_vm2, %v8228_v58, %v8197_v16  ;;  %vm8185_vm15 = vcmp.le.f32.partialorder %v14705_v6, %v14756_v11  ;;  %v8199_v10 = vsel %vm8183_vm1, %v12521_v38, 512  ;;  %v8200_v55 = vsel %vm8184_vm14, %v13195_v0, 512 }
0x2591   : >> { %v8216_v60 = vcvt.s32.f32 %v8214_v20  ;;  %vm8231_vm3 = vcmp.lt.s32.totalorder %v8230_v32, %v8198_v54  ;;  %vm8186_vm10 = vcmp.le.f32.partialorder %v14709_v61, %v14756_v11  ;;  %v8201_v59 = vsel %vm8185_vm15, %v13200_v44, 512 }
0x2592   : >> { %v14767_v63 = vpop.xlane.xlu1 %8170  ;;  %v8232_v62 = vsel %vm8231_vm3, %v8230_v32, %v8198_v54  ;;  %vm8247_vm4 = vcmp.lt.s32.totalorder %v8199_v10, %v8200_v55  ;;  %v8202_v6 = vsel %vm8186_vm10, %v13208_v22, 512  ;;  %v14791_v39 = vsel %vm8474_vm5, %v14735_v50, %v12108_v34  }
0x2593   : >> { %8217 = vmin.xlane.f32.xlu0 %v8216_v60  ;;  %v8234_v17 = vshra.s32 %v8232_v62, 16  ;;  %v8248_v2 = vsel %vm8247_vm4, %v8199_v10, %v8200_v55  ;;  %vm8187_vm0 = vcmp.le.f32.partialorder %v14707_v27, %v14767_v63  ;;  %vm8188_vm11 = vcmp.le.f32.partialorder %v14713_v45, %v14767_v63 }
0x2594   : >> { %vm8249_vm6 = vcmp.lt.s32.totalorder %v8248_v2, %v8201_v59  ;;  %vm8189_vm7 = vcmp.le.f32.partialorder %v14711_v28, %v14767_v63  ;;  %v8203_v31 = vsel %vm8187_vm0, %v12521_v38, 512  ;;  %v8204_v36 = vsel %vm8188_vm11, %v13195_v0, 512 }
0x2595   : >> { %v8236_v4 = vcvt.s32.f32 %v8234_v17  ;;  %v8250_v23 = vsel %vm8249_vm6, %v8248_v2, %v8201_v59  ;;  %vm8190_vm13 = vcmp.le.f32.partialorder %v14717_v30, %v14767_v63  ;;  %vm8267_vm8 = vcmp.lt.s32.totalorder %v8203_v31, %v8204_v36 }
0x2596   : >> { %vm8251_vm12 = vcmp.lt.s32.totalorder %v8250_v23, %v8202_v6  ;;  %v8205_v48 = vsel %vm8189_vm7, %v13200_v44, 512  ;;  %v8268_v27 = vsel %vm8267_vm8, %v8203_v31, %v8204_v36  ;;  %vm8475_vm1 = vcmp.lt.f32.partialorder %v14756_v11, %v12104_v56 }
0x2597   : >> { %8237 = vmin.xlane.f32.xlu1 %v8236_v4  ;;  %v8252_v43 = vsel %vm8251_vm12, %v8250_v23, %v8202_v6  ;;  %vm8269_vm2 = vcmp.lt.s32.totalorder %v8268_v27, %v8205_v48  ;;  %v8206_v28 = vsel %vm8190_vm13, %v13208_v22, 512  ;;  %v14801_v46 = vsel %vm8475_vm1, %v14756_v11, %v12104_v56  }
0x2598   : >> { %v8254_v61 = vshra.s32 %v8252_v43, 16  ;;  %v8270_v45 = vsel %vm8269_vm2, %v8268_v27, %v8205_v48  ;;  %vm8476_vm14 = vcmp.lt.f32.partialorder %v14767_v63, %v12100_v14  ;;  %v8213_v18 = vand.u32 65535, %v8212_v7 }
0x2599   : >> { %vm8271_vm15 = vcmp.lt.s32.totalorder %v8270_v45, %v8206_v28  ;;  %v14810_v30 = vsel %vm8476_vm14, %v14767_v63, %v12100_v14   ;;  %v8233_v26 = vand.u32 65535, %v8232_v62  ;;  %v8253_v40 = vand.u32 65535, %v8252_v43  ;;  %v11947_v63 = vld [vmem:[%s15402_s1 + $0x4] ss:$8 sps:$4 sm:$0xff] (%p7646_p5)  }
0x259a   : >> { %v8256_v8 = vcvt.s32.f32 %v8254_v61  ;;  %v8272_v25 = vsel %vm8271_vm15, %v8270_v45, %v8206_v28  ;;  %v8215_v53 = vcvt.s32.f32 %v8213_v18  ;;  %v12160_v27 = vmov 1.0|1.0   ;;  %8548 = vmatprep.subr.bf16.mxu0 (%p7646_p5), %v11947_v63 }
0x259b   : >> { %v8274_v42 = vshra.s32 %v8272_v25, 16  ;;  %v8235_v49 = vcvt.s32.f32 %v8233_v26  ;;  %v8255_v16 = vcvt.s32.f32 %v8253_v40  ;;  %v8273_v58 = vand.u32 65535, %v8272_v25 }
0x259c   : >> { %8257 = vmin.xlane.f32.xlu0 %v8256_v8  ;;  %v15398_v14 = vmov %v14810_v30  ;;  %v15399_v56 = vmov %v14801_v46  ;;  %v15400_v34 = vmov %v14791_v39  ;;  %v15403_v30 = vmov (%p7646_p5), 0   ;;  %v11949_v46 = vld [vmem:[%s15402_s1] ss:$8 sps:$4 sm:$0xff] (%p7646_p5)  }
0x259d   : >> { %v8276_v5 = vcvt.s32.f32 %v8274_v42  ;;  %v8275_v7 = vcvt.s32.f32 %v8273_v58  ;;  %11945 = vset.pattern.permute.xlu1 (%p7646_p5), %v15403_v30 }
0x259f   : >> { %8277 = vmin.xlane.f32.xlu1 %v8276_v5 }
0x2620   : >> { %v8218_v57 = vpop.xlane.xlu0 %8217 }
0x2621   : >> { %vm8219_vm3 = vcmp.eq.f32.partialorder %v8216_v60, %v8218_v57  ;;  %v8224_v10 = vcvt.f32.s32 %v8218_v57 }
0x2622   : >> { %v8220_v29 = vsel %vm8219_vm3, %v8215_v53, inf }
0x2623   : >> { %8221 = vmin.xlane.f32.xlu0 %v8220_v29  ;;  %v8225_v59 = vshll.u32 %v8224_v10, 16 }
0x2624   : >> { %v8238_v21 = vpop.xlane.xlu1 %8237 }
0x2625   : >> { %vm8239_vm10 = vcmp.eq.f32.partialorder %v8236_v4, %v8238_v21  ;;  %v8244_v55 = vcvt.f32.s32 %v8238_v21 }
0x2626   : >> { %v8240_v15 = vsel %vm8239_vm10, %v8235_v49, inf }
0x2627   : >> { %8241 = vmin.xlane.f32.xlu1 %v8240_v15  ;;  %v8245_v2 = vshll.u32 %v8244_v55, 16 }
0x2629   : >> { %v8258_v19 = vpop.xlane.xlu0 %8257 }
0x262a   : >> { %vm8259_vm4 = vcmp.eq.f32.partialorder %v8256_v8, %v8258_v19  ;;  %v8264_v23 = vcvt.f32.s32 %v8258_v19 }
0x262b   : >> { %v8260_v20 = vsel %vm8259_vm4, %v8255_v16, inf }
0x262c   : >> { %8261 = vmin.xlane.f32.xlu0 %v8260_v20  ;;  %v8278_v54 = vpop.xlane.xlu1 %8277  ;;  %v8265_v61 = vshll.u32 %v8264_v23, 16 }
0x262d   : >> { %vm8279_vm0 = vcmp.eq.f32.partialorder %v8276_v5, %v8278_v54  ;;  %v8284_v43 = vcvt.f32.s32 %v8278_v54 }
0x262e   : >> { %v8280_v32 = vsel %vm8279_vm0, %v8275_v7, inf }
0x262f   : >> { %8281 = vmin.xlane.f32.xlu1 %v8280_v32  ;;  %v8285_v45 = vshll.u32 %v8284_v43, 16 }
0x26b0   : >> { %v8222_v60 = vpop.xlane.xlu0 %8221 }
0x26b1   : >> { %v8223_v62 = vcvt.f32.s32 %v8222_v60 }
0x26b3   : >> { %v8226_v31 = vadd.s32 %v8225_v59, %v8223_v62 }
0x26b4   : >> { %v8242_v17 = vpop.xlane.xlu1 %8241 }
0x26b5   : >> { %v8243_v4 = vcvt.f32.s32 %v8242_v17  ;;  %vm8288_vm11 = vcmp.eq.s32.totalorder %v13195_v0, %v8226_v31  ;;  %vm8290_vm8 = vcmp.eq.s32.totalorder %v13208_v22, %v8226_v31  ;;  %vm8287_vm3 = vcmp.eq.s32.totalorder %v12521_v38, %v8226_v31 }
0x26b6   : >> { %vm8289_vm4 = vcmp.eq.s32.totalorder %v13200_v44, %v8226_v31 }
0x26b7   : >> { %v8246_v6 = vadd.s32 %v8245_v2, %v8243_v4 }
0x26b9   : >> { %v8262_v36 = vpop.xlane.xlu0 %8261  ;;  %vm8292_vm6 = vcmp.eq.s32.totalorder %v13195_v0, %v8246_v6  ;;  %vm8294_vm7 = vcmp.eq.s32.totalorder %v13208_v22, %v8246_v6  ;;  %vm8291_vm12 = vcmp.eq.s32.totalorder %v12521_v38, %v8246_v6  ;;  %vm8293_vm2 = vcmp.eq.s32.totalorder %v13200_v44, %v8246_v6 }
0x26ba   : >> { %v8263_v48 = vcvt.f32.s32 %v8262_v36  ;;  %vm10091_vm13 = vmpackc.low %vm8292_vm6, %vm8288_vm11  ;;  %v11952_v36 = vld [vmem:[%s15402_s1 + $0x10] ss:$8 sps:$4 sm:$0xff] (%p7646_p5)  }
0x26bb   : >> { %10092 = vmatprep.mubr.msk.bf16.mxu0 %vm10091_vm13, %v12160_v27  ;;  %vm10099_vm15 = vmpackc.low %vm8294_vm7, %vm8290_vm8 }
0x26bc   : >> { %10100 = vmatprep.mubr.msk.bf16.mxu1 %vm10099_vm15, %v12160_v27  ;;  %vm10093_vm10 = vmpackc.low %vm8291_vm12, %vm8287_vm3  ;;  %v8282_v28 = vpop.xlane.xlu1 %8281  ;;  %v8266_v8 = vadd.s32 %v8265_v61, %v8263_v48 }
0x26bd   : >> { %10094 = vmatmul.mubr.msk.bf16.vlgmr.msra.gmra.mrb[8].mxu0 %vm10093_vm10, %v12160_v27  ;;  %vm10101_vm0 = vmpackc.low %vm8293_vm2, %vm8289_vm4  ;;  %v8283_v25 = vcvt.f32.s32 %v8282_v28 }
0x26be   : >> { %10102 = vmatmul.mubr.msk.bf16.vlgmr.msra.gmra.mrb[8].mxu1 %vm10101_vm0, %v12160_v27  ;;  %vm8296_vm11 = vcmp.eq.s32.totalorder %v13195_v0, %v8266_v8  ;;  %vm8298_vm12 = vcmp.eq.s32.totalorder %v13208_v22, %v8266_v8  ;;  %vm8295_vm3 = vcmp.eq.s32.totalorder %v12521_v38, %v8266_v8  ;;  %vm8297_vm4 = vcmp.eq.s32.totalorder %v13200_v44, %v8266_v8 }
0x26bf   : >> { %v8286_v42 = vadd.s32 %v8285_v45, %v8283_v25  ;;  %8549 = vmatpush1.bf16.msra.mxu0 (%p7646_p5), %v11949_v46 }
0x26c1   : >> { %vm8300_vm6 = vcmp.eq.s32.totalorder %v13195_v0, %v8286_v42  ;;  %vm8302_vm7 = vcmp.eq.s32.totalorder %v13208_v22, %v8286_v42  ;;  %vm8299_vm13 = vcmp.eq.s32.totalorder %v12521_v38, %v8286_v42  ;;  %vm8301_vm15 = vcmp.eq.s32.totalorder %v13200_v44, %v8286_v42  ;;  %v14876_v38 = vld [vmem:[%s12382_s18] sm:$0xff] (%p7646_p5)  ;;  %s15410_s18 = sld [smem:[#allocation23_spill]] (%p7646_p5) }
0x26c2   : >> { %vm10095_vm8 = vmpackc.low %vm8300_vm6, %vm8296_vm11  ;;  %v14879_v0 = vadd.f32 (%p7646_p5), -0.1, %v14876_v38  ;;  %v14884_v41 = vadd.f32 (%p7646_p5), 0.1, %v14876_v38  ;;  %v8641_v35 = vand.u32 (%p7646_p5), 2139095040, %v14876_v38 }
0x26c3   : >> { %10096 = vmatprep.mubr.msk.bf16.mxu0 %vm10095_vm8, %v12160_v27  ;;  %vm10103_vm2 = vmpackc.low %vm8302_vm7, %vm8298_vm12 }
0x26c4   : >> { %10104 = vmatprep.mubr.msk.bf16.mxu1 %vm10103_vm2, %v12160_v27  ;;  %vm10097_vm10 = vmpackc.low %vm8299_vm13, %vm8295_vm3  ;;  %v8851_v22 = vand.u32 (%p7646_p5), 2139095040, %v14879_v0 }
0x26c5   : >> { %10098 = vmatmul.mubr.msk.bf16.gmra.mrb[12].mxu0 %vm10097_vm10, %v12160_v27  ;;  %vm10105_vm0 = vmpackc.low %vm8301_vm15, %vm8297_vm4 }
0x26c6   : >> { %10106 = vmatmul.mubr.msk.bf16.gmra.mrb[12].mxu1 %vm10105_vm0, %v12160_v27  ;;  %8580 = vmatprep.mubr.bf16.mxu0 (%p7646_p5), %v15403_v30 }
0x26c7   : > { %9086 = vmatprep.mubr.f32.mxu1 (%p7646_p5), %v12156_v47 }
0x2790   : >> { %v10590_v5 = vpop.f32.mrb[8].mxu0 }
0x2791   : >> { %v10618_v18 = vpop.f32.mrb[8].mxu1  ;;  %v10591_v57 = vpop.f32.mrb[9].mxu0 }
0x2792   : >> { %v10592_v53 = vadd.f32 %v10591_v57, %v10590_v5  ;;  %v10619_v26 = vpop.f32.mrb[9].mxu1  ;;  %v10593_v29 = vpop.f32.mrb[10].mxu0 }
0x2793   : >> { %v10620_v21 = vadd.f32 %v10619_v26, %v10618_v18  ;;  %v10621_v49 = vpop.f32.mrb[10].mxu1  ;;  %v10594_v40 = vpop.f32.mrb[11].mxu0 }
0x2794   : >> { %v10595_v15 = vadd.f32 %v10594_v40, %v10593_v29  ;;  %v10622_v19 = vpop.f32.mrb[11].mxu1  ;;  %v12161_v29 = vmov (%p7646_p5), 2102212464   ;;  %v12162_v40 = vmov (%p7646_p5), 683565275  }
0x2795   : >> { %v8459_v16 = vadd.f32 %v10620_v21, %v10592_v53  ;;  %v10623_v58 = vadd.f32 %v10622_v19, %v10621_v49  ;;  %v8638_v49 = vand.u32 (%p7646_p5), 2147483647, %v14876_v38 }
0x2797   : >> { %v8485_v20 = vsel %vm8473_vm9, %v8459_v16, %v12096_v3   ;;  %v8462_v54 = vadd.f32 %v10623_v58, %v10595_v15  ;;  %vm8535_vm9 = vcmask (%p7646_p5), 261120   ;;  %v12163_v16 = vmov (%p7646_p5), 920167782  }
0x2798   : >> { %v10596_v32 = vpop.f32.mrb[12].mxu0 }
0x2799   : >> { %v8486_v7 = vsel %vm8474_vm5, %v8462_v54, %v12092_v24   ;;  %v10624_v10 = vpop.f32.mrb[12].mxu1  ;;  %v10597_v60 = vpop.f32.mrb[13].mxu0 }
0x279a   : >> { %v10598_v55 = vadd.f32 %v10597_v60, %v10596_v32  ;;  %v10625_v62 = vpop.f32.mrb[13].mxu1  ;;  %v10599_v59 = vpop.f32.mrb[14].mxu0  ;;  %v15396_v24 = vmov %v8486_v7  ;;  %v8493_v11 = vpack.c.bf16 (%p7646_p5), %v8486_v7, %v8485_v20  ;;  %v8645_v7 = vand.u32 (%p7646_p5), 8388607, %v8638_v49 }
0x279b   : >> { %v10626_v17 = vadd.f32 %v10625_v62, %v10624_v10  ;;  %v10627_v2 = vpop.f32.mrb[14].mxu1  ;;  %v10600_v31 = vpop.f32.mrb[15].mxu0  ;;  %v8642_v24 = vshrl.u32 (%p7646_p5), %v8641_v35, 23  ;;  %v12164_v60 = vmov (%p7646_p5), 2475754826  }
0x279c   : >> { %v10601_v4 = vadd.f32 %v10600_v31, %v10599_v59  ;;  %v10628_v6 = vpop.f32.mrb[15].mxu1  ;;  %7648 = sbr.rel (!%p7646_p5) target bundleno = 9168 (0x23d0), region = 282  ;;  %8499 = vxpose.xlu0.c.b16.start [1/2] (short) (narrow) (%p7646_p5), %v8493_v11, 64  ;;  %v12165_v59 = vmov (%p7646_p5), 2131351028  }
0x279d   : >> { %v8467_v23 = vadd.f32 %v10626_v17, %v10598_v55  ;;  %v10629_v13 = vadd.f32 %v10628_v6, %v10627_v2  ;;  %v10115_v43 = vadd.s32 (%p7646_p5), 4294967169, %v8642_v24 }
0x279f   : >> { %v8487_v1 = vsel %vm8475_vm1, %v8467_v23, %v12088_v33   ;;  %v8470_v3 = vadd.f32 %v10629_v13, %v10601_v4  ;;  %v15401_v13 = vmov %v14743_v37  ;;  %v11950_v37 = vld [vmem:[%s15402_s1 + $0x14] ss:$8 sps:$4 sm:$0xff] (%p7646_p5)   ;;  %v8648_v61 = vadd.s32 (%p7646_p5), 1, %v10115_v43 }
0x27a0   : >> { %v15395_v33 = vmov %v8487_v1  ;;  %8550 = vmatprep.subr.bf16.mxu0 (%p7646_p5), %v11950_v37  ;;  %v8646_v4 = vor.u32 (%p7646_p5), 8388608, %v8645_v7 }
0x27a1   : >> { %v8488_v50 = vsel %vm8476_vm14, %v8470_v3, %v12084_v9   ;;  %v15397_v3 = vmov %v8485_v20  ;;  %8551 = vmatpush1.bf16.msra.mxu0 (%p7646_p5), %v11952_v36  ;;  %v8746_v33 = vand.u32 (%p7646_p5), 2139095040, %v14884_v41  ;;  %vm8649_vm1 = vcmp.gt.s32.totalorder (%p7646_p5), %v8648_v61, 0 }
0x27a2   : >> { %v15394_v9 = vmov %v8488_v50  ;;  %v8494_v39 = vpack.c.bf16 (%p7646_p5), %v8488_v50, %v8487_v1  ;;  %v8650_v25 = vsel (%p7646_p5), %vm8649_vm1, %v8648_v61, 0  ;;  %v8743_v20 = vand.u32 (%p7646_p5), 2147483647, %v14884_v41 }
0x27a3   : > { %v8852_v9 = vshrl.u32 %v8851_v22, 23  ;;  %v8747_v56 = vshrl.u32 %v8746_v33, 23  ;;  %v8652_v42 = vand.u32 31, %v8650_v25  ;;  %v8651_v32 = vshrl.u32 %v8650_v25, 5 }
0x27a4   : > { %8500 = vxpose.xlu0.c.b16.end [2/2] (short) (narrow) %v8494_v39, 64  ;;  %v12166_v50 = vmov 1326507024   ;;  %v8686_v63 = vshll.u32 %v8646_v4, 8  ;;  %v8750_v22 = vand.u32 8388607, %v8743_v20 }
0x27a5   : > { %v10124_v14 = vadd.s32 4294967169, %v8852_v9  ;;  %v10119_v27 = vadd.s32 4294967169, %v8747_v56  ;;  %v8653_v26 = vsub.s32 32, %v8652_v42  ;;  %v8664_v19 = vshll.u32 %v12161_v29, %v8652_v42 }
0x27a6   : > { %v8655_v10 = vshll.u32 %v12162_v40, %v8652_v42  ;;  %v8658_v62 = vshll.u32 %v12164_v60, %v8652_v42  ;;  %v8661_v2 = vshll.u32 %v12165_v59, %v8652_v42  ;;  %v8667_v13 = vshll.u32 %v12163_v16, %v8652_v42 }
0x27a7   : > { %v8858_v48 = vadd.s32 1, %v10124_v14  ;;  %v8753_v28 = vadd.s32 1, %v10119_v27  ;;  %v8665_v58 = vshrl.u32 %v12163_v16, %v8653_v26  ;;  %v8656_v55 = vshrl.u32 %v12164_v60, %v8653_v26 }
0x27a8   : > { %v8659_v17 = vshrl.u32 %v12165_v59, %v8653_v26  ;;  %v8662_v31 = vshrl.u32 %v12161_v29, %v8653_v26  ;;  %v8668_v11 = vshrl.u32 %v12166_v50, %v8653_v26  ;;  %vm8670_vm11 = vcmp.lt.s32.totalorder %v8651_v32, 1 }
0x27a9   : > { %vm8859_vm5 = vcmp.gt.s32.totalorder %v8858_v48, 0  ;;  %vm8754_vm14 = vcmp.gt.s32.totalorder %v8753_v28, 0  ;;  %v8657_v6 = vor.u32 %v8656_v55, %v8655_v10  ;;  %v8666_v23 = vor.u32 %v8665_v58, %v8664_v19 }
0x27aa   : > { %v14890_v45 = vsel %vm8859_vm5, %v8858_v48, 0  ;;  %v8755_v5 = vsel %vm8754_vm14, %v8753_v28, 0  ;;  %v8660_v1 = vor.u32 %v8659_v17, %v8658_v62  ;;  %v8663_v3 = vor.u32 %v8662_v31, %v8661_v2 }
0x27ab   : > { %v14894_v8 = vand.u32 31, %v14890_v45  ;;  %v14896_v18 = vand.u32 31, %v8755_v5  ;;  %vm8671_vm6 = vcmp.lt.s32.totalorder %v8651_v32, 2  ;;  %vm8672_vm7 = vcmp.lt.s32.totalorder %v8651_v32, 3 }
0x27ac   : > { %vm8673_vm13 = vcmp.lt.s32.totalorder %v8651_v32, 4  ;;  %v8669_v46 = vor.u32 %v8668_v11, %v8667_v13  ;;  %v8678_v39 = vsel %vm8670_vm11, %v8657_v6, %v8660_v1  ;;  %v8682_v36 = vsel %vm8670_vm11, %v8660_v1, %v8663_v3 }
0x27ad   : > { %11946 = vset.pattern.permute.xlu0 %v15403_v30  ;;  %v14899_v57 = vsub.s32 32, %v14894_v8  ;;  %v14903_v21 = vshll.u32 %v12161_v29, %v14894_v8  ;;  %v14908_v15 = vshll.u32 %v12162_v40, %v14894_v8  ;;  %v14914_v54 = vsub.s32 32, %v14896_v18 }
0x27ae   : > { %v8679_v37 = vsel %vm8673_vm13, %v8666_v23, 920167782  ;;  %v8756_v35 = vshrl.u32 %v8755_v5, 5  ;;  %v8760_v9 = vshll.u32 %v12162_v40, %v14896_v18  ;;  %v8654_v33 = vshrl.u32 %v12162_v40, %v8653_v26 }
0x27af   : > { %v8683_v14 = vsel %vm8673_vm13, %v8669_v46, 1326507024  ;;  %v8761_v56 = vshrl.u32 %v12164_v60, %v14914_v54  ;;  %v8751_v42 = vor.u32 8388608, %v8750_v22  ;;  %v8759_v19 = vshrl.u32 %v12162_v40, %v14914_v54 }
0x27b0   : > { %v8684_v43 = vsel %vm8672_vm7, %v8666_v23, %v8683_v14  ;;  %v8674_v61 = vsel %vm8670_vm11, %v8654_v33, %v8657_v6  ;;  %v8763_v10 = vshll.u32 %v12164_v60, %v14896_v18  ;;  %v8764_v55 = vshrl.u32 %v12165_v59, %v14914_v54 }
0x27b1   : > { %v8685_v25 = vsel %vm8671_vm6, %v8682_v36, %v8684_v43  ;;  %v8762_v7 = vor.u32 %v8761_v56, %v8760_v9  ;;  %v8766_v32 = vshll.u32 %v12165_v59, %v14896_v18  ;;  %v8767_v17 = vshrl.u32 %v12161_v29, %v14914_v54 }
0x27b2   : > { %v8769_v2 = vshll.u32 %v12161_v29, %v14896_v18  ;;  %v8765_v31 = vor.u32 %v8764_v55, %v8763_v10  ;;  %v8770_v4 = vshrl.u32 %v12163_v16, %v14914_v54  ;;  %v8772_v6 = vshll.u32 %v12163_v16, %v14896_v18 }
0x27b3   : > { %v8773_v23 = vshrl.u32 %v12166_v50, %v14914_v54  ;;  %v8768_v13 = vor.u32 %v8767_v17, %v8766_v32  ;;  %vm8775_vm12 = vcmp.lt.s32.totalorder %v8756_v35, 1  ;;  %vm8776_vm15 = vcmp.lt.s32.totalorder %v8756_v35, 2 }
0x27b4   : > { %vm8777_vm2 = vcmp.lt.s32.totalorder %v8756_v35, 3  ;;  %vm8778_vm3 = vcmp.lt.s32.totalorder %v8756_v35, 4  ;;  %v8783_v46 = vsel %vm8775_vm12, %v8762_v7, %v8765_v31  ;;  %v8791_v56 = vshll.u32 %v8751_v42, 8 }
0x27b5   : > { %v8774_v11 = vor.u32 %v8773_v23, %v8772_v6  ;;  %v8848_v43 = vand.u32 2147483647, %v14879_v0  ;;  %v8872_v10 = vshrl.u32 %v12161_v29, %v14899_v57  ;;  %v8875_v17 = vshrl.u32 %v12163_v16, %v14899_v57 }
0x27b6   : > { %v8877_v29 = vshll.u32 %v12163_v16, %v14894_v8  ;;  %v8878_v6 = vshrl.u32 %v12166_v50, %v14899_v57 }
0x27b7   : > { %v8788_v36 = vsel %vm8778_vm3, %v8774_v11, 1326507024  ;;  %v8855_v42 = vand.u32 8388607, %v8848_v43 }
0x2806   : > { %v8507_v44 = vpop.trf.xlu0 }
0x2807   : > { %10111 = vmatmul.mubr.msk.bf16.vlgmr.msra.gmra.mrb[0].mxu0 %vm8535_vm9, %v8507_v44  ;;  %v8680_v44 = vsel %vm8672_vm7, %v8663_v3, %v8679_v37  ;;  %v8787_v37 = vsel %vm8775_vm12, %v8765_v31, %v8768_v13 }
0x2808   : > { %8590 = vmatprep.mubr.bf16.mxu0 %v15403_v30  ;;  %v8681_v24 = vsel %vm8671_vm6, %v8678_v39, %v8680_v44  ;;  %v8780_v39 = vsel %vm8778_vm3, %v8768_v13, 2102212464 }
0x2809   : > { %v14944_v48 = vmul.u32.u64.low %v8686_v63, %v8681_v24  ;;  %v14945_v27 = vmul.u32.u64.high %v8686_v63, %v8681_v24, %v14944_v48  ;;  %v8781_v44 = vsel %vm8777_vm2, %v8765_v31, %v8780_v39 }
0x280a   : > { %v8508_v34 = vpop.trf.xlu0 }
0x280b   : > { %v8696_v62 = vadd.s32 1, %v14945_v27 }
0x280e   : > { %v8509_v53 = vpop.trf.xlu0 }
0x280f   : > { %10112 = vmatmul.mubr.msk.bf16.gmra.mrb[4].mxu0 %vm8535_vm9, %v8508_v34  ;;  %v8675_v34 = vsel %vm8673_vm13, %v8663_v3, 2102212464  ;;  %v8771_v3 = vor.u32 %v8770_v4, %v8769_v2  ;;  %vm8745_vm13 = vcmp.lt.s32.totalorder %v14884_v41, 0 }
0x2810   : > { %8600 = vmatprep.mubr.bf16.mxu0 %v15403_v30  ;;  %v8676_v28 = vsel %vm8672_vm7, %v8660_v1, %v8675_v34  ;;  %vm15050_vm7 = vcmp.le.f32.partialorder %v8638_v49, 0.7853982 }
0x2811   : > { %v8677_v5 = vsel %vm8671_vm6, %v8674_v61, %v8676_v28  ;;  %v8784_v18 = vsel %vm8778_vm3, %v8771_v3, 920167782  ;;  %v8789_v9 = vsel %vm8777_vm2, %v8771_v3, %v8788_v36  ;;  %v8864_v61 = vshrl.u32 %v12162_v40, %v14899_v57 }
0x2812   : > { %v8693_v58 = vmul.u32 %v8686_v63, %v8677_v5  ;;  %v8785_v22 = vsel %vm8777_vm2, %v8768_v13, %v8784_v18  ;;  %v8790_v14 = vsel %vm8776_vm15, %v8787_v37, %v8789_v9  ;;  %v8869_v40 = vshrl.u32 %v12165_v59, %v14899_v57 }
0x2813   : > { %v8786_v24 = vsel %vm8776_vm15, %v8783_v46, %v8785_v22  ;;  %vm8640_vm6 = vcmp.lt.s32.totalorder %v14876_v38, 0  ;;  %vm15087_vm2 = vcmp.le.f32.partialorder %v8848_v43, 0.7853982 }
0x2817   : > { %10113 = vmatmul.mubr.msk.bf16.gmra.mrb[8].mxu0 %vm8535_vm9, %v8509_v53  ;;  %v14953_v53 = vmul.u32.u64.low %v8686_v63, %v8685_v25  ;;  %v14954_v26 = vmul.u32.u64.high %v8686_v63, %v8685_v25, %v14953_v53  ;;  %v14987_v28 = vmul.u32.u64.low %v8791_v56, %v8790_v14  ;;  %v14988_v25 = vmul.u32.u64.high %v8791_v56, %v8790_v14, %v14987_v28 }
0x2818   : > { %8610 = vmatprep.mubr.bf16.mxu0 %v15403_v30  ;;  %v8510_v30 = vpop.trf.xlu0  ;;  %v14990_v5 = vmul.u32.u64.low %v8791_v56, %v8786_v24  ;;  %v14991_v53 = vmul.u32.u64.high %v8791_v56, %v8786_v24, %v14990_v5 }
0x2819   : > { %vm8695_vm8 = vc.u32 %v14954_v26, %v14944_v48  ;;  %v8694_v28 = vadd.s32 %v14944_v48, %v14954_v26 }
0x281a   : > { %v8697_v1 = vsel %vm8695_vm8, %v8696_v62, %v14945_v27  ;;  %v8861_v27 = vshrl.u32 %v14890_v45, 5  ;;  %v8868_v45 = vshll.u32 %v12164_v60, %v14894_v8  ;;  %v8856_v62 = vor.u32 8388608, %v8855_v42 }
0x281b   : > { %v8698_v63 = vadd.s32 %v8697_v1, %v8693_v58  ;;  %v8866_v58 = vshrl.u32 %v12164_v60, %v14899_v57  ;;  %vm8800_vm10 = vc.u32 %v14988_v25, %v14990_v5  ;;  %v8801_v60 = vadd.s32 1, %v14991_v53 }
0x281c   : > { %v8870_v2 = vor.u32 %v8869_v40, %v8868_v45  ;;  %vm8880_vm4 = vcmp.lt.s32.totalorder %v8861_v27, 1  ;;  %vm8881_vm0 = vcmp.lt.s32.totalorder %v8861_v27, 2  ;;  %v8879_v1 = vor.u32 %v8878_v6, %v8877_v29 }
0x281d   : > { %v8699_v54 = vadd.s32 536870912, %v8698_v63  ;;  %v8867_v32 = vor.u32 %v8866_v58, %v14908_v15  ;;  %v8802_v15 = vsel %vm8800_vm10, %v8801_v60, %v14991_v53  ;;  %vm8883_vm5 = vcmp.lt.s32.totalorder %v8861_v27, 4 }
0x281e   : > { %v8893_v39 = vsel %vm8883_vm5, %v8879_v1, 1326507024 }
0x281f   : > { %10114 = vmatmul.mubr.msk.bf16.gmra.mrb[12].mxu0 %vm8535_vm9, %v8510_v30  ;;  %v8779_v30 = vsel %vm8775_vm12, %v8759_v19, %v8762_v7  ;;  %v14981_v34 = vshrl.u32 %v8699_v54, 30  ;;  %v8871_v7 = vshll.u32 %v12165_v59, %v14894_v8  ;;  %v8876_v59 = vor.u32 %v8875_v17, %v14903_v21 }
0x2820   : > { %9267 = vmatprep.mubr.f32.mxu0 %v12156_v47  ;;  %v8782_v33 = vsel %vm8776_vm15, %v8779_v30, %v8781_v44  ;;  %vm8882_vm9 = vcmp.lt.s32.totalorder %v8861_v27, 3  ;;  %v8888_v11 = vsel %vm8880_vm4, %v8867_v32, %v8870_v2  ;;  %v8884_v8 = vsel %vm8880_vm4, %v8864_v61, %v8867_v32 }
0x2821   : > { %v8701_v35 = vshll.u32 %v14981_v34, 30  ;;  %v8798_v19 = vmul.u32 %v8791_v56, %v8782_v33  ;;  %v8873_v31 = vor.u32 %v8872_v10, %v8871_v7  ;;  %v8894_v36 = vsel %vm8882_vm9, %v8876_v59, %v8893_v39 }
0x2822   : > { %v8896_v54 = vshll.u32 %v8856_v62, 8  ;;  %vm15059_vm12 = vcmp.le.f32.partialorder %v8743_v20, 0.7853982  ;;  %vm8850_vm15 = vcmp.lt.s32.totalorder %v14879_v0, 0 }
0x2823   : > { %v8702_v55 = vsub.s32 %v8698_v63, %v8701_v35  ;;  %v8803_v13 = vadd.s32 %v8802_v15, %v8798_v19  ;;  %v8885_v3 = vsel %vm8883_vm5, %v8873_v31, 2102212464  ;;  %v8889_v63 = vsel %vm8883_vm5, %v8876_v59, 920167782 }
0x2824   : > { %v8890_v16 = vsel %vm8882_vm9, %v8873_v31, %v8889_v63  ;;  %v8886_v57 = vsel %vm8882_vm9, %v8870_v2, %v8885_v3  ;;  %v8892_v46 = vsel %vm8880_vm4, %v8870_v2, %v8873_v31 }
0x2825   : > { %v8704_v4 = vsub.s32 0, %v8702_v55  ;;  %v8804_v30 = vadd.s32 536870912, %v8803_v13  ;;  %v8891_v50 = vsel %vm8881_vm0, %v8888_v11, %v8890_v16  ;;  %v8895_v44 = vsel %vm8881_vm0, %v8892_v46, %v8894_v36 }
0x2826   : > { %v15030_v9 = vmul.u32.u64.low %v8896_v54, %v8895_v44  ;;  %v15031_v33 = vmul.u32.u64.high %v8896_v54, %v8895_v44, %v15030_v9  ;;  %v8887_v14 = vsel %vm8881_vm0, %v8884_v8, %v8886_v57 }
0x2827   : > { %v10116_v23 = vmin.u32 %v8704_v4, %v8702_v55  ;;  %v15025_v37 = vshrl.u32 %v8804_v30, 30  ;;  %v15034_v56 = vmul.u32.u64.low %v8896_v54, %v8891_v50  ;;  %v15035_v61 = vmul.u32.u64.high %v8896_v54, %v8891_v50, %v15034_v56 }
0x2828   : > { %v8903_v45 = vmul.u32 %v8896_v54, %v8887_v14  ;;  %v8799_v4 = vadd.s32 %v14990_v5, %v14988_v25  ;;  %v8990_v9 = vsub.s32 4, %v12915_v51 }
0x2829   : > { %v8706_v21 = vclz %v10116_v23  ;;  %v8806_v22 = vshll.u32 %v15025_v37, 30  ;;  %vm8905_vm14 = vc.u32 %v15031_v33, %v15034_v56  ;;  %v8906_v40 = vadd.s32 1, %v15035_v61 }
0x282b   : > { %v10117_v18 = vadd.s32 4294967294, %v8706_v21  ;;  %v8807_v19 = vsub.s32 %v8803_v13, %v8806_v22  ;;  %v8907_v32 = vsel %vm8905_vm14, %v8906_v40, %v15035_v61  ;;  %vm8835_vm14 = vweird.f32 %v14884_v41 }
0x282c   : > { %v8908_v60 = vadd.s32 %v8907_v32, %v8903_v45  ;;  %v8829_v45 = vsub.s32 4, %v15025_v37 }
0x282d   : > { %vm10118_vm1 = vcmp.lt.s32.totalorder %v10117_v18, 0  ;;  %v8809_v58 = vsub.s32 0, %v8807_v19 }
0x282e   : > { %v8709_v24 = vsel %vm10118_vm1, 0, %v10117_v18  ;;  %v8909_v31 = vadd.s32 536870912, %v8908_v60  ;;  %vm8730_vm1 = vweird.f32 %v14876_v38 }
0x282f   : > { %v8710_v53 = vsub.s32 32, %v8709_v24  ;;  %v8714_v35 = vsub.s32 4294967266, %v8709_v24  ;;  %v8711_v7 = vshll.u32 %v8702_v55, %v8709_v24  ;;  %v10120_v62 = vmin.u32 %v8809_v58, %v8807_v19 }
0x2830   : > { %v15044_v59 = vshrl.u32 %v8909_v31, 30  ;;  %v8904_v24 = vadd.s32 %v15034_v56, %v15031_v33 }
0x2831   : > { %v8715_v42 = vadd.s32 127, %v8714_v35  ;;  %v8712_v10 = vshrl.u32 %v8694_v28, %v8710_v53  ;;  %v8811_v17 = vclz %v10120_v62  ;;  %v8724_v53 = vsub.s32 4, %v14981_v34 }
0x2832   : > { %v8911_v1 = vshll.u32 %v15044_v59, 30  ;;  %v8830_v62 = vsel %vm8745_vm13, %v8829_v45, %v15025_v37 }
0x2833   : > { %v8716_v27 = vshll.u32 %v8715_v42, 23  ;;  %v8713_v2 = vor.u32 %v8712_v10, %v8711_v7  ;;  %v10121_v26 = vadd.s32 4294967294, %v8811_v17  ;;  %v8725_v58 = vsel %vm8640_vm6, %v8724_v53, %v14981_v34 }
0x2834   : > { %v8912_v63 = vsub.s32 %v8908_v60, %v8911_v1  ;;  %v8832_v34 = vsel %vm15059_vm12, 0, %v8830_v62 }
0x2835   : > { %v8717_v48 = vor.u32 4788187, %v8716_v27  ;;  %vm10122_vm11 = vcmp.lt.s32.totalorder %v10121_v26, 0  ;;  %v8720_v55 = vcvt.s32.f32 %v8713_v2  ;;  %v8727_v27 = vsel %vm15050_vm7, 0, %v8725_v58 }
0x2836   : > { %v8814_v29 = vsel %vm10122_vm11, 0, %v10121_v26  ;;  %v8914_v16 = vsub.s32 0, %v8912_v63  ;;  %v8731_v17 = vadd.s32 3, %v8727_v27 }
0x2837   : > { %v8718_v6 = vand.u32 2147483647, %v8717_v48  ;;  %v8815_v15 = vsub.s32 32, %v8814_v29  ;;  %v8816_v23 = vshll.u32 %v8807_v19, %v8814_v29  ;;  %v8819_v13 = vsub.s32 4294967266, %v8814_v29 }
0x2838   : > { %v10125_v5 = vmin.u32 %v8914_v16, %v8912_v63 }
0x2839   : > { %v8817_v3 = vshrl.u32 %v8799_v4, %v8815_v15  ;;  %v8820_v11 = vadd.s32 127, %v8819_v13  ;;  %v8721_v21 = vmul.f32 %v8720_v55, %v8718_v6  ;;  %v8934_v4 = vsub.s32 4, %v15044_v59 }
0x283a   : > { %v8916_v39 = vclz %v10125_v5  ;;  %v8732_v6 = vand.u32 3, %v8731_v17  ;;  %v8836_v55 = vand.u32 3, %v8832_v34 }
0x283b   : > { %v8818_v30 = vor.u32 %v8817_v3, %v8816_v23  ;;  %v8821_v8 = vshll.u32 %v8820_v11, 23  ;;  %v8722_v50 = vxor.u32 2147483648, %v8721_v21  ;;  %v8935_v1 = vsel %vm8850_vm15, %v8934_v4, %v15044_v59 }
0x283c   : > { %v10126_v36 = vadd.s32 4294967294, %v8916_v39  ;;  %vm8734_vm3 = vcmp.eq.s32.totalorder %v8732_v6, 0  ;;  %vm8737_vm10 = vcmp.eq.s32.totalorder %v8732_v6, 2  ;;  %vm8838_vm4 = vcmp.eq.s32.totalorder %v8836_v55, 0 }
0x283d   : > { %v8822_v57 = vor.u32 4788187, %v8821_v8  ;;  %v8825_v25 = vcvt.s32.f32 %v8818_v30  ;;  %v8723_v44 = vsel %vm8640_vm6, %v8722_v50, %v8721_v21  ;;  %vm8841_vm0 = vcmp.eq.s32.totalorder %v8836_v55, 2 }
0x283e   : > { %vm10127_vm8 = vcmp.lt.s32.totalorder %v10126_v36, 0  ;;  %v8726_v49 = vsel %vm15050_vm7, %v14876_v38, %v8723_v44  ;;  %vm8733_vm9 = vcmp.lt.s32.totalorder %v8732_v6, 2  ;;  %vm8837_vm5 = vcmp.lt.s32.totalorder %v8836_v55, 2 }
0x283f   : > { %v8823_v46 = vand.u32 2147483647, %v8822_v57  ;;  %v8919_v14 = vsel %vm10127_vm8, 0, %v10126_v36  ;;  %11954 = vcosq.f32 %v8726_v49  ;;  %vm8958_vm8 = vcmp.eq.s32.totalorder %v12915_v51, 1 }
0x2840   : > { %v8920_v28 = vsub.s32 32, %v8919_v14  ;;  %v8921_v35 = vshll.u32 %v8912_v63, %v8919_v14  ;;  %v8924_v19 = vsub.s32 4294967266, %v8919_v14  ;;  %11956 = vsinq.f32 %v8726_v49 }
0x2841   : > { %v8826_v18 = vmul.f32 %v8825_v25, %v8823_v46  ;;  %v8937_v63 = vsel %vm15087_vm2, 0, %v8935_v1  ;;  %v8966_v49 = vsub.s32 5, %v12915_v51 }
0x2842   : > { %v8922_v42 = vshrl.u32 %v8904_v24, %v8920_v28  ;;  %v8925_v33 = vadd.s32 127, %v8924_v19  ;;  %v8941_v57 = vand.u32 3, %v8937_v63 }
0x2843   : > { %v8827_v22 = vxor.u32 2147483648, %v8826_v18 }
0x2844   : > { %v8923_v56 = vor.u32 %v8922_v42, %v8921_v35  ;;  %v8926_v40 = vshll.u32 %v8925_v33, 23  ;;  %vm8946_vm11 = vcmp.eq.s32.totalorder %v8941_v57, 2  ;;  %vm8943_vm6 = vcmp.eq.s32.totalorder %v8941_v57, 0 }
0x2845   : > { %v8828_v61 = vsel %vm8745_vm13, %v8827_v22, %v8826_v18  ;;  %vm8942_vm7 = vcmp.lt.s32.totalorder %v8941_v57, 2  ;;  %vm8940_vm13 = vweird.f32 %v14879_v0  ;;  %v8979_v35 = vcombine.high %v14876_v38, %v14876_v38 }
0x2846   : > { %v8831_v20 = vsel %vm15059_vm12, %v14884_v41, %v8828_v61  ;;  %v8927_v7 = vor.u32 4788187, %v8926_v40  ;;  %v8930_v10 = vcvt.s32.f32 %v8923_v56  ;;  %vm8957_vm12 = vcmp.eq.s32.totalorder %v12915_v51, 0  ;;  %v9007_v51 = vld [vmem:[%s15410_s18 + $0x8] sm:$0xf] }
0x2847   : > { %11958 = vcosq.f32 %v8831_v20 }
0x2848   : > { %11960 = vsinq.f32 %v8831_v20  ;;  %v8928_v32 = vand.u32 2147483647, %v8927_v7 }
0x2849   : > { %v11955_v2 = vpop.eup %11954 }
0x284a   : > { %v8931_v60 = vmul.f32 %v8930_v10, %v8928_v32  ;;  %v11957_v48 = vpop.eup %11956  ;;  %v8738_v13 = vxor.u32 2147483648, %v11955_v2  ;;  %v9006_v10 = vld [vmem:[%s15410_s18] sm:$0xff] }
0x284b   : > { %v8735_v43 = vxor.u32 2147483648, %v11957_v48 }
0x284c   : > { %v8932_v31 = vxor.u32 2147483648, %v8931_v60  ;;  %v8739_v30 = vsel %vm8737_vm10, %v8738_v13, %v11957_v48 }
0x284d   : > { %v8736_v21 = vsel %vm8734_vm3, %v11955_v2, %v8735_v43  ;;  %vm15414_vm3 = vcmask 523264  }
0x284e   : > { %v8933_v15 = vsel %vm8850_vm15, %v8932_v31, %v8931_v60  ;;  %v8740_v59 = vsel %vm8733_vm9, %v8736_v21, %v8739_v30  ;;  %vm9015_vm15 = vcmask 1043456   ;;  %vm15415_vm10 = vmmov %vm15414_vm3 }
0x284f   : > { %v8936_v23 = vsel %vm15087_vm2, %v14879_v0, %v8933_v15  ;;  %v8741_v46 = vsel %vm8730_vm1, nan, %v8740_v59  ;;  %vm9008_vm2 = vcmask 31744  }
0x2850   : > { %11962 = vcosq.f32 %v8936_v23 }
0x2851   : > { %v11959_v37 = vpop.eup %11958  ;;  %11964 = vsinq.f32 %v8936_v23 }
0x2852   : > { %v11961_v29 = vpop.eup %11960  ;;  %v8842_v11 = vxor.u32 2147483648, %v11959_v37 }
0x2853   : > { %v8839_v3 = vxor.u32 2147483648, %v11961_v29 }
0x2854   : > { %v8843_v16 = vsel %vm8841_vm0, %v8842_v11, %v11961_v29  ;;  %vm12167_vm0 = vmmov 1  }
0x2855   : > { %v8840_v8 = vsel %vm8838_vm4, %v11959_v37, %v8839_v3  ;;  %vm15416_vm4 = vmmov %vm15414_vm3 }
0x2856   : > { %v8844_v25 = vsel %vm8837_vm5, %v8840_v8, %v8843_v16  ;;  %vm11113_vm9 = vmpackc.low %vm9015_vm15, %vm12167_vm0  ;;  %vm9353_vm5 = vcmask 97280  }
0x2857   : > { %v8845_v39 = vsel %vm8835_vm14, nan, %v8844_v25 }
0x2858   : > { %v8846_v44 = vmul.f32 %v8845_v39, %v8741_v46 }
0x285a   : > { %v11963_v5 = vpop.eup %11962  ;;  %v8991_v61 = vrot.slane %v8846_v44, %v8990_v9  ;;  %v8987_v28 = vrot.slane %v8846_v44, %v12918_v12  ;;  %v9004_v9 = vld [vmem:[%s15412_s0] sm:$0xff] }
0x285b   : > { %v11965_v50 = vpop.eup %11964  ;;  %v8947_v18 = vxor.u32 2147483648, %v11963_v5 }
0x285c   : > { %v8944_v36 = vxor.u32 2147483648, %v11965_v50  ;;  %v9001_v19 = vrot.slane %v8991_v61, %v12918_v12  ;;  %v8997_v42 = vrot.slane %v8987_v28, %v12918_v12  ;;  %v9182_v12 = vld [vmem:[%s15411_s2] sm:$0xff] }
0x285d   : > { %v8948_v54 = vsel %vm8946_vm11, %v8947_v18, %v11965_v50  ;;  %9186 = vperm.xlu1 %11945, %v9182_v12  }
0x285e   : > { %v8945_v22 = vsel %vm8943_vm6, %v11963_v5, %v8944_v36 }
0x285f   : > { %v8949_v24 = vsel %vm8942_vm7, %v8945_v22, %v8948_v54 }
0x2860   : > { %v8950_v14 = vsel %vm8940_vm13, nan, %v8949_v24  ;;  %v9005_v24 = vld [vmem:[%s15412_s0 + $0x8] sm:$0xf] }
0x2861   : > { %v8952_v41 = vrot.slane %v8950_v14, 7  ;;  %v9198_v14 = vld [vmem:[%s15413_s5] sm:$0xff] }
0x2863   : > { %v8954_v53 = vmul.f32 %v8952_v41, %v8741_v46  ;;  %v9199_v41 = vld [vmem:[%s12351_s20] sm:$0xff] }
0x2865   : > { %v8967_v20 = vrot.slane %v8954_v53, %v8966_v49  ;;  %v8963_v0 = vrot.slane %v8954_v53, %v12922_v52  ;;  %v9436_v49 = vld [vmem:[%s12356_s27] sm:$0xff] }
0x2866   : > { %9439 = vperm.xlu0 %11946, %v9436_v49  }
0x2867   : > { %v8977_v33 = vrot.slane %v8967_v20, %v12922_v52  ;;  %v8973_v56 = vrot.slane %v8963_v0, %v12922_v52  ;;  %v9183_v52 = vld [vmem:[%s15411_s2 + $0x8] sm:$0xf] }
0x2868   : > { %9191 = vperm.xlu1 %11945, %v9183_v52  }
0x2869   : > { %v8982_v58 = vsel %vm8958_vm8, %v8977_v33, %v8979_v35  ;;  %v8981_v45 = vsel %vm8958_vm8, %v8973_v56, %v14876_v38 }
0x286a   : > { %v9003_v40 = vsel %vm8957_vm12, %v9001_v19, %v8982_v58  ;;  %v9002_v7 = vsel %vm8957_vm12, %v8997_v42, %v8981_v45 }
0x286b   : > { %10128 = vmatprep.subr.msk.mxu1 %vm9015_vm15, %v9003_v40  ;;  %10134 = vmatprep.subr.msk.mxu0 %vm9015_vm15, %v9003_v40 }
0x286c   : > { %10129 = vmatpush1.msk.msra.mxu1 %vm9015_vm15, %v9002_v7  ;;  %10135 = vmatpush1.msk.msra.mxu0 %vm9015_vm15, %v9002_v7 }
0x286d   : > { %10130 = vmatmul.mubr.msk.f32.vlgmr.msra.gmra.mrb[0].mxu1 %vm9008_vm2, %v9006_v10  ;;  %10136 = vmatmul.mubr.msk.f32.vlgmr.msra.gmra.mrb[16].mxu0 %vm9008_vm2, %v9199_v41 }
0x286e   : > { %9092 = vmatprep.mubr.f32.mxu1 %v12156_v47 }
0x2871   : > { %10131 = vmatmul.mubr.msk.f32.gmra.mrb[2].mxu1 %vm9008_vm2, %v9007_v51  ;;  %v9348_v51 = vld [vmem:[%s12361_s4] sm:$0xff] }
0x2872   : > { %9169 = vmatprep.mubr.f32.mxu1 %v12156_v47 }
0x28da   : > { %v8582_v38 = vpop.f32.mrb[0].mxu0 }
0x28db   : > { %v8584_v27 = vpop.f32.mrb[1].mxu0  ;;  %v8621_v32 = vmax.f32 %v8582_v38, 0.0 }
0x28dc   : > { %v8586_v62 = vpop.f32.mrb[2].mxu0  ;;  %v8622_v2 = vmax.f32 %v8584_v27, 0.0  ;;  %v9187_v61 = vpop.permute.xlu1 %9186 }
0x28dd   : > { %v8623_v17 = vmax.f32 %v8586_v62, 0.0  ;;  %v8588_v60 = vpop.f32.mrb[3].mxu0 }
0x28de   : > { %v8624_v34 = vmax.f32 %v8588_v60, 0.0 }
0x28df   : > { %v11082_v48 = vpack.c.bf16 %v8623_v17, %v8621_v32 }
0x28e0   : > { %v11080_v26 = vpack.c.bf16 %v8624_v34, %v8622_v2 }
0x28e2   : > { %v8592_v31 = vpop.f32.mrb[4].mxu0  ;;  %11081 = vmatprep.subr.bf16.mxu1 %v11080_v26 }
0x28e3   : > { %v8594_v4 = vpop.f32.mrb[5].mxu0  ;;  %11083 = vmatpush1.bf16.msra.mxu1 %v11082_v48  ;;  %v8625_v29 = vmax.f32 %v8592_v31, 0.0 }
0x28e4   : > { %v8596_v37 = vpop.f32.mrb[6].mxu0  ;;  %v8626_v15 = vmax.f32 %v8594_v4, 0.0 }
0x28e5   : > { %v8627_v6 = vmax.f32 %v8596_v37, 0.0  ;;  %v8598_v55 = vpop.f32.mrb[7].mxu0  ;;  %v9440_v27 = vpop.permute.xlu0 %9439 }
0x28e6   : > { %v8628_v23 = vmax.f32 %v8598_v55, 0.0 }
0x28e7   : > { %v11086_v13 = vpack.c.bf16 %v8627_v6, %v8625_v29  ;;  %v9192_v35 = vpop.permute.xlu1 %9191 }
0x28e8   : > { %v11084_v1 = vpack.c.bf16 %v8628_v23, %v8626_v15 }
0x28ea   : > { %v8602_v43 = vpop.f32.mrb[8].mxu0  ;;  %11085 = vmatprep.subr.bf16.mxu1 %v11084_v1 }
0x28eb   : > { %v8604_v3 = vpop.f32.mrb[9].mxu0  ;;  %11087 = vmatpush1.bf16.msra.mxu1 %v11086_v13  ;;  %v8629_v63 = vmax.f32 %v8602_v43, 0.0 }
0x28ec   : > { %v8606_v11 = vpop.f32.mrb[10].mxu0  ;;  %v8630_v8 = vmax.f32 %v8604_v3, 0.0 }
0x28ed   : > { %v8631_v21 = vmax.f32 %v8606_v11, 0.0  ;;  %v8608_v30 = vpop.f32.mrb[11].mxu0 }
0x28ee   : > { %v8632_v16 = vmax.f32 %v8608_v30, 0.0 }
0x28ef   : > { %v11090_v57 = vpack.c.bf16 %v8631_v21, %v8629_v63 }
0x28f0   : > { %v11088_v59 = vpack.c.bf16 %v8632_v16, %v8630_v8 }
0x28f2   : > { %v8612_v25 = vpop.f32.mrb[12].mxu0  ;;  %11089 = vmatprep.subr.bf16.mxu1 %v11088_v59 }
0x28f3   : > { %v8614_v5 = vpop.f32.mrb[13].mxu0  ;;  %11091 = vmatpush1.bf16.msra.mxu1 %v11090_v57  ;;  %v8633_v46 = vmax.f32 %v8612_v25, 0.0 }
0x28f4   : > { %v8616_v50 = vpop.f32.mrb[14].mxu0  ;;  %v8634_v36 = vmax.f32 %v8614_v5, 0.0 }
0x28f5   : > { %v8635_v39 = vmax.f32 %v8616_v50, 0.0  ;;  %v8618_v18 = vpop.f32.mrb[15].mxu0 }
0x28f6   : > { %v8636_v54 = vmax.f32 %v8618_v18, 0.0 }
0x28f7   : > { %v11094_v44 = vpack.c.bf16 %v8635_v39, %v8633_v46 }
0x28f8   : > { %v11092_v22 = vpack.c.bf16 %v8636_v54, %v8634_v36 }
0x28fa   : > { %11093 = vmatprep.subr.bf16.mxu1 %v11092_v22 }
0x28fb   : > { %11095 = vmatpush1.bf16.msra.mxu1 %v11094_v44 }
0x28fc   : > { %11097 = vmatprep.subr.bf16.mxu1 %v11080_v26 }
0x28fe   : > { %10132 = vmatmul.mubr.msk.f32.vlgmr.msra.gmra.mrb[0].mxu1 %vm15414_vm3, %v9004_v9 }
0x28ff   : > { %11099 = vmatpush1.bf16.msra.mxu1 %v11082_v48  ;;  %9175 = vmatprep.mubr.f32.mxu1 %v12156_v47 }
0x2900   : > { %11101 = vmatprep.subr.bf16.mxu1 %v11084_v1 }
0x2902   : > { %10133 = vmatmul.mubr.msk.f32.gmra.mrb[2].mxu1 %vm15415_vm10, %v9005_v24 }
0x2903   : > { %11103 = vmatpush1.bf16.msra.mxu1 %v11086_v13  ;;  %9341 = vmatprep.mubr.f32.mxu1 %v12156_v47 }
0x2904   : > { %11105 = vmatprep.subr.bf16.mxu1 %v11088_v59 }
0x2907   : > { %11107 = vmatpush1.bf16.msra.mxu1 %v11090_v57 }
0x2908   : > { %11109 = vmatprep.subr.bf16.mxu1 %v11092_v22 }
0x290b   : > { %11111 = vmatpush1.bf16.msra.mxu1 %v11094_v44 }
0x290e   : > { %10137 = vmatmul.mubr.msk.f32.vlgmr.msra.gmra.mrb[4].mxu1 %vm15416_vm4, %v9198_v14 }
0x290f   : > { %9427 = vmatprep.mubr.f32.mxu1 %v12156_v47 }
0x2940   : > { %v9269_v12 = vpop.f32.mrb[16].mxu0 }
0x2941   : > { %v9271_v52 = vpop.f32.mrb[17].mxu0 }
0x29d1   : > { %v9171_v28 = vpop.f32.mrb[0].mxu1 }
0x29d2   : > { %v9173_v53 = vpop.f32.mrb[1].mxu1  ;;  %v9194_v20 = vadd.f32 %v9187_v61, %v9171_v28 }
0x29d3   : > { %v9195_v0 = vadd.f32 %v9187_v61, %v9173_v53 }
0x29d4   : > { %v9349_v58 = vmax.f32 %v9194_v20, 0.0 }
0x29d5   : > { %v9177_v19 = vpop.f32.mrb[2].mxu1  ;;  %v9350_v40 = vmax.f32 %v9195_v0, 0.0 }
0x29d6   : > { %v9196_v42 = vadd.f32 %v9192_v35, %v9177_v19  ;;  %v9179_v33 = vpop.f32.mrb[3].mxu1 }
0x29d7   : > { %v9197_v56 = vadd.f32 %v9192_v35, %v9179_v33 }
0x29d8   : > { %v9351_v45 = vmax.f32 %v9196_v42, 0.0 }
0x29d9   : > { %v9352_v47 = vmax.f32 %v9197_v56, 0.0 }
0x29da   : > { %v11115_v7 = vpack.c.bf16 %v9351_v45, %v9349_v58 }
0x29db   : > { %v11112_v10 = vpack.c.bf16 %v9352_v47, %v9350_v40 }
0x29dd   : > { %11114 = vmatprep.subr.msk.bf16.mxu1 %vm11113_vm9, %v11112_v10 }
0x29de   : > { %11117 = vmatpush1.bf16.msk.msra.mxu1 %vm11113_vm9, %v11115_v7 }
0x29e1   : > { %10140 = vmatmul.mubr.msk.f32.vlgmr.msra.gmra.mrb[4].mxu1 %vm9353_vm5, %v9348_v51 }
0x2ab4   : > { %v9429_v38 = vpop.f32.mrb[4].mxu1 }
0x2ab5   : > { %v11118_v62 = vadd.f32 %v9429_v38, %v9269_v12  ;;  %v9431_v32 = vpop.f32.mrb[5].mxu1 }
0x2ab6   : > { %v11119_v17 = vadd.f32 %v9431_v32, %v9271_v52 }
0x2ab7   : > { %v9442_v60 = vadd.f32 %v11118_v62, %v9440_v27 }
0x2ab8   : > { %v9443_v2 = vadd.f32 %v11119_v17, %v9440_v27 }
0x2ab9   : > { %9444 = vst [vmem:[%s12386_s23] sm:$0xff] %v9442_v60 }
0x2aba   : > { %9445 = vst [vmem:[%s12386_s23 + $0x8] sm:$0xff] %v9443_v2 }
0x2abb PF: > { %s87_s15 = sadd.s32 1, %s12044_s15  }
0x2abc   : > { %p84_p6 = scmp.ge.s32.totalorder %s87_s15, 4  }
0x2abe   :  { %86 = sbr.rel (!%p84_p6) target bundleno = 64 (0x40), region = 293 }

</bundles_post_ra>
